<compile_context>
chip_gen: v5e
topology: v5e:2x2
jax: 0.10.0
libtpu: 0.0.40
codegen_flags: <defaults>
</compile_context>

<pallas_src>
import functools

import jax
import jax.numpy as jnp
from jax import lax
from jax.experimental import pallas as pl
from jax.experimental.pallas import tpu as pltpu


SUBLANES = 8     # f32 sublane count
LANES = 128      # lane count


def _round_up(n, m):
    return ((n + m - 1) // m) * m


# ----------------------------- Pallas kernel --------------------------------

def _encoder_kernel(xp_ref, whh1_ref, w2_ref, b2_ref, out_ref):
    """Fused 2-layer LSTM recurrence, single invocation, T fully unrolled.

    xp_ref  : (T, Bp, 4*H1)   precomputed x @ W_ih1 + b1 (off the serial path)
    whh1_ref: (H1, 4*H1)      layer-1 recurrent weights
    w2_ref  : (H1+H2p, 4*H2p) stacked [W_ih2 ; W_hh2], gate columns padded
    b2_ref  : (1, 4*H2p)      layer-2 bias (b_ih + b_hh), gate columns padded
    out_ref : (Bp, H2p)       last-timestep hidden of layer 2 (padded)
    """
    T, Bp, _ = xp_ref.shape
    H1 = whh1_ref.shape[0]
    H2p = out_ref.shape[1]

    # Weights are tiny (<1 MiB): load once, keep resident across the unrolled loop.
    whh1 = whh1_ref[...]
    w2 = w2_ref[...]
    b2 = b2_ref[...]

    def cell(gates, c, H):
        # PyTorch LSTM cell, gate order [i, f, g, o]; all slices lane-aligned.
        i = jax.nn.sigmoid(gates[:, 0:H])
        f = jax.nn.sigmoid(gates[:, H:2 * H])
        g = jnp.tanh(gates[:, 2 * H:3 * H])
        o = jax.nn.sigmoid(gates[:, 3 * H:4 * H])
        c_new = f * c + i * g
        h_new = o * jnp.tanh(c_new)
        return h_new, c_new

    def step(t, carry):
        h1, c1, h2, c2 = carry
        # Layer 1: only the recurrent matmul is on the serial chain.
        gates1 = xp_ref[t] + jnp.dot(h1, whh1,
                                     preferred_element_type=jnp.float32)
        h1, c1 = cell(gates1, c1, H1)
        # Layer 2: single fused matmul for input + recurrent paths.
        hin = jnp.concatenate([h1, h2], axis=-1)              # (Bp, H1+H2p)
        gates2 = jnp.dot(hin, w2,
                         preferred_element_type=jnp.float32) + b2
        h2, c2 = cell(gates2, c2, H2p)
        return h1, c1, h2, c2

    init = (jnp.zeros((Bp, H1), jnp.float32),
            jnp.zeros((Bp, H1), jnp.float32),
            jnp.zeros((Bp, H2p), jnp.float32),
            jnp.zeros((Bp, H2p), jnp.float32))
    _, _, h2, _ = lax.fori_loop(0, T, step, init, unroll=True)
    out_ref[...] = h2.astype(out_ref.dtype)


# ------------------------------- wrapper -------------------------------------

@functools.partial(jax.jit, static_argnums=(2, 3))
def encoder_forward(x, params, seq_len, n_features):
    """x: any shape reshapeable to (B, seq_len, n_features). Returns (B, embedding_dim)."""
    wih1, whh1, b1, wih2, whh2, b2 = params
    B = x.shape[0]
    T, F = seq_len, n_features
    x = jnp.reshape(x, (B, T, F)).astype(jnp.float32)

    H1 = whh1.shape[0]            # hidden_dim (128)
    H2 = whh2.shape[0]            # embedding_dim (64)
    Bp = _round_up(max(B, SUBLANES), SUBLANES)
    H2p = _round_up(max(H2, LANES), LANES)

    # Hoist the layer-1 input projection off the recurrence critical path:
    # one (T*B, F) x (F, 4*H1) matmul instead of T tiny matmuls in the kernel.
    x_proj = jnp.einsum('btf,fg->tbg', x, wih1) + b1             # (T, B, 4*H1)
    x_proj = jnp.pad(x_proj, ((0, 0), (0, Bp - B), (0, 0)))      # batch -> sublanes

    # Layer 2: pad each gate's column block H2 -> H2p so gate slices are whole
    # vregs, then stack [W_ih2 ; W_hh2] along the contraction dim so the per-step
    # cell does a single fused matmul.
    def pad_gate_cols(w, h, hp):
        w4 = w.reshape(w.shape[0], 4, h)
        w4 = jnp.pad(w4, ((0, 0), (0, 0), (0, hp - h)))
        return w4.reshape(w.shape[0], 4 * hp)

    wih2_p = pad_gate_cols(wih2, H2, H2p)                        # (H1, 4*H2p)
    whh2_p = jnp.pad(pad_gate_cols(whh2, H2, H2p),
                     ((0, H2p - H2), (0, 0)))                    # (H2p, 4*H2p)
    w2_stacked = jnp.concatenate([wih2_p, whh2_p], axis=0)       # (H1+H2p, 4*H2p)
    b2_p = pad_gate_cols(b2, H2, H2p)                            # (1, 4*H2p)

    vmem = pl.BlockSpec(memory_space=pltpu.MemorySpace.VMEM)
    out_padded = pl.pallas_call(
        _encoder_kernel,
        out_shape=jax.ShapeDtypeStruct((Bp, H2p), jnp.float32),
        in_specs=[vmem, vmem, vmem, vmem],
        out_specs=vmem,
    )(x_proj, whh1, w2_stacked, b2_p)

    return out_padded[:B, :H2]


# --------------------------- parameter init ----------------------------------

def init_lstm_params(key, input_size, hidden_size):
    """PyTorch-style U(-1/sqrt(H), 1/sqrt(H)) init; weights pre-transposed to
    (in, 4H) with gate order [i, f, g, o]; the two biases pre-summed."""
    bound = 1.0 / float(hidden_size) ** 0.5
    k0, k1, k2, k3 = jax.random.split(key, 4)
    w_ih = jax.random.uniform(k0, (input_size, 4 * hidden_size),
                              minval=-bound, maxval=bound, dtype=jnp.float32)
    w_hh = jax.random.uniform(k1, (hidden_size, 4 * hidden_size),
                              minval=-bound, maxval=bound, dtype=jnp.float32)
    b_ih = jax.random.uniform(k2, (4 * hidden_size,),
                              minval=-bound, maxval=bound, dtype=jnp.float32)
    b_hh = jax.random.uniform(k3, (4 * hidden_size,),
                              minval=-bound, maxval=bound, dtype=jnp.float32)
    bias = (b_ih + b_hh).reshape(1, 4 * hidden_size)
    return w_ih, w_hh, bias


# ------------------------- pure-JAX reference --------------------------------

def _lstm_ref(x_tm, w_ih, w_hh, b):
    """x_tm: (T, B, F) -> outputs (T, B, H). Matches PyTorch LSTM semantics."""
    H = w_hh.shape[0]
    B = x_tm.shape[1]

    def step(carry, x_t):
        h, c = carry
        gates = x_t @ w_ih + h @ w_hh + b
        i = jax.nn.sigmoid(gates[:, 0:H])
        f = jax.nn.sigmoid(gates[:, H:2 * H])
        g = jnp.tanh(gates[:, 2 * H:3 * H])
        o = jax.nn.sigmoid(gates[:, 3 * H:4 * H])
        c = f * c + i * g
        h = o * jnp.tanh(c)
        return (h, c), h

    init = (jnp.zeros((B, H), jnp.float32), jnp.zeros((B, H), jnp.float32))
    _, hs = lax.scan(step, init, x_tm)
    return hs


def encoder_ref(x, params, seq_len, n_features):
    wih1, whh1, b1, wih2, whh2, b2 = params
    B = x.shape[0]
    x = jnp.reshape(x, (B, seq_len, n_features)).astype(jnp.float32)
    x_tm = jnp.transpose(x, (1, 0, 2))
    h1_seq = _lstm_ref(x_tm, wih1, whh1, b1)
    h2_seq = _lstm_ref(h1_seq, wih2, whh2, b2)
    return h2_seq[-1]                                            # (B, embedding_dim)


# --------------------------------- main ---------------------------------------

if __name__ == "__main__":
    batch = 2
    seq_len = 8
    n_features = 4
    embedding_dim = 64
    hidden_dim = 2 * embedding_dim                               # 128

    root = jax.random.PRNGKey(0)
    kx, k1, k2 = jax.random.split(root, 3)

    x = jax.random.normal(kx, (batch, seq_len, n_features), dtype=jnp.float32)

    p1 = init_lstm_params(k1, n_features, hidden_dim)            # rnn1
    p2 = init_lstm_params(k2, hidden_dim, embedding_dim)         # rnn2
    params = (*p1, *p2)

    out = encoder_forward(x, params, seq_len, n_features)
    out = jax.block_until_ready(out)

    ref = jax.block_until_ready(encoder_ref(x, params, seq_len, n_features))
    assert out.shape == (batch, embedding_dim), out.shape
    assert jnp.allclose(out, ref, atol=5e-5, rtol=1e-5), \
        f"max abs err = {jnp.max(jnp.abs(out - ref))}"

    print("KERNEL_OK")
</pallas_src>

<mosaic_0001>
module attributes {stable_mosaic.version = 11 : i64} {
  func.func @_encoder_kernel(%arg0: memref<8x8x512xf32, #tpu.memory_space<vmem>>, %arg1: memref<128x512xf32, #tpu.memory_space<vmem>>, %arg2: memref<256x512xf32, #tpu.memory_space<vmem>>, %arg3: memref<1x512xf32, #tpu.memory_space<vmem>>, %arg4: memref<8x128xf32, #tpu.memory_space<vmem>>) attributes {dimension_semantics = [], scalar_prefetch = 0 : i64, scratch_operands = 0 : i64, tpu.core_type = #tpu.core_type<tc>} {
    %c0 = arith.constant 0 : index
    %c0_0 = arith.constant 0 : index
    %0 = vector.load %arg1[%c0, %c0_0] : memref<128x512xf32, #tpu.memory_space<vmem>>, vector<128x512xf32>
    %c0_1 = arith.constant 0 : index
    %c0_2 = arith.constant 0 : index
    %1 = vector.load %arg2[%c0_1, %c0_2] : memref<256x512xf32, #tpu.memory_space<vmem>>, vector<256x512xf32>
    %c0_3 = arith.constant 0 : index
    %c0_4 = arith.constant 0 : index
    %2 = vector.load %arg3[%c0_3, %c0_4] : memref<1x512xf32, #tpu.memory_space<vmem>>, vector<1x512xf32>
    %cst = arith.constant 0.000000e+00 : f32
    %3 = vector.broadcast %cst : f32 to vector<8x128xf32>
    %cst_5 = arith.constant 0.000000e+00 : f32
    %4 = vector.broadcast %cst_5 : f32 to vector<8x128xf32>
    %cst_6 = arith.constant 0.000000e+00 : f32
    %5 = vector.broadcast %cst_6 : f32 to vector<8x128xf32>
    %cst_7 = arith.constant 0.000000e+00 : f32
    %6 = vector.broadcast %cst_7 : f32 to vector<8x128xf32>
    %c0_i32 = arith.constant 0 : i32
    %7 = arith.index_cast %c0_i32 : i32 to index
    %c0_8 = arith.constant 0 : index
    %c0_9 = arith.constant 0 : index
    %8 = vector.load %arg0[%7, %c0_8, %c0_9] : memref<8x8x512xf32, #tpu.memory_space<vmem>>, vector<1x8x512xf32>
    %9 = vector.shape_cast %8 : vector<1x8x512xf32> to vector<8x512xf32>
    %cst_10 = arith.constant dense<0.000000e+00> : vector<8x512xf32>
    %10 = tpu.matmul %3, %0, %cst_10 {dimension_numbers = #tpu.dot_dimension_numbers<[1], [0], [0], [1], [0, 0, 1, 1], [], []>} : vector<8x128xf32>, vector<128x512xf32>, vector<8x512xf32> -> vector<8x512xf32>
    %11 = arith.addf %9, %10 : vector<8x512xf32>
    %12 = vector.extract_strided_slice %11 {offsets = [0, 0], sizes = [8, 128], strides = [1, 1]} : vector<8x512xf32> to vector<8x128xf32>
    %13 = arith.negf %12 : vector<8x128xf32>
    %14 = math.exp %13 : vector<8x128xf32>
    %cst_11 = arith.constant 1.000000e+00 : f32
    %15 = vector.broadcast %cst_11 : f32 to vector<8x128xf32>
    %16 = arith.addf %15, %14 : vector<8x128xf32>
    %17 = arith.divf %15, %16 : vector<8x128xf32>
    %18 = vector.extract_strided_slice %11 {offsets = [0, 128], sizes = [8, 128], strides = [1, 1]} : vector<8x512xf32> to vector<8x128xf32>
    %19 = arith.negf %18 : vector<8x128xf32>
    %20 = math.exp %19 : vector<8x128xf32>
    %cst_12 = arith.constant 1.000000e+00 : f32
    %21 = vector.broadcast %cst_12 : f32 to vector<8x128xf32>
    %22 = arith.addf %21, %20 : vector<8x128xf32>
    %23 = arith.divf %21, %22 : vector<8x128xf32>
    %24 = vector.extract_strided_slice %11 {offsets = [0, 256], sizes = [8, 128], strides = [1, 1]} : vector<8x512xf32> to vector<8x128xf32>
    %25 = math.tanh %24 : vector<8x128xf32>
    %26 = vector.extract_strided_slice %11 {offsets = [0, 384], sizes = [8, 128], strides = [1, 1]} : vector<8x512xf32> to vector<8x128xf32>
    %27 = arith.negf %26 : vector<8x128xf32>
    %28 = math.exp %27 : vector<8x128xf32>
    %cst_13 = arith.constant 1.000000e+00 : f32
    %29 = vector.broadcast %cst_13 : f32 to vector<8x128xf32>
    %30 = arith.addf %29, %28 : vector<8x128xf32>
    %31 = arith.divf %29, %30 : vector<8x128xf32>
    %32 = arith.mulf %23, %4 : vector<8x128xf32>
    %33 = arith.mulf %17, %25 : vector<8x128xf32>
    %34 = arith.addf %32, %33 : vector<8x128xf32>
    %35 = math.tanh %34 : vector<8x128xf32>
    %36 = arith.mulf %31, %35 : vector<8x128xf32>
    %37 = tpu.concatenate %36, %5 in 1 : vector<8x128xf32>, vector<8x128xf32> -> vector<8x256xf32>
    %cst_14 = arith.constant dense<0.000000e+00> : vector<8x512xf32>
    %38 = tpu.matmul %37, %1, %cst_14 {dimension_numbers = #tpu.dot_dimension_numbers<[1], [0], [0], [1], [0, 0, 1, 1], [], []>} : vector<8x256xf32>, vector<256x512xf32>, vector<8x512xf32> -> vector<8x512xf32>
    %39 = vector.broadcast %2 : vector<1x512xf32> to vector<8x512xf32>
    %40 = arith.addf %38, %39 : vector<8x512xf32>
    %41 = vector.extract_strided_slice %40 {offsets = [0, 0], sizes = [8, 128], strides = [1, 1]} : vector<8x512xf32> to vector<8x128xf32>
    %42 = arith.negf %41 : vector<8x128xf32>
    %43 = math.exp %42 : vector<8x128xf32>
    %cst_15 = arith.constant 1.000000e+00 : f32
    %44 = vector.broadcast %cst_15 : f32 to vector<8x128xf32>
    %45 = arith.addf %44, %43 : vector<8x128xf32>
    %46 = arith.divf %44, %45 : vector<8x128xf32>
    %47 = vector.extract_strided_slice %40 {offsets = [0, 128], sizes = [8, 128], strides = [1, 1]} : vector<8x512xf32> to vector<8x128xf32>
    %48 = arith.negf %47 : vector<8x128xf32>
    %49 = math.exp %48 : vector<8x128xf32>
    %cst_16 = arith.constant 1.000000e+00 : f32
    %50 = vector.broadcast %cst_16 : f32 to vector<8x128xf32>
    %51 = arith.addf %50, %49 : vector<8x128xf32>
    %52 = arith.divf %50, %51 : vector<8x128xf32>
    %53 = vector.extract_strided_slice %40 {offsets = [0, 256], sizes = [8, 128], strides = [1, 1]} : vector<8x512xf32> to vector<8x128xf32>
    %54 = math.tanh %53 : vector<8x128xf32>
    %55 = vector.extract_strided_slice %40 {offsets = [0, 384], sizes = [8, 128], strides = [1, 1]} : vector<8x512xf32> to vector<8x128xf32>
    %56 = arith.negf %55 : vector<8x128xf32>
    %57 = math.exp %56 : vector<8x128xf32>
    %cst_17 = arith.constant 1.000000e+00 : f32
    %58 = vector.broadcast %cst_17 : f32 to vector<8x128xf32>
    %59 = arith.addf %58, %57 : vector<8x128xf32>
    %60 = arith.divf %58, %59 : vector<8x128xf32>
    %61 = arith.mulf %52, %6 : vector<8x128xf32>
    %62 = arith.mulf %46, %54 : vector<8x128xf32>
    %63 = arith.addf %61, %62 : vector<8x128xf32>
    %64 = math.tanh %63 : vector<8x128xf32>
    %65 = arith.mulf %60, %64 : vector<8x128xf32>
    %c1_i32 = arith.constant 1 : i32
    %66 = arith.index_cast %c1_i32 : i32 to index
    %c0_18 = arith.constant 0 : index
    %c0_19 = arith.constant 0 : index
    %67 = vector.load %arg0[%66, %c0_18, %c0_19] : memref<8x8x512xf32, #tpu.memory_space<vmem>>, vector<1x8x512xf32>
    %68 = vector.shape_cast %67 : vector<1x8x512xf32> to vector<8x512xf32>
    %cst_20 = arith.constant dense<0.000000e+00> : vector<8x512xf32>
    %69 = tpu.matmul %36, %0, %cst_20 {dimension_numbers = #tpu.dot_dimension_numbers<[1], [0], [0], [1], [0, 0, 1, 1], [], []>} : vector<8x128xf32>, vector<128x512xf32>, vector<8x512xf32> -> vector<8x512xf32>
    %70 = arith.addf %68, %69 : vector<8x512xf32>
    %71 = vector.extract_strided_slice %70 {offsets = [0, 0], sizes = [8, 128], strides = [1, 1]} : vector<8x512xf32> to vector<8x128xf32>
    %72 = arith.negf %71 : vector<8x128xf32>
    %73 = math.exp %72 : vector<8x128xf32>
    %cst_21 = arith.constant 1.000000e+00 : f32
    %74 = vector.broadcast %cst_21 : f32 to vector<8x128xf32>
    %75 = arith.addf %74, %73 : vector<8x128xf32>
    %76 = arith.divf %74, %75 : vector<8x128xf32>
    %77 = vector.extract_strided_slice %70 {offsets = [0, 128], sizes = [8, 128], strides = [1, 1]} : vector<8x512xf32> to vector<8x128xf32>
    %78 = arith.negf %77 : vector<8x128xf32>
    %79 = math.exp %78 : vector<8x128xf32>
    %cst_22 = arith.constant 1.000000e+00 : f32
    %80 = vector.broadcast %cst_22 : f32 to vector<8x128xf32>
    %81 = arith.addf %80, %79 : vector<8x128xf32>
    %82 = arith.divf %80, %81 : vector<8x128xf32>
    %83 = vector.extract_strided_slice %70 {offsets = [0, 256], sizes = [8, 128], strides = [1, 1]} : vector<8x512xf32> to vector<8x128xf32>
    %84 = math.tanh %83 : vector<8x128xf32>
    %85 = vector.extract_strided_slice %70 {offsets = [0, 384], sizes = [8, 128], strides = [1, 1]} : vector<8x512xf32> to vector<8x128xf32>
    %86 = arith.negf %85 : vector<8x128xf32>
    %87 = math.exp %86 : vector<8x128xf32>
    %cst_23 = arith.constant 1.000000e+00 : f32
    %88 = vector.broadcast %cst_23 : f32 to vector<8x128xf32>
    %89 = arith.addf %88, %87 : vector<8x128xf32>
    %90 = arith.divf %88, %89 : vector<8x128xf32>
    %91 = arith.mulf %82, %34 : vector<8x128xf32>
    %92 = arith.mulf %76, %84 : vector<8x128xf32>
    %93 = arith.addf %91, %92 : vector<8x128xf32>
    %94 = math.tanh %93 : vector<8x128xf32>
    %95 = arith.mulf %90, %94 : vector<8x128xf32>
    %96 = tpu.concatenate %95, %65 in 1 : vector<8x128xf32>, vector<8x128xf32> -> vector<8x256xf32>
    %cst_24 = arith.constant dense<0.000000e+00> : vector<8x512xf32>
    %97 = tpu.matmul %96, %1, %cst_24 {dimension_numbers = #tpu.dot_dimension_numbers<[1], [0], [0], [1], [0, 0, 1, 1], [], []>} : vector<8x256xf32>, vector<256x512xf32>, vector<8x512xf32> -> vector<8x512xf32>
    %98 = vector.broadcast %2 : vector<1x512xf32> to vector<8x512xf32>
    %99 = arith.addf %97, %98 : vector<8x512xf32>
    %100 = vector.extract_strided_slice %99 {offsets = [0, 0], sizes = [8, 128], strides = [1, 1]} : vector<8x512xf32> to vector<8x128xf32>
    %101 = arith.negf %100 : vector<8x128xf32>
    %102 = math.exp %101 : vector<8x128xf32>
    %cst_25 = arith.constant 1.000000e+00 : f32
    %103 = vector.broadcast %cst_25 : f32 to vector<8x128xf32>
    %104 = arith.addf %103, %102 : vector<8x128xf32>
    %105 = arith.divf %103, %104 : vector<8x128xf32>
    %106 = vector.extract_strided_slice %99 {offsets = [0, 128], sizes = [8, 128], strides = [1, 1]} : vector<8x512xf32> to vector<8x128xf32>
    %107 = arith.negf %106 : vector<8x128xf32>
    %108 = math.exp %107 : vector<8x128xf32>
    %cst_26 = arith.constant 1.000000e+00 : f32
    %109 = vector.broadcast %cst_26 : f32 to vector<8x128xf32>
    %110 = arith.addf %109, %108 : vector<8x128xf32>
    %111 = arith.divf %109, %110 : vector<8x128xf32>
    %112 = vector.extract_strided_slice %99 {offsets = [0, 256], sizes = [8, 128], strides = [1, 1]} : vector<8x512xf32> to vector<8x128xf32>
    %113 = math.tanh %112 : vector<8x128xf32>
    %114 = vector.extract_strided_slice %99 {offsets = [0, 384], sizes = [8, 128], strides = [1, 1]} : vector<8x512xf32> to vector<8x128xf32>
    %115 = arith.negf %114 : vector<8x128xf32>
    %116 = math.exp %115 : vector<8x128xf32>
    %cst_27 = arith.constant 1.000000e+00 : f32
    %117 = vector.broadcast %cst_27 : f32 to vector<8x128xf32>
    %118 = arith.addf %117, %116 : vector<8x128xf32>
    %119 = arith.divf %117, %118 : vector<8x128xf32>
    %120 = arith.mulf %111, %63 : vector<8x128xf32>
    %121 = arith.mulf %105, %113 : vector<8x128xf32>
    %122 = arith.addf %120, %121 : vector<8x128xf32>
    %123 = math.tanh %122 : vector<8x128xf32>
    %124 = arith.mulf %119, %123 : vector<8x128xf32>
    %c2_i32 = arith.constant 2 : i32
    %125 = arith.index_cast %c2_i32 : i32 to index
    %c0_28 = arith.constant 0 : index
    %c0_29 = arith.constant 0 : index
    %126 = vector.load %arg0[%125, %c0_28, %c0_29] : memref<8x8x512xf32, #tpu.memory_space<vmem>>, vector<1x8x512xf32>
    %127 = vector.shape_cast %126 : vector<1x8x512xf32> to vector<8x512xf32>
    %cst_30 = arith.constant dense<0.000000e+00> : vector<8x512xf32>
    %128 = tpu.matmul %95, %0, %cst_30 {dimension_numbers = #tpu.dot_dimension_numbers<[1], [0], [0], [1], [0, 0, 1, 1], [], []>} : vector<8x128xf32>, vector<128x512xf32>, vector<8x512xf32> -> vector<8x512xf32>
    %129 = arith.addf %127, %128 : vector<8x512xf32>
    %130 = vector.extract_strided_slice %129 {offsets = [0, 0], sizes = [8, 128], strides = [1, 1]} : vector<8x512xf32> to vector<8x128xf32>
    %131 = arith.negf %130 : vector<8x128xf32>
    %132 = math.exp %131 : vector<8x128xf32>
    %cst_31 = arith.constant 1.000000e+00 : f32
    %133 = vector.broadcast %cst_31 : f32 to vector<8x128xf32>
    %134 = arith.addf %133, %132 : vector<8x128xf32>
    %135 = arith.divf %133, %134 : vector<8x128xf32>
    %136 = vector.extract_strided_slice %129 {offsets = [0, 128], sizes = [8, 128], strides = [1, 1]} : vector<8x512xf32> to vector<8x128xf32>
    %137 = arith.negf %136 : vector<8x128xf32>
    %138 = math.exp %137 : vector<8x128xf32>
    %cst_32 = arith.constant 1.000000e+00 : f32
    %139 = vector.broadcast %cst_32 : f32 to vector<8x128xf32>
    %140 = arith.addf %139, %138 : vector<8x128xf32>
    %141 = arith.divf %139, %140 : vector<8x128xf32>
    %142 = vector.extract_strided_slice %129 {offsets = [0, 256], sizes = [8, 128], strides = [1, 1]} : vector<8x512xf32> to vector<8x128xf32>
    %143 = math.tanh %142 : vector<8x128xf32>
    %144 = vector.extract_strided_slice %129 {offsets = [0, 384], sizes = [8, 128], strides = [1, 1]} : vector<8x512xf32> to vector<8x128xf32>
    %145 = arith.negf %144 : vector<8x128xf32>
    %146 = math.exp %145 : vector<8x128xf32>
    %cst_33 = arith.constant 1.000000e+00 : f32
    %147 = vector.broadcast %cst_33 : f32 to vector<8x128xf32>
    %148 = arith.addf %147, %146 : vector<8x128xf32>
    %149 = arith.divf %147, %148 : vector<8x128xf32>
    %150 = arith.mulf %141, %93 : vector<8x128xf32>
    %151 = arith.mulf %135, %143 : vector<8x128xf32>
    %152 = arith.addf %150, %151 : vector<8x128xf32>
    %153 = math.tanh %152 : vector<8x128xf32>
    %154 = arith.mulf %149, %153 : vector<8x128xf32>
    %155 = tpu.concatenate %154, %124 in 1 : vector<8x128xf32>, vector<8x128xf32> -> vector<8x256xf32>
    %cst_34 = arith.constant dense<0.000000e+00> : vector<8x512xf32>
    %156 = tpu.matmul %155, %1, %cst_34 {dimension_numbers = #tpu.dot_dimension_numbers<[1], [0], [0], [1], [0, 0, 1, 1], [], []>} : vector<8x256xf32>, vector<256x512xf32>, vector<8x512xf32> -> vector<8x512xf32>
    %157 = vector.broadcast %2 : vector<1x512xf32> to vector<8x512xf32>
    %158 = arith.addf %156, %157 : vector<8x512xf32>
    %159 = vector.extract_strided_slice %158 {offsets = [0, 0], sizes = [8, 128], strides = [1, 1]} : vector<8x512xf32> to vector<8x128xf32>
    %160 = arith.negf %159 : vector<8x128xf32>
    %161 = math.exp %160 : vector<8x128xf32>
    %cst_35 = arith.constant 1.000000e+00 : f32
    %162 = vector.broadcast %cst_35 : f32 to vector<8x128xf32>
    %163 = arith.addf %162, %161 : vector<8x128xf32>
    %164 = arith.divf %162, %163 : vector<8x128xf32>
    %165 = vector.extract_strided_slice %158 {offsets = [0, 128], sizes = [8, 128], strides = [1, 1]} : vector<8x512xf32> to vector<8x128xf32>
    %166 = arith.negf %165 : vector<8x128xf32>
    %167 = math.exp %166 : vector<8x128xf32>
    %cst_36 = arith.constant 1.000000e+00 : f32
    %168 = vector.broadcast %cst_36 : f32 to vector<8x128xf32>
    %169 = arith.addf %168, %167 : vector<8x128xf32>
    %170 = arith.divf %168, %169 : vector<8x128xf32>
    %171 = vector.extract_strided_slice %158 {offsets = [0, 256], sizes = [8, 128], strides = [1, 1]} : vector<8x512xf32> to vector<8x128xf32>
    %172 = math.tanh %171 : vector<8x128xf32>
    %173 = vector.extract_strided_slice %158 {offsets = [0, 384], sizes = [8, 128], strides = [1, 1]} : vector<8x512xf32> to vector<8x128xf32>
    %174 = arith.negf %173 : vector<8x128xf32>
    %175 = math.exp %174 : vector<8x128xf32>
    %cst_37 = arith.constant 1.000000e+00 : f32
    %176 = vector.broadcast %cst_37 : f32 to vector<8x128xf32>
    %177 = arith.addf %176, %175 : vector<8x128xf32>
    %178 = arith.divf %176, %177 : vector<8x128xf32>
    %179 = arith.mulf %170, %122 : vector<8x128xf32>
    %180 = arith.mulf %164, %172 : vector<8x128xf32>
    %181 = arith.addf %179, %180 : vector<8x128xf32>
    %182 = math.tanh %181 : vector<8x128xf32>
    %183 = arith.mulf %178, %182 : vector<8x128xf32>
    %c3_i32 = arith.constant 3 : i32
    %184 = arith.index_cast %c3_i32 : i32 to index
    %c0_38 = arith.constant 0 : index
    %c0_39 = arith.constant 0 : index
    %185 = vector.load %arg0[%184, %c0_38, %c0_39] : memref<8x8x512xf32, #tpu.memory_space<vmem>>, vector<1x8x512xf32>
    %186 = vector.shape_cast %185 : vector<1x8x512xf32> to vector<8x512xf32>
    %cst_40 = arith.constant dense<0.000000e+00> : vector<8x512xf32>
    %187 = tpu.matmul %154, %0, %cst_40 {dimension_numbers = #tpu.dot_dimension_numbers<[1], [0], [0], [1], [0, 0, 1, 1], [], []>} : vector<8x128xf32>, vector<128x512xf32>, vector<8x512xf32> -> vector<8x512xf32>
    %188 = arith.addf %186, %187 : vector<8x512xf32>
    %189 = vector.extract_strided_slice %188 {offsets = [0, 0], sizes = [8, 128], strides = [1, 1]} : vector<8x512xf32> to vector<8x128xf32>
    %190 = arith.negf %189 : vector<8x128xf32>
    %191 = math.exp %190 : vector<8x128xf32>
    %cst_41 = arith.constant 1.000000e+00 : f32
    %192 = vector.broadcast %cst_41 : f32 to vector<8x128xf32>
    %193 = arith.addf %192, %191 : vector<8x128xf32>
    %194 = arith.divf %192, %193 : vector<8x128xf32>
    %195 = vector.extract_strided_slice %188 {offsets = [0, 128], sizes = [8, 128], strides = [1, 1]} : vector<8x512xf32> to vector<8x128xf32>
    %196 = arith.negf %195 : vector<8x128xf32>
    %197 = math.exp %196 : vector<8x128xf32>
    %cst_42 = arith.constant 1.000000e+00 : f32
    %198 = vector.broadcast %cst_42 : f32 to vector<8x128xf32>
    %199 = arith.addf %198, %197 : vector<8x128xf32>
    %200 = arith.divf %198, %199 : vector<8x128xf32>
    %201 = vector.extract_strided_slice %188 {offsets = [0, 256], sizes = [8, 128], strides = [1, 1]} : vector<8x512xf32> to vector<8x128xf32>
    %202 = math.tanh %201 : vector<8x128xf32>
    %203 = vector.extract_strided_slice %188 {offsets = [0, 384], sizes = [8, 128], strides = [1, 1]} : vector<8x512xf32> to vector<8x128xf32>
    %204 = arith.negf %203 : vector<8x128xf32>
    %205 = math.exp %204 : vector<8x128xf32>
    %cst_43 = arith.constant 1.000000e+00 : f32
    %206 = vector.broadcast %cst_43 : f32 to vector<8x128xf32>
    %207 = arith.addf %206, %205 : vector<8x128xf32>
    %208 = arith.divf %206, %207 : vector<8x128xf32>
    %209 = arith.mulf %200, %152 : vector<8x128xf32>
    %210 = arith.mulf %194, %202 : vector<8x128xf32>
    %211 = arith.addf %209, %210 : vector<8x128xf32>
    %212 = math.tanh %211 : vector<8x128xf32>
    %213 = arith.mulf %208, %212 : vector<8x128xf32>
    %214 = tpu.concatenate %213, %183 in 1 : vector<8x128xf32>, vector<8x128xf32> -> vector<8x256xf32>
    %cst_44 = arith.constant dense<0.000000e+00> : vector<8x512xf32>
    %215 = tpu.matmul %214, %1, %cst_44 {dimension_numbers = #tpu.dot_dimension_numbers<[1], [0], [0], [1], [0, 0, 1, 1], [], []>} : vector<8x256xf32>, vector<256x512xf32>, vector<8x512xf32> -> vector<8x512xf32>
    %216 = vector.broadcast %2 : vector<1x512xf32> to vector<8x512xf32>
    %217 = arith.addf %215, %216 : vector<8x512xf32>
    %218 = vector.extract_strided_slice %217 {offsets = [0, 0], sizes = [8, 128], strides = [1, 1]} : vector<8x512xf32> to vector<8x128xf32>
    %219 = arith.negf %218 : vector<8x128xf32>
    %220 = math.exp %219 : vector<8x128xf32>
    %cst_45 = arith.constant 1.000000e+00 : f32
    %221 = vector.broadcast %cst_45 : f32 to vector<8x128xf32>
    %222 = arith.addf %221, %220 : vector<8x128xf32>
    %223 = arith.divf %221, %222 : vector<8x128xf32>
    %224 = vector.extract_strided_slice %217 {offsets = [0, 128], sizes = [8, 128], strides = [1, 1]} : vector<8x512xf32> to vector<8x128xf32>
    %225 = arith.negf %224 : vector<8x128xf32>
    %226 = math.exp %225 : vector<8x128xf32>
    %cst_46 = arith.constant 1.000000e+00 : f32
    %227 = vector.broadcast %cst_46 : f32 to vector<8x128xf32>
    %228 = arith.addf %227, %226 : vector<8x128xf32>
    %229 = arith.divf %227, %228 : vector<8x128xf32>
    %230 = vector.extract_strided_slice %217 {offsets = [0, 256], sizes = [8, 128], strides = [1, 1]} : vector<8x512xf32> to vector<8x128xf32>
    %231 = math.tanh %230 : vector<8x128xf32>
    %232 = vector.extract_strided_slice %217 {offsets = [0, 384], sizes = [8, 128], strides = [1, 1]} : vector<8x512xf32> to vector<8x128xf32>
    %233 = arith.negf %232 : vector<8x128xf32>
    %234 = math.exp %233 : vector<8x128xf32>
    %cst_47 = arith.constant 1.000000e+00 : f32
    %235 = vector.broadcast %cst_47 : f32 to vector<8x128xf32>
    %236 = arith.addf %235, %234 : vector<8x128xf32>
    %237 = arith.divf %235, %236 : vector<8x128xf32>
    %238 = arith.mulf %229, %181 : vector<8x128xf32>
    %239 = arith.mulf %223, %231 : vector<8x128xf32>
    %240 = arith.addf %238, %239 : vector<8x128xf32>
    %241 = math.tanh %240 : vector<8x128xf32>
    %242 = arith.mulf %237, %241 : vector<8x128xf32>
    %c4_i32 = arith.constant 4 : i32
    %243 = arith.index_cast %c4_i32 : i32 to index
    %c0_48 = arith.constant 0 : index
    %c0_49 = arith.constant 0 : index
    %244 = vector.load %arg0[%243, %c0_48, %c0_49] : memref<8x8x512xf32, #tpu.memory_space<vmem>>, vector<1x8x512xf32>
    %245 = vector.shape_cast %244 : vector<1x8x512xf32> to vector<8x512xf32>
    %cst_50 = arith.constant dense<0.000000e+00> : vector<8x512xf32>
    %246 = tpu.matmul %213, %0, %cst_50 {dimension_numbers = #tpu.dot_dimension_numbers<[1], [0], [0], [1], [0, 0, 1, 1], [], []>} : vector<8x128xf32>, vector<128x512xf32>, vector<8x512xf32> -> vector<8x512xf32>
    %247 = arith.addf %245, %246 : vector<8x512xf32>
    %248 = vector.extract_strided_slice %247 {offsets = [0, 0], sizes = [8, 128], strides = [1, 1]} : vector<8x512xf32> to vector<8x128xf32>
    %249 = arith.negf %248 : vector<8x128xf32>
    %250 = math.exp %249 : vector<8x128xf32>
    %cst_51 = arith.constant 1.000000e+00 : f32
    %251 = vector.broadcast %cst_51 : f32 to vector<8x128xf32>
    %252 = arith.addf %251, %250 : vector<8x128xf32>
    %253 = arith.divf %251, %252 : vector<8x128xf32>
    %254 = vector.extract_strided_slice %247 {offsets = [0, 128], sizes = [8, 128], strides = [1, 1]} : vector<8x512xf32> to vector<8x128xf32>
    %255 = arith.negf %254 : vector<8x128xf32>
    %256 = math.exp %255 : vector<8x128xf32>
    %cst_52 = arith.constant 1.000000e+00 : f32
    %257 = vector.broadcast %cst_52 : f32 to vector<8x128xf32>
    %258 = arith.addf %257, %256 : vector<8x128xf32>
    %259 = arith.divf %257, %258 : vector<8x128xf32>
    %260 = vector.extract_strided_slice %247 {offsets = [0, 256], sizes = [8, 128], strides = [1, 1]} : vector<8x512xf32> to vector<8x128xf32>
    %261 = math.tanh %260 : vector<8x128xf32>
    %262 = vector.extract_strided_slice %247 {offsets = [0, 384], sizes = [8, 128], strides = [1, 1]} : vector<8x512xf32> to vector<8x128xf32>
    %263 = arith.negf %262 : vector<8x128xf32>
    %264 = math.exp %263 : vector<8x128xf32>
    %cst_53 = arith.constant 1.000000e+00 : f32
    %265 = vector.broadcast %cst_53 : f32 to vector<8x128xf32>
    %266 = arith.addf %265, %264 : vector<8x128xf32>
    %267 = arith.divf %265, %266 : vector<8x128xf32>
    %268 = arith.mulf %259, %211 : vector<8x128xf32>
    %269 = arith.mulf %253, %261 : vector<8x128xf32>
    %270 = arith.addf %268, %269 : vector<8x128xf32>
    %271 = math.tanh %270 : vector<8x128xf32>
    %272 = arith.mulf %267, %271 : vector<8x128xf32>
    %273 = tpu.concatenate %272, %242 in 1 : vector<8x128xf32>, vector<8x128xf32> -> vector<8x256xf32>
    %cst_54 = arith.constant dense<0.000000e+00> : vector<8x512xf32>
    %274 = tpu.matmul %273, %1, %cst_54 {dimension_numbers = #tpu.dot_dimension_numbers<[1], [0], [0], [1], [0, 0, 1, 1], [], []>} : vector<8x256xf32>, vector<256x512xf32>, vector<8x512xf32> -> vector<8x512xf32>
    %275 = vector.broadcast %2 : vector<1x512xf32> to vector<8x512xf32>
    %276 = arith.addf %274, %275 : vector<8x512xf32>
    %277 = vector.extract_strided_slice %276 {offsets = [0, 0], sizes = [8, 128], strides = [1, 1]} : vector<8x512xf32> to vector<8x128xf32>
    %278 = arith.negf %277 : vector<8x128xf32>
    %279 = math.exp %278 : vector<8x128xf32>
    %cst_55 = arith.constant 1.000000e+00 : f32
    %280 = vector.broadcast %cst_55 : f32 to vector<8x128xf32>
    %281 = arith.addf %280, %279 : vector<8x128xf32>
    %282 = arith.divf %280, %281 : vector<8x128xf32>
    %283 = vector.extract_strided_slice %276 {offsets = [0, 128], sizes = [8, 128], strides = [1, 1]} : vector<8x512xf32> to vector<8x128xf32>
    %284 = arith.negf %283 : vector<8x128xf32>
    %285 = math.exp %284 : vector<8x128xf32>
    %cst_56 = arith.constant 1.000000e+00 : f32
    %286 = vector.broadcast %cst_56 : f32 to vector<8x128xf32>
    %287 = arith.addf %286, %285 : vector<8x128xf32>
    %288 = arith.divf %286, %287 : vector<8x128xf32>
    %289 = vector.extract_strided_slice %276 {offsets = [0, 256], sizes = [8, 128], strides = [1, 1]} : vector<8x512xf32> to vector<8x128xf32>
    %290 = math.tanh %289 : vector<8x128xf32>
    %291 = vector.extract_strided_slice %276 {offsets = [0, 384], sizes = [8, 128], strides = [1, 1]} : vector<8x512xf32> to vector<8x128xf32>
    %292 = arith.negf %291 : vector<8x128xf32>
    %293 = math.exp %292 : vector<8x128xf32>
    %cst_57 = arith.constant 1.000000e+00 : f32
    %294 = vector.broadcast %cst_57 : f32 to vector<8x128xf32>
    %295 = arith.addf %294, %293 : vector<8x128xf32>
    %296 = arith.divf %294, %295 : vector<8x128xf32>
    %297 = arith.mulf %288, %240 : vector<8x128xf32>
    %298 = arith.mulf %282, %290 : vector<8x128xf32>
    %299 = arith.addf %297, %298 : vector<8x128xf32>
    %300 = math.tanh %299 : vector<8x128xf32>
    %301 = arith.mulf %296, %300 : vector<8x128xf32>
    %c5_i32 = arith.constant 5 : i32
    %302 = arith.index_cast %c5_i32 : i32 to index
    %c0_58 = arith.constant 0 : index
    %c0_59 = arith.constant 0 : index
    %303 = vector.load %arg0[%302, %c0_58, %c0_59] : memref<8x8x512xf32, #tpu.memory_space<vmem>>, vector<1x8x512xf32>
    %304 = vector.shape_cast %303 : vector<1x8x512xf32> to vector<8x512xf32>
    %cst_60 = arith.constant dense<0.000000e+00> : vector<8x512xf32>
    %305 = tpu.matmul %272, %0, %cst_60 {dimension_numbers = #tpu.dot_dimension_numbers<[1], [0], [0], [1], [0, 0, 1, 1], [], []>} : vector<8x128xf32>, vector<128x512xf32>, vector<8x512xf32> -> vector<8x512xf32>
    %306 = arith.addf %304, %305 : vector<8x512xf32>
    %307 = vector.extract_strided_slice %306 {offsets = [0, 0], sizes = [8, 128], strides = [1, 1]} : vector<8x512xf32> to vector<8x128xf32>
    %308 = arith.negf %307 : vector<8x128xf32>
    %309 = math.exp %308 : vector<8x128xf32>
    %cst_61 = arith.constant 1.000000e+00 : f32
    %310 = vector.broadcast %cst_61 : f32 to vector<8x128xf32>
    %311 = arith.addf %310, %309 : vector<8x128xf32>
    %312 = arith.divf %310, %311 : vector<8x128xf32>
    %313 = vector.extract_strided_slice %306 {offsets = [0, 128], sizes = [8, 128], strides = [1, 1]} : vector<8x512xf32> to vector<8x128xf32>
    %314 = arith.negf %313 : vector<8x128xf32>
    %315 = math.exp %314 : vector<8x128xf32>
    %cst_62 = arith.constant 1.000000e+00 : f32
    %316 = vector.broadcast %cst_62 : f32 to vector<8x128xf32>
    %317 = arith.addf %316, %315 : vector<8x128xf32>
    %318 = arith.divf %316, %317 : vector<8x128xf32>
    %319 = vector.extract_strided_slice %306 {offsets = [0, 256], sizes = [8, 128], strides = [1, 1]} : vector<8x512xf32> to vector<8x128xf32>
    %320 = math.tanh %319 : vector<8x128xf32>
    %321 = vector.extract_strided_slice %306 {offsets = [0, 384], sizes = [8, 128], strides = [1, 1]} : vector<8x512xf32> to vector<8x128xf32>
    %322 = arith.negf %321 : vector<8x128xf32>
    %323 = math.exp %322 : vector<8x128xf32>
    %cst_63 = arith.constant 1.000000e+00 : f32
    %324 = vector.broadcast %cst_63 : f32 to vector<8x128xf32>
    %325 = arith.addf %324, %323 : vector<8x128xf32>
    %326 = arith.divf %324, %325 : vector<8x128xf32>
    %327 = arith.mulf %318, %270 : vector<8x128xf32>
    %328 = arith.mulf %312, %320 : vector<8x128xf32>
    %329 = arith.addf %327, %328 : vector<8x128xf32>
    %330 = math.tanh %329 : vector<8x128xf32>
    %331 = arith.mulf %326, %330 : vector<8x128xf32>
    %332 = tpu.concatenate %331, %301 in 1 : vector<8x128xf32>, vector<8x128xf32> -> vector<8x256xf32>
    %cst_64 = arith.constant dense<0.000000e+00> : vector<8x512xf32>
    %333 = tpu.matmul %332, %1, %cst_64 {dimension_numbers = #tpu.dot_dimension_numbers<[1], [0], [0], [1], [0, 0, 1, 1], [], []>} : vector<8x256xf32>, vector<256x512xf32>, vector<8x512xf32> -> vector<8x512xf32>
    %334 = vector.broadcast %2 : vector<1x512xf32> to vector<8x512xf32>
    %335 = arith.addf %333, %334 : vector<8x512xf32>
    %336 = vector.extract_strided_slice %335 {offsets = [0, 0], sizes = [8, 128], strides = [1, 1]} : vector<8x512xf32> to vector<8x128xf32>
    %337 = arith.negf %336 : vector<8x128xf32>
    %338 = math.exp %337 : vector<8x128xf32>
    %cst_65 = arith.constant 1.000000e+00 : f32
    %339 = vector.broadcast %cst_65 : f32 to vector<8x128xf32>
    %340 = arith.addf %339, %338 : vector<8x128xf32>
    %341 = arith.divf %339, %340 : vector<8x128xf32>
    %342 = vector.extract_strided_slice %335 {offsets = [0, 128], sizes = [8, 128], strides = [1, 1]} : vector<8x512xf32> to vector<8x128xf32>
    %343 = arith.negf %342 : vector<8x128xf32>
    %344 = math.exp %343 : vector<8x128xf32>
    %cst_66 = arith.constant 1.000000e+00 : f32
    %345 = vector.broadcast %cst_66 : f32 to vector<8x128xf32>
    %346 = arith.addf %345, %344 : vector<8x128xf32>
    %347 = arith.divf %345, %346 : vector<8x128xf32>
    %348 = vector.extract_strided_slice %335 {offsets = [0, 256], sizes = [8, 128], strides = [1, 1]} : vector<8x512xf32> to vector<8x128xf32>
    %349 = math.tanh %348 : vector<8x128xf32>
    %350 = vector.extract_strided_slice %335 {offsets = [0, 384], sizes = [8, 128], strides = [1, 1]} : vector<8x512xf32> to vector<8x128xf32>
    %351 = arith.negf %350 : vector<8x128xf32>
    %352 = math.exp %351 : vector<8x128xf32>
    %cst_67 = arith.constant 1.000000e+00 : f32
    %353 = vector.broadcast %cst_67 : f32 to vector<8x128xf32>
    %354 = arith.addf %353, %352 : vector<8x128xf32>
    %355 = arith.divf %353, %354 : vector<8x128xf32>
    %356 = arith.mulf %347, %299 : vector<8x128xf32>
    %357 = arith.mulf %341, %349 : vector<8x128xf32>
    %358 = arith.addf %356, %357 : vector<8x128xf32>
    %359 = math.tanh %358 : vector<8x128xf32>
    %360 = arith.mulf %355, %359 : vector<8x128xf32>
    %c6_i32 = arith.constant 6 : i32
    %361 = arith.index_cast %c6_i32 : i32 to index
    %c0_68 = arith.constant 0 : index
    %c0_69 = arith.constant 0 : index
    %362 = vector.load %arg0[%361, %c0_68, %c0_69] : memref<8x8x512xf32, #tpu.memory_space<vmem>>, vector<1x8x512xf32>
    %363 = vector.shape_cast %362 : vector<1x8x512xf32> to vector<8x512xf32>
    %cst_70 = arith.constant dense<0.000000e+00> : vector<8x512xf32>
    %364 = tpu.matmul %331, %0, %cst_70 {dimension_numbers = #tpu.dot_dimension_numbers<[1], [0], [0], [1], [0, 0, 1, 1], [], []>} : vector<8x128xf32>, vector<128x512xf32>, vector<8x512xf32> -> vector<8x512xf32>
    %365 = arith.addf %363, %364 : vector<8x512xf32>
    %366 = vector.extract_strided_slice %365 {offsets = [0, 0], sizes = [8, 128], strides = [1, 1]} : vector<8x512xf32> to vector<8x128xf32>
    %367 = arith.negf %366 : vector<8x128xf32>
    %368 = math.exp %367 : vector<8x128xf32>
    %cst_71 = arith.constant 1.000000e+00 : f32
    %369 = vector.broadcast %cst_71 : f32 to vector<8x128xf32>
    %370 = arith.addf %369, %368 : vector<8x128xf32>
    %371 = arith.divf %369, %370 : vector<8x128xf32>
    %372 = vector.extract_strided_slice %365 {offsets = [0, 128], sizes = [8, 128], strides = [1, 1]} : vector<8x512xf32> to vector<8x128xf32>
    %373 = arith.negf %372 : vector<8x128xf32>
    %374 = math.exp %373 : vector<8x128xf32>
    %cst_72 = arith.constant 1.000000e+00 : f32
    %375 = vector.broadcast %cst_72 : f32 to vector<8x128xf32>
    %376 = arith.addf %375, %374 : vector<8x128xf32>
    %377 = arith.divf %375, %376 : vector<8x128xf32>
    %378 = vector.extract_strided_slice %365 {offsets = [0, 256], sizes = [8, 128], strides = [1, 1]} : vector<8x512xf32> to vector<8x128xf32>
    %379 = math.tanh %378 : vector<8x128xf32>
    %380 = vector.extract_strided_slice %365 {offsets = [0, 384], sizes = [8, 128], strides = [1, 1]} : vector<8x512xf32> to vector<8x128xf32>
    %381 = arith.negf %380 : vector<8x128xf32>
    %382 = math.exp %381 : vector<8x128xf32>
    %cst_73 = arith.constant 1.000000e+00 : f32
    %383 = vector.broadcast %cst_73 : f32 to vector<8x128xf32>
    %384 = arith.addf %383, %382 : vector<8x128xf32>
    %385 = arith.divf %383, %384 : vector<8x128xf32>
    %386 = arith.mulf %377, %329 : vector<8x128xf32>
    %387 = arith.mulf %371, %379 : vector<8x128xf32>
    %388 = arith.addf %386, %387 : vector<8x128xf32>
    %389 = math.tanh %388 : vector<8x128xf32>
    %390 = arith.mulf %385, %389 : vector<8x128xf32>
    %391 = tpu.concatenate %390, %360 in 1 : vector<8x128xf32>, vector<8x128xf32> -> vector<8x256xf32>
    %cst_74 = arith.constant dense<0.000000e+00> : vector<8x512xf32>
    %392 = tpu.matmul %391, %1, %cst_74 {dimension_numbers = #tpu.dot_dimension_numbers<[1], [0], [0], [1], [0, 0, 1, 1], [], []>} : vector<8x256xf32>, vector<256x512xf32>, vector<8x512xf32> -> vector<8x512xf32>
    %393 = vector.broadcast %2 : vector<1x512xf32> to vector<8x512xf32>
    %394 = arith.addf %392, %393 : vector<8x512xf32>
    %395 = vector.extract_strided_slice %394 {offsets = [0, 0], sizes = [8, 128], strides = [1, 1]} : vector<8x512xf32> to vector<8x128xf32>
    %396 = arith.negf %395 : vector<8x128xf32>
    %397 = math.exp %396 : vector<8x128xf32>
    %cst_75 = arith.constant 1.000000e+00 : f32
    %398 = vector.broadcast %cst_75 : f32 to vector<8x128xf32>
    %399 = arith.addf %398, %397 : vector<8x128xf32>
    %400 = arith.divf %398, %399 : vector<8x128xf32>
    %401 = vector.extract_strided_slice %394 {offsets = [0, 128], sizes = [8, 128], strides = [1, 1]} : vector<8x512xf32> to vector<8x128xf32>
    %402 = arith.negf %401 : vector<8x128xf32>
    %403 = math.exp %402 : vector<8x128xf32>
    %cst_76 = arith.constant 1.000000e+00 : f32
    %404 = vector.broadcast %cst_76 : f32 to vector<8x128xf32>
    %405 = arith.addf %404, %403 : vector<8x128xf32>
    %406 = arith.divf %404, %405 : vector<8x128xf32>
    %407 = vector.extract_strided_slice %394 {offsets = [0, 256], sizes = [8, 128], strides = [1, 1]} : vector<8x512xf32> to vector<8x128xf32>
    %408 = math.tanh %407 : vector<8x128xf32>
    %409 = vector.extract_strided_slice %394 {offsets = [0, 384], sizes = [8, 128], strides = [1, 1]} : vector<8x512xf32> to vector<8x128xf32>
    %410 = arith.negf %409 : vector<8x128xf32>
    %411 = math.exp %410 : vector<8x128xf32>
    %cst_77 = arith.constant 1.000000e+00 : f32
    %412 = vector.broadcast %cst_77 : f32 to vector<8x128xf32>
    %413 = arith.addf %412, %411 : vector<8x128xf32>
    %414 = arith.divf %412, %413 : vector<8x128xf32>
    %415 = arith.mulf %406, %358 : vector<8x128xf32>
    %416 = arith.mulf %400, %408 : vector<8x128xf32>
    %417 = arith.addf %415, %416 : vector<8x128xf32>
    %418 = math.tanh %417 : vector<8x128xf32>
    %419 = arith.mulf %414, %418 : vector<8x128xf32>
    %c7_i32 = arith.constant 7 : i32
    %420 = arith.index_cast %c7_i32 : i32 to index
    %c0_78 = arith.constant 0 : index
    %c0_79 = arith.constant 0 : index
    %421 = vector.load %arg0[%420, %c0_78, %c0_79] : memref<8x8x512xf32, #tpu.memory_space<vmem>>, vector<1x8x512xf32>
    %422 = vector.shape_cast %421 : vector<1x8x512xf32> to vector<8x512xf32>
    %cst_80 = arith.constant dense<0.000000e+00> : vector<8x512xf32>
    %423 = tpu.matmul %390, %0, %cst_80 {dimension_numbers = #tpu.dot_dimension_numbers<[1], [0], [0], [1], [0, 0, 1, 1], [], []>} : vector<8x128xf32>, vector<128x512xf32>, vector<8x512xf32> -> vector<8x512xf32>
    %424 = arith.addf %422, %423 : vector<8x512xf32>
    %425 = vector.extract_strided_slice %424 {offsets = [0, 0], sizes = [8, 128], strides = [1, 1]} : vector<8x512xf32> to vector<8x128xf32>
    %426 = arith.negf %425 : vector<8x128xf32>
    %427 = math.exp %426 : vector<8x128xf32>
    %cst_81 = arith.constant 1.000000e+00 : f32
    %428 = vector.broadcast %cst_81 : f32 to vector<8x128xf32>
    %429 = arith.addf %428, %427 : vector<8x128xf32>
    %430 = arith.divf %428, %429 : vector<8x128xf32>
    %431 = vector.extract_strided_slice %424 {offsets = [0, 128], sizes = [8, 128], strides = [1, 1]} : vector<8x512xf32> to vector<8x128xf32>
    %432 = arith.negf %431 : vector<8x128xf32>
    %433 = math.exp %432 : vector<8x128xf32>
    %cst_82 = arith.constant 1.000000e+00 : f32
    %434 = vector.broadcast %cst_82 : f32 to vector<8x128xf32>
    %435 = arith.addf %434, %433 : vector<8x128xf32>
    %436 = arith.divf %434, %435 : vector<8x128xf32>
    %437 = vector.extract_strided_slice %424 {offsets = [0, 256], sizes = [8, 128], strides = [1, 1]} : vector<8x512xf32> to vector<8x128xf32>
    %438 = math.tanh %437 : vector<8x128xf32>
    %439 = vector.extract_strided_slice %424 {offsets = [0, 384], sizes = [8, 128], strides = [1, 1]} : vector<8x512xf32> to vector<8x128xf32>
    %440 = arith.negf %439 : vector<8x128xf32>
    %441 = math.exp %440 : vector<8x128xf32>
    %cst_83 = arith.constant 1.000000e+00 : f32
    %442 = vector.broadcast %cst_83 : f32 to vector<8x128xf32>
    %443 = arith.addf %442, %441 : vector<8x128xf32>
    %444 = arith.divf %442, %443 : vector<8x128xf32>
    %445 = arith.mulf %436, %388 : vector<8x128xf32>
    %446 = arith.mulf %430, %438 : vector<8x128xf32>
    %447 = arith.addf %445, %446 : vector<8x128xf32>
    %448 = math.tanh %447 : vector<8x128xf32>
    %449 = arith.mulf %444, %448 : vector<8x128xf32>
    %450 = tpu.concatenate %449, %419 in 1 : vector<8x128xf32>, vector<8x128xf32> -> vector<8x256xf32>
    %cst_84 = arith.constant dense<0.000000e+00> : vector<8x512xf32>
    %451 = tpu.matmul %450, %1, %cst_84 {dimension_numbers = #tpu.dot_dimension_numbers<[1], [0], [0], [1], [0, 0, 1, 1], [], []>} : vector<8x256xf32>, vector<256x512xf32>, vector<8x512xf32> -> vector<8x512xf32>
    %452 = vector.broadcast %2 : vector<1x512xf32> to vector<8x512xf32>
    %453 = arith.addf %451, %452 : vector<8x512xf32>
    %454 = vector.extract_strided_slice %453 {offsets = [0, 0], sizes = [8, 128], strides = [1, 1]} : vector<8x512xf32> to vector<8x128xf32>
    %455 = arith.negf %454 : vector<8x128xf32>
    %456 = math.exp %455 : vector<8x128xf32>
    %cst_85 = arith.constant 1.000000e+00 : f32
    %457 = vector.broadcast %cst_85 : f32 to vector<8x128xf32>
    %458 = arith.addf %457, %456 : vector<8x128xf32>
    %459 = arith.divf %457, %458 : vector<8x128xf32>
    %460 = vector.extract_strided_slice %453 {offsets = [0, 128], sizes = [8, 128], strides = [1, 1]} : vector<8x512xf32> to vector<8x128xf32>
    %461 = arith.negf %460 : vector<8x128xf32>
    %462 = math.exp %461 : vector<8x128xf32>
    %cst_86 = arith.constant 1.000000e+00 : f32
    %463 = vector.broadcast %cst_86 : f32 to vector<8x128xf32>
    %464 = arith.addf %463, %462 : vector<8x128xf32>
    %465 = arith.divf %463, %464 : vector<8x128xf32>
    %466 = vector.extract_strided_slice %453 {offsets = [0, 256], sizes = [8, 128], strides = [1, 1]} : vector<8x512xf32> to vector<8x128xf32>
    %467 = math.tanh %466 : vector<8x128xf32>
    %468 = vector.extract_strided_slice %453 {offsets = [0, 384], sizes = [8, 128], strides = [1, 1]} : vector<8x512xf32> to vector<8x128xf32>
    %469 = arith.negf %468 : vector<8x128xf32>
    %470 = math.exp %469 : vector<8x128xf32>
    %cst_87 = arith.constant 1.000000e+00 : f32
    %471 = vector.broadcast %cst_87 : f32 to vector<8x128xf32>
    %472 = arith.addf %471, %470 : vector<8x128xf32>
    %473 = arith.divf %471, %472 : vector<8x128xf32>
    %474 = arith.mulf %465, %417 : vector<8x128xf32>
    %475 = arith.mulf %459, %467 : vector<8x128xf32>
    %476 = arith.addf %474, %475 : vector<8x128xf32>
    %477 = math.tanh %476 : vector<8x128xf32>
    %478 = arith.mulf %473, %477 : vector<8x128xf32>
    %c8_i32 = arith.constant 8 : i32
    %c0_88 = arith.constant 0 : index
    %c0_89 = arith.constant 0 : index
    %479 = vector.load %arg4[%c0_88, %c0_89] : memref<8x128xf32, #tpu.memory_space<vmem>>, vector<8x128xf32>
    tpu.vector_store %arg4[%c0_88, %c0_89], %478 {strides = array<i32>} : memref<8x128xf32, #tpu.memory_space<vmem>>, vector<8x128xf32>,
    return
  }
}

</mosaic_0001>

<bundles_post_ra>
// kernel: encoder_forward.1
= control target key start
LH: loop header
LB: loop body
LE: loop exit
PB: predicated region body
PF: predicated region fallthrough
CT: control target
= control target key end

     0   :  { %v10110_v61 = vmov 0.0   ;;  %s10105_s1 = inlined_call_operand.vmem [shape: f32[128,512], index: 1, kind: input, shape index: {}]   ;;  %s10106_s2 = inlined_call_operand.vmem [shape: f32[256,512], index: 2, kind: input, shape index: {}]   ;;  %s10107_s0 = inlined_call_operand.vmem [shape: f32[8,8,512], index: 0, kind: input, shape index: {}]   ;;  %s10108_s3 = inlined_call_operand.vmem [shape: f32[1,512], index: 3, kind: input, shape index: {}]   ;;  %s10109_s4 = inlined_call_operand.vmem [shape: f32[8,128], index: 4, kind: output, shape index: {}]  }
   0x1   :  { %v77_v0 = vld [vmem:[%s10105_s1 + $0x1e0] sm:$0xff]  ;;  %v4174_v1 = vld [vmem:[%s10105_s1 + $0x1e8] sm:$0xff]  ;;  %v4179_v2 = vld [vmem:[%s10105_s1 + $0x1f8] sm:$0xff] }
   0x2   :  { %214 = vmatpush.msra.mxu0 %v77_v0  ;;  %234 = vmatpush.msra.mxu1 %v4174_v1  ;;  %v73_v3 = vld [vmem:[%s10105_s1 + $0x1c0] sm:$0xff]  ;;  %v4188_v4 = vld [vmem:[%s10105_s1 + $0x1c8] sm:$0xff]  ;;  %v4193_v5 = vld [vmem:[%s10105_s1 + $0x1d8] sm:$0xff] }
   0x3   :  { %274 = vmatpush.msra.mxu3 %v4179_v2  ;;  %v69_v6 = vld [vmem:[%s10105_s1 + $0x1a0] sm:$0xff]  ;;  %v4202_v7 = vld [vmem:[%s10105_s1 + $0x1a8] sm:$0xff]  ;;  %v4208_v8 = vld [vmem:[%s10105_s1 + $0x1b8] sm:$0xff] }
   0x4   :  { %215 = vmatpush.msra.mxu0 %v73_v3  ;;  %235 = vmatpush.msra.mxu1 %v4188_v4  ;;  %v65_v9 = vld [vmem:[%s10105_s1 + $0x180] sm:$0xff]  ;;  %v4217_v10 = vld [vmem:[%s10105_s1 + $0x188] sm:$0xff]  ;;  %v4223_v11 = vld [vmem:[%s10105_s1 + $0x198] sm:$0xff] }
   0x5   :  { %275 = vmatpush.msra.mxu3 %v4193_v5  ;;  %v61_v12 = vld [vmem:[%s10105_s1 + $0x160] sm:$0xff]  ;;  %v4232_v13 = vld [vmem:[%s10105_s1 + $0x168] sm:$0xff]  ;;  %v4238_v14 = vld [vmem:[%s10105_s1 + $0x178] sm:$0xff] }
   0x6   :  { %216 = vmatpush.msra.mxu0 %v69_v6  ;;  %236 = vmatpush.msra.mxu1 %v4202_v7  ;;  %v57_v15 = vld [vmem:[%s10105_s1 + $0x140] sm:$0xff]  ;;  %v4247_v16 = vld [vmem:[%s10105_s1 + $0x148] sm:$0xff]  ;;  %v4252_v17 = vld [vmem:[%s10105_s1 + $0x1f0] sm:$0xff] }
   0x7   :  { %276 = vmatpush.msra.mxu3 %v4208_v8  ;;  %10663 = vst [vmem:[#allocation2_spill] sm:$0xff] %v4252_v17  ;;  %v4258_v18 = vld [vmem:[%s10105_s1 + $0x158] sm:$0xff]  ;;  %v4263_v19 = vld [vmem:[%s10105_s1 + $0x1d0] sm:$0xff]  ;;  %v53_v20 = vld [vmem:[%s10105_s1 + $0x120] sm:$0xff]  ;;  %254 = vmatpush.msra.mxu2 %v4252_v17 }
   0x8   :  { %217 = vmatpush.msra.mxu0 %v65_v9  ;;  %237 = vmatpush.msra.mxu1 %v4217_v10  ;;  %10664 = vst [vmem:[#allocation3_spill] sm:$0xff] %v4263_v19  ;;  %v4272_v21 = vld [vmem:[%s10105_s1 + $0x128] sm:$0xff]  ;;  %v4279_v22 = vld [vmem:[%s10105_s1 + $0x138] sm:$0xff]  ;;  %v4284_v23 = vld [vmem:[%s10105_s1 + $0x1b0] sm:$0xff] }
   0x9   :  { %277 = vmatpush.msra.mxu3 %v4223_v11  ;;  %10665 = vst [vmem:[#allocation4_spill] sm:$0xff] %v4284_v23  ;;  %v49_v24 = vld [vmem:[%s10105_s1 + $0x100] sm:$0xff]  ;;  %v4293_v25 = vld [vmem:[%s10105_s1 + $0x108] sm:$0xff]  ;;  %255 = vmatpush.msra.mxu2 %v4263_v19  ;;  %v4300_v26 = vld [vmem:[%s10105_s1 + $0x118] sm:$0xff] }
   0xa   :  { %218 = vmatpush.msra.mxu0 %v61_v12  ;;  %238 = vmatpush.msra.mxu1 %v4232_v13  ;;  %v4305_v27 = vld [vmem:[%s10105_s1 + $0x190] sm:$0xff]  ;;  %v45_v28 = vld [vmem:[%s10105_s1 + $0xe0] sm:$0xff]  ;;  %v4314_v29 = vld [vmem:[%s10105_s1 + $0xe8] sm:$0xff] }
   0xb   :  { %278 = vmatpush.msra.mxu3 %v4238_v14  ;;  %10666 = vst [vmem:[#allocation5_spill] sm:$0xff] %v4305_v27  ;;  %256 = vmatpush.msra.mxu2 %v4284_v23  ;;  %v4321_v30 = vld [vmem:[%s10105_s1 + $0xf8] sm:$0xff]  ;;  %v4326_v31 = vld [vmem:[%s10105_s1 + $0x170] sm:$0xff]  ;;  %v41_v32 = vld [vmem:[%s10105_s1 + $0xc0] sm:$0xff] }
   0xc   :  { %219 = vmatpush.msra.mxu0 %v57_v15  ;;  %239 = vmatpush.msra.mxu1 %v4247_v16  ;;  %10667 = vst [vmem:[#allocation6_spill] sm:$0xff] %v4326_v31  ;;  %v4335_v33 = vld [vmem:[%s10105_s1 + $0xc8] sm:$0xff]  ;;  %v4342_v34 = vld [vmem:[%s10105_s1 + $0xd8] sm:$0xff]  ;;  %v4347_v35 = vld [vmem:[%s10105_s1 + $0x150] sm:$0xff] }
   0xd   :  { %279 = vmatpush.msra.mxu3 %v4258_v18  ;;  %257 = vmatpush.msra.mxu2 %v4305_v27  ;;  %10668 = vst [vmem:[#allocation7_spill] sm:$0xff] %v4347_v35  ;;  %v4353_v36 = vld [vmem:[%s10105_s1 + $0xa0] sm:$0xff]  ;;  %v4358_v37 = vld [vmem:[%s10105_s1 + $0xa8] sm:$0xff]  ;;  %v4365_v38 = vld [vmem:[%s10105_s1 + $0xb8] sm:$0xff] }
   0xe   :  { %220 = vmatpush.msra.mxu0 %v53_v20  ;;  %240 = vmatpush.msra.mxu1 %v4272_v21  ;;  %10669 = vst [vmem:[#allocation8_spill] sm:$0xff] %v4353_v36  ;;  %v4370_v39 = vld [vmem:[%s10105_s1 + $0x130] sm:$0xff]  ;;  %v4376_v40 = vld [vmem:[%s10105_s1 + $0x80] sm:$0xff]  ;;  %v4381_v41 = vld [vmem:[%s10105_s1 + $0x88] sm:$0xff] }
   0xf   :  { %280 = vmatpush.msra.mxu3 %v4279_v22  ;;  %258 = vmatpush.msra.mxu2 %v4326_v31  ;;  %10670 = vst [vmem:[#allocation9_spill] sm:$0xff] %v4370_v39  ;;  %v4389_v42 = vld [vmem:[%s10105_s1 + $0x98] sm:$0xff]  ;;  %v4394_v43 = vld [vmem:[%s10105_s1 + $0x110] sm:$0xff]  ;;  %v4400_v44 = vld [vmem:[%s10105_s1 + $0x60] sm:$0xff] }
  0x10   :  { %221 = vmatpush.msra.mxu0 %v49_v24  ;;  %241 = vmatpush.msra.mxu1 %v4293_v25  ;;  %10671 = vst [vmem:[#allocation10_spill] sm:$0xff] %v4376_v40  ;;  %v4405_v45 = vld [vmem:[%s10105_s1 + $0x68] sm:$0xff]  ;;  %v4413_v46 = vld [vmem:[%s10105_s1 + $0x78] sm:$0xff]  ;;  %v4418_v47 = vld [vmem:[%s10105_s1 + $0xf0] sm:$0xff] }
  0x11   :  { %281 = vmatpush.msra.mxu3 %v4300_v26  ;;  %259 = vmatpush.msra.mxu2 %v4347_v35  ;;  %10672 = vst [vmem:[#allocation11_spill] sm:$0xff] %v4394_v43  ;;  %v4424_v48 = vld [vmem:[%s10105_s1 + $0x40] sm:$0xff]  ;;  %v4429_v49 = vld [vmem:[%s10105_s1 + $0x48] sm:$0xff]  ;;  %v4437_v50 = vld [vmem:[%s10105_s1 + $0x58] sm:$0xff] }
  0x12   :  { %222 = vmatpush.msra.mxu0 %v45_v28  ;;  %242 = vmatpush.msra.mxu1 %v4314_v29  ;;  %10673 = vst [vmem:[#allocation12_spill] sm:$0xff] %v4400_v44  ;;  %v4442_v51 = vld [vmem:[%s10105_s1 + $0xd0] sm:$0xff]  ;;  %v4448_v52 = vld [vmem:[%s10105_s1 + $0x20] sm:$0xff]  ;;  %v4453_v53 = vld [vmem:[%s10105_s1 + $0x28] sm:$0xff] }
  0x13   :  { %282 = vmatpush.msra.mxu3 %v4321_v30  ;;  %260 = vmatpush.msra.mxu2 %v4370_v39  ;;  %10674 = vst [vmem:[#allocation13_spill] sm:$0xff] %v4418_v47  ;;  %v4461_v54 = vld [vmem:[%s10105_s1 + $0x38] sm:$0xff]  ;;  %v4466_v55 = vld [vmem:[%s10105_s1 + $0xb0] sm:$0xff]  ;;  %v4472_v56 = vld [vmem:[%s10105_s1] sm:$0xff] }
  0x14   :  { %223 = vmatpush.msra.mxu0 %v41_v32  ;;  %243 = vmatpush.msra.mxu1 %v4335_v33  ;;  %10675 = vst [vmem:[#allocation14_spill] sm:$0xff] %v4424_v48  ;;  %v4477_v57 = vld [vmem:[%s10105_s1 + $0x8] sm:$0xff]  ;;  %v4485_v58 = vld [vmem:[%s10105_s1 + $0x18] sm:$0xff]  ;;  %v4494_v59 = vld [vmem:[%s10105_s1 + $0x90] sm:$0xff] }
  0x15   :  { %283 = vmatpush.msra.mxu3 %v4342_v34  ;;  %261 = vmatpush.msra.mxu2 %v4394_v43  ;;  %10676 = vst [vmem:[#allocation15_spill] sm:$0xff] %v4442_v51  ;;  %v4499_v60 = vld [vmem:[%s10106_s2 + $0x3e0] sm:$0xff]  ;;  %v4506_v62 = vld [vmem:[%s10106_s2 + $0x3e8] sm:$0xff]  ;;  %v4513_v63 = vld [vmem:[%s10105_s1 + $0x70] sm:$0xff] }
  0x16   :  { %224 = vmatpush.msra.mxu0 %v4353_v36  ;;  %244 = vmatpush.msra.mxu1 %v4358_v37  ;;  %10677 = vst [vmem:[#allocation16_spill] sm:$0xff] %v4448_v52  ;;  %v4518_v0 = vld [vmem:[%s10106_s2 + $0x3c0] sm:$0xff]  ;;  %v4530_v6 = vld [vmem:[%s10106_s2 + $0x3c8] sm:$0xff]  ;;  %v4540_v12 = vld [vmem:[%s10105_s1 + $0x50] sm:$0xff] }
  0x17   :  { %284 = vmatpush.msra.mxu3 %v4365_v38  ;;  %262 = vmatpush.msra.mxu2 %v4418_v47  ;;  %10678 = vst [vmem:[#allocation17_spill] sm:$0xff] %v4466_v55  ;;  %v4523_v3 = vld [vmem:[%s10106_s2 + $0x1e0] sm:$0xff]  ;;  %v4554_v20 = vld [vmem:[%s10106_s2 + $0x3a8] sm:$0xff]  ;;  %v4564_v28 = vld [vmem:[%s10105_s1 + $0x30] sm:$0xff] }
  0x18   :  { %225 = vmatpush.msra.mxu0 %v4376_v40  ;;  %245 = vmatpush.msra.mxu1 %v4381_v41  ;;  %10679 = vst [vmem:[#allocation18_spill] sm:$0xff] %v4472_v56  ;;  %v4535_v9 = vld [vmem:[%s10106_s2 + $0x1c0] sm:$0xff]  ;;  %v4709_v43 = vld [vmem:[%s10106_s2 + $0x168] sm:$0xff] }
  0x19   :  { %285 = vmatpush.msra.mxu3 %v4389_v42  ;;  %263 = vmatpush.msra.mxu2 %v4442_v51  ;;  %10680 = vst [vmem:[#allocation19_spill] sm:$0xff] %v4494_v59  ;;  %v4546_v15 = vld [vmem:[%s10106_s2 + $0x3a0] sm:$0xff]  ;;  %v4685_v51 = vld [vmem:[%s10106_s2 + $0x188] sm:$0xff] }
  0x1a   :  { %226 = vmatpush.msra.mxu0 %v4400_v44  ;;  %246 = vmatpush.msra.mxu1 %v4405_v45  ;;  %10681 = vst [vmem:[#allocation20_spill] sm:$0xff] %v4513_v63  ;;  %v4559_v24 = vld [vmem:[%s10106_s2 + $0x1a0] sm:$0xff]  ;;  %v4644_v44 = vld [vmem:[%s10106_s2 + $0x328] sm:$0xff] }
  0x1b   :  { %286 = vmatpush.msra.mxu3 %v4413_v46  ;;  %264 = vmatpush.msra.mxu2 %v4466_v55  ;;  %10682 = vst [vmem:[#allocation21_spill] sm:$0xff] %v4523_v3  ;;  %v4570_v32 = vld [vmem:[%s10106_s2 + $0x380] sm:$0xff]  ;;  %v4661_v55 = vld [vmem:[%s10106_s2 + $0x1a8] sm:$0xff] }
  0x1c   :  { %227 = vmatpush.msra.mxu0 %v4424_v48  ;;  %247 = vmatpush.msra.mxu1 %v4429_v49  ;;  %10683 = vst [vmem:[#allocation22_spill] sm:$0xff] %v4535_v9  ;;  %v4626_v48 = vld [vmem:[%s10106_s2 + $0x160] sm:$0xff]  ;;  %v4733_v35 = vld [vmem:[%s10106_s2 + $0x148] sm:$0xff] }
  0x1d   :  { %287 = vmatpush.msra.mxu3 %v4437_v50  ;;  %265 = vmatpush.msra.mxu2 %v4494_v59  ;;  %10684 = vst [vmem:[#allocation23_spill] sm:$0xff] %v4540_v12  ;;  %v4650_v59 = vld [vmem:[%s10106_s2 + $0x140] sm:$0xff]  ;;  %v4777_v23 = vld [vmem:[%s10106_s2 + $0x268] sm:$0xff] }
  0x1e   :  { %228 = vmatpush.msra.mxu0 %v4448_v52  ;;  %248 = vmatpush.msra.mxu1 %v4453_v53  ;;  %10685 = vst [vmem:[#allocation24_spill] sm:$0xff] %v4559_v24  ;;  %v4602_v52 = vld [vmem:[%s10106_s2 + $0x368] sm:$0xff]  ;;  %v4656_v40 = vld [vmem:[%s10106_s2 + $0x300] sm:$0xff] }
  0x1f   :  { %288 = vmatpush.msra.mxu3 %v4461_v54  ;;  %266 = vmatpush.msra.mxu2 %v4513_v63  ;;  %10686 = vst [vmem:[#allocation25_spill] sm:$0xff] %v4564_v28  ;;  %v10691_v63 = vmov 0.0   ;;  %v4674_v36 = vld [vmem:[%s10106_s2 + $0x120] sm:$0xff]  ;;  %v4789_v19 = vld [vmem:[%s10106_s2 + $0xe8] sm:$0xff] }
  0x20   :  { %229 = vmatpush.msra.mxu0 %v4472_v56  ;;  %249 = vmatpush.msra.mxu1 %v4477_v57  ;;  %v4588_v56 = vld [vmem:[%s10105_s1 + $0x10] sm:$0xff]  ;;  %10690 = vst [vmem:[#allocation29_spill] sm:$0xff] %v4626_v48  ;;  %v4698_v47 = vld [vmem:[%s10106_s2 + $0x100] sm:$0xff]  ;;  %v4795_v17 = vld [vmem:[%s10106_s2 + $0x248] sm:$0xff] }
  0x21   :  { %289 = vmatpush.msra.mxu3 %v4485_v58  ;;  %230 = vmatmul.f32.vlgmr.msra.gmra.mxu0 %v10110_v61  ;;  %10688 = vst [vmem:[#allocation27_spill] sm:$0xff] %v4588_v56  ;;  %v4722_v39 = vld [vmem:[%s10106_s2 + $0xe0] sm:$0xff] }
  0x22   :  { %250 = vmatmul.f32.vlgmr.msra.gmra.mxu1 %v10110_v61  ;;  %290 = vmatmul.f32.vlgmr.msra.gmra.mxu3 %v10110_v61  ;;  %v4578_v61 = vld [vmem:[%s10106_s2 + $0x388] sm:$0xff]  ;;  %10693 = vst [vmem:[#allocation31_spill] sm:$0xff] %v4650_v59  ;;  %v4747_v31 = vld [vmem:[%s10106_s2 + $0x280] sm:$0xff] }
  0x23   :  { %390 = vmatpush.msrb.mxu1 %v4499_v60  ;;  %430 = vmatpush.msrb.mxu3 %v4506_v62  ;;  %10694 = vst [vmem:[#allocation32_spill] sm:$0xff] %v4661_v55  ;;  %v4766_v27 = vld [vmem:[%s10106_s2 + $0x260] sm:$0xff] }
  0x24   :  { %370 = vmatpush.msrb.mxu0 %v4523_v3  ;;  %267 = vmatpush.msra.mxu2 %v4540_v12  ;;  %v4583_v3 = vld [vmem:[%s10106_s2 + $0x180] sm:$0xff]  ;;  %10695 = vst [vmem:[#allocation33_spill] sm:$0xff] %v4674_v36 }
  0x25   :  { %391 = vmatpush.msrb.mxu1 %v4518_v0  ;;  %431 = vmatpush.msrb.mxu3 %v4530_v6  ;;  %10687 = vst [vmem:[#allocation26_spill] sm:$0xff] %v4583_v3  ;;  %v4608_v12 = vld [vmem:[%s10106_s2 + $0x340] sm:$0xff] }
  0x26   :  { %371 = vmatpush.msrb.mxu0 %v4535_v9  ;;  %v4594_v9 = vld [vmem:[%s10106_s2 + $0x360] sm:$0xff]  ;;  %268 = vmatpush.msra.mxu2 %v4564_v28  ;;  %v4621_v28 = vld [vmem:[%s10106_s2 + $0x348] sm:$0xff]  ;;  %10696 = vst [vmem:[#allocation34_spill] sm:$0xff] %v4685_v51 }
  0x27   :  { %392 = vmatpush.msrb.mxu1 %v4546_v15  ;;  %432 = vmatpush.msrb.mxu3 %v4554_v20  ;;  %10697 = vst [vmem:[#allocation35_spill] sm:$0xff] %v4698_v47 }
  0x28   :  { %372 = vmatpush.msrb.mxu0 %v4559_v24  ;;  %v4613_v24 = vld [vmem:[%s10106_s2 + $0x1e8] sm:$0xff]  ;;  %269 = vmatpush.msra.mxu2 %v4588_v56  ;;  %10698 = vst [vmem:[#allocation36_spill] sm:$0xff] %v4709_v43 }
  0x29   :  { %393 = vmatpush.msrb.mxu1 %v4570_v32  ;;  %433 = vmatpush.msrb.mxu3 %v4578_v61  ;;  %10689 = vst [vmem:[#allocation28_spill] sm:$0xff] %v4613_v24  ;;  %v4638_v56 = vld [vmem:[%s10106_s2 + $0x1c8] sm:$0xff] }
  0x2a   :  { %373 = vmatpush.msrb.mxu0 %v4583_v3  ;;  %270 = vmatmul.f32.vlgmr.msra.gmra.mxu2 %v10691_v63  ;;  %v4633_v3 = vld [vmem:[%s10106_s2 + $0x320] sm:$0xff]  ;;  %10692 = vst [vmem:[#allocation30_spill] sm:$0xff] %v4638_v56 }
  0x2b   :  { %394 = vmatpush.msrb.mxu1 %v4594_v9  ;;  %434 = vmatpush.msrb.mxu3 %v4602_v52  ;;  %10699 = vst [vmem:[#allocation37_spill] sm:$0xff] %v4722_v39 }
  0x2c   :  { %410 = vmatpush.msrb.mxu2 %v4613_v24  ;;  %374 = vmatpush.msrb.mxu0 %v4626_v48  ;;  %v4668_v24 = vld [vmem:[%s10106_s2 + $0x308] sm:$0xff]  ;;  %v4680_v48 = vld [vmem:[%s10106_s2 + $0x2e0] sm:$0xff]  ;;  %10700 = vst [vmem:[#allocation38_spill] sm:$0xff] %v4733_v35 }
  0x2d   :  { %395 = vmatpush.msrb.mxu1 %v4608_v12  ;;  %435 = vmatpush.msrb.mxu3 %v4621_v28  ;;  %10702 = vst [vmem:[#allocation40_spill] sm:$0xff] %v4766_v27 }
  0x2e   :  { %411 = vmatpush.msrb.mxu2 %v4638_v56  ;;  %375 = vmatpush.msrb.mxu0 %v4650_v59  ;;  %v4692_v56 = vld [vmem:[%s10106_s2 + $0x2e8] sm:$0xff]  ;;  %v4704_v59 = vld [vmem:[%s10106_s2 + $0x2c0] sm:$0xff]  ;;  %10704 = vst [vmem:[#allocation42_spill] sm:$0xff] %v4777_v23 }
  0x2f   :  { %396 = vmatpush.msrb.mxu1 %v4633_v3  ;;  %436 = vmatpush.msrb.mxu3 %v4644_v44  ;;  %10706 = vst [vmem:[#allocation44_spill] sm:$0xff] %v4789_v19 }
  0x30   :  { %412 = vmatpush.msrb.mxu2 %v4661_v55  ;;  %376 = vmatpush.msrb.mxu0 %v4674_v36  ;;  %v4716_v55 = vld [vmem:[%s10106_s2 + $0x2c8] sm:$0xff]  ;;  %v4728_v36 = vld [vmem:[%s10106_s2 + $0x2a0] sm:$0xff] }
  0x31   :  { %397 = vmatpush.msrb.mxu1 %v4656_v40  ;;  %437 = vmatpush.msrb.mxu3 %v4668_v24 }
  0x32   :  { %413 = vmatpush.msrb.mxu2 %v4685_v51  ;;  %377 = vmatpush.msrb.mxu0 %v4698_v47  ;;  %v4740_v51 = vld [vmem:[%s10106_s2 + $0x2a8] sm:$0xff] }
  0x33   :  { %398 = vmatpush.msrb.mxu1 %v4680_v48  ;;  %438 = vmatpush.msrb.mxu3 %v4692_v56  ;;  %v4752_v47 = vld [vmem:[%s10106_s2 + $0x128] sm:$0xff] }
  0x34   :  { %414 = vmatpush.msrb.mxu2 %v4709_v43  ;;  %10701 = vst [vmem:[#allocation39_spill] sm:$0xff] %v4752_v47  ;;  %378 = vmatpush.msrb.mxu0 %v4722_v39  ;;  %v4759_v43 = vld [vmem:[%s10106_s2 + $0x288] sm:$0xff] }
  0x35   :  { %399 = vmatpush.msrb.mxu1 %v4704_v59  ;;  %439 = vmatpush.msrb.mxu3 %v4716_v55  ;;  %v4771_v39 = vld [vmem:[%s10106_s2 + $0x108] sm:$0xff] }
  0x36   :  { %415 = vmatpush.msrb.mxu2 %v4733_v35  ;;  %10703 = vst [vmem:[#allocation41_spill] sm:$0xff] %v4771_v39  ;;  %v4784_v35 = vld [vmem:[%s10106_s2 + $0x240] sm:$0xff] }
  0x37   :  { %400 = vmatpush.msrb.mxu1 %v4728_v36  ;;  %440 = vmatpush.msrb.mxu3 %v4740_v51  ;;  %10705 = vst [vmem:[#allocation43_spill] sm:$0xff] %v4784_v35 }
  0x38   :  { %416 = vmatpush.msrb.mxu2 %v4752_v47  ;;  %v4802_v47 = vld [vmem:[%s10106_s2 + $0x220] sm:$0xff] }
  0x39   :  { %401 = vmatpush.msrb.mxu1 %v4747_v31  ;;  %441 = vmatpush.msrb.mxu3 %v4759_v43  ;;  %10707 = vst [vmem:[#allocation45_spill] sm:$0xff] %v4802_v47 }
  0x3a   :  { %417 = vmatpush.msrb.mxu2 %v4771_v39  ;;  %v4815_v39 = vld [vmem:[%s10106_s2 + $0x200] sm:$0xff] }
  0x3b   :  { %402 = vmatpush.msrb.mxu1 %v4766_v27  ;;  %442 = vmatpush.msrb.mxu3 %v4777_v23  ;;  %v4808_v27 = vld [vmem:[%s10106_s2 + $0x228] sm:$0xff]  ;;  %10709 = vst [vmem:[#allocation47_spill] sm:$0xff] %v4815_v39  ;;  %v4826_v23 = vld [vmem:[%s10106_s2 + $0x3f0] sm:$0xff] }
  0x3c   :  { %10708 = vst [vmem:[#allocation46_spill] sm:$0xff] %v4808_v27  ;;  %418 = vmatpush.msrb.mxu2 %v4789_v19  ;;  %v4832_v19 = vld [vmem:[%s10106_s2 + $0x3f8] sm:$0xff] }
  0x3d   :  { %403 = vmatpush.msrb.mxu1 %v4784_v35  ;;  %443 = vmatpush.msrb.mxu3 %v4795_v17  ;;  %v4821_v35 = vld [vmem:[%s10106_s2 + $0x208] sm:$0xff]  ;;  %10711 = vst [vmem:[#allocation49_spill] sm:$0xff] %v4826_v23 }
  0x3e   :  { %10710 = vst [vmem:[#allocation48_spill] sm:$0xff] %v4821_v35 }
  0x3f   :  { %404 = vmatpush.msrb.mxu1 %v4802_v47  ;;  %444 = vmatpush.msrb.mxu3 %v4808_v27  ;;  %10712 = vst [vmem:[#allocation50_spill] sm:$0xff] %v4832_v19  ;;  %v4838_v47 = vld [vmem:[%s10106_s2 + $0x3d0] sm:$0xff]  ;;  %v4845_v27 = vld [vmem:[%s10106_s2 + $0x3d8] sm:$0xff] }
  0x40   :  { %10713 = vst [vmem:[#allocation51_spill] sm:$0xff] %v4838_v47 }
  0x41   :  { %405 = vmatpush.msrb.mxu1 %v4815_v39  ;;  %445 = vmatpush.msrb.mxu3 %v4821_v35  ;;  %10714 = vst [vmem:[#allocation52_spill] sm:$0xff] %v4845_v27  ;;  %v4851_v39 = vld [vmem:[%s10106_s2 + $0x3b0] sm:$0xff] }
  0x42   :  { %10715 = vst [vmem:[#allocation53_spill] sm:$0xff] %v4851_v39  ;;  %406 = vmatmul.f32.vlgmr.msrb.gmra.mxu1 %v10691_v63  ;;  %446 = vmatmul.f32.vlgmr.msrb.gmra.mxu3 %v10691_v63  ;;  %v4877_v35 = vld [vmem:[%s10106_s2 + $0x370] sm:$0xff] }
  0x43   :  { %470 = vmatpush.msra.mxu1 %v4826_v23  ;;  %510 = vmatpush.msra.mxu3 %v4832_v19  ;;  %v4858_v23 = vld [vmem:[%s10106_s2 + $0x3b8] sm:$0xff]  ;;  %v4865_v19 = vld [vmem:[%s10106_s2 + $0x390] sm:$0xff]  ;;  %10719 = vst [vmem:[#allocation57_spill] sm:$0xff] %v4877_v35 }
  0x44   :  { %10716 = vst [vmem:[#allocation54_spill] sm:$0xff] %v4858_v23 }
  0x45   :  { %471 = vmatpush.msra.mxu1 %v4838_v47  ;;  %511 = vmatpush.msra.mxu3 %v4845_v27  ;;  %10717 = vst [vmem:[#allocation55_spill] sm:$0xff] %v4865_v19  ;;  %v4871_v47 = vld [vmem:[%s10106_s2 + $0x398] sm:$0xff] }
  0x46   :  { %10718 = vst [vmem:[#allocation56_spill] sm:$0xff] %v4871_v47  ;;  %v4883_v27 = vld [vmem:[%s10106_s2 + $0x378] sm:$0xff] }
  0x47   :  { %472 = vmatpush.msra.mxu1 %v4851_v39  ;;  %512 = vmatpush.msra.mxu3 %v4858_v23  ;;  %10720 = vst [vmem:[#allocation58_spill] sm:$0xff] %v4883_v27  ;;  %v4889_v39 = vld [vmem:[%s10106_s2 + $0x350] sm:$0xff]  ;;  %v4895_v23 = vld [vmem:[%s10106_s2 + $0x358] sm:$0xff] }
  0x48   :  { %10721 = vst [vmem:[#allocation59_spill] sm:$0xff] %v4889_v39 }
  0x49   :  { %473 = vmatpush.msra.mxu1 %v4865_v19  ;;  %513 = vmatpush.msra.mxu3 %v4871_v47  ;;  %10722 = vst [vmem:[#allocation60_spill] sm:$0xff] %v4895_v23  ;;  %v4901_v19 = vld [vmem:[%s10106_s2 + $0x330] sm:$0xff]  ;;  %v4907_v47 = vld [vmem:[%s10106_s2 + $0x338] sm:$0xff] }
  0x4a   :  { %10723 = vst [vmem:[#allocation61_spill] sm:$0xff] %v4901_v19 }
  0x4b   :  { %474 = vmatpush.msra.mxu1 %v4877_v35  ;;  %514 = vmatpush.msra.mxu3 %v4883_v27  ;;  %10724 = vst [vmem:[#allocation62_spill] sm:$0xff] %v4907_v47  ;;  %v4913_v35 = vld [vmem:[%s10106_s2 + $0x310] sm:$0xff]  ;;  %v4919_v27 = vld [vmem:[%s10106_s2 + $0x318] sm:$0xff] }
  0x4c   :  { %10725 = vst [vmem:[#allocation63_spill] sm:$0xff] %v4913_v35 }
  0x4d   :  { %475 = vmatpush.msra.mxu1 %v4889_v39  ;;  %515 = vmatpush.msra.mxu3 %v4895_v23  ;;  %10726 = vst [vmem:[#allocation64_spill] sm:$0xff] %v4919_v27  ;;  %v4925_v39 = vld [vmem:[%s10106_s2 + $0x2f0] sm:$0xff]  ;;  %v4931_v23 = vld [vmem:[%s10106_s2 + $0x2f8] sm:$0xff] }
  0x4e   :  { %10727 = vst [vmem:[#allocation65_spill] sm:$0xff] %v4925_v39 }
  0x4f   :  { %476 = vmatpush.msra.mxu1 %v4901_v19  ;;  %516 = vmatpush.msra.mxu3 %v4907_v47  ;;  %10728 = vst [vmem:[#allocation66_spill] sm:$0xff] %v4931_v23  ;;  %v4939_v47 = vld [vmem:[%s10106_s2 + $0xc0] sm:$0xff]  ;;  %v4949_v19 = vld [vmem:[%s10106_s2 + $0x2d0] sm:$0xff] }
  0x50   :  { %10729 = vst [vmem:[#allocation67_spill] sm:$0xff] %v4939_v47  ;;  %379 = vmatpush.msrb.mxu0 %v4939_v47  ;;  %v4968_v47 = vld [vmem:[%s10106_s2 + $0xa8] sm:$0xff] }
  0x51   :  { %477 = vmatpush.msra.mxu1 %v4913_v35  ;;  %517 = vmatpush.msra.mxu3 %v4919_v27  ;;  %v4944_v35 = vld [vmem:[%s10106_s2 + $0xc8] sm:$0xff]  ;;  %10731 = vst [vmem:[#allocation69_spill] sm:$0xff] %v4949_v19  ;;  %v5110_v27 = vld [vmem:[%s10106_s2 + $0x1f8] sm:$0xff] }
  0x52   :  { %10730 = vst [vmem:[#allocation68_spill] sm:$0xff] %v4944_v35  ;;  %419 = vmatpush.msrb.mxu2 %v4944_v35  ;;  %v4973_v35 = vld [vmem:[%s10106_s2 + $0x2b0] sm:$0xff] }
  0x53   :  { %478 = vmatpush.msra.mxu1 %v4925_v39  ;;  %518 = vmatpush.msra.mxu3 %v4931_v23  ;;  %v4956_v23 = vld [vmem:[%s10106_s2 + $0x2d8] sm:$0xff]  ;;  %v4963_v39 = vld [vmem:[%s10106_s2 + $0xa0] sm:$0xff]  ;;  %10734 = vst [vmem:[#allocation72_spill] sm:$0xff] %v4968_v47 }
  0x54   :  { %10732 = vst [vmem:[#allocation70_spill] sm:$0xff] %v4956_v23  ;;  %380 = vmatpush.msrb.mxu0 %v4963_v39  ;;  %420 = vmatpush.msrb.mxu2 %v4968_v47  ;;  %v4997_v47 = vld [vmem:[%s10106_s2 + $0x290] sm:$0xff] }
  0x55   :  { %479 = vmatpush.msra.mxu1 %v4949_v19  ;;  %519 = vmatpush.msra.mxu3 %v4956_v23  ;;  %10733 = vst [vmem:[#allocation71_spill] sm:$0xff] %v4963_v39  ;;  %v4980_v23 = vld [vmem:[%s10106_s2 + $0x2b8] sm:$0xff]  ;;  %v4987_v19 = vld [vmem:[%s10106_s2 + $0x80] sm:$0xff]  ;;  %v4992_v39 = vld [vmem:[%s10106_s2 + $0x88] sm:$0xff] }
  0x56   :  { %10735 = vst [vmem:[#allocation73_spill] sm:$0xff] %v4973_v35  ;;  %381 = vmatpush.msrb.mxu0 %v4987_v19  ;;  %421 = vmatpush.msrb.mxu2 %v4992_v39 }
  0x57   :  { %10736 = vst [vmem:[#allocation74_spill] sm:$0xff] %v4980_v23  ;;  %480 = vmatpush.msra.mxu1 %v4973_v35  ;;  %520 = vmatpush.msra.mxu3 %v4980_v23  ;;  %v5004_v23 = vld [vmem:[%s10106_s2 + $0x298] sm:$0xff]  ;;  %v5011_v35 = vld [vmem:[%s10106_s2 + $0x60] sm:$0xff] }
  0x58   :  { %10737 = vst [vmem:[#allocation75_spill] sm:$0xff] %v4987_v19  ;;  %v5016_v19 = vld [vmem:[%s10106_s2 + $0x68] sm:$0xff]  ;;  %382 = vmatpush.msrb.mxu0 %v5011_v35 }
  0x59   :  { %10738 = vst [vmem:[#allocation76_spill] sm:$0xff] %v4992_v39  ;;  %481 = vmatpush.msra.mxu1 %v4997_v47  ;;  %521 = vmatpush.msra.mxu3 %v5004_v23  ;;  %v5021_v39 = vld [vmem:[%s10106_s2 + $0x270] sm:$0xff] }
  0x5a   :  { %10739 = vst [vmem:[#allocation77_spill] sm:$0xff] %v4997_v47  ;;  %422 = vmatpush.msrb.mxu2 %v5016_v19  ;;  %v5035_v47 = vld [vmem:[%s10106_s2 + $0x40] sm:$0xff] }
  0x5b   :  { %10740 = vst [vmem:[#allocation78_spill] sm:$0xff] %v5004_v23  ;;  %v5028_v23 = vld [vmem:[%s10106_s2 + $0x278] sm:$0xff]  ;;  %482 = vmatpush.msra.mxu1 %v5021_v39  ;;  %383 = vmatpush.msrb.mxu0 %v5035_v47 }
  0x5c   :  { %10741 = vst [vmem:[#allocation79_spill] sm:$0xff] %v5011_v35  ;;  %522 = vmatpush.msra.mxu3 %v5028_v23  ;;  %v5040_v35 = vld [vmem:[%s10106_s2 + $0x48] sm:$0xff] }
  0x5d   :  { %10742 = vst [vmem:[#allocation80_spill] sm:$0xff] %v5016_v19  ;;  %v5045_v19 = vld [vmem:[%s10106_s2 + $0x250] sm:$0xff]  ;;  %423 = vmatpush.msrb.mxu2 %v5040_v35 }
  0x5e   :  { %10743 = vst [vmem:[#allocation81_spill] sm:$0xff] %v5021_v39  ;;  %483 = vmatpush.msra.mxu1 %v5045_v19  ;;  %v5059_v39 = vld [vmem:[%s10106_s2 + $0x20] sm:$0xff] }
  0x5f   :  { %10744 = vst [vmem:[#allocation82_spill] sm:$0xff] %v5028_v23  ;;  %v5052_v23 = vld [vmem:[%s10106_s2 + $0x258] sm:$0xff]  ;;  %384 = vmatpush.msrb.mxu0 %v5059_v39 }
  0x60   :  { %10745 = vst [vmem:[#allocation83_spill] sm:$0xff] %v5035_v47  ;;  %523 = vmatpush.msra.mxu3 %v5052_v23  ;;  %v5064_v47 = vld [vmem:[%s10106_s2 + $0x28] sm:$0xff] }
  0x61   :  { %10746 = vst [vmem:[#allocation84_spill] sm:$0xff] %v5040_v35  ;;  %v5069_v35 = vld [vmem:[%s10106_s2 + $0x230] sm:$0xff]  ;;  %424 = vmatpush.msrb.mxu2 %v5064_v47 }
  0x62   :  { %10747 = vst [vmem:[#allocation85_spill] sm:$0xff] %v5045_v19  ;;  %484 = vmatpush.msra.mxu1 %v5069_v35  ;;  %v5083_v19 = vld [vmem:[%s10106_s2] sm:$0xff] }
  0x63   :  { %10748 = vst [vmem:[#allocation86_spill] sm:$0xff] %v5052_v23  ;;  %v5076_v23 = vld [vmem:[%s10106_s2 + $0x238] sm:$0xff]  ;;  %385 = vmatpush.msrb.mxu0 %v5083_v19 }
  0x64   :  { %10749 = vst [vmem:[#allocation87_spill] sm:$0xff] %v5059_v39  ;;  %524 = vmatpush.msra.mxu3 %v5076_v23  ;;  %v5088_v39 = vld [vmem:[%s10106_s2 + $0x8] sm:$0xff] }
  0x65   :  { %10750 = vst [vmem:[#allocation88_spill] sm:$0xff] %v5064_v47  ;;  %v5093_v47 = vld [vmem:[%s10106_s2 + $0x210] sm:$0xff]  ;;  %425 = vmatpush.msrb.mxu2 %v5088_v39 }
  0x66   :  { %10751 = vst [vmem:[#allocation89_spill] sm:$0xff] %v5069_v35  ;;  %v5105_v35 = vld [vmem:[%s10106_s2 + $0x1f0] sm:$0xff]  ;;  %485 = vmatpush.msra.mxu1 %v5093_v47 }
  0x67   :  { %10752 = vst [vmem:[#allocation90_spill] sm:$0xff] %v5076_v23  ;;  %v5100_v23 = vld [vmem:[%s10106_s2 + $0x218] sm:$0xff]  ;;  %450 = vmatpush.msra.mxu0 %v5105_v35  ;;  %490 = vmatpush.msra.mxu2 %v5110_v27 }
  0x68   :  { %10753 = vst [vmem:[#allocation91_spill] sm:$0xff] %v5083_v19  ;;  %525 = vmatpush.msra.mxu3 %v5100_v23  ;;  %v5124_v19 = vld [vmem:[%s10106_s2 + $0x1d8] sm:$0xff]  ;;  %618 = vmatpush.msrb.mxu1 %v4174_v1  ;;  %v5147_v1 = vld [vmem:[%s10106_s2 + $0x190] sm:$0xff] }
  0x69   :  { %10754 = vst [vmem:[#allocation92_spill] sm:$0xff] %v5088_v39  ;;  %v5119_v39 = vld [vmem:[%s10106_s2 + $0x1d0] sm:$0xff]  ;;  %491 = vmatpush.msra.mxu2 %v5124_v19  ;;  %486 = vmatmul.f32.vlgmr.msra.gmra.mxu1 %v10691_v63 }
  0x6a   :  { %10755 = vst [vmem:[#allocation93_spill] sm:$0xff] %v5105_v35  ;;  %658 = vmatpush.msrb.mxu3 %v4179_v2  ;;  %451 = vmatpush.msra.mxu0 %v5119_v39  ;;  %v5138_v35 = vld [vmem:[%s10106_s2 + $0x1b8] sm:$0xff] }
  0x6b   :  { %10756 = vst [vmem:[#allocation94_spill] sm:$0xff] %v5110_v27  ;;  %v5133_v27 = vld [vmem:[%s10106_s2 + $0x1b0] sm:$0xff]  ;;  %619 = vmatpush.msrb.mxu1 %v4188_v4  ;;  %492 = vmatpush.msra.mxu2 %v5138_v35  ;;  %v5152_v2 = vld [vmem:[%s10106_s2 + $0x198] sm:$0xff] }
  0x6c   :  { %659 = vmatpush.msrb.mxu3 %v4193_v5  ;;  %452 = vmatpush.msra.mxu0 %v5133_v27  ;;  %v5163_v4 = vld [vmem:[%s10106_s2 + $0x170] sm:$0xff]  ;;  %v5168_v5 = vld [vmem:[%s10106_s2 + $0x178] sm:$0xff] }
  0x6d   :  { %620 = vmatpush.msrb.mxu1 %v4202_v7  ;;  %493 = vmatpush.msra.mxu2 %v5152_v2  ;;  %v5177_v7 = vld [vmem:[%s10106_s2 + $0x150] sm:$0xff] }
  0x6e   :  { %660 = vmatpush.msrb.mxu3 %v4208_v8  ;;  %453 = vmatpush.msra.mxu0 %v5147_v1  ;;  %v5182_v8 = vld [vmem:[%s10106_s2 + $0x158] sm:$0xff] }
  0x6f   :  { %621 = vmatpush.msrb.mxu1 %v4217_v10  ;;  %494 = vmatpush.msra.mxu2 %v5168_v5  ;;  %v5191_v10 = vld [vmem:[%s10106_s2 + $0x130] sm:$0xff] }
  0x70   :  { %661 = vmatpush.msrb.mxu3 %v4223_v11  ;;  %454 = vmatpush.msra.mxu0 %v5163_v4  ;;  %v5196_v11 = vld [vmem:[%s10106_s2 + $0x138] sm:$0xff] }
  0x71   :  { %622 = vmatpush.msrb.mxu1 %v4232_v13  ;;  %495 = vmatpush.msra.mxu2 %v5182_v8  ;;  %10757 = vst [vmem:[#allocation95_spill] sm:$0xff] %v5196_v11  ;;  %v5205_v13 = vld [vmem:[%s10106_s2 + $0x110] sm:$0xff] }
  0x72   :  { %662 = vmatpush.msrb.mxu3 %v4238_v14  ;;  %455 = vmatpush.msra.mxu0 %v5177_v7  ;;  %10758 = vst [vmem:[#allocation96_spill] sm:$0xff] %v5205_v13  ;;  %v5210_v14 = vld [vmem:[%s10106_s2 + $0x118] sm:$0xff] }
  0x73   :  { %623 = vmatpush.msrb.mxu1 %v4247_v16  ;;  %496 = vmatpush.msra.mxu2 %v5196_v11  ;;  %10759 = vst [vmem:[#allocation97_spill] sm:$0xff] %v5210_v14  ;;  %v210_v16 = vld [vmem:[%s10107_s0] sm:$0xff] }
  0x74   :  { %663 = vmatpush.msrb.mxu3 %v4258_v18  ;;  %456 = vmatpush.msra.mxu0 %v5191_v10  ;;  %v5222_v18 = vld [vmem:[%s10106_s2 + $0xf0] sm:$0xff] }
  0x75   :  { %624 = vmatpush.msrb.mxu1 %v4272_v21  ;;  %497 = vmatpush.msra.mxu2 %v5210_v14  ;;  %v5227_v21 = vld [vmem:[%s10106_s2 + $0xf8] sm:$0xff] }
  0x76   :  { %664 = vmatpush.msrb.mxu3 %v4279_v22  ;;  %457 = vmatpush.msra.mxu0 %v5205_v13  ;;  %10760 = vst [vmem:[#allocation98_spill] sm:$0xff] %v5227_v21  ;;  %v211_v22 = vld [vmem:[%s10107_s0 + $0x8] sm:$0xff]  ;;  %v5244_v14 = vld [vmem:[%s10106_s2 + $0xd8] sm:$0xff] }
  0x77   :  { %625 = vmatpush.msrb.mxu1 %v4293_v25  ;;  %498 = vmatpush.msra.mxu2 %v5227_v21 }
  0x78   :  { %665 = vmatpush.msrb.mxu3 %v4300_v26  ;;  %458 = vmatpush.msra.mxu0 %v5222_v18  ;;  %v5239_v26 = vld [vmem:[%s10106_s2 + $0xd0] sm:$0xff] }
  0x79   :  { %626 = vmatpush.msrb.mxu1 %v4314_v29  ;;  %499 = vmatpush.msra.mxu2 %v5244_v14  ;;  %v5253_v29 = vld [vmem:[%s10106_s2 + $0xb0] sm:$0xff] }
  0x7a   :  { %666 = vmatpush.msrb.mxu3 %v4321_v30  ;;  %459 = vmatpush.msra.mxu0 %v5239_v26  ;;  %v5258_v30 = vld [vmem:[%s10106_s2 + $0xb8] sm:$0xff] }
  0x7b   :  { %627 = vmatpush.msrb.mxu1 %v4335_v33  ;;  %500 = vmatpush.msra.mxu2 %v5258_v30  ;;  %v5267_v33 = vld [vmem:[%s10106_s2 + $0x90] sm:$0xff] }
  0x7c   :  { %667 = vmatpush.msrb.mxu3 %v4342_v34  ;;  %460 = vmatpush.msra.mxu0 %v5253_v29  ;;  %v5272_v34 = vld [vmem:[%s10106_s2 + $0x98] sm:$0xff] }
  0x7d   :  { %628 = vmatpush.msrb.mxu1 %v4358_v37  ;;  %501 = vmatpush.msra.mxu2 %v5272_v34  ;;  %v5284_v37 = vld [vmem:[%s10106_s2 + $0x70] sm:$0xff] }
  0x7e   :  { %668 = vmatpush.msrb.mxu3 %v4365_v38  ;;  %461 = vmatpush.msra.mxu0 %v5267_v33  ;;  %v5289_v38 = vld [vmem:[%s10106_s2 + $0x78] sm:$0xff] }
  0x7f   :  { %629 = vmatpush.msrb.mxu1 %v4381_v41  ;;  %526 = vmatmul.f32.vlgmr.msra.gmra.mxu3 %v10691_v63  ;;  %v5298_v41 = vld [vmem:[%s10106_s2 + $0x50] sm:$0xff] }
  0x80   :  { %669 = vmatpush.msrb.mxu3 %v4389_v42  ;;  %462 = vmatpush.msra.mxu0 %v5284_v37  ;;  %v5303_v42 = vld [vmem:[%s10106_s2 + $0x58] sm:$0xff] }
  0x81   :  { %502 = vmatpush.msra.mxu2 %v5289_v38  ;;  %630 = vmatpush.msrb.mxu1 %v4405_v45  ;;  %v5324_v45 = vld [vmem:[%s10106_s2 + $0x10] sm:$0xff] }
  0x82   :  { %670 = vmatpush.msrb.mxu3 %v4413_v46  ;;  %463 = vmatpush.msra.mxu0 %v5298_v41  ;;  %v5329_v46 = vld [vmem:[%s10106_s2 + $0x18] sm:$0xff] }
  0x83   :  { %503 = vmatpush.msra.mxu2 %v5303_v42  ;;  %631 = vmatpush.msrb.mxu1 %v4429_v49 }
  0x84   :  { %671 = vmatpush.msrb.mxu3 %v4437_v50  ;;  %v212_v50 = vld [vmem:[%s10107_s0 + $0x10] sm:$0xff] }
  0x85   :  { %632 = vmatpush.msrb.mxu1 %v4453_v53 }
  0x86   :  { %672 = vmatpush.msrb.mxu3 %v4461_v54 }
  0x87   :  { %633 = vmatpush.msrb.mxu1 %v4477_v57 }
  0x88   :  { %673 = vmatpush.msrb.mxu3 %v4485_v58 }
  0x89   :  { %765 = vmatpush.msra.mxu1 %v4499_v60 }
  0x8a   :  { %805 = vmatpush.msra.mxu3 %v4506_v62 }
  0x8b   :  { %766 = vmatpush.msra.mxu1 %v4518_v0 }
  0x8c   :  { %806 = vmatpush.msra.mxu3 %v4530_v6 }
  0x8d   :  { %767 = vmatpush.msra.mxu1 %v4546_v15 }
  0x8e   :  { %807 = vmatpush.msra.mxu3 %v4554_v20 }
  0x8f   :  { %768 = vmatpush.msra.mxu1 %v4570_v32 }
  0x90   :  { %808 = vmatpush.msra.mxu3 %v4578_v61 }
  0x91   :  { %769 = vmatpush.msra.mxu1 %v4594_v9 }
  0x92   :  { %809 = vmatpush.msra.mxu3 %v4602_v52 }
  0x93   :  { %770 = vmatpush.msra.mxu1 %v4608_v12 }
  0x94   :  { %810 = vmatpush.msra.mxu3 %v4621_v28 }
  0x95   :  { %771 = vmatpush.msra.mxu1 %v4633_v3 }
  0x96   :  { %811 = vmatpush.msra.mxu3 %v4644_v44 }
  0x97   :  { %772 = vmatpush.msra.mxu1 %v4656_v40 }
  0x98   :  { %812 = vmatpush.msra.mxu3 %v4668_v24  ;;  %v10762_v24 = vld [vmem:[#allocation42_spill] sm:$0xff] }
  0x99   :  { %773 = vmatpush.msra.mxu1 %v4680_v48 }
  0x9a   :  { %813 = vmatpush.msra.mxu3 %v4692_v56 }
  0x9b   :  { %774 = vmatpush.msra.mxu1 %v4704_v59  ;;  %v10761_v59 = vld [vmem:[#allocation40_spill] sm:$0xff] }
  0x9c   :  { %814 = vmatpush.msra.mxu3 %v4716_v55 }
  0x9d   :  { %775 = vmatpush.msra.mxu1 %v4728_v36 }
  0x9e   :  { %v231_v25 = vpop.f32.mrf.mxu0  ;;  %815 = vmatpush.msra.mxu3 %v4740_v51 }
  0x9f   :  { %v294_v13 = vadd.f32 %v231_v25, %v210_v16  ;;  %v251_v11 = vpop.f32.mrf.mxu1  ;;  %v5312_v25 = vld [vmem:[%s10106_s2 + $0x30] sm:$0xff]  ;;  %776 = vmatpush.msra.mxu1 %v4747_v31  ;;  %v10765_v31 = vld [vmem:[#allocation46_spill] sm:$0xff] }
  0xa0   :  { %v295_v21 = vadd.f32 %v251_v11, %v211_v22  ;;  %464 = vmatpush.msra.mxu0 %v5312_v25  ;;  %816 = vmatpush.msra.mxu3 %v4759_v43  ;;  %v5390_v43 = vld [vmem:[%s10105_s1 + $0x1e0] sm:$0xff] }
  0xa1   :  { %v3223_v16 = vmul.f32 -1.442695, %v294_v13  ;;  %v213_v13 = vld [vmem:[%s10107_s0 + $0x18] sm:$0xff]  ;;  %777 = vmatpush.msra.mxu1 %v10761_v59  ;;  %v10785_v59 = vld [vmem:[#allocation58_spill] sm:$0xff] }
  0xa2   :  { %v3224_v11 = vmul.f32 -1.442695, %v295_v21  ;;  %465 = vmatpush.msra.mxu0 %v5324_v45  ;;  %817 = vmatpush.msra.mxu3 %v10762_v24  ;;  %v5462_v24 = vld [vmem:[%s10105_s1 + $0xe0] sm:$0xff] }
  0xa3   :  { %3300 = vpow2.f32 %v3223_v16  ;;  %v5317_v16 = vld [vmem:[%s10106_s2 + $0x38] sm:$0xff] }
  0xa4   :  { %3302 = vpow2.f32 %v3224_v11  ;;  %504 = vmatpush.msra.mxu2 %v5317_v16  ;;  %818 = vmatpush.msra.mxu3 %v4795_v17  ;;  %v10766_v17 = vld [vmem:[#allocation2_spill] sm:$0xff] }
  0xa5   :  { %v291_v21 = vpop.f32.mrf.mxu3 }
  0xa6   :  { %v297_v22 = vadd.f32 %v291_v21, %v213_v13  ;;  %505 = vmatpush.msra.mxu2 %v5329_v46  ;;  %819 = vmatpush.msra.mxu3 %v10765_v31  ;;  %v10789_v31 = vld [vmem:[#allocation61_spill] sm:$0xff] }
  0xa8   :  { %v3225_v63 = vmul.f32 -1.442695, %v297_v22 }
  0xa9   :  { %v3301_v11 = vpop.eup %3300 }
  0xaa   :  { %v3303_v13 = vpop.eup %3302  ;;  %v301_v21 = vadd.f32 1.0, %v3301_v11  ;;  %3304 = vpow2.f32 %v3225_v63 }
  0xab   :  { %v320_v49 = vadd.f32 1.0, %v3303_v13 }
  0xac   :  { %3306 = vrcp.f32 %v301_v21  ;;  %v313_v6 = vand.u32 2147483648, %v301_v21  ;;  %v311_v20 = vand.u32 2147483647, %v301_v21  ;;  %vm307_vm2 = vweird.f32 %v301_v21 }
  0xad   :  { %3308 = vrcp.f32 %v320_v49  ;;  %v271_v53 = vpop.f32.mrf.mxu2  ;;  %v332_v15 = vand.u32 2147483648, %v320_v49  ;;  %vm326_vm3 = vweird.f32 %v320_v49 }
  0xae   :  { %v296_v22 = vadd.f32 %v271_v53, %v212_v50  ;;  %v330_v53 = vand.u32 2147483647, %v320_v49  ;;  %v314_v52 = vor.u32 1.1754944e-38, %v313_v6  ;;  %vm312_vm5 = vcmp.eq.f32.partialorder %v311_v20, 8.507059e+37  ;;  %v10768_v20 = vld [vmem:[#allocation3_spill] sm:$0xff] }
  0xb0   :  { %v3305_v54 = vpop.eup %3304  ;;  %vm331_vm7 = vcmp.eq.f32.partialorder %v330_v53, 8.507059e+37  ;;  %v5408_v53 = vld [vmem:[%s10105_s1 + $0x1a0] sm:$0xff] }
  0xb1   :  { %v5346_v63 = vadd.f32 1.0, %v3305_v54 }
  0xb2   :  { %v3307_v11 = vpop.eup %3306 }
  0xb3   :  { %v3309_v57 = vpop.eup %3308  ;;  %v303_v58 = vmul.f32 %v3307_v11, %v301_v21  ;;  %3310 = vrcp.f32 %v5346_v63  ;;  %vm308_vm0 = vweird.f32 %v3307_v11  ;;  %v352_v40 = vand.u32 2147483648, %v5346_v63 }
  0xb4   :  { %v322_v60 = vmul.f32 %v3309_v57, %v320_v49  ;;  %3312 = vtanh.f32 %v296_v22  ;;  %vm327_vm1 = vweird.f32 %v3309_v57  ;;  %vm309_vm4 = vmor %vm307_vm2, %vm308_vm0  ;;  %vm346_vm9 = vweird.f32 %v5346_v63 }
  0xb5   :  { %v304_v62 = vsub.f32 1.0, %v303_v58  ;;  %v333_v58 = vor.u32 1.1754944e-38, %v332_v15  ;;  %vm328_vm6 = vmor %vm326_vm3, %vm327_vm1  ;;  %v350_v48 = vand.u32 2147483647, %v5346_v63  ;;  %v353_v56 = vor.u32 1.1754944e-38, %v352_v40  ;;  %v5399_v15 = vld [vmem:[%s10105_s1 + $0x1c0] sm:$0xff] }
  0xb6   :  { %v323_v0 = vsub.f32 1.0, %v322_v60  ;;  %v10782_v40 = vld [vmem:[#allocation56_spill] sm:$0xff] }
  0xb7   :  { %v305_v13 = vmul.f32 %v3307_v11, %v304_v62  ;;  %vm351_vm11 = vcmp.eq.f32.partialorder %v350_v48, 8.507059e+37  ;;  %v5453_v48 = vld [vmem:[%s10105_s1 + $0x100] sm:$0xff] }
  0xb8   :  { %v324_v50 = vmul.f32 %v3309_v57, %v323_v0 }
  0xb9   :  { %v3311_v32 = vpop.eup %3310  ;;  %v306_v61 = vadd.f32 %v3307_v11, %v305_v13  ;;  %v10767_v13 = vld [vmem:[#allocation47_spill] sm:$0xff] }
  0xba   :  { %v3313_v54 = vpop.eup %3312  ;;  %v342_v9 = vmul.f32 %v3311_v32, %v5346_v63  ;;  %v325_v22 = vadd.f32 %v3309_v57, %v324_v50  ;;  %vm347_vm8 = vweird.f32 %v3311_v32  ;;  %v10764_v63 = vld [vmem:[#allocation45_spill] sm:$0xff]  ;;  %v10769_v50 = vld [vmem:[#allocation48_spill] sm:$0xff] }
  0xbb   :  { %v310_v60 = vsel %vm309_vm4, %v3307_v11, %v306_v61  ;;  %vm348_vm10 = vmor %vm346_vm9, %vm347_vm8  ;;  %820 = vmatpush.msra.mxu3 %v10769_v50  ;;  %v10771_v61 = vld [vmem:[#allocation4_spill] sm:$0xff]  ;;  %v10793_v50 = vld [vmem:[#allocation63_spill] sm:$0xff] }
  0xbc   :  { %v343_v12 = vsub.f32 1.0, %v342_v9  ;;  %v315_v28 = vsel %vm312_vm5, %v314_v52, %v310_v60  ;;  %v329_v62 = vsel %vm328_vm6, %v3309_v57, %v325_v22  ;;  %v10763_v57 = vld [vmem:[#allocation43_spill] sm:$0xff]  ;;  %v5417_v9 = vld [vmem:[%s10105_s1 + $0x180] sm:$0xff]  ;;  %v10774_v22 = vld [vmem:[#allocation5_spill] sm:$0xff] }
  0xbd   :  { %v334_v21 = vsel %vm331_vm7, %v333_v58, %v329_v62  ;;  %v357_v49 = vmul.f32 %v3313_v54, %v315_v28  ;;  %778 = vmatpush.msra.mxu1 %v10763_v57  ;;  %v10772_v54 = vld [vmem:[#allocation50_spill] sm:$0xff]  ;;  %v10773_v52 = vld [vmem:[#allocation51_spill] sm:$0xff]  ;;  %v10777_v62 = vld [vmem:[#allocation53_spill] sm:$0xff] }
  0xbe   :  { %v344_v0 = vmul.f32 %v3311_v32, %v343_v12  ;;  %v356_v6 = vmul.f32 0.0, %v334_v21  ;;  %v5427_v58 = vld [vmem:[%s10105_s1 + $0x160] sm:$0xff]  ;;  %v10776_v12 = vld [vmem:[#allocation52_spill] sm:$0xff]  ;;  %v10778_v21 = vld [vmem:[#allocation7_spill] sm:$0xff] }
  0xbf   :  { %779 = vmatpush.msra.mxu1 %v10764_v63  ;;  %v10775_v60 = vld [vmem:[#allocation6_spill] sm:$0xff]  ;;  %v10788_v57 = vld [vmem:[#allocation60_spill] sm:$0xff] }
  0xc0   :  { %v5365_v44 = vadd.f32 %v357_v49, %v356_v6  ;;  %v345_v3 = vadd.f32 %v3311_v32, %v344_v0  ;;  %v5435_v28 = vld [vmem:[%s10105_s1 + $0x140] sm:$0xff]  ;;  %v10780_v6 = vld [vmem:[#allocation55_spill] sm:$0xff] }
  0xc1   :  { %780 = vmatpush.msra.mxu1 %v10767_v13  ;;  %v10779_v49 = vld [vmem:[#allocation54_spill] sm:$0xff] }
  0xc2   :  { %3314 = vtanh.f32 %v5365_v44  ;;  %v349_v55 = vsel %vm348_vm10, %v3311_v32, %v345_v3  ;;  %v10770_v32 = vld [vmem:[#allocation49_spill] sm:$0xff]  ;;  %v5444_v0 = vld [vmem:[%s10105_s1 + $0x120] sm:$0xff] }
  0xc3   :  { %v354_v36 = vsel %vm351_vm11, %v353_v56, %v349_v55  ;;  %v10781_v3 = vld [vmem:[#allocation9_spill] sm:$0xff]  ;;  %v10784_v56 = vld [vmem:[#allocation11_spill] sm:$0xff]  ;;  %v5471_v63 = vld [vmem:[%s10105_s1 + $0xc0] sm:$0xff] }
  0xc4   :  { %v10783_v55 = vld [vmem:[#allocation57_spill] sm:$0xff]  ;;  %v10791_v13 = vld [vmem:[#allocation62_spill] sm:$0xff] }
  0xc8   :  { %v3315_v11 = vpop.eup %3314 }
  0xc9   :  { %v5381_v51 = vmul.f32 %v3315_v11, %v354_v36  ;;  %v10786_v11 = vld [vmem:[#allocation59_spill] sm:$0xff]  ;;  %v10787_v36 = vld [vmem:[#allocation13_spill] sm:$0xff] }
  0xcb   :  { %386 = vmatmul.f32.vlgmr.msrb.gmra.mxu0 %v5381_v51  ;;  %426 = vmatmul.f32.vlgmr.msrb.gmra.mxu2 %v5381_v51 }
  0xcc   :  { %598 = vmatpush.msrb.mxu0 %v5390_v43  ;;  %634 = vmatmul.f32.vlgmr.msrb.gmra.mxu1 %v5381_v51 }
  0xcd   :  { %638 = vmatpush.msrb.mxu2 %v10766_v17  ;;  %674 = vmatmul.f32.vlgmr.msrb.gmra.mxu3 %v5381_v51  ;;  %v10790_v17 = vld [vmem:[#allocation15_spill] sm:$0xff] }
  0xce   :  { %599 = vmatpush.msrb.mxu0 %v5399_v15  ;;  %845 = vmatpush.msrb.mxu1 %v10770_v32  ;;  %v10794_v32 = vld [vmem:[#allocation17_spill] sm:$0xff] }
  0xcf   :  { %639 = vmatpush.msrb.mxu2 %v10768_v20  ;;  %885 = vmatpush.msrb.mxu3 %v10772_v54  ;;  %v10792_v20 = vld [vmem:[#allocation8_spill] sm:$0xff]  ;;  %v10796_v54 = vld [vmem:[#allocation10_spill] sm:$0xff] }
  0xd0   :  { %600 = vmatpush.msrb.mxu0 %v5408_v53  ;;  %846 = vmatpush.msrb.mxu1 %v10773_v52  ;;  %v10797_v52 = vld [vmem:[#allocation65_spill] sm:$0xff] }
  0xd1   :  { %640 = vmatpush.msrb.mxu2 %v10771_v61  ;;  %886 = vmatpush.msrb.mxu3 %v10776_v12  ;;  %v10795_v61 = vld [vmem:[#allocation64_spill] sm:$0xff] }
  0xd2   :  { %601 = vmatpush.msrb.mxu0 %v5417_v9  ;;  %847 = vmatpush.msrb.mxu1 %v10777_v62  ;;  %v10800_v12 = vld [vmem:[#allocation12_spill] sm:$0xff]  ;;  %v10801_v62 = vld [vmem:[#allocation69_spill] sm:$0xff] }
  0xd3   :  { %641 = vmatpush.msrb.mxu2 %v10774_v22  ;;  %466 = vmatmul.f32.vlgmr.msra.gmra.mxu0 %v5381_v51  ;;  %v10798_v22 = vld [vmem:[#allocation19_spill] sm:$0xff] }
  0xd4   :  { %506 = vmatmul.f32.vlgmr.msra.gmra.mxu2 %v5381_v51  ;;  %602 = vmatpush.msrb.mxu0 %v5427_v58 }
  0xd5   :  { %642 = vmatpush.msrb.mxu2 %v10775_v60  ;;  %887 = vmatpush.msrb.mxu3 %v10779_v49  ;;  %v10799_v60 = vld [vmem:[#allocation66_spill] sm:$0xff] }
  0xd6   :  { %603 = vmatpush.msrb.mxu0 %v5435_v28  ;;  %848 = vmatpush.msrb.mxu1 %v10780_v6  ;;  %v10803_v49 = vld [vmem:[#allocation70_spill] sm:$0xff] }
  0xd7   :  { %643 = vmatpush.msrb.mxu2 %v10778_v21  ;;  %888 = vmatpush.msrb.mxu3 %v10782_v40  ;;  %v10802_v21 = vld [vmem:[#allocation20_spill] sm:$0xff]  ;;  %v10804_v6 = vld [vmem:[#allocation14_spill] sm:$0xff]  ;;  %v10806_v40 = vld [vmem:[#allocation23_spill] sm:$0xff] }
  0xd8   :  { %604 = vmatpush.msrb.mxu0 %v5444_v0  ;;  %849 = vmatpush.msrb.mxu1 %v10783_v55  ;;  %v10807_v55 = vld [vmem:[#allocation74_spill] sm:$0xff] }
  0xd9   :  { %644 = vmatpush.msrb.mxu2 %v10781_v3  ;;  %889 = vmatpush.msrb.mxu3 %v10785_v59  ;;  %v10805_v3 = vld [vmem:[#allocation73_spill] sm:$0xff] }
  0xda   :  { %605 = vmatpush.msrb.mxu0 %v5453_v48  ;;  %850 = vmatpush.msrb.mxu1 %v10786_v11  ;;  %v10809_v59 = vld [vmem:[#allocation77_spill] sm:$0xff] }
  0xdb   :  { %645 = vmatpush.msrb.mxu2 %v10784_v56  ;;  %890 = vmatpush.msrb.mxu3 %v10788_v57  ;;  %v10808_v56 = vld [vmem:[#allocation16_spill] sm:$0xff]  ;;  %v10810_v11 = vld [vmem:[#allocation25_spill] sm:$0xff]  ;;  %v10812_v57 = vld [vmem:[#allocation18_spill] sm:$0xff] }
  0xdc   :  { %606 = vmatpush.msrb.mxu0 %v5462_v24  ;;  %851 = vmatpush.msrb.mxu1 %v10789_v31  ;;  %v10813_v31 = vld [vmem:[#allocation81_spill] sm:$0xff] }
  0xdd   :  { %646 = vmatpush.msrb.mxu2 %v10787_v36  ;;  %891 = vmatpush.msrb.mxu3 %v10791_v13  ;;  %v10811_v36 = vld [vmem:[#allocation78_spill] sm:$0xff]  ;;  %v10815_v13 = vld [vmem:[#allocation21_spill] sm:$0xff] }
  0xde   :  { %607 = vmatpush.msrb.mxu0 %v5471_v63  ;;  %852 = vmatpush.msrb.mxu1 %v10793_v50  ;;  %v10817_v50 = vld [vmem:[#allocation82_spill] sm:$0xff] }
  0xdf   :  { %647 = vmatpush.msrb.mxu2 %v10790_v17  ;;  %892 = vmatpush.msrb.mxu3 %v10795_v61  ;;  %v10814_v17 = vld [vmem:[#allocation27_spill] sm:$0xff]  ;;  %v10819_v61 = vld [vmem:[#allocation85_spill] sm:$0xff] }
  0xe0   :  { %608 = vmatpush.msrb.mxu0 %v10792_v20  ;;  %853 = vmatpush.msrb.mxu1 %v10797_v52  ;;  %v10816_v20 = vld [vmem:[#allocation28_spill] sm:$0xff]  ;;  %v10821_v52 = vld [vmem:[#allocation86_spill] sm:$0xff] }
  0xe1   :  { %648 = vmatpush.msrb.mxu2 %v10794_v32  ;;  %893 = vmatpush.msrb.mxu3 %v10799_v60  ;;  %v10818_v32 = vld [vmem:[#allocation22_spill] sm:$0xff]  ;;  %v10823_v60 = vld [vmem:[#allocation89_spill] sm:$0xff] }
  0xe2   :  { %609 = vmatpush.msrb.mxu0 %v10796_v54  ;;  %854 = vmatpush.msrb.mxu1 %v10801_v62  ;;  %v10820_v54 = vld [vmem:[#allocation30_spill] sm:$0xff] }
  0xe3   :  { %649 = vmatpush.msrb.mxu2 %v10798_v22  ;;  %894 = vmatpush.msrb.mxu3 %v10803_v49  ;;  %v10822_v22 = vld [vmem:[#allocation24_spill] sm:$0xff]  ;;  %v10826_v62 = vld [vmem:[#allocation26_spill] sm:$0xff]  ;;  %v10828_v49 = vld [vmem:[#allocation29_spill] sm:$0xff] }
  0xe4   :  { %610 = vmatpush.msrb.mxu0 %v10800_v12  ;;  %855 = vmatpush.msrb.mxu1 %v10805_v3  ;;  %v10824_v12 = vld [vmem:[#allocation32_spill] sm:$0xff]  ;;  %v10830_v3 = vld [vmem:[#allocation31_spill] sm:$0xff] }
  0xe5   :  { %650 = vmatpush.msrb.mxu2 %v10802_v21  ;;  %895 = vmatpush.msrb.mxu3 %v10807_v55  ;;  %v10827_v21 = vld [vmem:[#allocation34_spill] sm:$0xff]  ;;  %v10832_v55 = vld [vmem:[#allocation33_spill] sm:$0xff] }
  0xe6   :  { %611 = vmatpush.msrb.mxu0 %v10804_v6  ;;  %856 = vmatpush.msrb.mxu1 %v10809_v59  ;;  %v10829_v6 = vld [vmem:[#allocation36_spill] sm:$0xff]  ;;  %v10834_v59 = vld [vmem:[#allocation35_spill] sm:$0xff] }
  0xe7   :  { %651 = vmatpush.msrb.mxu2 %v10806_v40  ;;  %896 = vmatpush.msrb.mxu3 %v10811_v36  ;;  %v10831_v40 = vld [vmem:[#allocation38_spill] sm:$0xff]  ;;  %v10837_v36 = vld [vmem:[#allocation44_spill] sm:$0xff] }
  0xe8   :  { %612 = vmatpush.msrb.mxu0 %v10808_v56  ;;  %857 = vmatpush.msrb.mxu1 %v10813_v31  ;;  %v10833_v56 = vld [vmem:[#allocation39_spill] sm:$0xff] }
  0xe9   :  { %652 = vmatpush.msrb.mxu2 %v10810_v11  ;;  %897 = vmatpush.msrb.mxu3 %v10817_v50  ;;  %v10835_v11 = vld [vmem:[#allocation41_spill] sm:$0xff]  ;;  %v10840_v31 = vld [vmem:[#allocation71_spill] sm:$0xff] }
  0xea   :  { %613 = vmatpush.msrb.mxu0 %v10812_v57  ;;  %858 = vmatpush.msrb.mxu1 %v10819_v61  ;;  %v10839_v57 = vld [vmem:[#allocation68_spill] sm:$0xff]  ;;  %v10844_v50 = vld [vmem:[#allocation79_spill] sm:$0xff] }
  0xeb   :  { %653 = vmatpush.msrb.mxu2 %v10814_v17  ;;  %614 = vmatmul.f32.vlgmr.msrb.gmra.mxu0 %v5381_v51  ;;  %v10841_v17 = vld [vmem:[#allocation72_spill] sm:$0xff]  ;;  %v10846_v61 = vld [vmem:[#allocation83_spill] sm:$0xff] }
  0xec   :  { %654 = vmatmul.f32.vlgmr.msrb.gmra.mxu2 %v5381_v51  ;;  %745 = vmatpush.msra.mxu0 %v10815_v13  ;;  %v10825_v51 = vld [vmem:[#allocation90_spill] sm:$0xff]  ;;  %v10842_v13 = vld [vmem:[#allocation75_spill] sm:$0xff] }
  0xed   :  { %785 = vmatpush.msra.mxu2 %v10816_v20  ;;  %898 = vmatpush.msrb.mxu3 %v10821_v52  ;;  %v10843_v20 = vld [vmem:[#allocation76_spill] sm:$0xff]  ;;  %v10848_v52 = vld [vmem:[#allocation87_spill] sm:$0xff] }
  0xee   :  { %746 = vmatpush.msra.mxu0 %v10818_v32  ;;  %859 = vmatpush.msrb.mxu1 %v10823_v60  ;;  %v10845_v32 = vld [vmem:[#allocation80_spill] sm:$0xff]  ;;  %v10850_v60 = vld [vmem:[#allocation91_spill] sm:$0xff] }
  0xef   :  { %786 = vmatpush.msra.mxu2 %v10820_v54  ;;  %899 = vmatpush.msrb.mxu3 %v10825_v51  ;;  %v10847_v54 = vld [vmem:[#allocation84_spill] sm:$0xff]  ;;  %v10852_v51 = vld [vmem:[#allocation93_spill] sm:$0xff] }
  0xf0   :  { %747 = vmatpush.msra.mxu0 %v10822_v22  ;;  %860 = vmatpush.msrb.mxu1 %v5093_v47  ;;  %v10836_v47 = vld [vmem:[#allocation37_spill] sm:$0xff]  ;;  %v10849_v22 = vld [vmem:[#allocation88_spill] sm:$0xff] }
  0xf1   :  { %787 = vmatpush.msra.mxu2 %v10824_v12  ;;  %900 = vmatpush.msrb.mxu3 %v5100_v23  ;;  %v10838_v23 = vld [vmem:[#allocation67_spill] sm:$0xff]  ;;  %v10851_v12 = vld [vmem:[#allocation92_spill] sm:$0xff] }
  0xf2   :  { %748 = vmatpush.msra.mxu0 %v10826_v62  ;;  %v10853_v62 = vld [vmem:[#allocation94_spill] sm:$0xff] }
  0xf3   :  { %788 = vmatpush.msra.mxu2 %v10827_v21 }
  0xf4   :  { %749 = vmatpush.msra.mxu0 %v10828_v49 }
  0xf5   :  { %789 = vmatpush.msra.mxu2 %v10829_v6 }
  0xf6   :  { %750 = vmatpush.msra.mxu0 %v10830_v3  ;;  %v3232_v3 = vld [vmem:[%s10107_s0 + $0x38] sm:$0xff] }
  0xf7   :  { %790 = vmatpush.msra.mxu2 %v10831_v40 }
  0xf8   :  { %751 = vmatpush.msra.mxu0 %v10832_v55 }
  0xf9   :  { %791 = vmatpush.msra.mxu2 %v10833_v56 }
  0xfa   :  { %752 = vmatpush.msra.mxu0 %v10834_v59 }
  0xfb   :  { %792 = vmatpush.msra.mxu2 %v10835_v11 }
  0xfc   :  { %753 = vmatpush.msra.mxu0 %v10836_v47 }
  0xfd   :  { %793 = vmatpush.msra.mxu2 %v10837_v36 }
  0xfe   :  { %754 = vmatpush.msra.mxu0 %v10838_v23 }
  0xff   :  { %794 = vmatpush.msra.mxu2 %v10839_v57 }
 0x100   :  { %755 = vmatpush.msra.mxu0 %v10840_v31 }
 0x101   :  { %795 = vmatpush.msra.mxu2 %v10841_v17 }
 0x102   :  { %756 = vmatpush.msra.mxu0 %v10842_v13 }
 0x103   :  { %796 = vmatpush.msra.mxu2 %v10843_v20 }
 0x104   :  { %757 = vmatpush.msra.mxu0 %v10844_v50 }
 0x105   :  { %797 = vmatpush.msra.mxu2 %v10845_v32 }
 0x106   :  { %758 = vmatpush.msra.mxu0 %v10846_v61 }
 0x107   :  { %798 = vmatpush.msra.mxu2 %v10847_v54 }
 0x108   :  { %759 = vmatpush.msra.mxu0 %v10848_v52 }
 0x109   :  { %799 = vmatpush.msra.mxu2 %v10849_v22 }
 0x10a   :  { %760 = vmatpush.msra.mxu0 %v10850_v60 }
 0x10b   :  { %800 = vmatpush.msra.mxu2 %v10851_v12  ;;  %v3229_v12 = vld [vmem:[%s10107_s0 + $0x20] sm:$0xff] }
 0x10c   :  { %825 = vmatpush.msrb.mxu0 %v10852_v51 }
 0x10d   :  { %865 = vmatpush.msrb.mxu2 %v10853_v62 }
 0x10e   :  { %826 = vmatpush.msrb.mxu0 %v5119_v39  ;;  %v10854_v39 = vld [vmem:[#allocation95_spill] sm:$0xff] }
 0x10f   :  { %866 = vmatpush.msrb.mxu2 %v5124_v19  ;;  %v10855_v19 = vld [vmem:[#allocation96_spill] sm:$0xff] }
 0x110   :  { %827 = vmatpush.msrb.mxu0 %v5133_v27  ;;  %v10856_v27 = vld [vmem:[#allocation97_spill] sm:$0xff] }
 0x111   :  { %867 = vmatpush.msrb.mxu2 %v5138_v35  ;;  %v10857_v35 = vld [vmem:[#allocation98_spill] sm:$0xff] }
 0x112   :  { %828 = vmatpush.msrb.mxu0 %v5147_v1  ;;  %v407_v1 = vpop.f32.mrf.mxu1 }
 0x113   :  { %868 = vmatpush.msrb.mxu2 %v5152_v2  ;;  %v209_v2 = vld [vmem:[%s10108_s3] sm:$0xf] }
 0x114   :  { %829 = vmatpush.msrb.mxu0 %v5163_v4  ;;  %v5591_v59 = vperm.slane %v209_v2, 2 }
 0x115   :  { %869 = vmatpush.msrb.mxu2 %v5168_v5  ;;  %v5576_v5 = vperm.slane %v209_v2, 0 }
 0x116   :  { %830 = vmatpush.msrb.mxu0 %v5177_v7  ;;  %v447_v7 = vpop.f32.mrf.mxu3  ;;  %10861 = vst [vmem:[#allocation45_spill] sm:$0xff] %v5591_v59 }
 0x117   :  { %870 = vmatpush.msrb.mxu2 %v5182_v8  ;;  %10858 = vst [vmem:[#allocation40_spill] sm:$0xff] %v5576_v5 }
 0x118   :  { %831 = vmatpush.msrb.mxu0 %v5191_v10 }
 0x119   :  { %871 = vmatpush.msrb.mxu2 %v10854_v39 }
 0x11a   :  { %832 = vmatpush.msrb.mxu0 %v10855_v19  ;;  %v487_v4 = vpop.f32.mrf.mxu1 }
 0x11b   :  { %872 = vmatpush.msrb.mxu2 %v10856_v27  ;;  %v5640_v27 = vld [vmem:[%s10105_s1 + $0x1f8] sm:$0xff] }
 0x11c   :  { %833 = vmatpush.msrb.mxu0 %v5222_v18  ;;  %v5579_v18 = vperm.slane %v209_v2, 1 }
 0x11d   :  { %873 = vmatpush.msrb.mxu2 %v10857_v35 }
 0x11e   :  { %834 = vmatpush.msrb.mxu0 %v5239_v26  ;;  %10859 = vst [vmem:[#allocation42_spill] sm:$0xff] %v5579_v18 }
 0x11f   :  { %874 = vmatpush.msrb.mxu2 %v5244_v14 }
 0x120   :  { %835 = vmatpush.msrb.mxu0 %v5253_v29 }
 0x121   :  { %875 = vmatpush.msrb.mxu2 %v5258_v30  ;;  %v3230_v30 = vld [vmem:[%s10107_s0 + $0x28] sm:$0xff] }
 0x122   :  { %836 = vmatpush.msrb.mxu0 %v5267_v33 }
 0x123   :  { %876 = vmatpush.msrb.mxu2 %v5272_v34 }
 0x124   :  { %837 = vmatpush.msrb.mxu0 %v5284_v37  ;;  %v527_v37 = vpop.f32.mrf.mxu3 }
 0x125   :  { %877 = vmatpush.msrb.mxu2 %v5289_v38 }
 0x126   :  { %838 = vmatpush.msrb.mxu0 %v5298_v41 }
 0x127   :  { %878 = vmatpush.msrb.mxu2 %v5303_v42 }
 0x128   :  { %839 = vmatpush.msrb.mxu0 %v5312_v25 }
 0x129   :  { %879 = vmatpush.msrb.mxu2 %v5317_v16  ;;  %v5585_v16 = vperm.slane %v209_v2, 3 }
 0x12a   :  { %840 = vmatpush.msrb.mxu0 %v5324_v45 }
 0x12b   :  { %880 = vmatpush.msrb.mxu2 %v5329_v46  ;;  %10860 = vst [vmem:[#allocation43_spill] sm:$0xff] %v5585_v16 }
 0x148   :  { %v387_v8 = vpop.f32.mrf.mxu0 }
 0x149   :  { %v388_v10 = vadd.f32 %v387_v8, %v5576_v5  ;;  %v635_v33 = vpop.f32.mrf.mxu1 }
 0x14a   :  { %v679_v41 = vadd.f32 %v3230_v30, %v635_v33 }
 0x14b   :  { %v408_v14 = vadd.f32 %v407_v1, %v388_v10 }
 0x14c   :  { %v3234_v46 = vmul.f32 -1.442695, %v679_v41 }
 0x14d   :  { %v3226_v26 = vmul.f32 -1.442695, %v408_v14 }
 0x14e   :  { %v427_v29 = vpop.f32.mrf.mxu2 }
 0x14f   :  { %3316 = vpow2.f32 %v3226_v26  ;;  %v428_v34 = vadd.f32 %v427_v29, %v5579_v18 }
 0x150   :  { %v675_v40 = vpop.f32.mrf.mxu3  ;;  %v467_v11 = vpop.f32.mrf.mxu0 }
 0x151   :  { %v448_v38 = vadd.f32 %v447_v7, %v428_v34  ;;  %v681_v23 = vadd.f32 %v3232_v3, %v675_v40  ;;  %v468_v17 = vadd.f32 %v467_v11, %v5591_v59 }
 0x153   :  { %v3227_v42 = vmul.f32 -1.442695, %v448_v38  ;;  %v3235_v20 = vmul.f32 -1.442695, %v681_v23  ;;  %v488_v54 = vadd.f32 %v487_v4, %v468_v17 }
 0x155   :  { %v3317_v25 = vpop.eup %3316  ;;  %3318 = vpow2.f32 %v3227_v42 }
 0x156   :  { %v533_v45 = vadd.f32 1.0, %v3317_v25 }
 0x157   :  { %v507_v21 = vpop.f32.mrf.mxu2 }
 0x158   :  { %3320 = vrcp.f32 %v533_v45  ;;  %v508_v49 = vadd.f32 %v507_v21, %v5585_v16  ;;  %v545_v60 = vand.u32 2147483648, %v533_v45  ;;  %vm539_vm13 = vweird.f32 %v533_v45 }
 0x159   :  { %3322 = vpow2.f32 %v3234_v46  ;;  %v543_v39 = vand.u32 2147483647, %v533_v45 }
 0x15a   :  { %v528_v55 = vadd.f32 %v527_v37, %v508_v49  ;;  %v546_v10 = vor.u32 1.1754944e-38, %v545_v60 }
 0x15b   :  { %v3319_v6 = vpop.eup %3318  ;;  %vm544_vm1 = vcmp.eq.f32.partialorder %v543_v39, 8.507059e+37 }
 0x15c   :  { %v552_v56 = vadd.f32 1.0, %v3319_v6  ;;  %v3228_v47 = vmul.f32 -1.442695, %v528_v55 }
 0x15e   :  { %v3321_v36 = vpop.eup %3320  ;;  %3324 = vrcp.f32 %v552_v56  ;;  %v564_v19 = vand.u32 2147483648, %v552_v56  ;;  %v562_v35 = vand.u32 2147483647, %v552_v56  ;;  %vm558_vm0 = vweird.f32 %v552_v56 }
 0x15f   :  { %v535_v57 = vmul.f32 %v3321_v36, %v533_v45  ;;  %v3323_v31 = vpop.eup %3322  ;;  %3326 = vpow2.f32 %v3228_v47  ;;  %vm540_vm12 = vweird.f32 %v3321_v36 }
 0x160   :  { %v5594_v50 = vadd.f32 1.0, %v3323_v31  ;;  %3328 = vpow2.f32 %v3235_v20  ;;  %vm5600_vm14 = vmor %vm539_vm13, %vm540_vm12  ;;  %v565_v30 = vor.u32 1.1754944e-38, %v564_v19  ;;  %vm563_vm3 = vcmp.eq.f32.partialorder %v562_v35, 8.507059e+37  ;;  %v5634_v19 = vld [vmem:[%s10105_s1 + $0x1e8] sm:$0xff] }
 0x161   :  { %v536_v13 = vsub.f32 1.0, %v535_v57 }
 0x162   :  { %3330 = vrcp.f32 %v5594_v50  ;;  %vm710_vm9 = vweird.f32 %v5594_v50 }
 0x163   :  { %v537_v32 = vmul.f32 %v3321_v36, %v536_v13  ;;  %3332 = vtanh.f32 %v488_v54  ;;  %v3231_v13 = vld [vmem:[%s10107_s0 + $0x30] sm:$0xff] }
 0x164   :  { %v3325_v61 = vpop.eup %3324 }
 0x165   :  { %v554_v52 = vmul.f32 %v3325_v61, %v552_v56  ;;  %v538_v22 = vadd.f32 %v3321_v36, %v537_v32  ;;  %v3327_v51 = vpop.eup %3326  ;;  %vm559_vm15 = vweird.f32 %v3325_v61 }
 0x166   :  { %v572_v1 = vadd.f32 1.0, %v3327_v51  ;;  %v3329_v29 = vpop.eup %3328  ;;  %vm560_vm2 = vmor %vm558_vm0, %vm559_vm15 }
 0x167   :  { %v555_v62 = vsub.f32 1.0, %v554_v52  ;;  %v542_v7 = vsel %vm5600_vm14, %v3321_v36, %v538_v22  ;;  %v5608_v46 = vadd.f32 1.0, %v3329_v29 }
 0x168   :  { %v615_v2 = vpop.f32.mrf.mxu0  ;;  %3334 = vrcp.f32 %v572_v1  ;;  %v547_v33 = vsel %vm544_vm1, %v546_v10, %v542_v7  ;;  %v5606_v34 = vpop.eup %3330  ;;  %v584_v56 = vand.u32 2147483648, %v572_v1  ;;  %v582_v36 = vand.u32 2147483647, %v572_v1  ;;  %v5653_v7 = vld [vmem:[%s10105_s1 + $0x1c8] sm:$0xff] }
 0x169   :  { %v556_v4 = vmul.f32 %v3325_v61, %v555_v62  ;;  %v678_v8 = vadd.f32 %v3229_v12, %v615_v2  ;;  %v3333_v38 = vpop.eup %3332  ;;  %v706_v21 = vmul.f32 %v5606_v34, %v5594_v50  ;;  %vm578_vm5 = vweird.f32 %v572_v1  ;;  %v5806_v2 = vld [vmem:[%s10105_s1 + $0x1f0] sm:$0xff] }
 0x16a   :  { %v589_v25 = vmul.f32 %v3333_v38, %v547_v33  ;;  %v585_v57 = vor.u32 1.1754944e-38, %v584_v56  ;;  %vm583_vm7 = vcmp.eq.f32.partialorder %v582_v36, 8.507059e+37  ;;  %vm711_vm8 = vweird.f32 %v5606_v34  ;;  %v5675_v33 = vld [vmem:[%s10105_s1 + $0x1b8] sm:$0xff] }
 0x16b   :  { %v557_v14 = vadd.f32 %v3325_v61, %v556_v4  ;;  %v3233_v26 = vmul.f32 -1.442695, %v678_v8  ;;  %v707_v11 = vsub.f32 1.0, %v706_v21  ;;  %v716_v62 = vand.u32 2147483648, %v5594_v50  ;;  %vm5645_vm10 = vmor %vm710_vm9, %vm711_vm8  ;;  %v5659_v8 = vld [vmem:[%s10105_s1 + $0x1d8] sm:$0xff] }
 0x16c   :  { %vm730_vm1 = vweird.f32 %v5608_v46 }
 0x16d   :  { %v561_v37 = vsel %vm560_vm2, %v3325_v61, %v557_v14  ;;  %3336 = vpow2.f32 %v3233_v26  ;;  %v708_v17 = vmul.f32 %v5606_v34, %v707_v11  ;;  %v717_v26 = vor.u32 1.1754944e-38, %v716_v62  ;;  %v5708_v11 = vld [vmem:[%s10105_s1 + $0x148] sm:$0xff] }
 0x16e   :  { %v566_v41 = vsel %vm563_vm3, %v565_v30, %v561_v37  ;;  %v3335_v45 = vpop.eup %3334  ;;  %v5669_v30 = vld [vmem:[%s10105_s1 + $0x1a8] sm:$0xff] }
 0x16f   :  { %v588_v42 = vmul.f32 0.0, %v566_v41  ;;  %v574_v6 = vmul.f32 %v3335_v45, %v572_v1  ;;  %vm579_vm4 = vweird.f32 %v3335_v45  ;;  %v655_v20 = vpop.f32.mrf.mxu2  ;;  %v709_v51 = vadd.f32 %v5606_v34, %v708_v17  ;;  %v5682_v41 = vld [vmem:[%s10105_s1 + $0x188] sm:$0xff] }
 0x170   :  { %vm580_vm6 = vmor %vm578_vm5, %vm579_vm4  ;;  %v680_v60 = vadd.f32 %v3231_v13, %v655_v20  ;;  %v714_v1 = vand.u32 2147483647, %v5594_v50  ;;  %v734_v17 = vand.u32 2147483647, %v5608_v46  ;;  %v5740_v13 = vld [vmem:[%s10105_s1 + $0x108] sm:$0xff]  ;;  %v5746_v20 = vld [vmem:[%s10105_s1 + $0x118] sm:$0xff] }
 0x171   :  { %v5612_v49 = vadd.f32 %v589_v25, %v588_v42  ;;  %v575_v40 = vsub.f32 1.0, %v574_v6  ;;  %v713_v14 = vsel %vm5645_vm10, %v5606_v34, %v709_v51  ;;  %v5688_v42 = vld [vmem:[%s10105_s1 + $0x198] sm:$0xff]  ;;  %v5779_v62 = vld [vmem:[%s10105_s1 + $0xa8] sm:$0xff] }
 0x172   :  { %vm715_vm13 = vcmp.eq.f32.partialorder %v714_v1, 8.507059e+37  ;;  %vm735_vm3 = vcmp.eq.f32.partialorder %v734_v17, 8.507059e+37  ;;  %v5797_v1 = vld [vmem:[%s10105_s1 + $0x98] sm:$0xff]  ;;  %v5981_v17 = vld [vmem:[%s10106_s2 + $0x368] sm:$0xff] }
 0x173   :  { %v3337_v3 = vpop.eup %3336  ;;  %3338 = vtanh.f32 %v5612_v49  ;;  %v576_v47 = vmul.f32 %v3335_v45, %v575_v40  ;;  %v718_v38 = vsel %vm715_vm13, %v717_v26, %v713_v14  ;;  %v5701_v40 = vld [vmem:[%s10105_s1 + $0x178] sm:$0xff]  ;;  %v5850_v26 = vld [vmem:[%s10105_s1 + $0x28] sm:$0xff]  ;;  %10881 = vst [vmem:[#allocation55_spill] sm:$0xff] %v5981_v17 }
 0x174   :  { %3340 = vrcp.f32 %v5608_v46  ;;  %v5616_v55 = vadd.f32 1.0, %v3337_v3  ;;  %v5695_v3 = vld [vmem:[%s10105_s1 + $0x168] sm:$0xff]  ;;  %v5837_v14 = vld [vmem:[%s10105_s1 + $0x58] sm:$0xff] }
 0x175   :  { %v577_v23 = vadd.f32 %v3335_v45, %v576_v47  ;;  %v5714_v47 = vld [vmem:[%s10105_s1 + $0x158] sm:$0xff] }
 0x176   :  { %3342 = vrcp.f32 %v5616_v55  ;;  %v697_v4 = vand.u32 2147483648, %v5616_v55  ;;  %v695_v10 = vand.u32 2147483647, %v5616_v55  ;;  %vm691_vm12 = vweird.f32 %v5616_v55 }
 0x177   :  { %v581_v32 = vsel %vm580_vm6, %v3335_v45, %v577_v23  ;;  %3344 = vtanh.f32 %v680_v60 }
 0x178   :  { %v586_v54 = vsel %vm583_vm7, %v585_v57, %v581_v32  ;;  %v698_v34 = vor.u32 1.1754944e-38, %v697_v4  ;;  %vm696_vm15 = vcmp.eq.f32.partialorder %v695_v10, 8.507059e+37  ;;  %v5730_v57 = vld [vmem:[%s10105_s1 + $0x138] sm:$0xff]  ;;  %v5812_v4 = vld [vmem:[%s10105_s1 + $0x68] sm:$0xff] }
 0x179   :  { %v3339_v31 = vpop.eup %3338  ;;  %v5831_v10 = vld [vmem:[%s10105_s1 + $0x48] sm:$0xff] }
 0x17a   :  { %v5623_v61 = vpop.eup %3340  ;;  %v592_v52 = vmul.f32 %v3339_v31, %v586_v54  ;;  %v736_v31 = vand.u32 2147483648, %v5608_v46  ;;  %v5759_v54 = vld [vmem:[%s10105_s1 + $0xf8] sm:$0xff] }
 0x17b   :  { %v726_v39 = vmul.f32 %v5623_v61, %v5608_v46  ;;  %vm731_vm0 = vweird.f32 %v5623_v61  ;;  %v5753_v46 = vld [vmem:[%s10105_s1 + $0xe8] sm:$0xff] }
 0x17c   :  { %v3343_v22 = vpop.eup %3342  ;;  %781 = vmatmul.f32.vlgmr.msra.gmra.mxu1 %v592_v52  ;;  %821 = vmatmul.f32.vlgmr.msra.gmra.mxu3 %v592_v52  ;;  %vm732_vm2 = vmor %vm730_vm1, %vm731_vm0 }
 0x17d   :  { %v687_v12 = vmul.f32 %v3343_v22, %v5616_v55  ;;  %993 = vmatpush.msra.mxu1 %v5634_v19  ;;  %1033 = vmatpush.msra.mxu3 %v5640_v27  ;;  %vm692_vm11 = vweird.f32 %v3343_v22  ;;  %v727_v29 = vsub.f32 1.0, %v726_v39  ;;  %v3345_v45 = vpop.eup %3344  ;;  %v740_v55 = vmul.f32 %v718_v38, %v5365_v44  ;;  %v5724_v44 = vld [vmem:[%s10105_s1 + $0x128] sm:$0xff]  ;;  %v5785_v39 = vld [vmem:[%s10105_s1 + $0xb8] sm:$0xff]  ;;  %v5893_v38 = vld [vmem:[%s10106_s2 + $0x3e0] sm:$0xff] }
 0x17e   :  { %vm693_vm14 = vmor %vm691_vm12, %vm692_vm11  ;;  %10867 = vst [vmem:[#allocation2_spill] sm:$0xff] %v5893_v38 }
 0x17f   :  { %v688_v35 = vsub.f32 1.0, %v687_v12  ;;  %994 = vmatpush.msra.mxu1 %v5653_v7  ;;  %1034 = vmatpush.msra.mxu3 %v5659_v8  ;;  %v728_v21 = vmul.f32 %v5623_v61, %v727_v29  ;;  %v5856_v29 = vld [vmem:[%s10105_s1 + $0x38] sm:$0xff] }
 0x181   :  { %v689_v50 = vmul.f32 %v3343_v22, %v688_v35  ;;  %995 = vmatpush.msra.mxu1 %v5669_v30  ;;  %1035 = vmatpush.msra.mxu3 %v5675_v33  ;;  %v729_v23 = vadd.f32 %v5623_v61, %v728_v21  ;;  %v5791_v35 = vld [vmem:[%s10105_s1 + $0x88] sm:$0xff] }
 0x182   :  { %v5924_v21 = vld [vmem:[%s10106_s2 + $0x3c8] sm:$0xff] }
 0x183   :  { %v690_v37 = vadd.f32 %v3343_v22, %v689_v50  ;;  %996 = vmatpush.msra.mxu1 %v5682_v41  ;;  %1036 = vmatpush.msra.mxu3 %v5688_v42  ;;  %v733_v32 = vsel %vm732_vm2, %v5623_v61, %v729_v23  ;;  %v5765_v61 = vld [vmem:[%s10105_s1 + $0xc8] sm:$0xff]  ;;  %v5818_v50 = vld [vmem:[%s10105_s1 + $0x78] sm:$0xff]  ;;  %10872 = vst [vmem:[#allocation4_spill] sm:$0xff] %v5924_v21 }
 0x184   :  { %861 = vmatmul.f32.vlgmr.msrb.gmra.mxu1 %v592_v52  ;;  %901 = vmatmul.f32.vlgmr.msrb.gmra.mxu3 %v592_v52  ;;  %v737_v52 = vor.u32 1.1754944e-38, %v736_v31  ;;  %v5962_v23 = vld [vmem:[%s10106_s2 + $0x388] sm:$0xff]  ;;  %v5975_v31 = vld [vmem:[%s10105_s1 + $0xd0] sm:$0xff] }
 0x185   :  { %v694_v25 = vsel %vm693_vm14, %v3343_v22, %v690_v37  ;;  %997 = vmatpush.msra.mxu1 %v5695_v3  ;;  %1037 = vmatpush.msra.mxu3 %v5701_v40  ;;  %v5771_v22 = vld [vmem:[%s10105_s1 + $0xd8] sm:$0xff]  ;;  %v5869_v37 = vld [vmem:[%s10105_s1 + $0x8] sm:$0xff]  ;;  %10878 = vst [vmem:[#allocation53_spill] sm:$0xff] %v5962_v23 }
 0x186   :  { %v699_v6 = vsel %vm696_vm15, %v698_v34, %v694_v25  ;;  %v738_v12 = vsel %vm735_vm3, %v737_v52, %v733_v32  ;;  %v5875_v34 = vld [vmem:[%s10105_s1 + $0x18] sm:$0xff]  ;;  %v5905_v25 = vld [vmem:[%s10106_s2 + $0x3e8] sm:$0xff]  ;;  %10880 = vst [vmem:[#allocation54_spill] sm:$0xff] %v5975_v31  ;;  %v5993_v32 = vld [vmem:[%s10106_s2 + $0x340] sm:$0xff] }
 0x187   :  { %v741_v56 = vmul.f32 %v3345_v45, %v699_v6  ;;  %998 = vmatpush.msra.mxu1 %v5708_v11  ;;  %1038 = vmatpush.msra.mxu3 %v5714_v47  ;;  %10869 = vst [vmem:[#allocation3_spill] sm:$0xff] %v5905_v25  ;;  %v5918_v45 = vld [vmem:[%s10105_s1 + $0x130] sm:$0xff] }
 0x188   :  { %10871 = vst [vmem:[#allocation49_spill] sm:$0xff] %v5918_v45  ;;  %v5937_v6 = vld [vmem:[%s10105_s1 + $0x110] sm:$0xff] }
 0x189   :  { %v5717_v36 = vadd.f32 %v741_v56, %v740_v55  ;;  %999 = vmatpush.msra.mxu1 %v5724_v44  ;;  %1039 = vmatpush.msra.mxu3 %v5730_v57  ;;  %10874 = vst [vmem:[#allocation51_spill] sm:$0xff] %v5937_v6  ;;  %v5943_v55 = vld [vmem:[%s10106_s2 + $0x3a8] sm:$0xff]  ;;  %v5956_v56 = vld [vmem:[%s10105_s1 + $0xf0] sm:$0xff] }
 0x18a   :  { %10875 = vst [vmem:[#allocation5_spill] sm:$0xff] %v5943_v55  ;;  %v5999_v52 = vld [vmem:[%s10105_s1 + $0xb0] sm:$0xff] }
 0x18b   :  { %3346 = vtanh.f32 %v5717_v36  ;;  %1000 = vmatpush.msra.mxu1 %v5740_v13  ;;  %1040 = vmatpush.msra.mxu3 %v5746_v20  ;;  %10877 = vst [vmem:[#allocation52_spill] sm:$0xff] %v5956_v56 }
 0x18c   :  { %10883 = vst [vmem:[#allocation56_spill] sm:$0xff] %v5993_v32 }
 0x18d   :  { %1001 = vmatpush.msra.mxu1 %v5753_v46  ;;  %1041 = vmatpush.msra.mxu3 %v5759_v54  ;;  %10884 = vst [vmem:[#allocation57_spill] sm:$0xff] %v5999_v52 }
 0x18f   :  { %1002 = vmatpush.msra.mxu1 %v5765_v61  ;;  %1042 = vmatpush.msra.mxu3 %v5771_v22 }
 0x191   :  { %v3347_v60 = vpop.eup %3346  ;;  %1003 = vmatpush.msra.mxu1 %v5779_v62  ;;  %1043 = vmatpush.msra.mxu3 %v5785_v39 }
 0x192   :  { %v5774_v51 = vmul.f32 %v3347_v60, %v738_v12  ;;  %v6005_v60 = vld [vmem:[%s10106_s2 + $0x348] sm:$0xff]  ;;  %v6011_v12 = vld [vmem:[%s10105_s1 + $0x80] sm:$0xff] }
 0x193   :  { %1004 = vmatpush.msra.mxu1 %v5791_v35  ;;  %1044 = vmatpush.msra.mxu3 %v5797_v1  ;;  %10885 = vst [vmem:[#allocation11_spill] sm:$0xff] %v6005_v60 }
 0x194   :  { %761 = vmatmul.f32.vlgmr.msra.gmra.mxu0 %v5774_v51  ;;  %801 = vmatmul.f32.vlgmr.msra.gmra.mxu2 %v5774_v51  ;;  %10886 = vst [vmem:[#allocation58_spill] sm:$0xff] %v6011_v12 }
 0x195   :  { %973 = vmatpush.msra.mxu0 %v5390_v43  ;;  %1013 = vmatpush.msra.mxu2 %v5806_v2  ;;  %v5825_v43 = vld [vmem:[%s10105_s1 + $0x1d0] sm:$0xff] }
 0x196   :  { %1005 = vmatpush.msra.mxu1 %v5812_v4  ;;  %1045 = vmatpush.msra.mxu3 %v5818_v50 }
 0x197   :  { %974 = vmatpush.msra.mxu0 %v5399_v15  ;;  %1014 = vmatpush.msra.mxu2 %v5825_v43  ;;  %v5844_v15 = vld [vmem:[%s10105_s1 + $0x1b0] sm:$0xff] }
 0x198   :  { %1006 = vmatpush.msra.mxu1 %v5831_v10  ;;  %1046 = vmatpush.msra.mxu3 %v5837_v14 }
 0x199   :  { %975 = vmatpush.msra.mxu0 %v5408_v53  ;;  %1015 = vmatpush.msra.mxu2 %v5844_v15  ;;  %v5863_v53 = vld [vmem:[%s10105_s1 + $0x190] sm:$0xff] }
 0x19a   :  { %1007 = vmatpush.msra.mxu1 %v5850_v26  ;;  %1047 = vmatpush.msra.mxu3 %v5856_v29 }
 0x19b   :  { %976 = vmatpush.msra.mxu0 %v5417_v9  ;;  %1016 = vmatpush.msra.mxu2 %v5863_v53  ;;  %v5885_v9 = vld [vmem:[%s10105_s1 + $0x170] sm:$0xff] }
 0x19c   :  { %1008 = vmatpush.msra.mxu1 %v5869_v37  ;;  %1048 = vmatpush.msra.mxu3 %v5875_v34  ;;  %10866 = vst [vmem:[#allocation46_spill] sm:$0xff] %v5885_v9 }
 0x19d   :  { %841 = vmatmul.f32.vlgmr.msrb.gmra.mxu0 %v5774_v51  ;;  %881 = vmatmul.f32.vlgmr.msrb.gmra.mxu2 %v5774_v51 }
 0x19e   :  { %977 = vmatpush.msra.mxu0 %v5427_v58  ;;  %1009 = vmatmul.f32.vlgmr.msra.gmra.mxu1 %v5774_v51  ;;  %v5899_v58 = vld [vmem:[%s10105_s1 + $0x150] sm:$0xff] }
 0x19f   :  { %1017 = vmatpush.msra.mxu2 %v5885_v9  ;;  %1049 = vmatmul.f32.vlgmr.msra.gmra.mxu3 %v5774_v51  ;;  %10868 = vst [vmem:[#allocation47_spill] sm:$0xff] %v5899_v58 }
 0x1a0   :  { %978 = vmatpush.msra.mxu0 %v5435_v28  ;;  %1140 = vmatpush.msrb.mxu1 %v5893_v38  ;;  %v5912_v28 = vld [vmem:[%s10106_s2 + $0x3c0] sm:$0xff] }
 0x1a1   :  { %1018 = vmatpush.msra.mxu2 %v5899_v58  ;;  %1180 = vmatpush.msrb.mxu3 %v5905_v25  ;;  %10870 = vst [vmem:[#allocation48_spill] sm:$0xff] %v5912_v28 }
 0x1a2   :  { %979 = vmatpush.msra.mxu0 %v5444_v0  ;;  %1141 = vmatpush.msrb.mxu1 %v5912_v28  ;;  %v5931_v0 = vld [vmem:[%s10106_s2 + $0x3a0] sm:$0xff] }
 0x1a3   :  { %1019 = vmatpush.msra.mxu2 %v5918_v45  ;;  %1181 = vmatpush.msrb.mxu3 %v5924_v21  ;;  %10873 = vst [vmem:[#allocation50_spill] sm:$0xff] %v5931_v0 }
 0x1a4   :  { %980 = vmatpush.msra.mxu0 %v5453_v48  ;;  %1142 = vmatpush.msrb.mxu1 %v5931_v0  ;;  %v5950_v48 = vld [vmem:[%s10106_s2 + $0x380] sm:$0xff] }
 0x1a5   :  { %1020 = vmatpush.msra.mxu2 %v5937_v6  ;;  %1182 = vmatpush.msrb.mxu3 %v5943_v55  ;;  %10876 = vst [vmem:[#allocation6_spill] sm:$0xff] %v5950_v48 }
 0x1a6   :  { %981 = vmatpush.msra.mxu0 %v5462_v24  ;;  %1143 = vmatpush.msrb.mxu1 %v5950_v48  ;;  %v5969_v24 = vld [vmem:[%s10106_s2 + $0x360] sm:$0xff]  ;;  %v3240_v48 = vld [vmem:[%s10107_s0 + $0x48] sm:$0xff] }
 0x1a7   :  { %1021 = vmatpush.msra.mxu2 %v5956_v56  ;;  %1183 = vmatpush.msrb.mxu3 %v5962_v23  ;;  %10879 = vst [vmem:[#allocation7_spill] sm:$0xff] %v5969_v24 }
 0x1a8   :  { %982 = vmatpush.msra.mxu0 %v5471_v63  ;;  %1144 = vmatpush.msrb.mxu1 %v5969_v24  ;;  %v5987_v63 = vld [vmem:[%s10105_s1 + $0xa0] sm:$0xff] }
 0x1a9   :  { %1022 = vmatpush.msra.mxu2 %v5975_v31  ;;  %1184 = vmatpush.msrb.mxu3 %v5981_v17  ;;  %10882 = vst [vmem:[#allocation9_spill] sm:$0xff] %v5987_v63 }
 0x1aa   :  { %983 = vmatpush.msra.mxu0 %v5987_v63  ;;  %1145 = vmatpush.msrb.mxu1 %v5993_v32  ;;  %v6017_v32 = vld [vmem:[%s10106_s2 + $0x320] sm:$0xff] }
 0x1ab   :  { %1023 = vmatpush.msra.mxu2 %v5999_v52  ;;  %1185 = vmatpush.msrb.mxu3 %v6005_v60  ;;  %10887 = vst [vmem:[#allocation59_spill] sm:$0xff] %v6017_v32  ;;  %v6023_v52 = vld [vmem:[%s10105_s1 + $0x90] sm:$0xff]  ;;  %v6029_v60 = vld [vmem:[%s10106_s2 + $0x328] sm:$0xff] }
 0x1ac   :  { %984 = vmatpush.msra.mxu0 %v6011_v12  ;;  %1146 = vmatpush.msrb.mxu1 %v6017_v32  ;;  %10888 = vst [vmem:[#allocation13_spill] sm:$0xff] %v6023_v52  ;;  %v6035_v12 = vld [vmem:[%s10105_s1 + $0x60] sm:$0xff] }
 0x1ad   :  { %1024 = vmatpush.msra.mxu2 %v6023_v52  ;;  %10889 = vst [vmem:[#allocation60_spill] sm:$0xff] %v6029_v60  ;;  %1186 = vmatpush.msrb.mxu3 %v6029_v60  ;;  %v6041_v32 = vld [vmem:[%s10106_s2 + $0x300] sm:$0xff]  ;;  %v6047_v52 = vld [vmem:[%s10105_s1 + $0x70] sm:$0xff]  ;;  %v6053_v60 = vld [vmem:[%s10106_s2 + $0x308] sm:$0xff] }
 0x1ae   :  { %10890 = vst [vmem:[#allocation61_spill] sm:$0xff] %v6035_v12  ;;  %985 = vmatpush.msra.mxu0 %v6035_v12  ;;  %1147 = vmatpush.msrb.mxu1 %v6041_v32  ;;  %v6059_v12 = vld [vmem:[%s10105_s1 + $0x40] sm:$0xff] }
 0x1af   :  { %10891 = vst [vmem:[#allocation15_spill] sm:$0xff] %v6041_v32  ;;  %1025 = vmatpush.msra.mxu2 %v6047_v52  ;;  %1187 = vmatpush.msrb.mxu3 %v6053_v60  ;;  %v6065_v32 = vld [vmem:[%s10106_s2 + $0x2e0] sm:$0xff] }
 0x1b0   :  { %10892 = vst [vmem:[#allocation62_spill] sm:$0xff] %v6047_v52  ;;  %986 = vmatpush.msra.mxu0 %v6059_v12  ;;  %1148 = vmatpush.msrb.mxu1 %v6065_v32  ;;  %v6071_v52 = vld [vmem:[%s10105_s1 + $0x50] sm:$0xff] }
 0x1b1   :  { %10893 = vst [vmem:[#allocation8_spill] sm:$0xff] %v6053_v60  ;;  %1026 = vmatpush.msra.mxu2 %v6071_v52  ;;  %v6077_v60 = vld [vmem:[%s10106_s2 + $0x2e8] sm:$0xff] }
 0x1b2   :  { %10894 = vst [vmem:[#allocation63_spill] sm:$0xff] %v6059_v12  ;;  %1188 = vmatpush.msrb.mxu3 %v6077_v60  ;;  %v6083_v12 = vld [vmem:[%s10105_s1 + $0x20] sm:$0xff] }
 0x1b3   :  { %10895 = vst [vmem:[#allocation17_spill] sm:$0xff] %v6065_v32  ;;  %987 = vmatpush.msra.mxu0 %v6083_v12  ;;  %v6089_v32 = vld [vmem:[%s10106_s2 + $0x2c0] sm:$0xff] }
 0x1b4   :  { %10896 = vst [vmem:[#allocation64_spill] sm:$0xff] %v6071_v52  ;;  %1149 = vmatpush.msrb.mxu1 %v6089_v32  ;;  %v6095_v52 = vld [vmem:[%s10105_s1 + $0x30] sm:$0xff] }
 0x1b5   :  { %10897 = vst [vmem:[#allocation10_spill] sm:$0xff] %v6077_v60  ;;  %1027 = vmatpush.msra.mxu2 %v6095_v52  ;;  %v6101_v60 = vld [vmem:[%s10106_s2 + $0x2c8] sm:$0xff] }
 0x1b6   :  { %10898 = vst [vmem:[#allocation65_spill] sm:$0xff] %v6083_v12  ;;  %1189 = vmatpush.msrb.mxu3 %v6101_v60  ;;  %v6107_v12 = vld [vmem:[%s10105_s1] sm:$0xff] }
 0x1b7   :  { %10899 = vst [vmem:[#allocation19_spill] sm:$0xff] %v6089_v32  ;;  %988 = vmatpush.msra.mxu0 %v6107_v12  ;;  %v6113_v32 = vld [vmem:[%s10106_s2 + $0x2a0] sm:$0xff] }
 0x1b8   :  { %10900 = vst [vmem:[#allocation66_spill] sm:$0xff] %v6095_v52  ;;  %1150 = vmatpush.msrb.mxu1 %v6113_v32  ;;  %v6119_v52 = vld [vmem:[%s10105_s1 + $0x10] sm:$0xff]  ;;  %989 = vmatmul.f32.vlgmr.msra.gmra.mxu0 %v5774_v51 }
 0x1b9   :  { %10901 = vst [vmem:[#allocation12_spill] sm:$0xff] %v6101_v60  ;;  %1028 = vmatpush.msra.mxu2 %v6119_v52 }
 0x1ba   :  { %10902 = vst [vmem:[#allocation69_spill] sm:$0xff] %v6107_v12  ;;  %1029 = vmatmul.f32.vlgmr.msra.gmra.mxu2 %v5774_v51  ;;  %v6127_v12 = vld [vmem:[%s10106_s2 + $0x2a8] sm:$0xff] }
 0x1bb   :  { %10903 = vst [vmem:[#allocation20_spill] sm:$0xff] %v6113_v32  ;;  %1190 = vmatpush.msrb.mxu3 %v6127_v12  ;;  %v6133_v32 = vld [vmem:[%s10106_s2 + $0x280] sm:$0xff]  ;;  %v6145_v51 = vld [vmem:[%s10106_s2 + $0x288] sm:$0xff] }
 0x1bc   :  { %10904 = vst [vmem:[#allocation70_spill] sm:$0xff] %v6119_v52  ;;  %1151 = vmatpush.msrb.mxu1 %v6133_v32  ;;  %v6139_v52 = vld [vmem:[%s10106_s2 + $0x1e0] sm:$0xff] }
 0x1bd   :  { %10905 = vst [vmem:[#allocation14_spill] sm:$0xff] %v6127_v12  ;;  %1120 = vmatpush.msrb.mxu0 %v6139_v52  ;;  %1191 = vmatpush.msrb.mxu3 %v6145_v51  ;;  %v6151_v12 = vld [vmem:[%s10106_s2 + $0x1e8] sm:$0xff] }
 0x1be   :  { %10906 = vst [vmem:[#allocation73_spill] sm:$0xff] %v6133_v32  ;;  %1160 = vmatpush.msrb.mxu2 %v6151_v12  ;;  %v6157_v32 = vld [vmem:[%s10106_s2 + $0x260] sm:$0xff] }
 0x1bf   :  { %10907 = vst [vmem:[#allocation23_spill] sm:$0xff] %v6139_v52  ;;  %1152 = vmatpush.msrb.mxu1 %v6157_v32  ;;  %v6163_v52 = vld [vmem:[%s10106_s2 + $0x1c0] sm:$0xff] }
 0x1c0   :  { %10908 = vst [vmem:[#allocation74_spill] sm:$0xff] %v6145_v51  ;;  %1121 = vmatpush.msrb.mxu0 %v6163_v52  ;;  %v6169_v51 = vld [vmem:[%s10106_s2 + $0x268] sm:$0xff] }
 0x1c1   :  { %10909 = vst [vmem:[#allocation16_spill] sm:$0xff] %v6151_v12  ;;  %1192 = vmatpush.msrb.mxu3 %v6169_v51  ;;  %v6175_v12 = vld [vmem:[%s10106_s2 + $0x1c8] sm:$0xff] }
 0x1c2   :  { %10910 = vst [vmem:[#allocation77_spill] sm:$0xff] %v6157_v32  ;;  %1161 = vmatpush.msrb.mxu2 %v6175_v12  ;;  %v6181_v32 = vld [vmem:[%s10106_s2 + $0x240] sm:$0xff] }
 0x1c3   :  { %10911 = vst [vmem:[#allocation25_spill] sm:$0xff] %v6163_v52  ;;  %1153 = vmatpush.msrb.mxu1 %v6181_v32  ;;  %v6187_v52 = vld [vmem:[%s10106_s2 + $0x1a0] sm:$0xff] }
 0x1c4   :  { %10912 = vst [vmem:[#allocation78_spill] sm:$0xff] %v6169_v51  ;;  %1122 = vmatpush.msrb.mxu0 %v6187_v52  ;;  %v6193_v51 = vld [vmem:[%s10106_s2 + $0x248] sm:$0xff] }
 0x1c5   :  { %10913 = vst [vmem:[#allocation18_spill] sm:$0xff] %v6175_v12  ;;  %1193 = vmatpush.msrb.mxu3 %v6193_v51  ;;  %v6199_v12 = vld [vmem:[%s10106_s2 + $0x1a8] sm:$0xff] }
 0x1c6   :  { %10914 = vst [vmem:[#allocation81_spill] sm:$0xff] %v6181_v32  ;;  %1162 = vmatpush.msrb.mxu2 %v6199_v12  ;;  %v6205_v32 = vld [vmem:[%s10106_s2 + $0x220] sm:$0xff] }
 0x1c7   :  { %10915 = vst [vmem:[#allocation27_spill] sm:$0xff] %v6187_v52  ;;  %1154 = vmatpush.msrb.mxu1 %v6205_v32  ;;  %v6211_v52 = vld [vmem:[%s10106_s2 + $0x180] sm:$0xff] }
 0x1c8   :  { %10916 = vst [vmem:[#allocation21_spill] sm:$0xff] %v6193_v51  ;;  %1123 = vmatpush.msrb.mxu0 %v6211_v52  ;;  %v6217_v51 = vld [vmem:[%s10106_s2 + $0x228] sm:$0xff] }
 0x1c9   :  { %10917 = vst [vmem:[#allocation28_spill] sm:$0xff] %v6199_v12  ;;  %1194 = vmatpush.msrb.mxu3 %v6217_v51  ;;  %v6223_v12 = vld [vmem:[%s10106_s2 + $0x188] sm:$0xff] }
 0x1ca   :  { %10918 = vst [vmem:[#allocation82_spill] sm:$0xff] %v6205_v32  ;;  %1163 = vmatpush.msrb.mxu2 %v6223_v12  ;;  %v6229_v32 = vld [vmem:[%s10106_s2 + $0x200] sm:$0xff] }
 0x1cb   :  { %10919 = vst [vmem:[#allocation22_spill] sm:$0xff] %v6211_v52  ;;  %1155 = vmatpush.msrb.mxu1 %v6229_v32  ;;  %v6235_v52 = vld [vmem:[%s10106_s2 + $0x160] sm:$0xff] }
 0x1cc   :  { %10920 = vst [vmem:[#allocation85_spill] sm:$0xff] %v6217_v51  ;;  %1124 = vmatpush.msrb.mxu0 %v6235_v52  ;;  %v6241_v51 = vld [vmem:[%s10106_s2 + $0x208] sm:$0xff] }
 0x1cd   :  { %10921 = vst [vmem:[#allocation30_spill] sm:$0xff] %v6223_v12  ;;  %1195 = vmatpush.msrb.mxu3 %v6241_v51  ;;  %v6247_v12 = vld [vmem:[%s10106_s2 + $0x168] sm:$0xff] }
 0x1ce   :  { %10922 = vst [vmem:[#allocation86_spill] sm:$0xff] %v6229_v32  ;;  %1164 = vmatpush.msrb.mxu2 %v6247_v12  ;;  %v6253_v32 = vld [vmem:[%s10106_s2 + $0x3f0] sm:$0xff] }
 0x1cf   :  { %10923 = vst [vmem:[#allocation24_spill] sm:$0xff] %v6235_v52  ;;  %1220 = vmatpush.msra.mxu1 %v6253_v32  ;;  %v6259_v52 = vld [vmem:[%s10106_s2 + $0x3f8] sm:$0xff] }
 0x1d0   :  { %10924 = vst [vmem:[#allocation89_spill] sm:$0xff] %v6241_v51  ;;  %1260 = vmatpush.msra.mxu3 %v6259_v52  ;;  %v6265_v51 = vld [vmem:[%s10106_s2 + $0x140] sm:$0xff] }
 0x1d1   :  { %10925 = vst [vmem:[#allocation32_spill] sm:$0xff] %v6247_v12  ;;  %1125 = vmatpush.msrb.mxu0 %v6265_v51  ;;  %v6271_v12 = vld [vmem:[%s10106_s2 + $0x148] sm:$0xff] }
 0x1d2   :  { %10926 = vst [vmem:[#allocation90_spill] sm:$0xff] %v6253_v32  ;;  %1165 = vmatpush.msrb.mxu2 %v6271_v12  ;;  %v6277_v32 = vld [vmem:[%s10106_s2 + $0x3d0] sm:$0xff] }
 0x1d3   :  { %10927 = vst [vmem:[#allocation26_spill] sm:$0xff] %v6259_v52  ;;  %1221 = vmatpush.msra.mxu1 %v6277_v32  ;;  %v6283_v52 = vld [vmem:[%s10106_s2 + $0x3d8] sm:$0xff] }
 0x1d4   :  { %10928 = vst [vmem:[#allocation34_spill] sm:$0xff] %v6265_v51  ;;  %1261 = vmatpush.msra.mxu3 %v6283_v52  ;;  %v6289_v51 = vld [vmem:[%s10106_s2 + $0x120] sm:$0xff] }
 0x1d5   :  { %10929 = vst [vmem:[#allocation29_spill] sm:$0xff] %v6271_v12  ;;  %1126 = vmatpush.msrb.mxu0 %v6289_v51  ;;  %v6295_v12 = vld [vmem:[%s10106_s2 + $0x128] sm:$0xff] }
 0x1d6   :  { %10930 = vst [vmem:[#allocation36_spill] sm:$0xff] %v6277_v32  ;;  %1166 = vmatpush.msrb.mxu2 %v6295_v12  ;;  %v6301_v32 = vld [vmem:[%s10106_s2 + $0x3b0] sm:$0xff] }
 0x1d7   :  { %10931 = vst [vmem:[#allocation31_spill] sm:$0xff] %v6283_v52  ;;  %1222 = vmatpush.msra.mxu1 %v6301_v32  ;;  %v6307_v52 = vld [vmem:[%s10106_s2 + $0x3b8] sm:$0xff] }
 0x1d8   :  { %10932 = vst [vmem:[#allocation38_spill] sm:$0xff] %v6289_v51  ;;  %1262 = vmatpush.msra.mxu3 %v6307_v52  ;;  %v6313_v51 = vld [vmem:[%s10106_s2 + $0x100] sm:$0xff] }
 0x1d9   :  { %10933 = vst [vmem:[#allocation33_spill] sm:$0xff] %v6295_v12  ;;  %1127 = vmatpush.msrb.mxu0 %v6313_v51  ;;  %v6319_v12 = vld [vmem:[%s10106_s2 + $0x108] sm:$0xff] }
 0x1da   :  { %10934 = vst [vmem:[#allocation39_spill] sm:$0xff] %v6301_v32  ;;  %1167 = vmatpush.msrb.mxu2 %v6319_v12  ;;  %v6325_v32 = vld [vmem:[%s10106_s2 + $0x390] sm:$0xff] }
 0x1db   :  { %10935 = vst [vmem:[#allocation35_spill] sm:$0xff] %v6307_v52  ;;  %1223 = vmatpush.msra.mxu1 %v6325_v32  ;;  %v6331_v52 = vld [vmem:[%s10106_s2 + $0x398] sm:$0xff] }
 0x1dc   :  { %10936 = vst [vmem:[#allocation41_spill] sm:$0xff] %v6313_v51  ;;  %1263 = vmatpush.msra.mxu3 %v6331_v52  ;;  %v6337_v51 = vld [vmem:[%s10106_s2 + $0xe0] sm:$0xff] }
 0x1dd   :  { %10937 = vst [vmem:[#allocation37_spill] sm:$0xff] %v6319_v12  ;;  %1128 = vmatpush.msrb.mxu0 %v6337_v51  ;;  %v6343_v12 = vld [vmem:[%s10106_s2 + $0xe8] sm:$0xff] }
 0x1de   :  { %10938 = vst [vmem:[#allocation44_spill] sm:$0xff] %v6325_v32  ;;  %1168 = vmatpush.msrb.mxu2 %v6343_v12  ;;  %v6349_v32 = vld [vmem:[%s10106_s2 + $0x370] sm:$0xff] }
 0x1df   :  { %10939 = vst [vmem:[#allocation67_spill] sm:$0xff] %v6331_v52  ;;  %1224 = vmatpush.msra.mxu1 %v6349_v32  ;;  %v6355_v52 = vld [vmem:[%s10106_s2 + $0x378] sm:$0xff] }
 0x1e0   :  { %10940 = vst [vmem:[#allocation68_spill] sm:$0xff] %v6337_v51  ;;  %1264 = vmatpush.msra.mxu3 %v6355_v52  ;;  %v6361_v51 = vld [vmem:[%s10106_s2 + $0xc0] sm:$0xff] }
 0x1e1   :  { %10941 = vst [vmem:[#allocation71_spill] sm:$0xff] %v6343_v12  ;;  %1129 = vmatpush.msrb.mxu0 %v6361_v51  ;;  %v6367_v12 = vld [vmem:[%s10106_s2 + $0xc8] sm:$0xff] }
 0x1e2   :  { %10942 = vst [vmem:[#allocation72_spill] sm:$0xff] %v6349_v32  ;;  %1169 = vmatpush.msrb.mxu2 %v6367_v12  ;;  %v6373_v32 = vld [vmem:[%s10106_s2 + $0x350] sm:$0xff] }
 0x1e3   :  { %10943 = vst [vmem:[#allocation75_spill] sm:$0xff] %v6355_v52  ;;  %1225 = vmatpush.msra.mxu1 %v6373_v32  ;;  %v6379_v52 = vld [vmem:[%s10106_s2 + $0x358] sm:$0xff] }
 0x1e4   :  { %10944 = vst [vmem:[#allocation76_spill] sm:$0xff] %v6361_v51  ;;  %1265 = vmatpush.msra.mxu3 %v6379_v52  ;;  %v6385_v51 = vld [vmem:[%s10106_s2 + $0xa0] sm:$0xff] }
 0x1e5   :  { %10945 = vst [vmem:[#allocation79_spill] sm:$0xff] %v6367_v12  ;;  %1130 = vmatpush.msrb.mxu0 %v6385_v51  ;;  %v6391_v12 = vld [vmem:[%s10106_s2 + $0xa8] sm:$0xff] }
 0x1e6   :  { %10946 = vst [vmem:[#allocation80_spill] sm:$0xff] %v6373_v32  ;;  %1170 = vmatpush.msrb.mxu2 %v6391_v12  ;;  %v6397_v32 = vld [vmem:[%s10106_s2 + $0x330] sm:$0xff] }
 0x1e7   :  { %10947 = vst [vmem:[#allocation83_spill] sm:$0xff] %v6379_v52  ;;  %1226 = vmatpush.msra.mxu1 %v6397_v32  ;;  %v6403_v52 = vld [vmem:[%s10106_s2 + $0x338] sm:$0xff] }
 0x1e8   :  { %10948 = vst [vmem:[#allocation84_spill] sm:$0xff] %v6385_v51  ;;  %1266 = vmatpush.msra.mxu3 %v6403_v52  ;;  %v6409_v51 = vld [vmem:[%s10106_s2 + $0x80] sm:$0xff] }
 0x1e9   :  { %10949 = vst [vmem:[#allocation87_spill] sm:$0xff] %v6391_v12  ;;  %1131 = vmatpush.msrb.mxu0 %v6409_v51  ;;  %v6415_v12 = vld [vmem:[%s10106_s2 + $0x88] sm:$0xff] }
 0x1ea   :  { %10950 = vst [vmem:[#allocation88_spill] sm:$0xff] %v6397_v32  ;;  %1171 = vmatpush.msrb.mxu2 %v6415_v12  ;;  %v6421_v32 = vld [vmem:[%s10106_s2 + $0x310] sm:$0xff] }
 0x1eb   :  { %10951 = vst [vmem:[#allocation91_spill] sm:$0xff] %v6403_v52  ;;  %1227 = vmatpush.msra.mxu1 %v6421_v32  ;;  %v6427_v52 = vld [vmem:[%s10106_s2 + $0x318] sm:$0xff] }
 0x1ec   :  { %10952 = vst [vmem:[#allocation92_spill] sm:$0xff] %v6409_v51  ;;  %1267 = vmatpush.msra.mxu3 %v6427_v52  ;;  %v6433_v51 = vld [vmem:[%s10106_s2 + $0x60] sm:$0xff] }
 0x1ed   :  { %10953 = vst [vmem:[#allocation93_spill] sm:$0xff] %v6415_v12  ;;  %1132 = vmatpush.msrb.mxu0 %v6433_v51  ;;  %v6439_v12 = vld [vmem:[%s10106_s2 + $0x68] sm:$0xff] }
 0x1ee   :  { %10954 = vst [vmem:[#allocation94_spill] sm:$0xff] %v6421_v32  ;;  %1172 = vmatpush.msrb.mxu2 %v6439_v12  ;;  %v6445_v32 = vld [vmem:[%s10106_s2 + $0x2f0] sm:$0xff] }
 0x1ef   :  { %10955 = vst [vmem:[#allocation95_spill] sm:$0xff] %v6427_v52  ;;  %1228 = vmatpush.msra.mxu1 %v6445_v32  ;;  %v6451_v52 = vld [vmem:[%s10106_s2 + $0x2f8] sm:$0xff] }
 0x1f0   :  { %10956 = vst [vmem:[#allocation96_spill] sm:$0xff] %v6433_v51  ;;  %1268 = vmatpush.msra.mxu3 %v6451_v52  ;;  %v6457_v51 = vld [vmem:[%s10106_s2 + $0x40] sm:$0xff] }
 0x1f1   :  { %10957 = vst [vmem:[#allocation97_spill] sm:$0xff] %v6439_v12  ;;  %1133 = vmatpush.msrb.mxu0 %v6457_v51  ;;  %v6463_v12 = vld [vmem:[%s10106_s2 + $0x48] sm:$0xff] }
 0x1f2   :  { %10958 = vst [vmem:[#allocation98_spill] sm:$0xff] %v6445_v32  ;;  %1173 = vmatpush.msrb.mxu2 %v6463_v12  ;;  %v6469_v32 = vld [vmem:[%s10106_s2 + $0x2d0] sm:$0xff] }
 0x1f3   :  { %10959 = vst [vmem:[#allocation99_spill] sm:$0xff] %v6451_v52  ;;  %1229 = vmatpush.msra.mxu1 %v6469_v32  ;;  %v6475_v52 = vld [vmem:[%s10106_s2 + $0x2d8] sm:$0xff] }
 0x1f4   :  { %10960 = vst [vmem:[#allocation100_spill] sm:$0xff] %v6457_v51  ;;  %1269 = vmatpush.msra.mxu3 %v6475_v52  ;;  %v6481_v51 = vld [vmem:[%s10106_s2 + $0x20] sm:$0xff] }
 0x1f5   :  { %10961 = vst [vmem:[#allocation101_spill] sm:$0xff] %v6463_v12  ;;  %1134 = vmatpush.msrb.mxu0 %v6481_v51  ;;  %v6487_v12 = vld [vmem:[%s10106_s2 + $0x28] sm:$0xff] }
 0x1f6   :  { %10962 = vst [vmem:[#allocation102_spill] sm:$0xff] %v6469_v32  ;;  %1174 = vmatpush.msrb.mxu2 %v6487_v12  ;;  %v6493_v32 = vld [vmem:[%s10106_s2 + $0x2b0] sm:$0xff] }
 0x1f7   :  { %10963 = vst [vmem:[#allocation103_spill] sm:$0xff] %v6475_v52  ;;  %1230 = vmatpush.msra.mxu1 %v6493_v32  ;;  %v6499_v52 = vld [vmem:[%s10106_s2 + $0x2b8] sm:$0xff] }
 0x1f8   :  { %10964 = vst [vmem:[#allocation104_spill] sm:$0xff] %v6481_v51  ;;  %1270 = vmatpush.msra.mxu3 %v6499_v52  ;;  %v6505_v51 = vld [vmem:[%s10106_s2] sm:$0xff] }
 0x1f9   :  { %10965 = vst [vmem:[#allocation105_spill] sm:$0xff] %v6487_v12  ;;  %1135 = vmatpush.msrb.mxu0 %v6505_v51  ;;  %v6511_v12 = vld [vmem:[%s10106_s2 + $0x8] sm:$0xff] }
 0x1fa   :  { %10966 = vst [vmem:[#allocation106_spill] sm:$0xff] %v6493_v32  ;;  %1175 = vmatpush.msrb.mxu2 %v6511_v12  ;;  %v6517_v32 = vld [vmem:[%s10106_s2 + $0x290] sm:$0xff] }
 0x1fb   :  { %10967 = vst [vmem:[#allocation107_spill] sm:$0xff] %v6499_v52  ;;  %1231 = vmatpush.msra.mxu1 %v6517_v32  ;;  %v6523_v52 = vld [vmem:[%s10106_s2 + $0x298] sm:$0xff] }
 0x1fc   :  { %10968 = vst [vmem:[#allocation108_spill] sm:$0xff] %v6505_v51  ;;  %1271 = vmatpush.msra.mxu3 %v6523_v52  ;;  %v6529_v51 = vld [vmem:[%s10106_s2 + $0x1f0] sm:$0xff] }
 0x1fd   :  { %10969 = vst [vmem:[#allocation109_spill] sm:$0xff] %v6511_v12  ;;  %1200 = vmatpush.msra.mxu0 %v6529_v51  ;;  %v6535_v12 = vld [vmem:[%s10106_s2 + $0x1f8] sm:$0xff] }
 0x1fe   :  { %10970 = vst [vmem:[#allocation110_spill] sm:$0xff] %v6517_v32  ;;  %1240 = vmatpush.msra.mxu2 %v6535_v12  ;;  %v6541_v32 = vld [vmem:[%s10106_s2 + $0x270] sm:$0xff] }
 0x1ff   :  { %10971 = vst [vmem:[#allocation111_spill] sm:$0xff] %v6523_v52  ;;  %1232 = vmatpush.msra.mxu1 %v6541_v32  ;;  %v6547_v52 = vld [vmem:[%s10106_s2 + $0x278] sm:$0xff]  ;;  %v822_v17 = vpop.f32.mrf.mxu3 }
 0x200   :  { %10972 = vst [vmem:[#allocation112_spill] sm:$0xff] %v6529_v51  ;;  %1272 = vmatpush.msra.mxu3 %v6547_v52  ;;  %v6553_v51 = vld [vmem:[%s10106_s2 + $0x1d0] sm:$0xff] }
 0x201   :  { %10973 = vst [vmem:[#allocation113_spill] sm:$0xff] %v6535_v12  ;;  %1201 = vmatpush.msra.mxu0 %v6553_v51  ;;  %v6559_v12 = vld [vmem:[%s10106_s2 + $0x1d8] sm:$0xff] }
 0x202   :  { %10974 = vst [vmem:[#allocation114_spill] sm:$0xff] %v6541_v32  ;;  %1241 = vmatpush.msra.mxu2 %v6559_v12  ;;  %v6565_v32 = vld [vmem:[%s10106_s2 + $0x250] sm:$0xff] }
 0x203   :  { %10975 = vst [vmem:[#allocation115_spill] sm:$0xff] %v6547_v52  ;;  %1233 = vmatpush.msra.mxu1 %v6565_v32  ;;  %v6571_v52 = vld [vmem:[%s10106_s2 + $0x258] sm:$0xff] }
 0x204   :  { %10976 = vst [vmem:[#allocation116_spill] sm:$0xff] %v6553_v51  ;;  %1273 = vmatpush.msra.mxu3 %v6571_v52  ;;  %v6577_v51 = vld [vmem:[%s10106_s2 + $0x1b0] sm:$0xff] }
 0x205   :  { %10977 = vst [vmem:[#allocation117_spill] sm:$0xff] %v6559_v12  ;;  %1202 = vmatpush.msra.mxu0 %v6577_v51  ;;  %v6583_v12 = vld [vmem:[%s10106_s2 + $0x1b8] sm:$0xff] }
 0x206   :  { %10978 = vst [vmem:[#allocation118_spill] sm:$0xff] %v6565_v32  ;;  %1242 = vmatpush.msra.mxu2 %v6583_v12  ;;  %v6589_v32 = vld [vmem:[%s10106_s2 + $0x230] sm:$0xff] }
 0x207   :  { %10979 = vst [vmem:[#allocation119_spill] sm:$0xff] %v6571_v52  ;;  %1234 = vmatpush.msra.mxu1 %v6589_v32  ;;  %v6595_v52 = vld [vmem:[%s10106_s2 + $0x238] sm:$0xff] }
 0x208   :  { %10980 = vst [vmem:[#allocation120_spill] sm:$0xff] %v6577_v51  ;;  %1274 = vmatpush.msra.mxu3 %v6595_v52  ;;  %v6601_v51 = vld [vmem:[%s10106_s2 + $0x190] sm:$0xff] }
 0x209   :  { %10981 = vst [vmem:[#allocation121_spill] sm:$0xff] %v6583_v12  ;;  %1203 = vmatpush.msra.mxu0 %v6601_v51  ;;  %v6607_v12 = vld [vmem:[%s10106_s2 + $0x198] sm:$0xff] }
 0x20a   :  { %10982 = vst [vmem:[#allocation122_spill] sm:$0xff] %v6589_v32  ;;  %1243 = vmatpush.msra.mxu2 %v6607_v12  ;;  %v6613_v32 = vld [vmem:[%s10106_s2 + $0x210] sm:$0xff] }
 0x20b   :  { %10983 = vst [vmem:[#allocation123_spill] sm:$0xff] %v6595_v52  ;;  %1235 = vmatpush.msra.mxu1 %v6613_v32  ;;  %v6619_v52 = vld [vmem:[%s10106_s2 + $0x218] sm:$0xff] }
 0x20c   :  { %10984 = vst [vmem:[#allocation124_spill] sm:$0xff] %v6601_v51  ;;  %1275 = vmatpush.msra.mxu3 %v6619_v52  ;;  %v6625_v51 = vld [vmem:[%s10106_s2 + $0x170] sm:$0xff] }
 0x20d   :  { %10985 = vst [vmem:[#allocation125_spill] sm:$0xff] %v6607_v12  ;;  %1204 = vmatpush.msra.mxu0 %v6625_v51  ;;  %v6631_v12 = vld [vmem:[%s10106_s2 + $0x178] sm:$0xff] }
 0x20e   :  { %10986 = vst [vmem:[#allocation126_spill] sm:$0xff] %v6613_v32  ;;  %1244 = vmatpush.msra.mxu2 %v6631_v12  ;;  %v6637_v32 = vld [vmem:[%s10106_s2 + $0x150] sm:$0xff] }
 0x20f   :  { %10987 = vst [vmem:[#allocation127_spill] sm:$0xff] %v6619_v52  ;;  %1205 = vmatpush.msra.mxu0 %v6637_v32  ;;  %v6643_v52 = vld [vmem:[%s10106_s2 + $0x158] sm:$0xff] }
 0x210   :  { %10988 = vst [vmem:[#allocation128_spill] sm:$0xff] %v6625_v51  ;;  %1245 = vmatpush.msra.mxu2 %v6643_v52  ;;  %v6649_v51 = vld [vmem:[%s10106_s2 + $0x130] sm:$0xff] }
 0x211   :  { %10989 = vst [vmem:[#allocation129_spill] sm:$0xff] %v6631_v12  ;;  %1206 = vmatpush.msra.mxu0 %v6649_v51  ;;  %v6655_v12 = vld [vmem:[%s10106_s2 + $0x138] sm:$0xff]  ;;  %v762_v60 = vpop.f32.mrf.mxu0 }
 0x212   :  { %10990 = vst [vmem:[#allocation130_spill] sm:$0xff] %v6637_v32  ;;  %1246 = vmatpush.msra.mxu2 %v6655_v12  ;;  %v6661_v32 = vld [vmem:[%s10106_s2 + $0x110] sm:$0xff]  ;;  %v763_v63 = vadd.f32 %v762_v60, %v5576_v5 }
 0x213   :  { %10991 = vst [vmem:[#allocation131_spill] sm:$0xff] %v6643_v52  ;;  %1207 = vmatpush.msra.mxu0 %v6661_v32  ;;  %v6667_v52 = vld [vmem:[%s10106_s2 + $0x118] sm:$0xff] }
 0x214   :  { %10992 = vst [vmem:[#allocation132_spill] sm:$0xff] %v6649_v51  ;;  %1247 = vmatpush.msra.mxu2 %v6667_v52  ;;  %v6673_v51 = vld [vmem:[%s10106_s2 + $0xf0] sm:$0xff] }
 0x215   :  { %10993 = vst [vmem:[#allocation133_spill] sm:$0xff] %v6655_v12  ;;  %1208 = vmatpush.msra.mxu0 %v6673_v51  ;;  %v6679_v12 = vld [vmem:[%s10106_s2 + $0xf8] sm:$0xff] }
 0x216   :  { %10994 = vst [vmem:[#allocation134_spill] sm:$0xff] %v6661_v32  ;;  %1248 = vmatpush.msra.mxu2 %v6679_v12  ;;  %v6685_v32 = vld [vmem:[%s10106_s2 + $0xd0] sm:$0xff] }
 0x217   :  { %10995 = vst [vmem:[#allocation135_spill] sm:$0xff] %v6667_v52  ;;  %1209 = vmatpush.msra.mxu0 %v6685_v32  ;;  %v6691_v52 = vld [vmem:[%s10106_s2 + $0xd8] sm:$0xff]  ;;  %v802_v23 = vpop.f32.mrf.mxu2 }
 0x218   :  { %10996 = vst [vmem:[#allocation136_spill] sm:$0xff] %v6673_v51  ;;  %1249 = vmatpush.msra.mxu2 %v6691_v52  ;;  %v6697_v51 = vld [vmem:[%s10106_s2 + $0xb0] sm:$0xff]  ;;  %v803_v56 = vadd.f32 %v802_v23, %v5579_v18 }
 0x219   :  { %10997 = vst [vmem:[#allocation137_spill] sm:$0xff] %v6679_v12  ;;  %1210 = vmatpush.msra.mxu0 %v6697_v51  ;;  %v6703_v12 = vld [vmem:[%s10106_s2 + $0xb8] sm:$0xff] }
 0x21a   :  { %10998 = vst [vmem:[#allocation138_spill] sm:$0xff] %v6685_v32  ;;  %1250 = vmatpush.msra.mxu2 %v6703_v12  ;;  %v6709_v32 = vld [vmem:[%s10106_s2 + $0x90] sm:$0xff] }
 0x21b   :  { %10999 = vst [vmem:[#allocation139_spill] sm:$0xff] %v6691_v52  ;;  %1211 = vmatpush.msra.mxu0 %v6709_v32  ;;  %v6715_v52 = vld [vmem:[%s10106_s2 + $0x98] sm:$0xff] }
 0x21c   :  { %11000 = vst [vmem:[#allocation140_spill] sm:$0xff] %v6697_v51  ;;  %1251 = vmatpush.msra.mxu2 %v6715_v52  ;;  %v6721_v51 = vld [vmem:[%s10106_s2 + $0x70] sm:$0xff] }
 0x21d   :  { %11001 = vst [vmem:[#allocation141_spill] sm:$0xff] %v6703_v12  ;;  %1212 = vmatpush.msra.mxu0 %v6721_v51  ;;  %v6727_v12 = vld [vmem:[%s10106_s2 + $0x78] sm:$0xff] }
 0x21e   :  { %11002 = vst [vmem:[#allocation142_spill] sm:$0xff] %v6709_v32  ;;  %1252 = vmatpush.msra.mxu2 %v6727_v12  ;;  %v6733_v32 = vld [vmem:[%s10106_s2 + $0x50] sm:$0xff] }
 0x21f   :  { %11003 = vst [vmem:[#allocation143_spill] sm:$0xff] %v6715_v52  ;;  %1213 = vmatpush.msra.mxu0 %v6733_v32  ;;  %v6739_v52 = vld [vmem:[%s10106_s2 + $0x58] sm:$0xff] }
 0x220   :  { %11004 = vst [vmem:[#allocation144_spill] sm:$0xff] %v6721_v51  ;;  %1253 = vmatpush.msra.mxu2 %v6739_v52  ;;  %v6745_v51 = vld [vmem:[%s10106_s2 + $0x30] sm:$0xff]  ;;  %v882_v5 = vpop.f32.mrf.mxu2 }
 0x221   :  { %11005 = vst [vmem:[#allocation145_spill] sm:$0xff] %v6727_v12  ;;  %1214 = vmatpush.msra.mxu0 %v6745_v51  ;;  %v6751_v12 = vld [vmem:[%s10106_s2 + $0x38] sm:$0xff] }
 0x222   :  { %11006 = vst [vmem:[#allocation146_spill] sm:$0xff] %v6733_v32  ;;  %1254 = vmatpush.msra.mxu2 %v6751_v12  ;;  %v6757_v32 = vld [vmem:[%s10106_s2 + $0x10] sm:$0xff] }
 0x223   :  { %11007 = vst [vmem:[#allocation147_spill] sm:$0xff] %v6739_v52  ;;  %1215 = vmatpush.msra.mxu0 %v6757_v32  ;;  %v6763_v52 = vld [vmem:[%s10106_s2 + $0x18] sm:$0xff] }
 0x224   :  { %11008 = vst [vmem:[#allocation148_spill] sm:$0xff] %v6745_v51  ;;  %1255 = vmatpush.msra.mxu2 %v6763_v52  ;;  %v782_v51 = vpop.f32.mrf.mxu1 }
 0x225   :  { %11009 = vst [vmem:[#allocation149_spill] sm:$0xff] %v6751_v12  ;;  %v783_v31 = vadd.f32 %v782_v51, %v763_v63  ;;  %v842_v51 = vpop.f32.mrf.mxu0 }
 0x226   :  { %11010 = vst [vmem:[#allocation150_spill] sm:$0xff] %v6757_v32  ;;  %v823_v32 = vadd.f32 %v822_v17, %v803_v56  ;;  %v3242_v17 = vld [vmem:[%s10107_s0 + $0x58] sm:$0xff] }
 0x227   :  { %11011 = vst [vmem:[#allocation151_spill] sm:$0xff] %v6763_v52  ;;  %v3236_v24 = vmul.f32 -1.442695, %v783_v31  ;;  %v902_v52 = vpop.f32.mrf.mxu3  ;;  %v883_v31 = vadd.f32 %v882_v5, %v5585_v16 }
 0x228   :  { %v3237_v6 = vmul.f32 -1.442695, %v823_v32 }
 0x229   :  { %3348 = vpow2.f32 %v3236_v24  ;;  %v903_v23 = vadd.f32 %v902_v52, %v883_v31 }
 0x22a   :  { %3350 = vpow2.f32 %v3237_v6 }
 0x22b   :  { %v3238_v18 = vmul.f32 -1.442695, %v903_v23 }
 0x22c   :  { %v862_v12 = vpop.f32.mrf.mxu1 }
 0x22f   :  { %v3349_v21 = vpop.eup %3348  ;;  %v1050_v32 = vpop.f32.mrf.mxu3 }
 0x230   :  { %v908_v60 = vadd.f32 1.0, %v3349_v21  ;;  %v3351_v24 = vpop.eup %3350  ;;  %v843_v21 = vadd.f32 %v842_v51, %v5591_v59 }
 0x231   :  { %v927_v56 = vadd.f32 1.0, %v3351_v24 }
 0x232   :  { %3352 = vrcp.f32 %v908_v60  ;;  %v863_v16 = vadd.f32 %v862_v12, %v843_v21  ;;  %v920_v23 = vand.u32 2147483648, %v908_v60  ;;  %vm914_vm5 = vweird.f32 %v908_v60 }
 0x233   :  { %v918_v51 = vand.u32 2147483647, %v908_v60  ;;  %v939_v12 = vand.u32 2147483648, %v927_v56  ;;  %vm933_vm8 = vweird.f32 %v927_v56 }
 0x234   :  { %v1010_v55 = vpop.f32.mrf.mxu1  ;;  %v921_v21 = vor.u32 1.1754944e-38, %v920_v23 }
 0x235   :  { %v1054_v0 = vadd.f32 %v3240_v48, %v1010_v55  ;;  %vm919_vm9 = vcmp.eq.f32.partialorder %v918_v51, 8.507059e+37 }
 0x237   :  { %v3244_v63 = vmul.f32 -1.442695, %v1054_v0  ;;  %v1056_v0 = vadd.f32 %v3242_v17, %v1050_v32 }
 0x238   :  { %v3353_v55 = vpop.eup %3352 }
 0x239   :  { %3354 = vpow2.f32 %v3244_v63  ;;  %v910_v6 = vmul.f32 %v3353_v55, %v908_v60  ;;  %v3245_v52 = vmul.f32 -1.442695, %v1056_v0  ;;  %vm915_vm4 = vweird.f32 %v3353_v55  ;;  %v990_v60 = vpop.f32.mrf.mxu0 }
 0x23a   :  { %3356 = vrcp.f32 %v927_v56  ;;  %vm6781_vm6 = vmor %vm914_vm5, %vm915_vm4 }
 0x23b   :  { %3358 = vpow2.f32 %v3238_v18  ;;  %v911_v48 = vsub.f32 1.0, %v910_v6  ;;  %v3239_v18 = vld [vmem:[%s10107_s0 + $0x40] sm:$0xff] }
 0x23c   :  { %3360 = vtanh.f32 %v863_v16  ;;  %v1053_v6 = vadd.f32 %v3239_v18, %v990_v60 }
 0x23d   :  { %v912_v45 = vmul.f32 %v3353_v55, %v911_v48  ;;  %3362 = vpow2.f32 %v3245_v52 }
 0x23f   :  { %v3355_v5 = vpop.eup %3354  ;;  %v913_v28 = vadd.f32 %v3353_v55, %v912_v45  ;;  %v937_v45 = vand.u32 2147483647, %v927_v56 }
 0x240   :  { %v3357_v31 = vpop.eup %3356  ;;  %v6776_v25 = vadd.f32 1.0, %v3355_v5  ;;  %v940_v5 = vor.u32 1.1754944e-38, %v939_v12 }
 0x241   :  { %v3359_v63 = vpop.eup %3358  ;;  %v929_v24 = vmul.f32 %v3357_v31, %v927_v56  ;;  %vm934_vm7 = vweird.f32 %v3357_v31  ;;  %v917_v16 = vsel %vm6781_vm6, %v3353_v55, %v913_v28  ;;  %vm938_vm11 = vcmp.eq.f32.partialorder %v937_v45, 8.507059e+37 }
 0x242   :  { %v947_v58 = vadd.f32 1.0, %v3359_v63  ;;  %v3361_v48 = vpop.eup %3360  ;;  %vm935_vm10 = vmor %vm933_vm8, %vm934_vm7  ;;  %v922_v52 = vsel %vm919_vm9, %v921_v21, %v917_v16  ;;  %v3243_v63 = vmul.f32 -1.442695, %v1053_v6  ;;  %vm1085_vm1 = vweird.f32 %v6776_v25 }
 0x243   :  { %v930_v38 = vsub.f32 1.0, %v929_v24  ;;  %v3363_v24 = vpop.eup %3362  ;;  %v964_v23 = vmul.f32 %v3361_v48, %v922_v52  ;;  %v1030_v52 = vpop.f32.mrf.mxu2 }
 0x244   :  { %3364 = vrcp.f32 %v947_v58  ;;  %v6795_v17 = vadd.f32 1.0, %v3363_v24  ;;  %v959_v45 = vand.u32 2147483648, %v947_v58  ;;  %vm953_vm13 = vweird.f32 %v947_v58 }
 0x245   :  { %v931_v32 = vmul.f32 %v3357_v31, %v930_v38  ;;  %3366 = vrcp.f32 %v6776_v25 }
 0x246   :  { %3368 = vpow2.f32 %v3243_v63  ;;  %vm1105_vm9 = vweird.f32 %v6795_v17 }
 0x247   :  { %v932_v0 = vadd.f32 %v3357_v31, %v931_v32  ;;  %v957_v32 = vand.u32 2147483647, %v947_v58 }
 0x249   :  { %v936_v59 = vsel %vm935_vm10, %v3357_v31, %v932_v0  ;;  %vm958_vm15 = vcmp.eq.f32.partialorder %v957_v32, 8.507059e+37 }
 0x24a   :  { %v3365_v38 = vpop.eup %3364  ;;  %v941_v9 = vsel %vm938_vm11, %v940_v5, %v936_v59  ;;  %v3241_v5 = vld [vmem:[%s10107_s0 + $0x50] sm:$0xff] }
 0x24b   :  { %v6788_v28 = vpop.eup %3366  ;;  %v963_v55 = vmul.f32 %v941_v9, %v5612_v49  ;;  %v949_v18 = vmul.f32 %v3365_v38, %v947_v58  ;;  %vm954_vm12 = vweird.f32 %v3365_v38  ;;  %v960_v9 = vor.u32 1.1754944e-38, %v959_v45 }
 0x24c   :  { %v1081_v12 = vmul.f32 %v6788_v28, %v6776_v25  ;;  %v3369_v59 = vpop.eup %3368  ;;  %vm955_vm14 = vmor %vm953_vm13, %vm954_vm12  ;;  %vm1086_vm0 = vweird.f32 %v6788_v28 }
 0x24d   :  { %v6791_v56 = vadd.f32 %v964_v23, %v963_v55  ;;  %v950_v51 = vsub.f32 1.0, %v949_v18  ;;  %v1060_v16 = vadd.f32 1.0, %v3369_v59  ;;  %v1055_v55 = vadd.f32 %v3241_v5, %v1030_v52  ;;  %vm6816_vm2 = vmor %vm1085_vm1, %vm1086_vm0  ;;  %v11032_v5 = vld [vmem:[#allocation9_spill] sm:$0xff]  ;;  %v11033_v52 = vld [vmem:[#allocation56_spill] sm:$0xff] }
 0x24e   :  { %v1082_v49 = vsub.f32 1.0, %v1081_v12  ;;  %v1091_v18 = vand.u32 2147483648, %v6776_v25 }
 0x24f   :  { %3370 = vtanh.f32 %v6791_v56  ;;  %v951_v31 = vmul.f32 %v3365_v38, %v950_v51  ;;  %vm1066_vm4 = vweird.f32 %v1060_v16 }
 0x250   :  { %3372 = vrcp.f32 %v6795_v17  ;;  %v1083_v48 = vmul.f32 %v6788_v28, %v1082_v49  ;;  %v1092_v59 = vor.u32 1.1754944e-38, %v1091_v18  ;;  %v11040_v18 = vld [vmem:[#allocation61_spill] sm:$0xff] }
 0x251   :  { %v952_v60 = vadd.f32 %v3365_v38, %v951_v31  ;;  %3374 = vrcp.f32 %v1060_v16  ;;  %v1072_v31 = vand.u32 2147483648, %v1060_v16 }
 0x252   :  { %v1084_v23 = vadd.f32 %v6788_v28, %v1083_v48  ;;  %3376 = vtanh.f32 %v1055_v55  ;;  %v11031_v48 = vld [vmem:[#allocation55_spill] sm:$0xff] }
 0x253   :  { %v956_v21 = vsel %vm955_vm14, %v3365_v38, %v952_v60  ;;  %v11037_v55 = vld [vmem:[#allocation59_spill] sm:$0xff] }
 0x254   :  { %v961_v0 = vsel %vm958_vm15, %v960_v9, %v956_v21  ;;  %v11028_v9 = vld [vmem:[#allocation53_spill] sm:$0xff]  ;;  %v6944_v21 = vld [vmem:[%s10105_s1 + $0xc0] sm:$0xff] }
 0x255   :  { %v3371_v6 = vpop.eup %3370 }
 0x256   :  { %v967_v63 = vmul.f32 %v3371_v6, %v961_v0  ;;  %v6803_v24 = vpop.eup %3372  ;;  %v11029_v6 = vld [vmem:[#allocation7_spill] sm:$0xff]  ;;  %v11030_v0 = vld [vmem:[#allocation54_spill] sm:$0xff] }
 0x257   :  { %v3375_v58 = vpop.eup %3374  ;;  %v1101_v51 = vmul.f32 %v6803_v24, %v6795_v17  ;;  %vm1106_vm8 = vweird.f32 %v6803_v24 }
 0x258   :  { %1156 = vmatmul.f32.vlgmr.msrb.gmra.mxu1 %v967_v63  ;;  %1196 = vmatmul.f32.vlgmr.msrb.gmra.mxu3 %v967_v63  ;;  %v1062_v38 = vmul.f32 %v3375_v58, %v1060_v16  ;;  %vm1067_vm3 = vweird.f32 %v3375_v58  ;;  %vm1107_vm10 = vmor %vm1105_vm9, %vm1106_vm8 }
 0x259   :  { %1368 = vmatpush.msrb.mxu1 %v5634_v19  ;;  %1408 = vmatpush.msrb.mxu3 %v5640_v27  ;;  %v1089_v19 = vand.u32 2147483647, %v6776_v25  ;;  %v1102_v32 = vsub.f32 1.0, %v1101_v51  ;;  %vm1068_vm6 = vmor %vm1066_vm4, %vm1067_vm3  ;;  %v11041_v51 = vld [vmem:[#allocation15_spill] sm:$0xff] }
 0x25a   :  { %v1063_v12 = vsub.f32 1.0, %v1062_v38  ;;  %v11038_v38 = vld [vmem:[#allocation13_spill] sm:$0xff]  ;;  %v11044_v27 = vld [vmem:[#allocation63_spill] sm:$0xff] }
 0x25b   :  { %1369 = vmatpush.msrb.mxu1 %v5653_v7  ;;  %1409 = vmatpush.msrb.mxu3 %v5659_v8  ;;  %v1070_v7 = vand.u32 2147483647, %v1060_v16  ;;  %v1088_v8 = vsel %vm6816_vm2, %v6788_v28, %v1084_v23  ;;  %vm1090_vm5 = vcmp.eq.f32.partialorder %v1089_v19, 8.507059e+37  ;;  %v3377_v28 = vpop.eup %3376  ;;  %v1103_v49 = vmul.f32 %v6803_v24, %v1102_v32  ;;  %v11039_v23 = vld [vmem:[#allocation60_spill] sm:$0xff]  ;;  %v11050_v32 = vld [vmem:[#allocation66_spill] sm:$0xff] }
 0x25c   :  { %v1064_v45 = vmul.f32 %v3375_v58, %v1063_v12  ;;  %v11042_v12 = vld [vmem:[#allocation62_spill] sm:$0xff]  ;;  %v11043_v19 = vld [vmem:[#allocation8_spill] sm:$0xff] }
 0x25d   :  { %1370 = vmatpush.msrb.mxu1 %v5669_v30  ;;  %1410 = vmatpush.msrb.mxu3 %v5675_v33  ;;  %v1073_v30 = vor.u32 1.1754944e-38, %v1072_v31  ;;  %v1093_v33 = vsel %vm1090_vm5, %v1092_v59, %v1088_v8  ;;  %vm1071_vm7 = vcmp.eq.f32.partialorder %v1070_v7, 8.507059e+37  ;;  %v11045_v31 = vld [vmem:[#allocation17_spill] sm:$0xff]  ;;  %v11047_v7 = vld [vmem:[#allocation10_spill] sm:$0xff]  ;;  %v11049_v59 = vld [vmem:[#allocation19_spill] sm:$0xff] }
 0x25e   :  { %v1065_v25 = vadd.f32 %v3375_v58, %v1064_v45  ;;  %v11046_v45 = vld [vmem:[#allocation64_spill] sm:$0xff]  ;;  %v11048_v8 = vld [vmem:[#allocation65_spill] sm:$0xff] }
 0x25f   :  { %1371 = vmatpush.msrb.mxu1 %v5682_v41  ;;  %1411 = vmatpush.msrb.mxu3 %v5688_v42  ;;  %v1115_v42 = vmul.f32 %v1093_v33, %v5717_v36  ;;  %v11053_v33 = vld [vmem:[#allocation20_spill] sm:$0xff] }
 0x260   :  { %1236 = vmatmul.f32.vlgmr.msra.gmra.mxu1 %v967_v63  ;;  %1276 = vmatmul.f32.vlgmr.msra.gmra.mxu3 %v967_v63  ;;  %v1069_v60 = vsel %vm1068_vm6, %v3375_v58, %v1065_v25  ;;  %v11034_v63 = vld [vmem:[#allocation57_spill] sm:$0xff]  ;;  %v11036_v58 = vld [vmem:[#allocation58_spill] sm:$0xff]  ;;  %v11051_v25 = vld [vmem:[#allocation12_spill] sm:$0xff] }
 0x261   :  { %1372 = vmatpush.msrb.mxu1 %v5695_v3  ;;  %1412 = vmatpush.msrb.mxu3 %v5701_v40  ;;  %v1074_v41 = vsel %vm1071_vm7, %v1073_v30, %v1069_v60  ;;  %v1104_v40 = vadd.f32 %v6803_v24, %v1103_v49  ;;  %v11052_v30 = vld [vmem:[#allocation69_spill] sm:$0xff]  ;;  %v11054_v60 = vld [vmem:[#allocation70_spill] sm:$0xff] }
 0x262   :  { %v1116_v16 = vmul.f32 %v3377_v28, %v1074_v41  ;;  %v11055_v28 = vld [vmem:[#allocation14_spill] sm:$0xff]  ;;  %v11056_v49 = vld [vmem:[#allocation73_spill] sm:$0xff]  ;;  %v11057_v41 = vld [vmem:[#allocation23_spill] sm:$0xff] }
 0x263   :  { %1373 = vmatpush.msrb.mxu1 %v5708_v11  ;;  %1413 = vmatpush.msrb.mxu3 %v5714_v47  ;;  %v1111_v11 = vand.u32 2147483648, %v6795_v17  ;;  %v1109_v47 = vand.u32 2147483647, %v6795_v17  ;;  %v1108_v36 = vsel %vm1107_vm10, %v6803_v24, %v1104_v40  ;;  %v11027_v17 = vld [vmem:[#allocation52_spill] sm:$0xff]  ;;  %v11035_v24 = vld [vmem:[#allocation11_spill] sm:$0xff]  ;;  %v11060_v40 = vld [vmem:[#allocation77_spill] sm:$0xff] }
 0x264   :  { %v6835_v3 = vadd.f32 %v1116_v16, %v1115_v42  ;;  %v11058_v42 = vld [vmem:[#allocation74_spill] sm:$0xff]  ;;  %v11059_v16 = vld [vmem:[#allocation16_spill] sm:$0xff] }
 0x265   :  { %1374 = vmatpush.msrb.mxu1 %v5724_v44  ;;  %1414 = vmatpush.msrb.mxu3 %v5730_v57  ;;  %v1112_v44 = vor.u32 1.1754944e-38, %v1111_v11  ;;  %vm1110_vm11 = vcmp.eq.f32.partialorder %v1109_v47, 8.507059e+37  ;;  %v11061_v11 = vld [vmem:[#allocation25_spill] sm:$0xff]  ;;  %v11062_v47 = vld [vmem:[#allocation78_spill] sm:$0xff] }
 0x266   :  { %3378 = vtanh.f32 %v6835_v3 }
 0x267   :  { %1375 = vmatpush.msrb.mxu1 %v5740_v13  ;;  %1415 = vmatpush.msrb.mxu3 %v5746_v20  ;;  %v1113_v13 = vsel %vm1110_vm11, %v1112_v44, %v1108_v36  ;;  %v11063_v36 = vld [vmem:[#allocation18_spill] sm:$0xff]  ;;  %v11064_v44 = vld [vmem:[#allocation81_spill] sm:$0xff] }
 0x269   :  { %1376 = vmatpush.msrb.mxu1 %v5753_v46  ;;  %1416 = vmatpush.msrb.mxu3 %v5759_v54  ;;  %v6861_v46 = vld [vmem:[%s10105_s1 + $0x1e0] sm:$0xff] }
 0x26a   :  { %v6870_v54 = vld [vmem:[%s10105_s1 + $0x1c0] sm:$0xff] }
 0x26b   :  { %1377 = vmatpush.msrb.mxu1 %v5765_v61  ;;  %1417 = vmatpush.msrb.mxu3 %v5771_v22  ;;  %v6879_v61 = vld [vmem:[%s10105_s1 + $0x1a0] sm:$0xff] }
 0x26c   :  { %v3379_v57 = vpop.eup %3378  ;;  %v6888_v22 = vld [vmem:[%s10105_s1 + $0x180] sm:$0xff] }
 0x26d   :  { %1378 = vmatpush.msrb.mxu1 %v5779_v62  ;;  %1418 = vmatpush.msrb.mxu3 %v5785_v39  ;;  %v6852_v20 = vmul.f32 %v3379_v57, %v1113_v13  ;;  %v6899_v62 = vld [vmem:[%s10105_s1 + $0x160] sm:$0xff]  ;;  %v11065_v57 = vld [vmem:[#allocation27_spill] sm:$0xff]  ;;  %v11066_v13 = vld [vmem:[#allocation21_spill] sm:$0xff] }
 0x26e   :  { %v11016_v39 = vld [vmem:[#allocation46_spill] sm:$0xff] }
 0x26f   :  { %1379 = vmatpush.msrb.mxu1 %v5791_v35  ;;  %1419 = vmatpush.msrb.mxu3 %v5797_v1  ;;  %v6908_v35 = vld [vmem:[%s10105_s1 + $0x140] sm:$0xff] }
 0x270   :  { %1136 = vmatmul.f32.vlgmr.msrb.gmra.mxu0 %v6852_v20  ;;  %1176 = vmatmul.f32.vlgmr.msrb.gmra.mxu2 %v6852_v20  ;;  %v11017_v1 = vld [vmem:[#allocation2_spill] sm:$0xff] }
 0x271   :  { %1348 = vmatpush.msrb.mxu0 %v6861_v46  ;;  %1388 = vmatpush.msrb.mxu2 %v5806_v2  ;;  %v11018_v2 = vld [vmem:[#allocation47_spill] sm:$0xff] }
 0x272   :  { %1380 = vmatpush.msrb.mxu1 %v5812_v4  ;;  %1420 = vmatpush.msrb.mxu3 %v5818_v50  ;;  %v11019_v4 = vld [vmem:[#allocation3_spill] sm:$0xff]  ;;  %v6917_v50 = vld [vmem:[%s10105_s1 + $0x120] sm:$0xff] }
 0x273   :  { %1349 = vmatpush.msrb.mxu0 %v6870_v54  ;;  %1389 = vmatpush.msrb.mxu2 %v5825_v43  ;;  %v11020_v43 = vld [vmem:[#allocation48_spill] sm:$0xff] }
 0x274   :  { %1381 = vmatpush.msrb.mxu1 %v5831_v10  ;;  %1421 = vmatpush.msrb.mxu3 %v5837_v14  ;;  %v11021_v10 = vld [vmem:[#allocation49_spill] sm:$0xff]  ;;  %v11022_v14 = vld [vmem:[#allocation4_spill] sm:$0xff] }
 0x275   :  { %1350 = vmatpush.msrb.mxu0 %v6879_v61  ;;  %1390 = vmatpush.msrb.mxu2 %v5844_v15  ;;  %v6926_v15 = vld [vmem:[%s10105_s1 + $0x100] sm:$0xff] }
 0x276   :  { %1382 = vmatpush.msrb.mxu1 %v5850_v26  ;;  %1422 = vmatpush.msrb.mxu3 %v5856_v29  ;;  %v11023_v26 = vld [vmem:[#allocation50_spill] sm:$0xff]  ;;  %v11024_v29 = vld [vmem:[#allocation51_spill] sm:$0xff] }
 0x277   :  { %1351 = vmatpush.msrb.mxu0 %v6888_v22  ;;  %1391 = vmatpush.msrb.mxu2 %v5863_v53  ;;  %v11025_v53 = vld [vmem:[#allocation5_spill] sm:$0xff] }
 0x278   :  { %1383 = vmatpush.msrb.mxu1 %v5869_v37  ;;  %1423 = vmatpush.msrb.mxu3 %v5875_v34  ;;  %v6935_v37 = vld [vmem:[%s10105_s1 + $0xe0] sm:$0xff] }
 0x279   :  { %1216 = vmatmul.f32.vlgmr.msra.gmra.mxu0 %v6852_v20  ;;  %1256 = vmatmul.f32.vlgmr.msra.gmra.mxu2 %v6852_v20  ;;  %v11026_v34 = vld [vmem:[#allocation6_spill] sm:$0xff] }
 0x27a   :  { %1352 = vmatpush.msrb.mxu0 %v6899_v62  ;;  %1384 = vmatmul.f32.vlgmr.msrb.gmra.mxu1 %v6852_v20 }
 0x27b   :  { %1392 = vmatpush.msrb.mxu2 %v11016_v39  ;;  %1424 = vmatmul.f32.vlgmr.msrb.gmra.mxu3 %v6852_v20  ;;  %v11068_v39 = vld [vmem:[#allocation82_spill] sm:$0xff] }
 0x27c   :  { %1353 = vmatpush.msrb.mxu0 %v6908_v35  ;;  %1515 = vmatpush.msra.mxu1 %v11017_v1  ;;  %v11069_v1 = vld [vmem:[#allocation22_spill] sm:$0xff] }
 0x27d   :  { %1393 = vmatpush.msrb.mxu2 %v11018_v2  ;;  %1555 = vmatpush.msra.mxu3 %v11019_v4  ;;  %v11070_v2 = vld [vmem:[#allocation85_spill] sm:$0xff]  ;;  %v11071_v4 = vld [vmem:[#allocation30_spill] sm:$0xff] }
 0x27e   :  { %1354 = vmatpush.msrb.mxu0 %v6917_v50  ;;  %1516 = vmatpush.msra.mxu1 %v11020_v43  ;;  %v11072_v43 = vld [vmem:[#allocation86_spill] sm:$0xff] }
 0x27f   :  { %1394 = vmatpush.msrb.mxu2 %v11021_v10  ;;  %1556 = vmatpush.msra.mxu3 %v11022_v14  ;;  %v11073_v10 = vld [vmem:[#allocation24_spill] sm:$0xff]  ;;  %v11074_v14 = vld [vmem:[#allocation89_spill] sm:$0xff] }
 0x280   :  { %1355 = vmatpush.msrb.mxu0 %v6926_v15  ;;  %1517 = vmatpush.msra.mxu1 %v11023_v26  ;;  %v11075_v26 = vld [vmem:[#allocation32_spill] sm:$0xff] }
 0x281   :  { %1395 = vmatpush.msrb.mxu2 %v11024_v29  ;;  %1557 = vmatpush.msra.mxu3 %v11025_v53  ;;  %v11076_v29 = vld [vmem:[#allocation90_spill] sm:$0xff] }
 0x282   :  { %1356 = vmatpush.msrb.mxu0 %v6935_v37  ;;  %1518 = vmatpush.msra.mxu1 %v11026_v34  ;;  %v11077_v53 = vld [vmem:[#allocation26_spill] sm:$0xff] }
 0x283   :  { %1396 = vmatpush.msrb.mxu2 %v11027_v17  ;;  %1558 = vmatpush.msra.mxu3 %v11028_v9  ;;  %v11078_v34 = vld [vmem:[#allocation34_spill] sm:$0xff]  ;;  %v11079_v17 = vld [vmem:[#allocation29_spill] sm:$0xff]  ;;  %v11080_v9 = vld [vmem:[#allocation36_spill] sm:$0xff] }
 0x284   :  { %1357 = vmatpush.msrb.mxu0 %v6944_v21  ;;  %1519 = vmatpush.msra.mxu1 %v11029_v6  ;;  %v11081_v6 = vld [vmem:[#allocation31_spill] sm:$0xff] }
 0x285   :  { %1397 = vmatpush.msrb.mxu2 %v11030_v0  ;;  %1559 = vmatpush.msra.mxu3 %v11031_v48  ;;  %v11082_v0 = vld [vmem:[#allocation38_spill] sm:$0xff]  ;;  %v11083_v48 = vld [vmem:[#allocation33_spill] sm:$0xff] }
 0x286   :  { %1358 = vmatpush.msrb.mxu0 %v11032_v5  ;;  %1520 = vmatpush.msra.mxu1 %v11033_v52  ;;  %v11084_v5 = vld [vmem:[#allocation39_spill] sm:$0xff] }
 0x287   :  { %1398 = vmatpush.msrb.mxu2 %v11034_v63  ;;  %1560 = vmatpush.msra.mxu3 %v11035_v24  ;;  %v11085_v52 = vld [vmem:[#allocation35_spill] sm:$0xff]  ;;  %v11086_v63 = vld [vmem:[#allocation41_spill] sm:$0xff] }
 0x288   :  { %1359 = vmatpush.msrb.mxu0 %v11036_v58  ;;  %1521 = vmatpush.msra.mxu1 %v11037_v55  ;;  %v11087_v24 = vld [vmem:[#allocation37_spill] sm:$0xff]  ;;  %v11088_v58 = vld [vmem:[#allocation44_spill] sm:$0xff]  ;;  %v11089_v55 = vld [vmem:[#allocation67_spill] sm:$0xff] }
 0x289   :  { %1399 = vmatpush.msrb.mxu2 %v11038_v38  ;;  %1561 = vmatpush.msra.mxu3 %v11039_v23  ;;  %v11090_v38 = vld [vmem:[#allocation68_spill] sm:$0xff]  ;;  %v11091_v23 = vld [vmem:[#allocation71_spill] sm:$0xff] }
 0x28a   :  { %1360 = vmatpush.msrb.mxu0 %v11040_v18  ;;  %1522 = vmatpush.msra.mxu1 %v11041_v51  ;;  %v11092_v18 = vld [vmem:[#allocation72_spill] sm:$0xff]  ;;  %v11093_v51 = vld [vmem:[#allocation75_spill] sm:$0xff] }
 0x28b   :  { %1400 = vmatpush.msrb.mxu2 %v11042_v12  ;;  %1562 = vmatpush.msra.mxu3 %v11043_v19  ;;  %v11094_v12 = vld [vmem:[#allocation76_spill] sm:$0xff]  ;;  %v11095_v19 = vld [vmem:[#allocation79_spill] sm:$0xff] }
 0x28c   :  { %1361 = vmatpush.msrb.mxu0 %v11044_v27  ;;  %1523 = vmatpush.msra.mxu1 %v11045_v31  ;;  %v11096_v27 = vld [vmem:[#allocation80_spill] sm:$0xff]  ;;  %v11097_v31 = vld [vmem:[#allocation83_spill] sm:$0xff] }
 0x28d   :  { %1401 = vmatpush.msrb.mxu2 %v11046_v45  ;;  %1563 = vmatpush.msra.mxu3 %v11047_v7  ;;  %v11098_v45 = vld [vmem:[#allocation84_spill] sm:$0xff]  ;;  %v11099_v7 = vld [vmem:[#allocation87_spill] sm:$0xff] }
 0x28e   :  { %1362 = vmatpush.msrb.mxu0 %v11048_v8  ;;  %1524 = vmatpush.msra.mxu1 %v11049_v59  ;;  %v11100_v8 = vld [vmem:[#allocation88_spill] sm:$0xff]  ;;  %v11101_v59 = vld [vmem:[#allocation91_spill] sm:$0xff] }
 0x28f   :  { %1402 = vmatpush.msrb.mxu2 %v11050_v32  ;;  %1564 = vmatpush.msra.mxu3 %v11051_v25  ;;  %v11102_v32 = vld [vmem:[#allocation92_spill] sm:$0xff]  ;;  %v11103_v25 = vld [vmem:[#allocation93_spill] sm:$0xff] }
 0x290   :  { %1363 = vmatpush.msrb.mxu0 %v11052_v30  ;;  %1525 = vmatpush.msra.mxu1 %v11053_v33  ;;  %v11104_v30 = vld [vmem:[#allocation94_spill] sm:$0xff]  ;;  %v11105_v33 = vld [vmem:[#allocation95_spill] sm:$0xff] }
 0x291   :  { %1403 = vmatpush.msrb.mxu2 %v11054_v60  ;;  %1364 = vmatmul.f32.vlgmr.msrb.gmra.mxu0 %v6852_v20  ;;  %v11106_v60 = vld [vmem:[#allocation96_spill] sm:$0xff] }
 0x292   :  { %1404 = vmatmul.f32.vlgmr.msrb.gmra.mxu2 %v6852_v20  ;;  %1565 = vmatpush.msra.mxu3 %v11055_v28  ;;  %v11067_v20 = vld [vmem:[#allocation28_spill] sm:$0xff]  ;;  %v11107_v28 = vld [vmem:[#allocation97_spill] sm:$0xff] }
 0x293   :  { %1526 = vmatpush.msra.mxu1 %v11056_v49  ;;  %1495 = vmatpush.msra.mxu0 %v11057_v41  ;;  %v11108_v49 = vld [vmem:[#allocation98_spill] sm:$0xff]  ;;  %v11109_v41 = vld [vmem:[#allocation99_spill] sm:$0xff] }
 0x294   :  { %1566 = vmatpush.msra.mxu3 %v11058_v42  ;;  %1535 = vmatpush.msra.mxu2 %v11059_v16  ;;  %v11110_v42 = vld [vmem:[#allocation100_spill] sm:$0xff]  ;;  %v11111_v16 = vld [vmem:[#allocation101_spill] sm:$0xff] }
 0x295   :  { %1527 = vmatpush.msra.mxu1 %v11060_v40  ;;  %1496 = vmatpush.msra.mxu0 %v11061_v11  ;;  %v11112_v40 = vld [vmem:[#allocation102_spill] sm:$0xff]  ;;  %v11113_v11 = vld [vmem:[#allocation103_spill] sm:$0xff] }
 0x296   :  { %1567 = vmatpush.msra.mxu3 %v11062_v47  ;;  %1536 = vmatpush.msra.mxu2 %v11063_v36  ;;  %v11114_v47 = vld [vmem:[#allocation104_spill] sm:$0xff]  ;;  %v11115_v36 = vld [vmem:[#allocation105_spill] sm:$0xff] }
 0x297   :  { %1528 = vmatpush.msra.mxu1 %v11064_v44  ;;  %1497 = vmatpush.msra.mxu0 %v11065_v57  ;;  %v11116_v44 = vld [vmem:[#allocation106_spill] sm:$0xff]  ;;  %v11117_v57 = vld [vmem:[#allocation107_spill] sm:$0xff] }
 0x298   :  { %1568 = vmatpush.msra.mxu3 %v11066_v13  ;;  %1537 = vmatpush.msra.mxu2 %v11067_v20  ;;  %v11118_v13 = vld [vmem:[#allocation108_spill] sm:$0xff]  ;;  %v11119_v20 = vld [vmem:[#allocation109_spill] sm:$0xff] }
 0x299   :  { %1529 = vmatpush.msra.mxu1 %v11068_v39  ;;  %1498 = vmatpush.msra.mxu0 %v11069_v1  ;;  %v11120_v39 = vld [vmem:[#allocation110_spill] sm:$0xff]  ;;  %v11121_v1 = vld [vmem:[#allocation111_spill] sm:$0xff] }
 0x29a   :  { %1569 = vmatpush.msra.mxu3 %v11070_v2  ;;  %1538 = vmatpush.msra.mxu2 %v11071_v4  ;;  %v11122_v2 = vld [vmem:[#allocation112_spill] sm:$0xff]  ;;  %v11123_v4 = vld [vmem:[#allocation113_spill] sm:$0xff] }
 0x29b   :  { %1530 = vmatpush.msra.mxu1 %v11072_v43  ;;  %1499 = vmatpush.msra.mxu0 %v11073_v10  ;;  %v11124_v43 = vld [vmem:[#allocation114_spill] sm:$0xff]  ;;  %v11125_v10 = vld [vmem:[#allocation115_spill] sm:$0xff] }
 0x29c   :  { %1570 = vmatpush.msra.mxu3 %v11074_v14  ;;  %1539 = vmatpush.msra.mxu2 %v11075_v26  ;;  %v11126_v14 = vld [vmem:[#allocation116_spill] sm:$0xff]  ;;  %v11127_v26 = vld [vmem:[#allocation117_spill] sm:$0xff] }
 0x29d   :  { %1595 = vmatpush.msrb.mxu1 %v11076_v29  ;;  %1500 = vmatpush.msra.mxu0 %v11078_v34  ;;  %v11128_v29 = vld [vmem:[#allocation118_spill] sm:$0xff]  ;;  %v11130_v34 = vld [vmem:[#allocation120_spill] sm:$0xff] }
 0x29e   :  { %1635 = vmatpush.msrb.mxu3 %v11077_v53  ;;  %1540 = vmatpush.msra.mxu2 %v11079_v17  ;;  %v11129_v53 = vld [vmem:[#allocation119_spill] sm:$0xff]  ;;  %v11131_v17 = vld [vmem:[#allocation121_spill] sm:$0xff] }
 0x29f   :  { %1596 = vmatpush.msrb.mxu1 %v11080_v9  ;;  %1501 = vmatpush.msra.mxu0 %v11082_v0  ;;  %v11132_v9 = vld [vmem:[#allocation122_spill] sm:$0xff]  ;;  %v11134_v0 = vld [vmem:[#allocation124_spill] sm:$0xff] }
 0x2a0   :  { %1636 = vmatpush.msrb.mxu3 %v11081_v6  ;;  %1541 = vmatpush.msra.mxu2 %v11083_v48  ;;  %v11133_v6 = vld [vmem:[#allocation123_spill] sm:$0xff]  ;;  %v11135_v48 = vld [vmem:[#allocation125_spill] sm:$0xff] }
 0x2a1   :  { %1597 = vmatpush.msrb.mxu1 %v11084_v5  ;;  %1502 = vmatpush.msra.mxu0 %v11086_v63  ;;  %v11136_v5 = vld [vmem:[#allocation126_spill] sm:$0xff]  ;;  %v11138_v63 = vld [vmem:[#allocation128_spill] sm:$0xff] }
 0x2a2   :  { %1637 = vmatpush.msrb.mxu3 %v11085_v52  ;;  %1542 = vmatpush.msra.mxu2 %v11087_v24  ;;  %v11137_v52 = vld [vmem:[#allocation127_spill] sm:$0xff]  ;;  %v11139_v24 = vld [vmem:[#allocation129_spill] sm:$0xff] }
 0x2a3   :  { %1598 = vmatpush.msrb.mxu1 %v11088_v58  ;;  %1503 = vmatpush.msra.mxu0 %v11090_v38  ;;  %v11140_v58 = vld [vmem:[#allocation130_spill] sm:$0xff]  ;;  %v11142_v38 = vld [vmem:[#allocation132_spill] sm:$0xff] }
 0x2a4   :  { %1638 = vmatpush.msrb.mxu3 %v11089_v55  ;;  %1543 = vmatpush.msra.mxu2 %v11091_v23  ;;  %v11141_v55 = vld [vmem:[#allocation131_spill] sm:$0xff]  ;;  %v11143_v23 = vld [vmem:[#allocation133_spill] sm:$0xff] }
 0x2a5   :  { %1599 = vmatpush.msrb.mxu1 %v11092_v18  ;;  %1504 = vmatpush.msra.mxu0 %v11094_v12  ;;  %v11144_v18 = vld [vmem:[#allocation134_spill] sm:$0xff]  ;;  %v11146_v12 = vld [vmem:[#allocation136_spill] sm:$0xff] }
 0x2a6   :  { %1639 = vmatpush.msrb.mxu3 %v11093_v51  ;;  %1544 = vmatpush.msra.mxu2 %v11095_v19  ;;  %v11145_v51 = vld [vmem:[#allocation135_spill] sm:$0xff]  ;;  %v11147_v19 = vld [vmem:[#allocation137_spill] sm:$0xff] }
 0x2a7   :  { %1600 = vmatpush.msrb.mxu1 %v11096_v27  ;;  %1505 = vmatpush.msra.mxu0 %v11098_v45  ;;  %v11148_v27 = vld [vmem:[#allocation138_spill] sm:$0xff]  ;;  %v11150_v45 = vld [vmem:[#allocation140_spill] sm:$0xff] }
 0x2a8   :  { %1640 = vmatpush.msrb.mxu3 %v11097_v31  ;;  %1545 = vmatpush.msra.mxu2 %v11099_v7  ;;  %v11149_v31 = vld [vmem:[#allocation139_spill] sm:$0xff]  ;;  %v11151_v7 = vld [vmem:[#allocation141_spill] sm:$0xff] }
 0x2a9   :  { %1601 = vmatpush.msrb.mxu1 %v11100_v8  ;;  %1506 = vmatpush.msra.mxu0 %v11102_v32  ;;  %v11152_v8 = vld [vmem:[#allocation142_spill] sm:$0xff]  ;;  %v11154_v32 = vld [vmem:[#allocation144_spill] sm:$0xff] }
 0x2aa   :  { %1641 = vmatpush.msrb.mxu3 %v11101_v59  ;;  %1546 = vmatpush.msra.mxu2 %v11103_v25  ;;  %v11153_v59 = vld [vmem:[#allocation143_spill] sm:$0xff]  ;;  %v11155_v25 = vld [vmem:[#allocation145_spill] sm:$0xff] }
 0x2ab   :  { %1602 = vmatpush.msrb.mxu1 %v11104_v30  ;;  %1507 = vmatpush.msra.mxu0 %v11106_v60  ;;  %v11156_v30 = vld [vmem:[#allocation146_spill] sm:$0xff]  ;;  %v11158_v60 = vld [vmem:[#allocation148_spill] sm:$0xff] }
 0x2ac   :  { %1642 = vmatpush.msrb.mxu3 %v11105_v33  ;;  %1547 = vmatpush.msra.mxu2 %v11107_v28  ;;  %v11157_v33 = vld [vmem:[#allocation147_spill] sm:$0xff]  ;;  %v11159_v28 = vld [vmem:[#allocation149_spill] sm:$0xff] }
 0x2ad   :  { %1603 = vmatpush.msrb.mxu1 %v11108_v49  ;;  %1508 = vmatpush.msra.mxu0 %v11110_v42  ;;  %v11160_v49 = vld [vmem:[#allocation150_spill] sm:$0xff] }
 0x2ae   :  { %1643 = vmatpush.msrb.mxu3 %v11109_v41  ;;  %1548 = vmatpush.msra.mxu2 %v11111_v16  ;;  %v11161_v41 = vld [vmem:[#allocation151_spill] sm:$0xff] }
 0x2af   :  { %1604 = vmatpush.msrb.mxu1 %v11112_v40  ;;  %1509 = vmatpush.msra.mxu0 %v11114_v47  ;;  %v11162_v40 = vld [vmem:[#allocation40_spill] sm:$0xff] }
 0x2b0   :  { %1644 = vmatpush.msrb.mxu3 %v11113_v11  ;;  %1549 = vmatpush.msra.mxu2 %v11115_v36 }
 0x2b1   :  { %1605 = vmatpush.msrb.mxu1 %v11116_v44  ;;  %1510 = vmatpush.msra.mxu0 %v11118_v13 }
 0x2b2   :  { %1645 = vmatpush.msrb.mxu3 %v11117_v57  ;;  %1550 = vmatpush.msra.mxu2 %v11119_v20  ;;  %v11163_v20 = vld [vmem:[#allocation42_spill] sm:$0xff] }
 0x2b3   :  { %1606 = vmatpush.msrb.mxu1 %v11120_v39  ;;  %1575 = vmatpush.msrb.mxu0 %v11122_v2  ;;  %v3250_v2 = vld [vmem:[%s10107_s0 + $0x68] sm:$0xff] }
 0x2b4   :  { %1646 = vmatpush.msrb.mxu3 %v11121_v1  ;;  %1615 = vmatpush.msrb.mxu2 %v11123_v4 }
 0x2b5   :  { %1607 = vmatpush.msrb.mxu1 %v11124_v43  ;;  %1576 = vmatpush.msrb.mxu0 %v11126_v14 }
 0x2b6   :  { %1647 = vmatpush.msrb.mxu3 %v11125_v10  ;;  %1616 = vmatpush.msrb.mxu2 %v11127_v26 }
 0x2b7   :  { %1608 = vmatpush.msrb.mxu1 %v11128_v29  ;;  %1577 = vmatpush.msrb.mxu0 %v11130_v34 }
 0x2b8   :  { %1648 = vmatpush.msrb.mxu3 %v11129_v53  ;;  %1617 = vmatpush.msrb.mxu2 %v11131_v17  ;;  %v11164_v17 = vld [vmem:[#allocation43_spill] sm:$0xff] }
 0x2b9   :  { %1609 = vmatpush.msrb.mxu1 %v11132_v9  ;;  %1578 = vmatpush.msrb.mxu0 %v11134_v0 }
 0x2ba   :  { %1649 = vmatpush.msrb.mxu3 %v11133_v6  ;;  %1618 = vmatpush.msrb.mxu2 %v11135_v48 }
 0x2bb   :  { %1610 = vmatpush.msrb.mxu1 %v11136_v5  ;;  %1579 = vmatpush.msrb.mxu0 %v11138_v63 }
 0x2bc   :  { %1650 = vmatpush.msrb.mxu3 %v11137_v52  ;;  %1619 = vmatpush.msrb.mxu2 %v11139_v24  ;;  %v3252_v52 = vld [vmem:[%s10107_s0 + $0x78] sm:$0xff] }
 0x2bd   :  { %1580 = vmatpush.msrb.mxu0 %v11140_v58 }
 0x2be   :  { %1620 = vmatpush.msrb.mxu2 %v11141_v55  ;;  %v11165_v55 = vld [vmem:[#allocation45_spill] sm:$0xff] }
 0x2bf   :  { %1581 = vmatpush.msrb.mxu0 %v11142_v38 }
 0x2c0   :  { %1621 = vmatpush.msrb.mxu2 %v11143_v23 }
 0x2c1   :  { %1582 = vmatpush.msrb.mxu0 %v11144_v18 }
 0x2c2   :  { %1622 = vmatpush.msrb.mxu2 %v11145_v51 }
 0x2c3   :  { %1583 = vmatpush.msrb.mxu0 %v11146_v12 }
 0x2c4   :  { %1623 = vmatpush.msrb.mxu2 %v11147_v19 }
 0x2c5   :  { %1584 = vmatpush.msrb.mxu0 %v11148_v27 }
 0x2c6   :  { %1624 = vmatpush.msrb.mxu2 %v11149_v31 }
 0x2c7   :  { %1585 = vmatpush.msrb.mxu0 %v11150_v45 }
 0x2c8   :  { %1625 = vmatpush.msrb.mxu2 %v11151_v7 }
 0x2c9   :  { %1586 = vmatpush.msrb.mxu0 %v11152_v8 }
 0x2ca   :  { %1626 = vmatpush.msrb.mxu2 %v11153_v59 }
 0x2cb   :  { %1587 = vmatpush.msrb.mxu0 %v11154_v32 }
 0x2cc   :  { %1627 = vmatpush.msrb.mxu2 %v11155_v25 }
 0x2cd   :  { %1588 = vmatpush.msrb.mxu0 %v11156_v30 }
 0x2ce   :  { %1628 = vmatpush.msrb.mxu2 %v11157_v33 }
 0x2cf   :  { %1589 = vmatpush.msrb.mxu0 %v11158_v60 }
 0x2d0   :  { %1629 = vmatpush.msrb.mxu2 %v11159_v28  ;;  %v3249_v28 = vld [vmem:[%s10107_s0 + $0x60] sm:$0xff] }
 0x2d1   :  { %1590 = vmatpush.msrb.mxu0 %v11160_v49 }
 0x2d2   :  { %1630 = vmatpush.msrb.mxu2 %v11161_v41  ;;  %v7145_v41 = vld [vmem:[%s10105_s1 + $0x1c8] sm:$0xff] }
 0x2d5   :  { %v1157_v42 = vpop.f32.mrf.mxu1 }
 0x2db   :  { %v1197_v47 = vpop.f32.mrf.mxu3 }
 0x2dd   :  { %v1237_v36 = vpop.f32.mrf.mxu1 }
 0x2e3   :  { %v1277_v10 = vpop.f32.mrf.mxu3 }
 0x2ed   :  { %v1137_v16 = vpop.f32.mrf.mxu0 }
 0x2ee   :  { %v1138_v11 = vadd.f32 %v1137_v16, %v11162_v40 }
 0x2f0   :  { %v1158_v44 = vadd.f32 %v1157_v42, %v1138_v11 }
 0x2f2   :  { %v3246_v57 = vmul.f32 -1.442695, %v1158_v44 }
 0x2f3   :  { %v1177_v13 = vpop.f32.mrf.mxu2 }
 0x2f4   :  { %3380 = vpow2.f32 %v3246_v57  ;;  %v1178_v39 = vadd.f32 %v1177_v13, %v11163_v20 }
 0x2f6   :  { %v1198_v1 = vadd.f32 %v1197_v47, %v1178_v39  ;;  %v1217_v0 = vpop.f32.mrf.mxu0 }
 0x2f7   :  { %v1385_v4 = vpop.f32.mrf.mxu1  ;;  %v1218_v38 = vadd.f32 %v1217_v0, %v11165_v55 }
 0x2f8   :  { %v3247_v43 = vmul.f32 -1.442695, %v1198_v1  ;;  %v1429_v14 = vadd.f32 %v3250_v2, %v1385_v4 }
 0x2f9   :  { %v1238_v19 = vadd.f32 %v1237_v36, %v1218_v38 }
 0x2fa   :  { %v3381_v26 = vpop.eup %3380  ;;  %3382 = vpow2.f32 %v3247_v43  ;;  %v3254_v34 = vmul.f32 -1.442695, %v1429_v14 }
 0x2fb   :  { %v1283_v29 = vadd.f32 1.0, %v3381_v26 }
 0x2fc   :  { %v1257_v53 = vpop.f32.mrf.mxu2 }
 0x2fd   :  { %3384 = vrcp.f32 %v1283_v29  ;;  %v1258_v9 = vadd.f32 %v1257_v53, %v11164_v17  ;;  %v1295_v25 = vand.u32 2147483648, %v1283_v29  ;;  %vm1289_vm13 = vweird.f32 %v1283_v29 }
 0x2fe   :  { %3386 = vpow2.f32 %v3254_v34  ;;  %v1425_v63 = vpop.f32.mrf.mxu3  ;;  %v1293_v60 = vand.u32 2147483647, %v1283_v29 }
 0x2ff   :  { %v1278_v48 = vadd.f32 %v1277_v10, %v1258_v9  ;;  %v1431_v18 = vadd.f32 %v3252_v52, %v1425_v63  ;;  %v1296_v36 = vor.u32 1.1754944e-38, %v1295_v25  ;;  %v7127_v25 = vld [vmem:[%s10105_s1 + $0x1e8] sm:$0xff] }
 0x300   :  { %v3383_v6 = vpop.eup %3382  ;;  %vm1294_vm1 = vcmp.eq.f32.partialorder %v1293_v60, 8.507059e+37 }
 0x301   :  { %v1302_v5 = vadd.f32 1.0, %v3383_v6  ;;  %v3248_v24 = vmul.f32 -1.442695, %v1278_v48  ;;  %v3255_v31 = vmul.f32 -1.442695, %v1431_v18 }
 0x303   :  { %v3385_v58 = vpop.eup %3384  ;;  %3388 = vrcp.f32 %v1302_v5  ;;  %v1314_v49 = vand.u32 2147483648, %v1302_v5  ;;  %v1312_v42 = vand.u32 2147483647, %v1302_v5  ;;  %vm1308_vm0 = vweird.f32 %v1302_v5 }
 0x304   :  { %v1285_v23 = vmul.f32 %v3385_v58, %v1283_v29  ;;  %3390 = vpow2.f32 %v3248_v24  ;;  %v3387_v12 = vpop.eup %3386  ;;  %vm1290_vm12 = vweird.f32 %v3385_v58 }
 0x305   :  { %v7092_v32 = vadd.f32 1.0, %v3387_v12  ;;  %3392 = vtanh.f32 %v1238_v19  ;;  %vm7097_vm14 = vmor %vm1289_vm13, %vm1290_vm12  ;;  %v1315_v39 = vor.u32 1.1754944e-38, %v1314_v49  ;;  %vm1313_vm3 = vcmp.eq.f32.partialorder %v1312_v42, 8.507059e+37  ;;  %v7151_v42 = vld [vmem:[%s10105_s1 + $0x1d8] sm:$0xff] }
 0x306   :  { %v1286_v51 = vsub.f32 1.0, %v1285_v23  ;;  %3394 = vpow2.f32 %v3255_v31 }
 0x307   :  { %vm1460_vm9 = vweird.f32 %v7092_v32 }
 0x308   :  { %v1287_v27 = vmul.f32 %v3385_v58, %v1286_v51 }
 0x309   :  { %v3389_v45 = vpop.eup %3388 }
 0x30a   :  { %v3391_v7 = vpop.eup %3390  ;;  %v1304_v8 = vmul.f32 %v3389_v45, %v1302_v5  ;;  %v1288_v59 = vadd.f32 %v3385_v58, %v1287_v27  ;;  %vm1309_vm15 = vweird.f32 %v3389_v45  ;;  %v3251_v27 = vld [vmem:[%s10107_s0 + $0x70] sm:$0xff] }
 0x30b   :  { %v1322_v30 = vadd.f32 1.0, %v3391_v7  ;;  %v3393_v13 = vpop.eup %3392  ;;  %vm1310_vm2 = vmor %vm1308_vm0, %vm1309_vm15 }
 0x30c   :  { %v1305_v33 = vsub.f32 1.0, %v1304_v8  ;;  %v1292_v11 = vsel %vm7097_vm14, %v3385_v58, %v1288_v59  ;;  %v3395_v4 = vpop.eup %3394 }
 0x30d   :  { %3396 = vrcp.f32 %v1322_v30  ;;  %v1297_v1 = vsel %vm1294_vm1, %v1296_v36, %v1292_v11  ;;  %v7111_v48 = vadd.f32 1.0, %v3395_v4  ;;  %v1334_v52 = vand.u32 2147483648, %v1322_v30  ;;  %v7180_v4 = vld [vmem:[%s10105_s1 + $0x188] sm:$0xff] }
 0x30e   :  { %v1306_v16 = vmul.f32 %v3389_v45, %v1305_v33  ;;  %3398 = vrcp.f32 %v7092_v32  ;;  %v1365_v47 = vpop.f32.mrf.mxu0  ;;  %v1339_v53 = vmul.f32 %v3393_v13, %v1297_v1  ;;  %v1332_v24 = vand.u32 2147483647, %v1322_v30 }
 0x30f   :  { %v1428_v44 = vadd.f32 %v3249_v28, %v1365_v47  ;;  %vm1328_vm5 = vweird.f32 %v1322_v30  ;;  %v1335_v23 = vor.u32 1.1754944e-38, %v1334_v52  ;;  %v1466_v28 = vand.u32 2147483648, %v7092_v32  ;;  %v7206_v52 = vld [vmem:[%s10105_s1 + $0x148] sm:$0xff]  ;;  %v7305_v47 = vld [vmem:[%s10105_s1 + $0x1f0] sm:$0xff] }
 0x310   :  { %v1307_v57 = vadd.f32 %v3389_v45, %v1306_v16  ;;  %vm1333_vm7 = vcmp.eq.f32.partialorder %v1332_v24, 8.507059e+37  ;;  %v1464_v11 = vand.u32 2147483647, %v7092_v32  ;;  %vm1480_vm1 = vweird.f32 %v7111_v48 }
 0x311   :  { %v3253_v2 = vmul.f32 -1.442695, %v1428_v44  ;;  %v7164_v44 = vld [vmem:[%s10105_s1 + $0x1a8] sm:$0xff]  ;;  %v1467_v1 = vor.u32 1.1754944e-38, %v1466_v28 }
 0x312   :  { %v1311_v43 = vsel %vm1310_vm2, %v3389_v45, %v1307_v57  ;;  %v7170_v57 = vld [vmem:[%s10105_s1 + $0x1b8] sm:$0xff]  ;;  %vm1465_vm13 = vcmp.eq.f32.partialorder %v1464_v11, 8.507059e+37 }
 0x313   :  { %v3397_v10 = vpop.eup %3396  ;;  %v1316_v14 = vsel %vm1313_vm3, %v1315_v39, %v1311_v43  ;;  %3400 = vpow2.f32 %v3253_v2  ;;  %v7186_v43 = vld [vmem:[%s10105_s1 + $0x198] sm:$0xff] }
 0x314   :  { %v7104_v26 = vpop.eup %3398  ;;  %v1338_v29 = vmul.f32 %v1316_v14, %v6791_v56  ;;  %v1324_v34 = vmul.f32 %v3397_v10, %v1322_v30  ;;  %vm1329_vm4 = vweird.f32 %v3397_v10  ;;  %v7133_v30 = vld [vmem:[%s10105_s1 + $0x1f8] sm:$0xff] }
 0x315   :  { %v1456_v0 = vmul.f32 %v7104_v26, %v7092_v32  ;;  %vm1330_vm6 = vmor %vm1328_vm5, %vm1329_vm4  ;;  %v1405_v31 = vpop.f32.mrf.mxu2  ;;  %vm1461_vm8 = vweird.f32 %v7104_v26  ;;  %v7296_v11 = vld [vmem:[%s10105_s1 + $0x98] sm:$0xff] }
 0x316   :  { %v7107_v9 = vadd.f32 %v1339_v53, %v1338_v29  ;;  %v1325_v6 = vsub.f32 1.0, %v1324_v34  ;;  %v1430_v59 = vadd.f32 %v3251_v27, %v1405_v31  ;;  %vm7156_vm10 = vmor %vm1460_vm9, %vm1461_vm8  ;;  %v7193_v29 = vld [vmem:[%s10105_s1 + $0x168] sm:$0xff]  ;;  %v7199_v53 = vld [vmem:[%s10105_s1 + $0x178] sm:$0xff] }
 0x317   :  { %v1457_v38 = vsub.f32 1.0, %v1456_v0  ;;  %v7251_v27 = vld [vmem:[%s10105_s1 + $0xe8] sm:$0xff]  ;;  %v7257_v31 = vld [vmem:[%s10105_s1 + $0xf8] sm:$0xff] }
 0x318   :  { %3402 = vtanh.f32 %v7107_v9  ;;  %v1326_v5 = vmul.f32 %v3397_v10, %v1325_v6 }
 0x319   :  { %v3401_v63 = vpop.eup %3400  ;;  %3404 = vrcp.f32 %v7111_v48  ;;  %v1458_v19 = vmul.f32 %v7104_v26, %v1457_v38  ;;  %v7225_v38 = vld [vmem:[%s10105_s1 + $0x138] sm:$0xff] }
 0x31a   :  { %v7114_v58 = vadd.f32 1.0, %v3401_v63  ;;  %v1327_v56 = vadd.f32 %v3397_v10, %v1326_v5  ;;  %v7212_v63 = vld [vmem:[%s10105_s1 + $0x158] sm:$0xff] }
 0x31b   :  { %v1459_v60 = vadd.f32 %v7104_v26, %v1458_v19  ;;  %v1484_v19 = vand.u32 2147483647, %v7111_v48 }
 0x31c   :  { %3406 = vrcp.f32 %v7114_v58  ;;  %v1331_v18 = vsel %vm1330_vm6, %v3397_v10, %v1327_v56  ;;  %v1447_v36 = vand.u32 2147483648, %v7114_v58  ;;  %v1445_v13 = vand.u32 2147483647, %v7114_v58  ;;  %v7219_v56 = vld [vmem:[%s10105_s1 + $0x128] sm:$0xff] }
 0x31d   :  { %v1336_v12 = vsel %vm1333_vm7, %v1335_v23, %v1331_v18  ;;  %3408 = vtanh.f32 %v1430_v59  ;;  %v1463_v39 = vsel %vm7156_vm10, %v7104_v26, %v1459_v60  ;;  %vm1441_vm12 = vweird.f32 %v7114_v58 }
 0x31e   :  { %v3403_v51 = vpop.eup %3402  ;;  %v1448_v14 = vor.u32 1.1754944e-38, %v1447_v36  ;;  %v1468_v26 = vsel %vm1465_vm13, %v1467_v1, %v1463_v39  ;;  %vm1446_vm15 = vcmp.eq.f32.partialorder %v1445_v13, 8.507059e+37  ;;  %vm1485_vm3 = vcmp.eq.f32.partialorder %v1484_v19, 8.507059e+37  ;;  %v7311_v36 = vld [vmem:[%s10105_s1 + $0x68] sm:$0xff]  ;;  %v7336_v39 = vld [vmem:[%s10105_s1 + $0x58] sm:$0xff] }
 0x31f   :  { %v1342_v45 = vmul.f32 %v3403_v51, %v1336_v12  ;;  %v7122_v7 = vpop.eup %3404  ;;  %v1490_v24 = vmul.f32 %v1468_v26, %v6835_v3  ;;  %v7235_v3 = vld [vmem:[%s10105_s1 + $0x108] sm:$0xff]  ;;  %v7241_v51 = vld [vmem:[%s10105_s1 + $0x118] sm:$0xff]  ;;  %v1486_v12 = vand.u32 2147483648, %v7111_v48  ;;  %v7392_v26 = vld [vmem:[%s10106_s2 + $0x3e0] sm:$0xff] }
 0x320   :  { %v1476_v49 = vmul.f32 %v7122_v7, %v7111_v48  ;;  %vm1481_vm0 = vweird.f32 %v7122_v7  ;;  %v7264_v48 = vld [vmem:[%s10105_s1 + $0xc8] sm:$0xff]  ;;  %11171 = vst [vmem:[#allocation2_spill] sm:$0xff] %v7392_v26 }
 0x321   :  { %1531 = vmatmul.f32.vlgmr.msra.gmra.mxu1 %v1342_v45  ;;  %1571 = vmatmul.f32.vlgmr.msra.gmra.mxu3 %v1342_v45  ;;  %vm1482_vm2 = vmor %vm1480_vm1, %vm1481_vm0  ;;  %v1487_v59 = vor.u32 1.1754944e-38, %v1486_v12  ;;  %v7330_v13 = vld [vmem:[%s10105_s1 + $0x48] sm:$0xff]  ;;  %v7474_v12 = vld [vmem:[%s10105_s1 + $0xd0] sm:$0xff] }
 0x322   :  { %v3407_v8 = vpop.eup %3406  ;;  %1743 = vmatpush.msra.mxu1 %v7127_v25  ;;  %1783 = vmatpush.msra.mxu3 %v7133_v30  ;;  %v1477_v2 = vsub.f32 1.0, %v1476_v49  ;;  %v7349_v1 = vld [vmem:[%s10105_s1 + $0x28] sm:$0xff]  ;;  %11184 = vst [vmem:[#allocation54_spill] sm:$0xff] %v7474_v12 }
 0x323   :  { %v1437_v33 = vmul.f32 %v3407_v8, %v7114_v58  ;;  %vm1442_vm11 = vweird.f32 %v3407_v8  ;;  %v3409_v6 = vpop.eup %3408  ;;  %v7480_v19 = vld [vmem:[%s10106_s2 + $0x368] sm:$0xff] }
 0x324   :  { %1744 = vmatpush.msra.mxu1 %v7145_v41  ;;  %1784 = vmatpush.msra.mxu3 %v7151_v42  ;;  %vm1443_vm14 = vmor %vm1441_vm12, %vm1442_vm11  ;;  %v1478_v0 = vmul.f32 %v7122_v7, %v1477_v2  ;;  %v7355_v2 = vld [vmem:[%s10105_s1 + $0x38] sm:$0xff]  ;;  %11185 = vst [vmem:[#allocation55_spill] sm:$0xff] %v7480_v19 }
 0x325   :  { %v1438_v16 = vsub.f32 1.0, %v1437_v33  ;;  %v7282_v33 = vld [vmem:[%s10105_s1 + $0xb8] sm:$0xff] }
 0x326   :  { %1745 = vmatpush.msra.mxu1 %v7164_v44  ;;  %1785 = vmatpush.msra.mxu3 %v7170_v57  ;;  %v1479_v18 = vadd.f32 %v7122_v7, %v1478_v0  ;;  %v7423_v0 = vld [vmem:[%s10106_s2 + $0x3c8] sm:$0xff] }
 0x327   :  { %v1439_v32 = vmul.f32 %v3407_v8, %v1438_v16  ;;  %v7290_v16 = vld [vmem:[%s10105_s1 + $0x88] sm:$0xff]  ;;  %11176 = vst [vmem:[#allocation4_spill] sm:$0xff] %v7423_v0 }
 0x328   :  { %1746 = vmatpush.msra.mxu1 %v7180_v4  ;;  %1786 = vmatpush.msra.mxu3 %v7186_v43 }
 0x329   :  { %v1440_v10 = vadd.f32 %v3407_v8, %v1439_v32  ;;  %1611 = vmatmul.f32.vlgmr.msrb.gmra.mxu1 %v1342_v45  ;;  %1651 = vmatmul.f32.vlgmr.msrb.gmra.mxu3 %v1342_v45  ;;  %v1483_v45 = vsel %vm1482_vm2, %v7122_v7, %v1479_v18  ;;  %v7276_v7 = vld [vmem:[%s10105_s1 + $0xa8] sm:$0xff]  ;;  %v7317_v32 = vld [vmem:[%s10105_s1 + $0x78] sm:$0xff] }
 0x32a   :  { %1747 = vmatpush.msra.mxu1 %v7193_v29  ;;  %1787 = vmatpush.msra.mxu3 %v7199_v53  ;;  %v1488_v28 = vsel %vm1485_vm3, %v1487_v59, %v1483_v45  ;;  %v7461_v18 = vld [vmem:[%s10106_s2 + $0x388] sm:$0xff]  ;;  %v7492_v45 = vld [vmem:[%s10106_s2 + $0x340] sm:$0xff]  ;;  %v7498_v59 = vld [vmem:[%s10105_s1 + $0xb0] sm:$0xff] }
 0x32b   :  { %v1444_v34 = vsel %vm1443_vm14, %v3407_v8, %v1440_v10  ;;  %v7270_v8 = vld [vmem:[%s10105_s1 + $0xd8] sm:$0xff]  ;;  %v7368_v10 = vld [vmem:[%s10105_s1 + $0x8] sm:$0xff]  ;;  %11182 = vst [vmem:[#allocation53_spill] sm:$0xff] %v7461_v18 }
 0x32c   :  { %v1449_v5 = vsel %vm1446_vm15, %v1448_v14, %v1444_v34  ;;  %1748 = vmatpush.msra.mxu1 %v7206_v52  ;;  %1788 = vmatpush.msra.mxu3 %v7212_v63  ;;  %v7374_v14 = vld [vmem:[%s10105_s1 + $0x18] sm:$0xff]  ;;  %v7404_v34 = vld [vmem:[%s10106_s2 + $0x3e8] sm:$0xff]  ;;  %11187 = vst [vmem:[#allocation56_spill] sm:$0xff] %v7492_v45 }
 0x32d   :  { %v1491_v58 = vmul.f32 %v3409_v6, %v1449_v5  ;;  %11173 = vst [vmem:[#allocation3_spill] sm:$0xff] %v7404_v34  ;;  %v7417_v6 = vld [vmem:[%s10105_s1 + $0x130] sm:$0xff] }
 0x32e   :  { %1749 = vmatpush.msra.mxu1 %v7219_v56  ;;  %1789 = vmatpush.msra.mxu3 %v7225_v38  ;;  %11175 = vst [vmem:[#allocation49_spill] sm:$0xff] %v7417_v6  ;;  %v7436_v5 = vld [vmem:[%s10105_s1 + $0x110] sm:$0xff] }
 0x32f   :  { %v7228_v23 = vadd.f32 %v1491_v58, %v1490_v24  ;;  %11178 = vst [vmem:[#allocation51_spill] sm:$0xff] %v7436_v5  ;;  %v7442_v24 = vld [vmem:[%s10106_s2 + $0x3a8] sm:$0xff]  ;;  %v7455_v58 = vld [vmem:[%s10105_s1 + $0xf0] sm:$0xff] }
 0x330   :  { %1750 = vmatpush.msra.mxu1 %v7235_v3  ;;  %1790 = vmatpush.msra.mxu3 %v7241_v51  ;;  %11179 = vst [vmem:[#allocation5_spill] sm:$0xff] %v7442_v24 }
 0x331   :  { %3410 = vtanh.f32 %v7228_v23  ;;  %11181 = vst [vmem:[#allocation52_spill] sm:$0xff] %v7455_v58 }
 0x332   :  { %1751 = vmatpush.msra.mxu1 %v7251_v27  ;;  %1791 = vmatpush.msra.mxu3 %v7257_v31  ;;  %11188 = vst [vmem:[#allocation57_spill] sm:$0xff] %v7498_v59 }
 0x334   :  { %1752 = vmatpush.msra.mxu1 %v7264_v48  ;;  %1792 = vmatpush.msra.mxu3 %v7270_v8 }
 0x336   :  { %1753 = vmatpush.msra.mxu1 %v7276_v7  ;;  %1793 = vmatpush.msra.mxu3 %v7282_v33 }
 0x337   :  { %v3411_v60 = vpop.eup %3410 }
 0x338   :  { %v7285_v49 = vmul.f32 %v3411_v60, %v1488_v28  ;;  %1754 = vmatpush.msra.mxu1 %v7290_v16  ;;  %1794 = vmatpush.msra.mxu3 %v7296_v11  ;;  %v7504_v60 = vld [vmem:[%s10106_s2 + $0x348] sm:$0xff]  ;;  %v7510_v28 = vld [vmem:[%s10105_s1 + $0x80] sm:$0xff] }
 0x339   :  { %11189 = vst [vmem:[#allocation11_spill] sm:$0xff] %v7504_v60 }
 0x33a   :  { %1511 = vmatmul.f32.vlgmr.msra.gmra.mxu0 %v7285_v49  ;;  %1551 = vmatmul.f32.vlgmr.msra.gmra.mxu2 %v7285_v49  ;;  %11190 = vst [vmem:[#allocation58_spill] sm:$0xff] %v7510_v28 }
 0x33b   :  { %1723 = vmatpush.msra.mxu0 %v6861_v46  ;;  %1763 = vmatpush.msra.mxu2 %v7305_v47  ;;  %v7324_v46 = vld [vmem:[%s10105_s1 + $0x1d0] sm:$0xff] }
 0x33c   :  { %1755 = vmatpush.msra.mxu1 %v7311_v36  ;;  %1795 = vmatpush.msra.mxu3 %v7317_v32 }
 0x33d   :  { %1724 = vmatpush.msra.mxu0 %v6870_v54  ;;  %1764 = vmatpush.msra.mxu2 %v7324_v46  ;;  %v7343_v54 = vld [vmem:[%s10105_s1 + $0x1b0] sm:$0xff] }
 0x33e   :  { %1756 = vmatpush.msra.mxu1 %v7330_v13  ;;  %1796 = vmatpush.msra.mxu3 %v7336_v39 }
 0x33f   :  { %1725 = vmatpush.msra.mxu0 %v6879_v61  ;;  %1765 = vmatpush.msra.mxu2 %v7343_v54  ;;  %v7362_v61 = vld [vmem:[%s10105_s1 + $0x190] sm:$0xff] }
 0x340   :  { %1757 = vmatpush.msra.mxu1 %v7349_v1  ;;  %1797 = vmatpush.msra.mxu3 %v7355_v2 }
 0x341   :  { %1726 = vmatpush.msra.mxu0 %v6888_v22  ;;  %1766 = vmatpush.msra.mxu2 %v7362_v61  ;;  %v7384_v22 = vld [vmem:[%s10105_s1 + $0x170] sm:$0xff] }
 0x342   :  { %1758 = vmatpush.msra.mxu1 %v7368_v10  ;;  %1798 = vmatpush.msra.mxu3 %v7374_v14  ;;  %11170 = vst [vmem:[#allocation46_spill] sm:$0xff] %v7384_v22 }
 0x343   :  { %1591 = vmatmul.f32.vlgmr.msrb.gmra.mxu0 %v7285_v49  ;;  %1631 = vmatmul.f32.vlgmr.msrb.gmra.mxu2 %v7285_v49 }
 0x344   :  { %1727 = vmatpush.msra.mxu0 %v6899_v62  ;;  %1759 = vmatmul.f32.vlgmr.msra.gmra.mxu1 %v7285_v49  ;;  %v7398_v62 = vld [vmem:[%s10105_s1 + $0x150] sm:$0xff] }
 0x345   :  { %1767 = vmatpush.msra.mxu2 %v7384_v22  ;;  %1799 = vmatmul.f32.vlgmr.msra.gmra.mxu3 %v7285_v49  ;;  %11172 = vst [vmem:[#allocation47_spill] sm:$0xff] %v7398_v62 }
 0x346   :  { %1728 = vmatpush.msra.mxu0 %v6908_v35  ;;  %1890 = vmatpush.msrb.mxu1 %v7392_v26  ;;  %v7411_v35 = vld [vmem:[%s10106_s2 + $0x3c0] sm:$0xff] }
 0x347   :  { %1768 = vmatpush.msra.mxu2 %v7398_v62  ;;  %1930 = vmatpush.msrb.mxu3 %v7404_v34  ;;  %11174 = vst [vmem:[#allocation48_spill] sm:$0xff] %v7411_v35 }
 0x348   :  { %1729 = vmatpush.msra.mxu0 %v6917_v50  ;;  %1891 = vmatpush.msrb.mxu1 %v7411_v35  ;;  %v7430_v50 = vld [vmem:[%s10106_s2 + $0x3a0] sm:$0xff] }
 0x349   :  { %1769 = vmatpush.msra.mxu2 %v7417_v6  ;;  %1931 = vmatpush.msrb.mxu3 %v7423_v0  ;;  %11177 = vst [vmem:[#allocation50_spill] sm:$0xff] %v7430_v50 }
 0x34a   :  { %1730 = vmatpush.msra.mxu0 %v6926_v15  ;;  %1892 = vmatpush.msrb.mxu1 %v7430_v50  ;;  %v7449_v15 = vld [vmem:[%s10106_s2 + $0x380] sm:$0xff] }
 0x34b   :  { %1770 = vmatpush.msra.mxu2 %v7436_v5  ;;  %1932 = vmatpush.msrb.mxu3 %v7442_v24  ;;  %11180 = vst [vmem:[#allocation6_spill] sm:$0xff] %v7449_v15 }
 0x34c   :  { %1731 = vmatpush.msra.mxu0 %v6935_v37  ;;  %1893 = vmatpush.msrb.mxu1 %v7449_v15  ;;  %v7468_v37 = vld [vmem:[%s10106_s2 + $0x360] sm:$0xff]  ;;  %v3260_v15 = vld [vmem:[%s10107_s0 + $0x88] sm:$0xff] }
 0x34d   :  { %1771 = vmatpush.msra.mxu2 %v7455_v58  ;;  %1933 = vmatpush.msrb.mxu3 %v7461_v18  ;;  %11183 = vst [vmem:[#allocation7_spill] sm:$0xff] %v7468_v37 }
 0x34e   :  { %1732 = vmatpush.msra.mxu0 %v6944_v21  ;;  %1894 = vmatpush.msrb.mxu1 %v7468_v37  ;;  %v7486_v21 = vld [vmem:[%s10105_s1 + $0xa0] sm:$0xff] }
 0x34f   :  { %1772 = vmatpush.msra.mxu2 %v7474_v12  ;;  %1934 = vmatpush.msrb.mxu3 %v7480_v19  ;;  %11186 = vst [vmem:[#allocation9_spill] sm:$0xff] %v7486_v21 }
 0x350   :  { %1733 = vmatpush.msra.mxu0 %v7486_v21  ;;  %1895 = vmatpush.msrb.mxu1 %v7492_v45  ;;  %v7516_v45 = vld [vmem:[%s10106_s2 + $0x320] sm:$0xff] }
 0x351   :  { %1773 = vmatpush.msra.mxu2 %v7498_v59  ;;  %1935 = vmatpush.msrb.mxu3 %v7504_v60  ;;  %11191 = vst [vmem:[#allocation59_spill] sm:$0xff] %v7516_v45  ;;  %v7522_v59 = vld [vmem:[%s10105_s1 + $0x90] sm:$0xff]  ;;  %v7528_v60 = vld [vmem:[%s10106_s2 + $0x328] sm:$0xff] }
 0x352   :  { %1734 = vmatpush.msra.mxu0 %v7510_v28  ;;  %1896 = vmatpush.msrb.mxu1 %v7516_v45  ;;  %11192 = vst [vmem:[#allocation13_spill] sm:$0xff] %v7522_v59  ;;  %v7534_v28 = vld [vmem:[%s10105_s1 + $0x60] sm:$0xff] }
 0x353   :  { %1774 = vmatpush.msra.mxu2 %v7522_v59  ;;  %11193 = vst [vmem:[#allocation60_spill] sm:$0xff] %v7528_v60  ;;  %1936 = vmatpush.msrb.mxu3 %v7528_v60  ;;  %v7540_v45 = vld [vmem:[%s10106_s2 + $0x300] sm:$0xff]  ;;  %v7546_v59 = vld [vmem:[%s10105_s1 + $0x70] sm:$0xff]  ;;  %v7552_v60 = vld [vmem:[%s10106_s2 + $0x308] sm:$0xff] }
 0x354   :  { %11194 = vst [vmem:[#allocation61_spill] sm:$0xff] %v7534_v28  ;;  %1735 = vmatpush.msra.mxu0 %v7534_v28  ;;  %1897 = vmatpush.msrb.mxu1 %v7540_v45  ;;  %v7558_v28 = vld [vmem:[%s10105_s1 + $0x40] sm:$0xff] }
 0x355   :  { %11195 = vst [vmem:[#allocation15_spill] sm:$0xff] %v7540_v45  ;;  %1775 = vmatpush.msra.mxu2 %v7546_v59  ;;  %1937 = vmatpush.msrb.mxu3 %v7552_v60  ;;  %v7564_v45 = vld [vmem:[%s10106_s2 + $0x2e0] sm:$0xff] }
 0x356   :  { %11196 = vst [vmem:[#allocation62_spill] sm:$0xff] %v7546_v59  ;;  %1736 = vmatpush.msra.mxu0 %v7558_v28  ;;  %1898 = vmatpush.msrb.mxu1 %v7564_v45  ;;  %v7570_v59 = vld [vmem:[%s10105_s1 + $0x50] sm:$0xff] }
 0x357   :  { %11197 = vst [vmem:[#allocation8_spill] sm:$0xff] %v7552_v60  ;;  %1776 = vmatpush.msra.mxu2 %v7570_v59  ;;  %v7576_v60 = vld [vmem:[%s10106_s2 + $0x2e8] sm:$0xff] }
 0x358   :  { %11198 = vst [vmem:[#allocation63_spill] sm:$0xff] %v7558_v28  ;;  %1938 = vmatpush.msrb.mxu3 %v7576_v60  ;;  %v7582_v28 = vld [vmem:[%s10105_s1 + $0x20] sm:$0xff] }
 0x359   :  { %11199 = vst [vmem:[#allocation17_spill] sm:$0xff] %v7564_v45  ;;  %1737 = vmatpush.msra.mxu0 %v7582_v28  ;;  %v7588_v45 = vld [vmem:[%s10106_s2 + $0x2c0] sm:$0xff] }
 0x35a   :  { %11200 = vst [vmem:[#allocation64_spill] sm:$0xff] %v7570_v59  ;;  %1899 = vmatpush.msrb.mxu1 %v7588_v45  ;;  %v7594_v59 = vld [vmem:[%s10105_s1 + $0x30] sm:$0xff] }
 0x35b   :  { %11201 = vst [vmem:[#allocation10_spill] sm:$0xff] %v7576_v60  ;;  %1777 = vmatpush.msra.mxu2 %v7594_v59  ;;  %v7600_v60 = vld [vmem:[%s10106_s2 + $0x2c8] sm:$0xff] }
 0x35c   :  { %11202 = vst [vmem:[#allocation65_spill] sm:$0xff] %v7582_v28  ;;  %1939 = vmatpush.msrb.mxu3 %v7600_v60  ;;  %v7606_v28 = vld [vmem:[%s10105_s1] sm:$0xff] }
 0x35d   :  { %11203 = vst [vmem:[#allocation19_spill] sm:$0xff] %v7588_v45  ;;  %1738 = vmatpush.msra.mxu0 %v7606_v28  ;;  %v7612_v45 = vld [vmem:[%s10106_s2 + $0x2a0] sm:$0xff] }
 0x35e   :  { %11204 = vst [vmem:[#allocation66_spill] sm:$0xff] %v7594_v59  ;;  %1900 = vmatpush.msrb.mxu1 %v7612_v45  ;;  %v7618_v59 = vld [vmem:[%s10105_s1 + $0x10] sm:$0xff]  ;;  %1739 = vmatmul.f32.vlgmr.msra.gmra.mxu0 %v7285_v49 }
 0x35f   :  { %11205 = vst [vmem:[#allocation12_spill] sm:$0xff] %v7600_v60  ;;  %1778 = vmatpush.msra.mxu2 %v7618_v59 }
 0x360   :  { %11206 = vst [vmem:[#allocation69_spill] sm:$0xff] %v7606_v28  ;;  %1779 = vmatmul.f32.vlgmr.msra.gmra.mxu2 %v7285_v49  ;;  %v7626_v28 = vld [vmem:[%s10106_s2 + $0x2a8] sm:$0xff] }
 0x361   :  { %11207 = vst [vmem:[#allocation20_spill] sm:$0xff] %v7612_v45  ;;  %1940 = vmatpush.msrb.mxu3 %v7626_v28  ;;  %v7632_v45 = vld [vmem:[%s10106_s2 + $0x280] sm:$0xff]  ;;  %v7644_v49 = vld [vmem:[%s10106_s2 + $0x288] sm:$0xff] }
 0x362   :  { %11208 = vst [vmem:[#allocation70_spill] sm:$0xff] %v7618_v59  ;;  %1901 = vmatpush.msrb.mxu1 %v7632_v45  ;;  %v7638_v59 = vld [vmem:[%s10106_s2 + $0x1e0] sm:$0xff] }
 0x363   :  { %11209 = vst [vmem:[#allocation14_spill] sm:$0xff] %v7626_v28  ;;  %1870 = vmatpush.msrb.mxu0 %v7638_v59  ;;  %1941 = vmatpush.msrb.mxu3 %v7644_v49  ;;  %v7650_v28 = vld [vmem:[%s10106_s2 + $0x1e8] sm:$0xff] }
 0x364   :  { %11210 = vst [vmem:[#allocation73_spill] sm:$0xff] %v7632_v45  ;;  %1910 = vmatpush.msrb.mxu2 %v7650_v28  ;;  %v7656_v45 = vld [vmem:[%s10106_s2 + $0x260] sm:$0xff] }
 0x365   :  { %11211 = vst [vmem:[#allocation23_spill] sm:$0xff] %v7638_v59  ;;  %1902 = vmatpush.msrb.mxu1 %v7656_v45  ;;  %v7662_v59 = vld [vmem:[%s10106_s2 + $0x1c0] sm:$0xff] }
 0x366   :  { %11212 = vst [vmem:[#allocation74_spill] sm:$0xff] %v7644_v49  ;;  %1871 = vmatpush.msrb.mxu0 %v7662_v59  ;;  %v7668_v49 = vld [vmem:[%s10106_s2 + $0x268] sm:$0xff] }
 0x367   :  { %11213 = vst [vmem:[#allocation16_spill] sm:$0xff] %v7650_v28  ;;  %1942 = vmatpush.msrb.mxu3 %v7668_v49  ;;  %v7674_v28 = vld [vmem:[%s10106_s2 + $0x1c8] sm:$0xff] }
 0x368   :  { %11214 = vst [vmem:[#allocation77_spill] sm:$0xff] %v7656_v45  ;;  %1911 = vmatpush.msrb.mxu2 %v7674_v28  ;;  %v7680_v45 = vld [vmem:[%s10106_s2 + $0x240] sm:$0xff] }
 0x369   :  { %11215 = vst [vmem:[#allocation25_spill] sm:$0xff] %v7662_v59  ;;  %1903 = vmatpush.msrb.mxu1 %v7680_v45  ;;  %v7686_v59 = vld [vmem:[%s10106_s2 + $0x1a0] sm:$0xff] }
 0x36a   :  { %11216 = vst [vmem:[#allocation78_spill] sm:$0xff] %v7668_v49  ;;  %1872 = vmatpush.msrb.mxu0 %v7686_v59  ;;  %v7692_v49 = vld [vmem:[%s10106_s2 + $0x248] sm:$0xff] }
 0x36b   :  { %11217 = vst [vmem:[#allocation18_spill] sm:$0xff] %v7674_v28  ;;  %1943 = vmatpush.msrb.mxu3 %v7692_v49  ;;  %v7698_v28 = vld [vmem:[%s10106_s2 + $0x1a8] sm:$0xff] }
 0x36c   :  { %11218 = vst [vmem:[#allocation81_spill] sm:$0xff] %v7680_v45  ;;  %1912 = vmatpush.msrb.mxu2 %v7698_v28  ;;  %v7704_v45 = vld [vmem:[%s10106_s2 + $0x220] sm:$0xff] }
 0x36d   :  { %11219 = vst [vmem:[#allocation27_spill] sm:$0xff] %v7686_v59  ;;  %1904 = vmatpush.msrb.mxu1 %v7704_v45  ;;  %v7710_v59 = vld [vmem:[%s10106_s2 + $0x180] sm:$0xff] }
 0x36e   :  { %11220 = vst [vmem:[#allocation21_spill] sm:$0xff] %v7692_v49  ;;  %1873 = vmatpush.msrb.mxu0 %v7710_v59  ;;  %v7716_v49 = vld [vmem:[%s10106_s2 + $0x228] sm:$0xff] }
 0x36f   :  { %11221 = vst [vmem:[#allocation28_spill] sm:$0xff] %v7698_v28  ;;  %1944 = vmatpush.msrb.mxu3 %v7716_v49  ;;  %v7722_v28 = vld [vmem:[%s10106_s2 + $0x188] sm:$0xff] }
 0x370   :  { %11222 = vst [vmem:[#allocation82_spill] sm:$0xff] %v7704_v45  ;;  %1913 = vmatpush.msrb.mxu2 %v7722_v28  ;;  %v7728_v45 = vld [vmem:[%s10106_s2 + $0x200] sm:$0xff] }
 0x371   :  { %11223 = vst [vmem:[#allocation22_spill] sm:$0xff] %v7710_v59  ;;  %1905 = vmatpush.msrb.mxu1 %v7728_v45  ;;  %v7734_v59 = vld [vmem:[%s10106_s2 + $0x160] sm:$0xff] }
 0x372   :  { %11224 = vst [vmem:[#allocation85_spill] sm:$0xff] %v7716_v49  ;;  %1874 = vmatpush.msrb.mxu0 %v7734_v59  ;;  %v7740_v49 = vld [vmem:[%s10106_s2 + $0x208] sm:$0xff] }
 0x373   :  { %11225 = vst [vmem:[#allocation30_spill] sm:$0xff] %v7722_v28  ;;  %1945 = vmatpush.msrb.mxu3 %v7740_v49  ;;  %v7746_v28 = vld [vmem:[%s10106_s2 + $0x168] sm:$0xff] }
 0x374   :  { %11226 = vst [vmem:[#allocation86_spill] sm:$0xff] %v7728_v45  ;;  %1914 = vmatpush.msrb.mxu2 %v7746_v28  ;;  %v7752_v45 = vld [vmem:[%s10106_s2 + $0x3f0] sm:$0xff] }
 0x375   :  { %11227 = vst [vmem:[#allocation24_spill] sm:$0xff] %v7734_v59  ;;  %1970 = vmatpush.msra.mxu1 %v7752_v45  ;;  %v7758_v59 = vld [vmem:[%s10106_s2 + $0x3f8] sm:$0xff] }
 0x376   :  { %11228 = vst [vmem:[#allocation89_spill] sm:$0xff] %v7740_v49  ;;  %2010 = vmatpush.msra.mxu3 %v7758_v59  ;;  %v7764_v49 = vld [vmem:[%s10106_s2 + $0x140] sm:$0xff] }
 0x377   :  { %11229 = vst [vmem:[#allocation32_spill] sm:$0xff] %v7746_v28  ;;  %1875 = vmatpush.msrb.mxu0 %v7764_v49  ;;  %v7770_v28 = vld [vmem:[%s10106_s2 + $0x148] sm:$0xff] }
 0x378   :  { %11230 = vst [vmem:[#allocation90_spill] sm:$0xff] %v7752_v45  ;;  %1915 = vmatpush.msrb.mxu2 %v7770_v28  ;;  %v7776_v45 = vld [vmem:[%s10106_s2 + $0x3d0] sm:$0xff] }
 0x379   :  { %11231 = vst [vmem:[#allocation26_spill] sm:$0xff] %v7758_v59  ;;  %1971 = vmatpush.msra.mxu1 %v7776_v45  ;;  %v7782_v59 = vld [vmem:[%s10106_s2 + $0x3d8] sm:$0xff] }
 0x37a   :  { %11232 = vst [vmem:[#allocation34_spill] sm:$0xff] %v7764_v49  ;;  %2011 = vmatpush.msra.mxu3 %v7782_v59  ;;  %v7788_v49 = vld [vmem:[%s10106_s2 + $0x120] sm:$0xff] }
 0x37b   :  { %11233 = vst [vmem:[#allocation29_spill] sm:$0xff] %v7770_v28  ;;  %1876 = vmatpush.msrb.mxu0 %v7788_v49  ;;  %v7794_v28 = vld [vmem:[%s10106_s2 + $0x128] sm:$0xff] }
 0x37c   :  { %11234 = vst [vmem:[#allocation36_spill] sm:$0xff] %v7776_v45  ;;  %1916 = vmatpush.msrb.mxu2 %v7794_v28  ;;  %v7800_v45 = vld [vmem:[%s10106_s2 + $0x3b0] sm:$0xff] }
 0x37d   :  { %11235 = vst [vmem:[#allocation31_spill] sm:$0xff] %v7782_v59  ;;  %1972 = vmatpush.msra.mxu1 %v7800_v45  ;;  %v7806_v59 = vld [vmem:[%s10106_s2 + $0x3b8] sm:$0xff] }
 0x37e   :  { %11236 = vst [vmem:[#allocation38_spill] sm:$0xff] %v7788_v49  ;;  %2012 = vmatpush.msra.mxu3 %v7806_v59  ;;  %v7812_v49 = vld [vmem:[%s10106_s2 + $0x100] sm:$0xff] }
 0x37f   :  { %11237 = vst [vmem:[#allocation33_spill] sm:$0xff] %v7794_v28  ;;  %1877 = vmatpush.msrb.mxu0 %v7812_v49  ;;  %v7818_v28 = vld [vmem:[%s10106_s2 + $0x108] sm:$0xff] }
 0x380   :  { %11238 = vst [vmem:[#allocation39_spill] sm:$0xff] %v7800_v45  ;;  %1917 = vmatpush.msrb.mxu2 %v7818_v28  ;;  %v7824_v45 = vld [vmem:[%s10106_s2 + $0x390] sm:$0xff] }
 0x381   :  { %11239 = vst [vmem:[#allocation35_spill] sm:$0xff] %v7806_v59  ;;  %1973 = vmatpush.msra.mxu1 %v7824_v45  ;;  %v7830_v59 = vld [vmem:[%s10106_s2 + $0x398] sm:$0xff] }
 0x382   :  { %11240 = vst [vmem:[#allocation41_spill] sm:$0xff] %v7812_v49  ;;  %2013 = vmatpush.msra.mxu3 %v7830_v59  ;;  %v7836_v49 = vld [vmem:[%s10106_s2 + $0xe0] sm:$0xff] }
 0x383   :  { %11241 = vst [vmem:[#allocation37_spill] sm:$0xff] %v7818_v28  ;;  %1878 = vmatpush.msrb.mxu0 %v7836_v49  ;;  %v7842_v28 = vld [vmem:[%s10106_s2 + $0xe8] sm:$0xff] }
 0x384   :  { %11242 = vst [vmem:[#allocation44_spill] sm:$0xff] %v7824_v45  ;;  %1918 = vmatpush.msrb.mxu2 %v7842_v28  ;;  %v7848_v45 = vld [vmem:[%s10106_s2 + $0x370] sm:$0xff] }
 0x385   :  { %11243 = vst [vmem:[#allocation67_spill] sm:$0xff] %v7830_v59  ;;  %1974 = vmatpush.msra.mxu1 %v7848_v45  ;;  %v7854_v59 = vld [vmem:[%s10106_s2 + $0x378] sm:$0xff] }
 0x386   :  { %11244 = vst [vmem:[#allocation68_spill] sm:$0xff] %v7836_v49  ;;  %2014 = vmatpush.msra.mxu3 %v7854_v59  ;;  %v7860_v49 = vld [vmem:[%s10106_s2 + $0xc0] sm:$0xff] }
 0x387   :  { %11245 = vst [vmem:[#allocation71_spill] sm:$0xff] %v7842_v28  ;;  %1879 = vmatpush.msrb.mxu0 %v7860_v49  ;;  %v7866_v28 = vld [vmem:[%s10106_s2 + $0xc8] sm:$0xff] }
 0x388   :  { %11246 = vst [vmem:[#allocation72_spill] sm:$0xff] %v7848_v45  ;;  %1919 = vmatpush.msrb.mxu2 %v7866_v28  ;;  %v7872_v45 = vld [vmem:[%s10106_s2 + $0x350] sm:$0xff] }
 0x389   :  { %11247 = vst [vmem:[#allocation75_spill] sm:$0xff] %v7854_v59  ;;  %1975 = vmatpush.msra.mxu1 %v7872_v45  ;;  %v7878_v59 = vld [vmem:[%s10106_s2 + $0x358] sm:$0xff] }
 0x38a   :  { %11248 = vst [vmem:[#allocation76_spill] sm:$0xff] %v7860_v49  ;;  %2015 = vmatpush.msra.mxu3 %v7878_v59  ;;  %v7884_v49 = vld [vmem:[%s10106_s2 + $0xa0] sm:$0xff] }
 0x38b   :  { %11249 = vst [vmem:[#allocation79_spill] sm:$0xff] %v7866_v28  ;;  %1880 = vmatpush.msrb.mxu0 %v7884_v49  ;;  %v7890_v28 = vld [vmem:[%s10106_s2 + $0xa8] sm:$0xff] }
 0x38c   :  { %11250 = vst [vmem:[#allocation80_spill] sm:$0xff] %v7872_v45  ;;  %1920 = vmatpush.msrb.mxu2 %v7890_v28  ;;  %v7896_v45 = vld [vmem:[%s10106_s2 + $0x330] sm:$0xff] }
 0x38d   :  { %11251 = vst [vmem:[#allocation83_spill] sm:$0xff] %v7878_v59  ;;  %1976 = vmatpush.msra.mxu1 %v7896_v45  ;;  %v7902_v59 = vld [vmem:[%s10106_s2 + $0x338] sm:$0xff] }
 0x38e   :  { %11252 = vst [vmem:[#allocation84_spill] sm:$0xff] %v7884_v49  ;;  %2016 = vmatpush.msra.mxu3 %v7902_v59  ;;  %v7908_v49 = vld [vmem:[%s10106_s2 + $0x80] sm:$0xff] }
 0x38f   :  { %11253 = vst [vmem:[#allocation87_spill] sm:$0xff] %v7890_v28  ;;  %1881 = vmatpush.msrb.mxu0 %v7908_v49  ;;  %v7914_v28 = vld [vmem:[%s10106_s2 + $0x88] sm:$0xff] }
 0x390   :  { %11254 = vst [vmem:[#allocation88_spill] sm:$0xff] %v7896_v45  ;;  %1921 = vmatpush.msrb.mxu2 %v7914_v28  ;;  %v7920_v45 = vld [vmem:[%s10106_s2 + $0x310] sm:$0xff] }
 0x391   :  { %11255 = vst [vmem:[#allocation91_spill] sm:$0xff] %v7902_v59  ;;  %1977 = vmatpush.msra.mxu1 %v7920_v45  ;;  %v7926_v59 = vld [vmem:[%s10106_s2 + $0x318] sm:$0xff] }
 0x392   :  { %11256 = vst [vmem:[#allocation92_spill] sm:$0xff] %v7908_v49  ;;  %2017 = vmatpush.msra.mxu3 %v7926_v59  ;;  %v7932_v49 = vld [vmem:[%s10106_s2 + $0x60] sm:$0xff] }
 0x393   :  { %11257 = vst [vmem:[#allocation93_spill] sm:$0xff] %v7914_v28  ;;  %1882 = vmatpush.msrb.mxu0 %v7932_v49  ;;  %v7938_v28 = vld [vmem:[%s10106_s2 + $0x68] sm:$0xff] }
 0x394   :  { %11258 = vst [vmem:[#allocation94_spill] sm:$0xff] %v7920_v45  ;;  %1922 = vmatpush.msrb.mxu2 %v7938_v28  ;;  %v7944_v45 = vld [vmem:[%s10106_s2 + $0x2f0] sm:$0xff] }
 0x395   :  { %11259 = vst [vmem:[#allocation95_spill] sm:$0xff] %v7926_v59  ;;  %1978 = vmatpush.msra.mxu1 %v7944_v45  ;;  %v7950_v59 = vld [vmem:[%s10106_s2 + $0x2f8] sm:$0xff] }
 0x396   :  { %11260 = vst [vmem:[#allocation96_spill] sm:$0xff] %v7932_v49  ;;  %2018 = vmatpush.msra.mxu3 %v7950_v59  ;;  %v7956_v49 = vld [vmem:[%s10106_s2 + $0x40] sm:$0xff] }
 0x397   :  { %11261 = vst [vmem:[#allocation97_spill] sm:$0xff] %v7938_v28  ;;  %1883 = vmatpush.msrb.mxu0 %v7956_v49  ;;  %v7962_v28 = vld [vmem:[%s10106_s2 + $0x48] sm:$0xff] }
 0x398   :  { %11262 = vst [vmem:[#allocation98_spill] sm:$0xff] %v7944_v45  ;;  %1923 = vmatpush.msrb.mxu2 %v7962_v28  ;;  %v7968_v45 = vld [vmem:[%s10106_s2 + $0x2d0] sm:$0xff] }
 0x399   :  { %11263 = vst [vmem:[#allocation99_spill] sm:$0xff] %v7950_v59  ;;  %1979 = vmatpush.msra.mxu1 %v7968_v45  ;;  %v7974_v59 = vld [vmem:[%s10106_s2 + $0x2d8] sm:$0xff] }
 0x39a   :  { %11264 = vst [vmem:[#allocation100_spill] sm:$0xff] %v7956_v49  ;;  %2019 = vmatpush.msra.mxu3 %v7974_v59  ;;  %v7980_v49 = vld [vmem:[%s10106_s2 + $0x20] sm:$0xff] }
 0x39b   :  { %11265 = vst [vmem:[#allocation101_spill] sm:$0xff] %v7962_v28  ;;  %1884 = vmatpush.msrb.mxu0 %v7980_v49  ;;  %v7986_v28 = vld [vmem:[%s10106_s2 + $0x28] sm:$0xff] }
 0x39c   :  { %11266 = vst [vmem:[#allocation102_spill] sm:$0xff] %v7968_v45  ;;  %1924 = vmatpush.msrb.mxu2 %v7986_v28  ;;  %v7992_v45 = vld [vmem:[%s10106_s2 + $0x2b0] sm:$0xff] }
 0x39d   :  { %11267 = vst [vmem:[#allocation103_spill] sm:$0xff] %v7974_v59  ;;  %1980 = vmatpush.msra.mxu1 %v7992_v45  ;;  %v7998_v59 = vld [vmem:[%s10106_s2 + $0x2b8] sm:$0xff] }
 0x39e   :  { %11268 = vst [vmem:[#allocation104_spill] sm:$0xff] %v7980_v49  ;;  %2020 = vmatpush.msra.mxu3 %v7998_v59  ;;  %v8004_v49 = vld [vmem:[%s10106_s2] sm:$0xff] }
 0x39f   :  { %11269 = vst [vmem:[#allocation105_spill] sm:$0xff] %v7986_v28  ;;  %1885 = vmatpush.msrb.mxu0 %v8004_v49  ;;  %v8010_v28 = vld [vmem:[%s10106_s2 + $0x8] sm:$0xff] }
 0x3a0   :  { %11270 = vst [vmem:[#allocation106_spill] sm:$0xff] %v7992_v45  ;;  %1925 = vmatpush.msrb.mxu2 %v8010_v28  ;;  %v8016_v45 = vld [vmem:[%s10106_s2 + $0x290] sm:$0xff] }
 0x3a1   :  { %11271 = vst [vmem:[#allocation107_spill] sm:$0xff] %v7998_v59  ;;  %1981 = vmatpush.msra.mxu1 %v8016_v45  ;;  %v8022_v59 = vld [vmem:[%s10106_s2 + $0x298] sm:$0xff] }
 0x3a2   :  { %11272 = vst [vmem:[#allocation108_spill] sm:$0xff] %v8004_v49  ;;  %2021 = vmatpush.msra.mxu3 %v8022_v59  ;;  %v8028_v49 = vld [vmem:[%s10106_s2 + $0x1f0] sm:$0xff] }
 0x3a3   :  { %11273 = vst [vmem:[#allocation109_spill] sm:$0xff] %v8010_v28  ;;  %1950 = vmatpush.msra.mxu0 %v8028_v49  ;;  %v8034_v28 = vld [vmem:[%s10106_s2 + $0x1f8] sm:$0xff] }
 0x3a4   :  { %11274 = vst [vmem:[#allocation110_spill] sm:$0xff] %v8016_v45  ;;  %1990 = vmatpush.msra.mxu2 %v8034_v28  ;;  %v8040_v45 = vld [vmem:[%s10106_s2 + $0x270] sm:$0xff]  ;;  %v1572_v19 = vpop.f32.mrf.mxu3 }
 0x3a5   :  { %11275 = vst [vmem:[#allocation111_spill] sm:$0xff] %v8022_v59  ;;  %1982 = vmatpush.msra.mxu1 %v8040_v45  ;;  %v8046_v59 = vld [vmem:[%s10106_s2 + $0x278] sm:$0xff] }
 0x3a6   :  { %11276 = vst [vmem:[#allocation112_spill] sm:$0xff] %v8028_v49  ;;  %2022 = vmatpush.msra.mxu3 %v8046_v59  ;;  %v8052_v49 = vld [vmem:[%s10106_s2 + $0x1d0] sm:$0xff] }
 0x3a7   :  { %11277 = vst [vmem:[#allocation113_spill] sm:$0xff] %v8034_v28  ;;  %1951 = vmatpush.msra.mxu0 %v8052_v49  ;;  %v8058_v28 = vld [vmem:[%s10106_s2 + $0x1d8] sm:$0xff] }
 0x3a8   :  { %11278 = vst [vmem:[#allocation114_spill] sm:$0xff] %v8040_v45  ;;  %1991 = vmatpush.msra.mxu2 %v8058_v28  ;;  %v8064_v45 = vld [vmem:[%s10106_s2 + $0x250] sm:$0xff] }
 0x3a9   :  { %11279 = vst [vmem:[#allocation115_spill] sm:$0xff] %v8046_v59  ;;  %1983 = vmatpush.msra.mxu1 %v8064_v45  ;;  %v8070_v59 = vld [vmem:[%s10106_s2 + $0x258] sm:$0xff] }
 0x3aa   :  { %11280 = vst [vmem:[#allocation116_spill] sm:$0xff] %v8052_v49  ;;  %2023 = vmatpush.msra.mxu3 %v8070_v59  ;;  %v8076_v49 = vld [vmem:[%s10106_s2 + $0x1b0] sm:$0xff] }
 0x3ab   :  { %11281 = vst [vmem:[#allocation117_spill] sm:$0xff] %v8058_v28  ;;  %1952 = vmatpush.msra.mxu0 %v8076_v49  ;;  %v8082_v28 = vld [vmem:[%s10106_s2 + $0x1b8] sm:$0xff] }
 0x3ac   :  { %11282 = vst [vmem:[#allocation118_spill] sm:$0xff] %v8064_v45  ;;  %1992 = vmatpush.msra.mxu2 %v8082_v28  ;;  %v8088_v45 = vld [vmem:[%s10106_s2 + $0x230] sm:$0xff] }
 0x3ad   :  { %11283 = vst [vmem:[#allocation119_spill] sm:$0xff] %v8070_v59  ;;  %1984 = vmatpush.msra.mxu1 %v8088_v45  ;;  %v8094_v59 = vld [vmem:[%s10106_s2 + $0x238] sm:$0xff] }
 0x3ae   :  { %11284 = vst [vmem:[#allocation120_spill] sm:$0xff] %v8076_v49  ;;  %2024 = vmatpush.msra.mxu3 %v8094_v59  ;;  %v8100_v49 = vld [vmem:[%s10106_s2 + $0x190] sm:$0xff] }
 0x3af   :  { %11285 = vst [vmem:[#allocation121_spill] sm:$0xff] %v8082_v28  ;;  %1953 = vmatpush.msra.mxu0 %v8100_v49  ;;  %v8106_v28 = vld [vmem:[%s10106_s2 + $0x198] sm:$0xff] }
 0x3b0   :  { %11286 = vst [vmem:[#allocation122_spill] sm:$0xff] %v8088_v45  ;;  %1993 = vmatpush.msra.mxu2 %v8106_v28  ;;  %v8112_v45 = vld [vmem:[%s10106_s2 + $0x210] sm:$0xff] }
 0x3b1   :  { %11287 = vst [vmem:[#allocation123_spill] sm:$0xff] %v8094_v59  ;;  %1985 = vmatpush.msra.mxu1 %v8112_v45  ;;  %v8118_v59 = vld [vmem:[%s10106_s2 + $0x218] sm:$0xff] }
 0x3b2   :  { %11288 = vst [vmem:[#allocation124_spill] sm:$0xff] %v8100_v49  ;;  %2025 = vmatpush.msra.mxu3 %v8118_v59  ;;  %v8124_v49 = vld [vmem:[%s10106_s2 + $0x170] sm:$0xff] }
 0x3b3   :  { %11289 = vst [vmem:[#allocation125_spill] sm:$0xff] %v8106_v28  ;;  %1954 = vmatpush.msra.mxu0 %v8124_v49  ;;  %v8130_v28 = vld [vmem:[%s10106_s2 + $0x178] sm:$0xff] }
 0x3b4   :  { %11290 = vst [vmem:[#allocation126_spill] sm:$0xff] %v8112_v45  ;;  %1994 = vmatpush.msra.mxu2 %v8130_v28  ;;  %v8136_v45 = vld [vmem:[%s10106_s2 + $0x150] sm:$0xff] }
 0x3b5   :  { %11291 = vst [vmem:[#allocation127_spill] sm:$0xff] %v8118_v59  ;;  %1955 = vmatpush.msra.mxu0 %v8136_v45  ;;  %v8142_v59 = vld [vmem:[%s10106_s2 + $0x158] sm:$0xff] }
 0x3b6   :  { %11292 = vst [vmem:[#allocation128_spill] sm:$0xff] %v8124_v49  ;;  %1995 = vmatpush.msra.mxu2 %v8142_v59  ;;  %v8148_v49 = vld [vmem:[%s10106_s2 + $0x130] sm:$0xff] }
 0x3b7   :  { %11293 = vst [vmem:[#allocation129_spill] sm:$0xff] %v8130_v28  ;;  %1956 = vmatpush.msra.mxu0 %v8148_v49  ;;  %v8154_v28 = vld [vmem:[%s10106_s2 + $0x138] sm:$0xff]  ;;  %v1512_v60 = vpop.f32.mrf.mxu0 }
 0x3b8   :  { %11294 = vst [vmem:[#allocation130_spill] sm:$0xff] %v8136_v45  ;;  %1996 = vmatpush.msra.mxu2 %v8154_v28  ;;  %v8160_v45 = vld [vmem:[%s10106_s2 + $0x110] sm:$0xff]  ;;  %v1513_v21 = vadd.f32 %v1512_v60, %v11162_v40 }
 0x3b9   :  { %11295 = vst [vmem:[#allocation131_spill] sm:$0xff] %v8142_v59  ;;  %1957 = vmatpush.msra.mxu0 %v8160_v45  ;;  %v8166_v59 = vld [vmem:[%s10106_s2 + $0x118] sm:$0xff] }
 0x3ba   :  { %11296 = vst [vmem:[#allocation132_spill] sm:$0xff] %v8148_v49  ;;  %1997 = vmatpush.msra.mxu2 %v8166_v59  ;;  %v8172_v49 = vld [vmem:[%s10106_s2 + $0xf0] sm:$0xff] }
 0x3bb   :  { %11297 = vst [vmem:[#allocation133_spill] sm:$0xff] %v8154_v28  ;;  %1958 = vmatpush.msra.mxu0 %v8172_v49  ;;  %v8178_v28 = vld [vmem:[%s10106_s2 + $0xf8] sm:$0xff] }
 0x3bc   :  { %11298 = vst [vmem:[#allocation134_spill] sm:$0xff] %v8160_v45  ;;  %1998 = vmatpush.msra.mxu2 %v8178_v28  ;;  %v8184_v45 = vld [vmem:[%s10106_s2 + $0xd0] sm:$0xff] }
 0x3bd   :  { %11299 = vst [vmem:[#allocation135_spill] sm:$0xff] %v8166_v59  ;;  %1959 = vmatpush.msra.mxu0 %v8184_v45  ;;  %v8190_v59 = vld [vmem:[%s10106_s2 + $0xd8] sm:$0xff]  ;;  %v1552_v18 = vpop.f32.mrf.mxu2 }
 0x3be   :  { %11300 = vst [vmem:[#allocation136_spill] sm:$0xff] %v8172_v49  ;;  %1999 = vmatpush.msra.mxu2 %v8190_v59  ;;  %v8196_v49 = vld [vmem:[%s10106_s2 + $0xb0] sm:$0xff]  ;;  %v1553_v58 = vadd.f32 %v1552_v18, %v11163_v20 }
 0x3bf   :  { %11301 = vst [vmem:[#allocation137_spill] sm:$0xff] %v8178_v28  ;;  %1960 = vmatpush.msra.mxu0 %v8196_v49  ;;  %v8202_v28 = vld [vmem:[%s10106_s2 + $0xb8] sm:$0xff] }
 0x3c0   :  { %11302 = vst [vmem:[#allocation138_spill] sm:$0xff] %v8184_v45  ;;  %2000 = vmatpush.msra.mxu2 %v8202_v28  ;;  %v8208_v45 = vld [vmem:[%s10106_s2 + $0x90] sm:$0xff] }
 0x3c1   :  { %11303 = vst [vmem:[#allocation139_spill] sm:$0xff] %v8190_v59  ;;  %1961 = vmatpush.msra.mxu0 %v8208_v45  ;;  %v8214_v59 = vld [vmem:[%s10106_s2 + $0x98] sm:$0xff] }
 0x3c2   :  { %11304 = vst [vmem:[#allocation140_spill] sm:$0xff] %v8196_v49  ;;  %2001 = vmatpush.msra.mxu2 %v8214_v59  ;;  %v8220_v49 = vld [vmem:[%s10106_s2 + $0x70] sm:$0xff] }
 0x3c3   :  { %11305 = vst [vmem:[#allocation141_spill] sm:$0xff] %v8202_v28  ;;  %1962 = vmatpush.msra.mxu0 %v8220_v49  ;;  %v8226_v28 = vld [vmem:[%s10106_s2 + $0x78] sm:$0xff] }
 0x3c4   :  { %11306 = vst [vmem:[#allocation142_spill] sm:$0xff] %v8208_v45  ;;  %2002 = vmatpush.msra.mxu2 %v8226_v28  ;;  %v8232_v45 = vld [vmem:[%s10106_s2 + $0x50] sm:$0xff] }
 0x3c5   :  { %11307 = vst [vmem:[#allocation143_spill] sm:$0xff] %v8214_v59  ;;  %1963 = vmatpush.msra.mxu0 %v8232_v45  ;;  %v8238_v59 = vld [vmem:[%s10106_s2 + $0x58] sm:$0xff] }
 0x3c6   :  { %11308 = vst [vmem:[#allocation144_spill] sm:$0xff] %v8220_v49  ;;  %2003 = vmatpush.msra.mxu2 %v8238_v59  ;;  %v8244_v49 = vld [vmem:[%s10106_s2 + $0x30] sm:$0xff]  ;;  %v1632_v40 = vpop.f32.mrf.mxu2 }
 0x3c7   :  { %11309 = vst [vmem:[#allocation145_spill] sm:$0xff] %v8226_v28  ;;  %1964 = vmatpush.msra.mxu0 %v8244_v49  ;;  %v8250_v28 = vld [vmem:[%s10106_s2 + $0x38] sm:$0xff] }
 0x3c8   :  { %11310 = vst [vmem:[#allocation146_spill] sm:$0xff] %v8232_v45  ;;  %2004 = vmatpush.msra.mxu2 %v8250_v28  ;;  %v8256_v45 = vld [vmem:[%s10106_s2 + $0x10] sm:$0xff] }
 0x3c9   :  { %11311 = vst [vmem:[#allocation147_spill] sm:$0xff] %v8238_v59  ;;  %1965 = vmatpush.msra.mxu0 %v8256_v45  ;;  %v8262_v59 = vld [vmem:[%s10106_s2 + $0x18] sm:$0xff] }
 0x3ca   :  { %11312 = vst [vmem:[#allocation148_spill] sm:$0xff] %v8244_v49  ;;  %2005 = vmatpush.msra.mxu2 %v8262_v59  ;;  %v1532_v49 = vpop.f32.mrf.mxu1 }
 0x3cb   :  { %11313 = vst [vmem:[#allocation149_spill] sm:$0xff] %v8250_v28  ;;  %v1533_v12 = vadd.f32 %v1532_v49, %v1513_v21  ;;  %v1592_v49 = vpop.f32.mrf.mxu0 }
 0x3cc   :  { %11314 = vst [vmem:[#allocation150_spill] sm:$0xff] %v8256_v45  ;;  %v1573_v45 = vadd.f32 %v1572_v19, %v1553_v58  ;;  %v3262_v19 = vld [vmem:[%s10107_s0 + $0x98] sm:$0xff] }
 0x3cd   :  { %11315 = vst [vmem:[#allocation151_spill] sm:$0xff] %v8262_v59  ;;  %v3256_v37 = vmul.f32 -1.442695, %v1533_v12  ;;  %v1652_v59 = vpop.f32.mrf.mxu3  ;;  %v1633_v12 = vadd.f32 %v1632_v40, %v11164_v17 }
 0x3ce   :  { %v3257_v5 = vmul.f32 -1.442695, %v1573_v45 }
 0x3cf   :  { %3412 = vpow2.f32 %v3256_v37  ;;  %v1653_v18 = vadd.f32 %v1652_v59, %v1633_v12 }
 0x3d0   :  { %3414 = vpow2.f32 %v3257_v5 }
 0x3d1   :  { %v3258_v20 = vmul.f32 -1.442695, %v1653_v18 }
 0x3d2   :  { %v1612_v28 = vpop.f32.mrf.mxu1 }
 0x3d5   :  { %v3413_v0 = vpop.eup %3412  ;;  %v1800_v45 = vpop.f32.mrf.mxu3 }
 0x3d6   :  { %v1658_v60 = vadd.f32 1.0, %v3413_v0  ;;  %v3415_v37 = vpop.eup %3414  ;;  %v1593_v0 = vadd.f32 %v1592_v49, %v11165_v55 }
 0x3d7   :  { %v1677_v58 = vadd.f32 1.0, %v3415_v37 }
 0x3d8   :  { %3416 = vrcp.f32 %v1658_v60  ;;  %v1613_v17 = vadd.f32 %v1612_v28, %v1593_v0  ;;  %v1670_v18 = vand.u32 2147483648, %v1658_v60  ;;  %vm1664_vm5 = vweird.f32 %v1658_v60 }
 0x3d9   :  { %v1668_v49 = vand.u32 2147483647, %v1658_v60  ;;  %v1689_v28 = vand.u32 2147483648, %v1677_v58  ;;  %vm1683_vm8 = vweird.f32 %v1677_v58 }
 0x3da   :  { %v1760_v24 = vpop.f32.mrf.mxu1  ;;  %v1671_v0 = vor.u32 1.1754944e-38, %v1670_v18 }
 0x3db   :  { %v1804_v50 = vadd.f32 %v3260_v15, %v1760_v24  ;;  %vm1669_vm9 = vcmp.eq.f32.partialorder %v1668_v49, 8.507059e+37 }
 0x3dd   :  { %v3264_v21 = vmul.f32 -1.442695, %v1804_v50  ;;  %v1806_v50 = vadd.f32 %v3262_v19, %v1800_v45 }
 0x3de   :  { %v3417_v24 = vpop.eup %3416 }
 0x3df   :  { %3418 = vpow2.f32 %v3264_v21  ;;  %v1660_v5 = vmul.f32 %v3417_v24, %v1658_v60  ;;  %v3265_v59 = vmul.f32 -1.442695, %v1806_v50  ;;  %vm1665_vm4 = vweird.f32 %v3417_v24  ;;  %v1740_v60 = vpop.f32.mrf.mxu0 }
 0x3e0   :  { %3420 = vrcp.f32 %v1677_v58  ;;  %vm8280_vm6 = vmor %vm1664_vm5, %vm1665_vm4 }
 0x3e1   :  { %3422 = vpow2.f32 %v3258_v20  ;;  %v1661_v15 = vsub.f32 1.0, %v1660_v5  ;;  %v3259_v20 = vld [vmem:[%s10107_s0 + $0x80] sm:$0xff] }
 0x3e2   :  { %3424 = vtanh.f32 %v1613_v17  ;;  %v1803_v5 = vadd.f32 %v3259_v20, %v1740_v60 }
 0x3e3   :  { %v1662_v6 = vmul.f32 %v3417_v24, %v1661_v15  ;;  %3426 = vpow2.f32 %v3265_v59 }
 0x3e5   :  { %v3419_v40 = vpop.eup %3418  ;;  %v1663_v35 = vadd.f32 %v3417_v24, %v1662_v6  ;;  %v1687_v6 = vand.u32 2147483647, %v1677_v58 }
 0x3e6   :  { %v3421_v12 = vpop.eup %3420  ;;  %v8275_v34 = vadd.f32 1.0, %v3419_v40  ;;  %v1690_v40 = vor.u32 1.1754944e-38, %v1689_v28 }
 0x3e7   :  { %v3423_v21 = vpop.eup %3422  ;;  %v1679_v37 = vmul.f32 %v3421_v12, %v1677_v58  ;;  %vm1684_vm7 = vweird.f32 %v3421_v12  ;;  %v1667_v17 = vsel %vm8280_vm6, %v3417_v24, %v1663_v35  ;;  %vm1688_vm11 = vcmp.eq.f32.partialorder %v1687_v6, 8.507059e+37 }
 0x3e8   :  { %v1697_v62 = vadd.f32 1.0, %v3423_v21  ;;  %v3425_v15 = vpop.eup %3424  ;;  %vm1685_vm10 = vmor %vm1683_vm8, %vm1684_vm7  ;;  %v1672_v59 = vsel %vm1669_vm9, %v1671_v0, %v1667_v17  ;;  %v3263_v21 = vmul.f32 -1.442695, %v1803_v5  ;;  %vm1835_vm1 = vweird.f32 %v8275_v34 }
 0x3e9   :  { %v1680_v26 = vsub.f32 1.0, %v1679_v37  ;;  %v3427_v37 = vpop.eup %3426  ;;  %v1714_v18 = vmul.f32 %v3425_v15, %v1672_v59  ;;  %v1780_v59 = vpop.f32.mrf.mxu2 }
 0x3ea   :  { %3428 = vrcp.f32 %v1697_v62  ;;  %v8294_v19 = vadd.f32 1.0, %v3427_v37  ;;  %v1709_v6 = vand.u32 2147483648, %v1697_v62  ;;  %vm1703_vm13 = vweird.f32 %v1697_v62 }
 0x3eb   :  { %v1681_v45 = vmul.f32 %v3421_v12, %v1680_v26  ;;  %3430 = vrcp.f32 %v8275_v34 }
 0x3ec   :  { %3432 = vpow2.f32 %v3263_v21  ;;  %vm1855_vm9 = vweird.f32 %v8294_v19 }
 0x3ed   :  { %v1682_v50 = vadd.f32 %v3421_v12, %v1681_v45  ;;  %v1707_v45 = vand.u32 2147483647, %v1697_v62 }
 0x3ef   :  { %v1686_v55 = vsel %vm1685_vm10, %v3421_v12, %v1682_v50  ;;  %vm1708_vm15 = vcmp.eq.f32.partialorder %v1707_v45, 8.507059e+37 }
 0x3f0   :  { %v3429_v26 = vpop.eup %3428  ;;  %v1691_v22 = vsel %vm1688_vm11, %v1690_v40, %v1686_v55  ;;  %v3261_v40 = vld [vmem:[%s10107_s0 + $0x90] sm:$0xff] }
 0x3f1   :  { %v8287_v35 = vpop.eup %3430  ;;  %v1713_v24 = vmul.f32 %v1691_v22, %v7107_v9  ;;  %v1699_v20 = vmul.f32 %v3429_v26, %v1697_v62  ;;  %vm1704_vm12 = vweird.f32 %v3429_v26  ;;  %v1710_v22 = vor.u32 1.1754944e-38, %v1709_v6 }
 0x3f2   :  { %v1831_v28 = vmul.f32 %v8287_v35, %v8275_v34  ;;  %v3433_v55 = vpop.eup %3432  ;;  %vm1705_vm14 = vmor %vm1703_vm13, %vm1704_vm12  ;;  %vm1836_vm0 = vweird.f32 %v8287_v35 }
 0x3f3   :  { %v8290_v58 = vadd.f32 %v1714_v18, %v1713_v24  ;;  %v1700_v49 = vsub.f32 1.0, %v1699_v20  ;;  %v1810_v17 = vadd.f32 1.0, %v3433_v55  ;;  %v1805_v24 = vadd.f32 %v3261_v40, %v1780_v59  ;;  %vm8315_vm2 = vmor %vm1835_vm1, %vm1836_vm0  ;;  %v11336_v40 = vld [vmem:[#allocation9_spill] sm:$0xff]  ;;  %v11337_v59 = vld [vmem:[#allocation56_spill] sm:$0xff] }
 0x3f4   :  { %v1832_v9 = vsub.f32 1.0, %v1831_v28  ;;  %v1841_v20 = vand.u32 2147483648, %v8275_v34 }
 0x3f5   :  { %3434 = vtanh.f32 %v8290_v58  ;;  %v1701_v12 = vmul.f32 %v3429_v26, %v1700_v49  ;;  %vm1816_vm4 = vweird.f32 %v1810_v17 }
 0x3f6   :  { %3436 = vrcp.f32 %v8294_v19  ;;  %v1833_v15 = vmul.f32 %v8287_v35, %v1832_v9  ;;  %v1842_v55 = vor.u32 1.1754944e-38, %v1841_v20  ;;  %v11344_v20 = vld [vmem:[#allocation61_spill] sm:$0xff] }
 0x3f7   :  { %v1702_v60 = vadd.f32 %v3429_v26, %v1701_v12  ;;  %3438 = vrcp.f32 %v1810_v17  ;;  %v1822_v12 = vand.u32 2147483648, %v1810_v17 }
 0x3f8   :  { %v1834_v18 = vadd.f32 %v8287_v35, %v1833_v15  ;;  %3440 = vtanh.f32 %v1805_v24  ;;  %v11335_v15 = vld [vmem:[#allocation55_spill] sm:$0xff] }
 0x3f9   :  { %v1706_v0 = vsel %vm1705_vm14, %v3429_v26, %v1702_v60  ;;  %v11341_v24 = vld [vmem:[#allocation59_spill] sm:$0xff] }
 0x3fa   :  { %v1711_v50 = vsel %vm1708_vm15, %v1710_v22, %v1706_v0  ;;  %v11332_v22 = vld [vmem:[#allocation53_spill] sm:$0xff]  ;;  %v8443_v0 = vld [vmem:[%s10105_s1 + $0xc0] sm:$0xff] }
 0x3fb   :  { %v3435_v5 = vpop.eup %3434 }
 0x3fc   :  { %v1717_v21 = vmul.f32 %v3435_v5, %v1711_v50  ;;  %v8302_v37 = vpop.eup %3436  ;;  %v11333_v5 = vld [vmem:[#allocation7_spill] sm:$0xff]  ;;  %v11334_v50 = vld [vmem:[#allocation54_spill] sm:$0xff] }
 0x3fd   :  { %v3439_v62 = vpop.eup %3438  ;;  %v1851_v49 = vmul.f32 %v8302_v37, %v8294_v19  ;;  %vm1856_vm8 = vweird.f32 %v8302_v37 }
 0x3fe   :  { %1906 = vmatmul.f32.vlgmr.msrb.gmra.mxu1 %v1717_v21  ;;  %1946 = vmatmul.f32.vlgmr.msrb.gmra.mxu3 %v1717_v21  ;;  %v1812_v26 = vmul.f32 %v3439_v62, %v1810_v17  ;;  %vm1817_vm3 = vweird.f32 %v3439_v62  ;;  %vm1857_vm10 = vmor %vm1855_vm9, %vm1856_vm8 }
 0x3ff   :  { %2118 = vmatpush.msrb.mxu1 %v7127_v25  ;;  %2158 = vmatpush.msrb.mxu3 %v7133_v30  ;;  %v1839_v25 = vand.u32 2147483647, %v8275_v34  ;;  %v1852_v45 = vsub.f32 1.0, %v1851_v49  ;;  %vm1818_vm6 = vmor %vm1816_vm4, %vm1817_vm3  ;;  %v11345_v49 = vld [vmem:[#allocation15_spill] sm:$0xff] }
 0x400   :  { %v1813_v28 = vsub.f32 1.0, %v1812_v26  ;;  %v11342_v26 = vld [vmem:[#allocation13_spill] sm:$0xff]  ;;  %v11348_v30 = vld [vmem:[#allocation63_spill] sm:$0xff] }
 0x401   :  { %2119 = vmatpush.msrb.mxu1 %v7145_v41  ;;  %2159 = vmatpush.msrb.mxu3 %v7151_v42  ;;  %v1820_v41 = vand.u32 2147483647, %v1810_v17  ;;  %v1838_v42 = vsel %vm8315_vm2, %v8287_v35, %v1834_v18  ;;  %vm1840_vm5 = vcmp.eq.f32.partialorder %v1839_v25, 8.507059e+37  ;;  %v3441_v35 = vpop.eup %3440  ;;  %v1853_v9 = vmul.f32 %v8302_v37, %v1852_v45  ;;  %v11343_v18 = vld [vmem:[#allocation60_spill] sm:$0xff]  ;;  %v11354_v45 = vld [vmem:[#allocation66_spill] sm:$0xff] }
 0x402   :  { %v1814_v6 = vmul.f32 %v3439_v62, %v1813_v28  ;;  %v11346_v28 = vld [vmem:[#allocation62_spill] sm:$0xff]  ;;  %v11347_v25 = vld [vmem:[#allocation8_spill] sm:$0xff] }
 0x403   :  { %2120 = vmatpush.msrb.mxu1 %v7164_v44  ;;  %2160 = vmatpush.msrb.mxu3 %v7170_v57  ;;  %v1823_v44 = vor.u32 1.1754944e-38, %v1822_v12  ;;  %v1843_v57 = vsel %vm1840_vm5, %v1842_v55, %v1838_v42  ;;  %vm1821_vm7 = vcmp.eq.f32.partialorder %v1820_v41, 8.507059e+37  ;;  %v11349_v12 = vld [vmem:[#allocation17_spill] sm:$0xff]  ;;  %v11351_v41 = vld [vmem:[#allocation10_spill] sm:$0xff]  ;;  %v11353_v55 = vld [vmem:[#allocation19_spill] sm:$0xff] }
 0x404   :  { %v1815_v34 = vadd.f32 %v3439_v62, %v1814_v6  ;;  %v11350_v6 = vld [vmem:[#allocation64_spill] sm:$0xff]  ;;  %v11352_v42 = vld [vmem:[#allocation65_spill] sm:$0xff] }
 0x405   :  { %2121 = vmatpush.msrb.mxu1 %v7180_v4  ;;  %2161 = vmatpush.msrb.mxu3 %v7186_v43  ;;  %v1865_v43 = vmul.f32 %v1843_v57, %v7228_v23  ;;  %v11357_v57 = vld [vmem:[#allocation20_spill] sm:$0xff] }
 0x406   :  { %1986 = vmatmul.f32.vlgmr.msra.gmra.mxu1 %v1717_v21  ;;  %2026 = vmatmul.f32.vlgmr.msra.gmra.mxu3 %v1717_v21  ;;  %v1819_v60 = vsel %vm1818_vm6, %v3439_v62, %v1815_v34  ;;  %v11338_v21 = vld [vmem:[#allocation57_spill] sm:$0xff]  ;;  %v11340_v62 = vld [vmem:[#allocation58_spill] sm:$0xff]  ;;  %v11355_v34 = vld [vmem:[#allocation12_spill] sm:$0xff] }
 0x407   :  { %2122 = vmatpush.msrb.mxu1 %v7193_v29  ;;  %2162 = vmatpush.msrb.mxu3 %v7199_v53  ;;  %v1824_v4 = vsel %vm1821_vm7, %v1823_v44, %v1819_v60  ;;  %v1854_v53 = vadd.f32 %v8302_v37, %v1853_v9  ;;  %v11356_v44 = vld [vmem:[#allocation69_spill] sm:$0xff]  ;;  %v11358_v60 = vld [vmem:[#allocation70_spill] sm:$0xff] }
 0x408   :  { %v1866_v17 = vmul.f32 %v3441_v35, %v1824_v4  ;;  %v11359_v35 = vld [vmem:[#allocation14_spill] sm:$0xff]  ;;  %v11360_v9 = vld [vmem:[#allocation73_spill] sm:$0xff]  ;;  %v11361_v4 = vld [vmem:[#allocation23_spill] sm:$0xff] }
 0x409   :  { %2123 = vmatpush.msrb.mxu1 %v7206_v52  ;;  %2163 = vmatpush.msrb.mxu3 %v7212_v63  ;;  %v1861_v52 = vand.u32 2147483648, %v8294_v19  ;;  %v1859_v63 = vand.u32 2147483647, %v8294_v19  ;;  %v11331_v19 = vld [vmem:[#allocation52_spill] sm:$0xff] }
 0x40a   :  { %v8334_v29 = vadd.f32 %v1866_v17, %v1865_v43  ;;  %v11362_v43 = vld [vmem:[#allocation74_spill] sm:$0xff]  ;;  %v11363_v17 = vld [vmem:[#allocation16_spill] sm:$0xff] }
 0x40b   :  { %2124 = vmatpush.msrb.mxu1 %v7219_v56  ;;  %2164 = vmatpush.msrb.mxu3 %v7225_v38  ;;  %v1858_v56 = vsel %vm1857_vm10, %v8302_v37, %v1854_v53  ;;  %v1862_v38 = vor.u32 1.1754944e-38, %v1861_v52  ;;  %vm1860_vm11 = vcmp.eq.f32.partialorder %v1859_v63, 8.507059e+37  ;;  %v11339_v37 = vld [vmem:[#allocation11_spill] sm:$0xff]  ;;  %v11364_v53 = vld [vmem:[#allocation77_spill] sm:$0xff]  ;;  %v11366_v63 = vld [vmem:[#allocation78_spill] sm:$0xff] }
 0x40c   :  { %3442 = vtanh.f32 %v8334_v29  ;;  %v11365_v52 = vld [vmem:[#allocation25_spill] sm:$0xff] }
 0x40d   :  { %2125 = vmatpush.msrb.mxu1 %v7235_v3  ;;  %2165 = vmatpush.msrb.mxu3 %v7241_v51  ;;  %v1863_v3 = vsel %vm1860_vm11, %v1862_v38, %v1858_v56  ;;  %v11367_v56 = vld [vmem:[#allocation18_spill] sm:$0xff]  ;;  %v11368_v38 = vld [vmem:[#allocation81_spill] sm:$0xff] }
 0x40f   :  { %2126 = vmatpush.msrb.mxu1 %v7251_v27  ;;  %2166 = vmatpush.msrb.mxu3 %v7257_v31  ;;  %v8360_v27 = vld [vmem:[%s10105_s1 + $0x1e0] sm:$0xff] }
 0x410   :  { %v8369_v31 = vld [vmem:[%s10105_s1 + $0x1c0] sm:$0xff] }
 0x411   :  { %2127 = vmatpush.msrb.mxu1 %v7264_v48  ;;  %2167 = vmatpush.msrb.mxu3 %v7270_v8  ;;  %v8378_v48 = vld [vmem:[%s10105_s1 + $0x1a0] sm:$0xff] }
 0x412   :  { %v3443_v23 = vpop.eup %3442  ;;  %v8387_v8 = vld [vmem:[%s10105_s1 + $0x180] sm:$0xff] }
 0x413   :  { %2128 = vmatpush.msrb.mxu1 %v7276_v7  ;;  %2168 = vmatpush.msrb.mxu3 %v7282_v33  ;;  %v8351_v51 = vmul.f32 %v3443_v23, %v1863_v3  ;;  %v8398_v7 = vld [vmem:[%s10105_s1 + $0x160] sm:$0xff]  ;;  %v11369_v23 = vld [vmem:[#allocation27_spill] sm:$0xff]  ;;  %v11370_v3 = vld [vmem:[#allocation21_spill] sm:$0xff] }
 0x414   :  { %v11320_v33 = vld [vmem:[#allocation46_spill] sm:$0xff] }
 0x415   :  { %2129 = vmatpush.msrb.mxu1 %v7290_v16  ;;  %2169 = vmatpush.msrb.mxu3 %v7296_v11  ;;  %v8407_v16 = vld [vmem:[%s10105_s1 + $0x140] sm:$0xff] }
 0x416   :  { %1886 = vmatmul.f32.vlgmr.msrb.gmra.mxu0 %v8351_v51  ;;  %1926 = vmatmul.f32.vlgmr.msrb.gmra.mxu2 %v8351_v51  ;;  %v11321_v11 = vld [vmem:[#allocation2_spill] sm:$0xff] }
 0x417   :  { %2098 = vmatpush.msrb.mxu0 %v8360_v27  ;;  %2138 = vmatpush.msrb.mxu2 %v7305_v47  ;;  %v11322_v47 = vld [vmem:[#allocation47_spill] sm:$0xff] }
 0x418   :  { %2130 = vmatpush.msrb.mxu1 %v7311_v36  ;;  %2170 = vmatpush.msrb.mxu3 %v7317_v32  ;;  %v11323_v36 = vld [vmem:[#allocation3_spill] sm:$0xff]  ;;  %v8416_v32 = vld [vmem:[%s10105_s1 + $0x120] sm:$0xff] }
 0x419   :  { %2099 = vmatpush.msrb.mxu0 %v8369_v31  ;;  %2139 = vmatpush.msrb.mxu2 %v7324_v46  ;;  %v11324_v46 = vld [vmem:[#allocation48_spill] sm:$0xff] }
 0x41a   :  { %2131 = vmatpush.msrb.mxu1 %v7330_v13  ;;  %2171 = vmatpush.msrb.mxu3 %v7336_v39  ;;  %v11325_v13 = vld [vmem:[#allocation49_spill] sm:$0xff]  ;;  %v11326_v39 = vld [vmem:[#allocation4_spill] sm:$0xff] }
 0x41b   :  { %2100 = vmatpush.msrb.mxu0 %v8378_v48  ;;  %2140 = vmatpush.msrb.mxu2 %v7343_v54  ;;  %v8425_v54 = vld [vmem:[%s10105_s1 + $0x100] sm:$0xff] }
 0x41c   :  { %2132 = vmatpush.msrb.mxu1 %v7349_v1  ;;  %2172 = vmatpush.msrb.mxu3 %v7355_v2  ;;  %v11327_v1 = vld [vmem:[#allocation50_spill] sm:$0xff]  ;;  %v11328_v2 = vld [vmem:[#allocation51_spill] sm:$0xff] }
 0x41d   :  { %2101 = vmatpush.msrb.mxu0 %v8387_v8  ;;  %2141 = vmatpush.msrb.mxu2 %v7362_v61  ;;  %v11329_v61 = vld [vmem:[#allocation5_spill] sm:$0xff] }
 0x41e   :  { %2133 = vmatpush.msrb.mxu1 %v7368_v10  ;;  %2173 = vmatpush.msrb.mxu3 %v7374_v14  ;;  %v8434_v10 = vld [vmem:[%s10105_s1 + $0xe0] sm:$0xff] }
 0x41f   :  { %1966 = vmatmul.f32.vlgmr.msra.gmra.mxu0 %v8351_v51  ;;  %2006 = vmatmul.f32.vlgmr.msra.gmra.mxu2 %v8351_v51  ;;  %v11330_v14 = vld [vmem:[#allocation6_spill] sm:$0xff] }
 0x420   :  { %2102 = vmatpush.msrb.mxu0 %v8398_v7  ;;  %2134 = vmatmul.f32.vlgmr.msrb.gmra.mxu1 %v8351_v51 }
 0x421   :  { %2142 = vmatpush.msrb.mxu2 %v11320_v33  ;;  %2174 = vmatmul.f32.vlgmr.msrb.gmra.mxu3 %v8351_v51  ;;  %v11372_v33 = vld [vmem:[#allocation82_spill] sm:$0xff] }
 0x422   :  { %2103 = vmatpush.msrb.mxu0 %v8407_v16  ;;  %2265 = vmatpush.msra.mxu1 %v11321_v11  ;;  %v11373_v11 = vld [vmem:[#allocation22_spill] sm:$0xff] }
 0x423   :  { %2143 = vmatpush.msrb.mxu2 %v11322_v47  ;;  %2305 = vmatpush.msra.mxu3 %v11323_v36  ;;  %v11374_v47 = vld [vmem:[#allocation85_spill] sm:$0xff]  ;;  %v11375_v36 = vld [vmem:[#allocation30_spill] sm:$0xff] }
 0x424   :  { %2104 = vmatpush.msrb.mxu0 %v8416_v32  ;;  %2266 = vmatpush.msra.mxu1 %v11324_v46  ;;  %v11376_v46 = vld [vmem:[#allocation86_spill] sm:$0xff] }
 0x425   :  { %2144 = vmatpush.msrb.mxu2 %v11325_v13  ;;  %2306 = vmatpush.msra.mxu3 %v11326_v39  ;;  %v11377_v13 = vld [vmem:[#allocation24_spill] sm:$0xff]  ;;  %v11378_v39 = vld [vmem:[#allocation89_spill] sm:$0xff] }
 0x426   :  { %2105 = vmatpush.msrb.mxu0 %v8425_v54  ;;  %2267 = vmatpush.msra.mxu1 %v11327_v1  ;;  %v11379_v1 = vld [vmem:[#allocation32_spill] sm:$0xff] }
 0x427   :  { %2145 = vmatpush.msrb.mxu2 %v11328_v2  ;;  %2307 = vmatpush.msra.mxu3 %v11329_v61  ;;  %v11380_v2 = vld [vmem:[#allocation90_spill] sm:$0xff] }
 0x428   :  { %2106 = vmatpush.msrb.mxu0 %v8434_v10  ;;  %2268 = vmatpush.msra.mxu1 %v11330_v14  ;;  %v11381_v61 = vld [vmem:[#allocation26_spill] sm:$0xff] }
 0x429   :  { %2146 = vmatpush.msrb.mxu2 %v11331_v19  ;;  %2308 = vmatpush.msra.mxu3 %v11332_v22  ;;  %v11382_v14 = vld [vmem:[#allocation34_spill] sm:$0xff]  ;;  %v11383_v19 = vld [vmem:[#allocation29_spill] sm:$0xff]  ;;  %v11384_v22 = vld [vmem:[#allocation36_spill] sm:$0xff] }
 0x42a   :  { %2107 = vmatpush.msrb.mxu0 %v8443_v0  ;;  %2269 = vmatpush.msra.mxu1 %v11333_v5  ;;  %v11385_v5 = vld [vmem:[#allocation31_spill] sm:$0xff] }
 0x42b   :  { %2147 = vmatpush.msrb.mxu2 %v11334_v50  ;;  %2309 = vmatpush.msra.mxu3 %v11335_v15  ;;  %v11386_v50 = vld [vmem:[#allocation38_spill] sm:$0xff]  ;;  %v11387_v15 = vld [vmem:[#allocation33_spill] sm:$0xff] }
 0x42c   :  { %2108 = vmatpush.msrb.mxu0 %v11336_v40  ;;  %2270 = vmatpush.msra.mxu1 %v11337_v59  ;;  %v11388_v40 = vld [vmem:[#allocation39_spill] sm:$0xff] }
 0x42d   :  { %2148 = vmatpush.msrb.mxu2 %v11338_v21  ;;  %2310 = vmatpush.msra.mxu3 %v11339_v37  ;;  %v11389_v59 = vld [vmem:[#allocation35_spill] sm:$0xff]  ;;  %v11390_v21 = vld [vmem:[#allocation41_spill] sm:$0xff] }
 0x42e   :  { %2109 = vmatpush.msrb.mxu0 %v11340_v62  ;;  %2271 = vmatpush.msra.mxu1 %v11341_v24  ;;  %v11391_v37 = vld [vmem:[#allocation37_spill] sm:$0xff]  ;;  %v11392_v62 = vld [vmem:[#allocation44_spill] sm:$0xff]  ;;  %v11393_v24 = vld [vmem:[#allocation67_spill] sm:$0xff] }
 0x42f   :  { %2149 = vmatpush.msrb.mxu2 %v11342_v26  ;;  %2311 = vmatpush.msra.mxu3 %v11343_v18  ;;  %v11394_v26 = vld [vmem:[#allocation68_spill] sm:$0xff]  ;;  %v11395_v18 = vld [vmem:[#allocation71_spill] sm:$0xff] }
 0x430   :  { %2110 = vmatpush.msrb.mxu0 %v11344_v20  ;;  %2272 = vmatpush.msra.mxu1 %v11345_v49  ;;  %v11396_v20 = vld [vmem:[#allocation72_spill] sm:$0xff]  ;;  %v11397_v49 = vld [vmem:[#allocation75_spill] sm:$0xff] }
 0x431   :  { %2150 = vmatpush.msrb.mxu2 %v11346_v28  ;;  %2312 = vmatpush.msra.mxu3 %v11347_v25  ;;  %v11398_v28 = vld [vmem:[#allocation76_spill] sm:$0xff]  ;;  %v11399_v25 = vld [vmem:[#allocation79_spill] sm:$0xff] }
 0x432   :  { %2111 = vmatpush.msrb.mxu0 %v11348_v30  ;;  %2273 = vmatpush.msra.mxu1 %v11349_v12  ;;  %v11400_v30 = vld [vmem:[#allocation80_spill] sm:$0xff]  ;;  %v11401_v12 = vld [vmem:[#allocation83_spill] sm:$0xff] }
 0x433   :  { %2151 = vmatpush.msrb.mxu2 %v11350_v6  ;;  %2313 = vmatpush.msra.mxu3 %v11351_v41  ;;  %v11402_v6 = vld [vmem:[#allocation84_spill] sm:$0xff]  ;;  %v11403_v41 = vld [vmem:[#allocation87_spill] sm:$0xff] }
 0x434   :  { %2112 = vmatpush.msrb.mxu0 %v11352_v42  ;;  %2274 = vmatpush.msra.mxu1 %v11353_v55  ;;  %v11404_v42 = vld [vmem:[#allocation88_spill] sm:$0xff]  ;;  %v11405_v55 = vld [vmem:[#allocation91_spill] sm:$0xff] }
 0x435   :  { %2152 = vmatpush.msrb.mxu2 %v11354_v45  ;;  %2314 = vmatpush.msra.mxu3 %v11355_v34  ;;  %v11406_v45 = vld [vmem:[#allocation92_spill] sm:$0xff]  ;;  %v11407_v34 = vld [vmem:[#allocation93_spill] sm:$0xff] }
 0x436   :  { %2113 = vmatpush.msrb.mxu0 %v11356_v44  ;;  %2275 = vmatpush.msra.mxu1 %v11357_v57  ;;  %v11408_v44 = vld [vmem:[#allocation94_spill] sm:$0xff]  ;;  %v11409_v57 = vld [vmem:[#allocation95_spill] sm:$0xff] }
 0x437   :  { %2153 = vmatpush.msrb.mxu2 %v11358_v60  ;;  %2114 = vmatmul.f32.vlgmr.msrb.gmra.mxu0 %v8351_v51  ;;  %v11410_v60 = vld [vmem:[#allocation96_spill] sm:$0xff] }
 0x438   :  { %2154 = vmatmul.f32.vlgmr.msrb.gmra.mxu2 %v8351_v51  ;;  %2315 = vmatpush.msra.mxu3 %v11359_v35  ;;  %v11371_v51 = vld [vmem:[#allocation28_spill] sm:$0xff]  ;;  %v11411_v35 = vld [vmem:[#allocation97_spill] sm:$0xff] }
 0x439   :  { %2276 = vmatpush.msra.mxu1 %v11360_v9  ;;  %2245 = vmatpush.msra.mxu0 %v11361_v4  ;;  %v11412_v9 = vld [vmem:[#allocation98_spill] sm:$0xff]  ;;  %v11413_v4 = vld [vmem:[#allocation99_spill] sm:$0xff] }
 0x43a   :  { %2316 = vmatpush.msra.mxu3 %v11362_v43  ;;  %2285 = vmatpush.msra.mxu2 %v11363_v17  ;;  %v11414_v43 = vld [vmem:[#allocation100_spill] sm:$0xff]  ;;  %v11415_v17 = vld [vmem:[#allocation101_spill] sm:$0xff] }
 0x43b   :  { %2277 = vmatpush.msra.mxu1 %v11364_v53  ;;  %2246 = vmatpush.msra.mxu0 %v11365_v52  ;;  %v11416_v53 = vld [vmem:[#allocation102_spill] sm:$0xff]  ;;  %v11417_v52 = vld [vmem:[#allocation103_spill] sm:$0xff] }
 0x43c   :  { %2317 = vmatpush.msra.mxu3 %v11366_v63  ;;  %2286 = vmatpush.msra.mxu2 %v11367_v56  ;;  %v11418_v63 = vld [vmem:[#allocation104_spill] sm:$0xff]  ;;  %v11419_v56 = vld [vmem:[#allocation105_spill] sm:$0xff] }
 0x43d   :  { %2278 = vmatpush.msra.mxu1 %v11368_v38  ;;  %2247 = vmatpush.msra.mxu0 %v11369_v23  ;;  %v11420_v38 = vld [vmem:[#allocation106_spill] sm:$0xff]  ;;  %v11421_v23 = vld [vmem:[#allocation107_spill] sm:$0xff] }
 0x43e   :  { %2318 = vmatpush.msra.mxu3 %v11370_v3  ;;  %2287 = vmatpush.msra.mxu2 %v11371_v51  ;;  %v11422_v3 = vld [vmem:[#allocation108_spill] sm:$0xff]  ;;  %v11423_v51 = vld [vmem:[#allocation109_spill] sm:$0xff] }
 0x43f   :  { %2279 = vmatpush.msra.mxu1 %v11372_v33  ;;  %2248 = vmatpush.msra.mxu0 %v11373_v11  ;;  %v11424_v33 = vld [vmem:[#allocation110_spill] sm:$0xff]  ;;  %v11425_v11 = vld [vmem:[#allocation111_spill] sm:$0xff] }
 0x440   :  { %2319 = vmatpush.msra.mxu3 %v11374_v47  ;;  %2288 = vmatpush.msra.mxu2 %v11375_v36  ;;  %v11426_v47 = vld [vmem:[#allocation112_spill] sm:$0xff]  ;;  %v11427_v36 = vld [vmem:[#allocation113_spill] sm:$0xff] }
 0x441   :  { %2280 = vmatpush.msra.mxu1 %v11376_v46  ;;  %2249 = vmatpush.msra.mxu0 %v11377_v13  ;;  %v11428_v46 = vld [vmem:[#allocation114_spill] sm:$0xff]  ;;  %v11429_v13 = vld [vmem:[#allocation115_spill] sm:$0xff] }
 0x442   :  { %2320 = vmatpush.msra.mxu3 %v11378_v39  ;;  %2289 = vmatpush.msra.mxu2 %v11379_v1  ;;  %v11430_v39 = vld [vmem:[#allocation116_spill] sm:$0xff]  ;;  %v11431_v1 = vld [vmem:[#allocation117_spill] sm:$0xff] }
 0x443   :  { %2345 = vmatpush.msrb.mxu1 %v11380_v2  ;;  %2250 = vmatpush.msra.mxu0 %v11382_v14  ;;  %v11432_v2 = vld [vmem:[#allocation118_spill] sm:$0xff]  ;;  %v11434_v14 = vld [vmem:[#allocation120_spill] sm:$0xff] }
 0x444   :  { %2385 = vmatpush.msrb.mxu3 %v11381_v61  ;;  %2290 = vmatpush.msra.mxu2 %v11383_v19  ;;  %v11433_v61 = vld [vmem:[#allocation119_spill] sm:$0xff]  ;;  %v11435_v19 = vld [vmem:[#allocation121_spill] sm:$0xff] }
 0x445   :  { %2346 = vmatpush.msrb.mxu1 %v11384_v22  ;;  %2251 = vmatpush.msra.mxu0 %v11386_v50  ;;  %v11436_v22 = vld [vmem:[#allocation122_spill] sm:$0xff]  ;;  %v11438_v50 = vld [vmem:[#allocation124_spill] sm:$0xff] }
 0x446   :  { %2386 = vmatpush.msrb.mxu3 %v11385_v5  ;;  %2291 = vmatpush.msra.mxu2 %v11387_v15  ;;  %v11437_v5 = vld [vmem:[#allocation123_spill] sm:$0xff]  ;;  %v11439_v15 = vld [vmem:[#allocation125_spill] sm:$0xff] }
 0x447   :  { %2347 = vmatpush.msrb.mxu1 %v11388_v40  ;;  %2252 = vmatpush.msra.mxu0 %v11390_v21  ;;  %v11440_v40 = vld [vmem:[#allocation126_spill] sm:$0xff]  ;;  %v11442_v21 = vld [vmem:[#allocation128_spill] sm:$0xff] }
 0x448   :  { %2387 = vmatpush.msrb.mxu3 %v11389_v59  ;;  %2292 = vmatpush.msra.mxu2 %v11391_v37  ;;  %v11441_v59 = vld [vmem:[#allocation127_spill] sm:$0xff]  ;;  %v11443_v37 = vld [vmem:[#allocation129_spill] sm:$0xff] }
 0x449   :  { %2348 = vmatpush.msrb.mxu1 %v11392_v62  ;;  %2253 = vmatpush.msra.mxu0 %v11394_v26  ;;  %v11444_v62 = vld [vmem:[#allocation130_spill] sm:$0xff]  ;;  %v11446_v26 = vld [vmem:[#allocation132_spill] sm:$0xff] }
 0x44a   :  { %2388 = vmatpush.msrb.mxu3 %v11393_v24  ;;  %2293 = vmatpush.msra.mxu2 %v11395_v18  ;;  %v11445_v24 = vld [vmem:[#allocation131_spill] sm:$0xff]  ;;  %v11447_v18 = vld [vmem:[#allocation133_spill] sm:$0xff] }
 0x44b   :  { %2349 = vmatpush.msrb.mxu1 %v11396_v20  ;;  %2254 = vmatpush.msra.mxu0 %v11398_v28  ;;  %v11448_v20 = vld [vmem:[#allocation134_spill] sm:$0xff]  ;;  %v11450_v28 = vld [vmem:[#allocation136_spill] sm:$0xff] }
 0x44c   :  { %2389 = vmatpush.msrb.mxu3 %v11397_v49  ;;  %2294 = vmatpush.msra.mxu2 %v11399_v25  ;;  %v11449_v49 = vld [vmem:[#allocation135_spill] sm:$0xff]  ;;  %v11451_v25 = vld [vmem:[#allocation137_spill] sm:$0xff] }
 0x44d   :  { %2350 = vmatpush.msrb.mxu1 %v11400_v30  ;;  %2255 = vmatpush.msra.mxu0 %v11402_v6  ;;  %v11452_v30 = vld [vmem:[#allocation138_spill] sm:$0xff]  ;;  %v11454_v6 = vld [vmem:[#allocation140_spill] sm:$0xff] }
 0x44e   :  { %2390 = vmatpush.msrb.mxu3 %v11401_v12  ;;  %2295 = vmatpush.msra.mxu2 %v11403_v41  ;;  %v11453_v12 = vld [vmem:[#allocation139_spill] sm:$0xff]  ;;  %v11455_v41 = vld [vmem:[#allocation141_spill] sm:$0xff] }
 0x44f   :  { %2351 = vmatpush.msrb.mxu1 %v11404_v42  ;;  %2256 = vmatpush.msra.mxu0 %v11406_v45  ;;  %v11456_v42 = vld [vmem:[#allocation142_spill] sm:$0xff]  ;;  %v11458_v45 = vld [vmem:[#allocation144_spill] sm:$0xff] }
 0x450   :  { %2391 = vmatpush.msrb.mxu3 %v11405_v55  ;;  %2296 = vmatpush.msra.mxu2 %v11407_v34  ;;  %v11457_v55 = vld [vmem:[#allocation143_spill] sm:$0xff]  ;;  %v11459_v34 = vld [vmem:[#allocation145_spill] sm:$0xff] }
 0x451   :  { %2352 = vmatpush.msrb.mxu1 %v11408_v44  ;;  %2257 = vmatpush.msra.mxu0 %v11410_v60  ;;  %v11460_v44 = vld [vmem:[#allocation146_spill] sm:$0xff]  ;;  %v11462_v60 = vld [vmem:[#allocation148_spill] sm:$0xff] }
 0x452   :  { %2392 = vmatpush.msrb.mxu3 %v11409_v57  ;;  %2297 = vmatpush.msra.mxu2 %v11411_v35  ;;  %v11461_v57 = vld [vmem:[#allocation147_spill] sm:$0xff]  ;;  %v11463_v35 = vld [vmem:[#allocation149_spill] sm:$0xff] }
 0x453   :  { %2353 = vmatpush.msrb.mxu1 %v11412_v9  ;;  %2258 = vmatpush.msra.mxu0 %v11414_v43  ;;  %v11464_v9 = vld [vmem:[#allocation150_spill] sm:$0xff] }
 0x454   :  { %2393 = vmatpush.msrb.mxu3 %v11413_v4  ;;  %2298 = vmatpush.msra.mxu2 %v11415_v17  ;;  %v11465_v4 = vld [vmem:[#allocation151_spill] sm:$0xff] }
 0x455   :  { %2354 = vmatpush.msrb.mxu1 %v11416_v53  ;;  %2259 = vmatpush.msra.mxu0 %v11418_v63  ;;  %v11466_v53 = vld [vmem:[#allocation40_spill] sm:$0xff] }
 0x456   :  { %2394 = vmatpush.msrb.mxu3 %v11417_v52  ;;  %2299 = vmatpush.msra.mxu2 %v11419_v56 }
 0x457   :  { %2355 = vmatpush.msrb.mxu1 %v11420_v38  ;;  %2260 = vmatpush.msra.mxu0 %v11422_v3 }
 0x458   :  { %2395 = vmatpush.msrb.mxu3 %v11421_v23  ;;  %2300 = vmatpush.msra.mxu2 %v11423_v51  ;;  %v11467_v51 = vld [vmem:[#allocation42_spill] sm:$0xff] }
 0x459   :  { %2356 = vmatpush.msrb.mxu1 %v11424_v33  ;;  %2325 = vmatpush.msrb.mxu0 %v11426_v47  ;;  %v3270_v47 = vld [vmem:[%s10107_s0 + $0xa8] sm:$0xff] }
 0x45a   :  { %2396 = vmatpush.msrb.mxu3 %v11425_v11  ;;  %2365 = vmatpush.msrb.mxu2 %v11427_v36 }
 0x45b   :  { %2357 = vmatpush.msrb.mxu1 %v11428_v46  ;;  %2326 = vmatpush.msrb.mxu0 %v11430_v39 }
 0x45c   :  { %2397 = vmatpush.msrb.mxu3 %v11429_v13  ;;  %2366 = vmatpush.msrb.mxu2 %v11431_v1 }
 0x45d   :  { %2358 = vmatpush.msrb.mxu1 %v11432_v2  ;;  %2327 = vmatpush.msrb.mxu0 %v11434_v14 }
 0x45e   :  { %2398 = vmatpush.msrb.mxu3 %v11433_v61  ;;  %2367 = vmatpush.msrb.mxu2 %v11435_v19  ;;  %v11468_v19 = vld [vmem:[#allocation43_spill] sm:$0xff] }
 0x45f   :  { %2359 = vmatpush.msrb.mxu1 %v11436_v22  ;;  %2328 = vmatpush.msrb.mxu0 %v11438_v50 }
 0x460   :  { %2399 = vmatpush.msrb.mxu3 %v11437_v5  ;;  %2368 = vmatpush.msrb.mxu2 %v11439_v15 }
 0x461   :  { %2360 = vmatpush.msrb.mxu1 %v11440_v40  ;;  %2329 = vmatpush.msrb.mxu0 %v11442_v21 }
 0x462   :  { %2400 = vmatpush.msrb.mxu3 %v11441_v59  ;;  %2369 = vmatpush.msrb.mxu2 %v11443_v37  ;;  %v3272_v59 = vld [vmem:[%s10107_s0 + $0xb8] sm:$0xff] }
 0x463   :  { %2330 = vmatpush.msrb.mxu0 %v11444_v62 }
 0x464   :  { %2370 = vmatpush.msrb.mxu2 %v11445_v24  ;;  %v11469_v24 = vld [vmem:[#allocation45_spill] sm:$0xff] }
 0x465   :  { %2331 = vmatpush.msrb.mxu0 %v11446_v26 }
 0x466   :  { %2371 = vmatpush.msrb.mxu2 %v11447_v18 }
 0x467   :  { %2332 = vmatpush.msrb.mxu0 %v11448_v20 }
 0x468   :  { %2372 = vmatpush.msrb.mxu2 %v11449_v49 }
 0x469   :  { %2333 = vmatpush.msrb.mxu0 %v11450_v28 }
 0x46a   :  { %2373 = vmatpush.msrb.mxu2 %v11451_v25 }
 0x46b   :  { %2334 = vmatpush.msrb.mxu0 %v11452_v30 }
 0x46c   :  { %2374 = vmatpush.msrb.mxu2 %v11453_v12 }
 0x46d   :  { %2335 = vmatpush.msrb.mxu0 %v11454_v6 }
 0x46e   :  { %2375 = vmatpush.msrb.mxu2 %v11455_v41 }
 0x46f   :  { %2336 = vmatpush.msrb.mxu0 %v11456_v42 }
 0x470   :  { %2376 = vmatpush.msrb.mxu2 %v11457_v55 }
 0x471   :  { %2337 = vmatpush.msrb.mxu0 %v11458_v45 }
 0x472   :  { %2377 = vmatpush.msrb.mxu2 %v11459_v34 }
 0x473   :  { %2338 = vmatpush.msrb.mxu0 %v11460_v44 }
 0x474   :  { %2378 = vmatpush.msrb.mxu2 %v11461_v57 }
 0x475   :  { %2339 = vmatpush.msrb.mxu0 %v11462_v60 }
 0x476   :  { %2379 = vmatpush.msrb.mxu2 %v11463_v35  ;;  %v3269_v35 = vld [vmem:[%s10107_s0 + $0xa0] sm:$0xff] }
 0x477   :  { %2340 = vmatpush.msrb.mxu0 %v11464_v9 }
 0x478   :  { %2380 = vmatpush.msrb.mxu2 %v11465_v4  ;;  %v8644_v4 = vld [vmem:[%s10105_s1 + $0x1c8] sm:$0xff] }
 0x47b   :  { %v1907_v43 = vpop.f32.mrf.mxu1 }
 0x481   :  { %v1947_v63 = vpop.f32.mrf.mxu3 }
 0x483   :  { %v1987_v56 = vpop.f32.mrf.mxu1 }
 0x489   :  { %v2027_v13 = vpop.f32.mrf.mxu3 }
 0x493   :  { %v1887_v17 = vpop.f32.mrf.mxu0 }
 0x494   :  { %v1888_v52 = vadd.f32 %v1887_v17, %v11466_v53 }
 0x496   :  { %v1908_v38 = vadd.f32 %v1907_v43, %v1888_v52 }
 0x498   :  { %v3266_v23 = vmul.f32 -1.442695, %v1908_v38 }
 0x499   :  { %v1927_v3 = vpop.f32.mrf.mxu2 }
 0x49a   :  { %3444 = vpow2.f32 %v3266_v23  ;;  %v1928_v33 = vadd.f32 %v1927_v3, %v11467_v51 }
 0x49c   :  { %v1948_v11 = vadd.f32 %v1947_v63, %v1928_v33  ;;  %v1967_v50 = vpop.f32.mrf.mxu0 }
 0x49d   :  { %v2135_v36 = vpop.f32.mrf.mxu1  ;;  %v1968_v26 = vadd.f32 %v1967_v50, %v11469_v24 }
 0x49e   :  { %v3267_v46 = vmul.f32 -1.442695, %v1948_v11  ;;  %v2179_v39 = vadd.f32 %v3270_v47, %v2135_v36 }
 0x49f   :  { %v1988_v25 = vadd.f32 %v1987_v56, %v1968_v26 }
 0x4a0   :  { %v3445_v1 = vpop.eup %3444  ;;  %3446 = vpow2.f32 %v3267_v46  ;;  %v3274_v14 = vmul.f32 -1.442695, %v2179_v39 }
 0x4a1   :  { %v2033_v2 = vadd.f32 1.0, %v3445_v1 }
 0x4a2   :  { %v2007_v61 = vpop.f32.mrf.mxu2 }
 0x4a3   :  { %3448 = vrcp.f32 %v2033_v2  ;;  %v2008_v22 = vadd.f32 %v2007_v61, %v11468_v19  ;;  %v2045_v34 = vand.u32 2147483648, %v2033_v2  ;;  %vm2039_vm13 = vweird.f32 %v2033_v2 }
 0x4a4   :  { %3450 = vpow2.f32 %v3274_v14  ;;  %v2175_v21 = vpop.f32.mrf.mxu3  ;;  %v2043_v60 = vand.u32 2147483647, %v2033_v2 }
 0x4a5   :  { %v2028_v15 = vadd.f32 %v2027_v13, %v2008_v22  ;;  %v2181_v20 = vadd.f32 %v3272_v59, %v2175_v21  ;;  %v2046_v56 = vor.u32 1.1754944e-38, %v2045_v34  ;;  %v8626_v34 = vld [vmem:[%s10105_s1 + $0x1e8] sm:$0xff] }
 0x4a6   :  { %v3447_v5 = vpop.eup %3446  ;;  %vm2044_vm1 = vcmp.eq.f32.partialorder %v2043_v60, 8.507059e+37 }
 0x4a7   :  { %v2052_v40 = vadd.f32 1.0, %v3447_v5  ;;  %v3268_v37 = vmul.f32 -1.442695, %v2028_v15  ;;  %v3275_v12 = vmul.f32 -1.442695, %v2181_v20 }
 0x4a9   :  { %v3449_v62 = vpop.eup %3448  ;;  %3452 = vrcp.f32 %v2052_v40  ;;  %v2064_v9 = vand.u32 2147483648, %v2052_v40  ;;  %v2062_v43 = vand.u32 2147483647, %v2052_v40  ;;  %vm2058_vm0 = vweird.f32 %v2052_v40 }
 0x4aa   :  { %v2035_v18 = vmul.f32 %v3449_v62, %v2033_v2  ;;  %3454 = vpow2.f32 %v3268_v37  ;;  %v3451_v28 = vpop.eup %3450  ;;  %vm2040_vm12 = vweird.f32 %v3449_v62 }
 0x4ab   :  { %v8591_v45 = vadd.f32 1.0, %v3451_v28  ;;  %3456 = vtanh.f32 %v1988_v25  ;;  %vm8596_vm14 = vmor %vm2039_vm13, %vm2040_vm12  ;;  %v2065_v33 = vor.u32 1.1754944e-38, %v2064_v9  ;;  %vm2063_vm3 = vcmp.eq.f32.partialorder %v2062_v43, 8.507059e+37  ;;  %v8650_v43 = vld [vmem:[%s10105_s1 + $0x1d8] sm:$0xff] }
 0x4ac   :  { %v2036_v49 = vsub.f32 1.0, %v2035_v18  ;;  %3458 = vpow2.f32 %v3275_v12 }
 0x4ad   :  { %vm2210_vm9 = vweird.f32 %v8591_v45 }
 0x4ae   :  { %v2037_v30 = vmul.f32 %v3449_v62, %v2036_v49 }
 0x4af   :  { %v3453_v6 = vpop.eup %3452 }
 0x4b0   :  { %v3455_v41 = vpop.eup %3454  ;;  %v2054_v42 = vmul.f32 %v3453_v6, %v2052_v40  ;;  %v2038_v55 = vadd.f32 %v3449_v62, %v2037_v30  ;;  %vm2059_vm15 = vweird.f32 %v3453_v6  ;;  %v3271_v30 = vld [vmem:[%s10107_s0 + $0xb0] sm:$0xff] }
 0x4b1   :  { %v2072_v44 = vadd.f32 1.0, %v3455_v41  ;;  %v3457_v3 = vpop.eup %3456  ;;  %vm2060_vm2 = vmor %vm2058_vm0, %vm2059_vm15 }
 0x4b2   :  { %v2055_v57 = vsub.f32 1.0, %v2054_v42  ;;  %v2042_v52 = vsel %vm8596_vm14, %v3449_v62, %v2038_v55  ;;  %v3459_v36 = vpop.eup %3458 }
 0x4b3   :  { %3460 = vrcp.f32 %v2072_v44  ;;  %v2047_v11 = vsel %vm2044_vm1, %v2046_v56, %v2042_v52  ;;  %v8610_v15 = vadd.f32 1.0, %v3459_v36  ;;  %v2084_v59 = vand.u32 2147483648, %v2072_v44  ;;  %v8679_v36 = vld [vmem:[%s10105_s1 + $0x188] sm:$0xff] }
 0x4b4   :  { %v2056_v17 = vmul.f32 %v3453_v6, %v2055_v57  ;;  %3462 = vrcp.f32 %v8591_v45  ;;  %v2115_v63 = vpop.f32.mrf.mxu0  ;;  %v2089_v61 = vmul.f32 %v3457_v3, %v2047_v11  ;;  %v2082_v37 = vand.u32 2147483647, %v2072_v44 }
 0x4b5   :  { %v2178_v38 = vadd.f32 %v3269_v35, %v2115_v63  ;;  %vm2078_vm5 = vweird.f32 %v2072_v44  ;;  %v2085_v18 = vor.u32 1.1754944e-38, %v2084_v59  ;;  %v2216_v35 = vand.u32 2147483648, %v8591_v45  ;;  %v8705_v59 = vld [vmem:[%s10105_s1 + $0x148] sm:$0xff]  ;;  %v8804_v63 = vld [vmem:[%s10105_s1 + $0x1f0] sm:$0xff] }
 0x4b6   :  { %v2057_v23 = vadd.f32 %v3453_v6, %v2056_v17  ;;  %vm2083_vm7 = vcmp.eq.f32.partialorder %v2082_v37, 8.507059e+37  ;;  %v2214_v52 = vand.u32 2147483647, %v8591_v45  ;;  %vm2230_vm1 = vweird.f32 %v8610_v15 }
 0x4b7   :  { %v3273_v47 = vmul.f32 -1.442695, %v2178_v38  ;;  %v8663_v38 = vld [vmem:[%s10105_s1 + $0x1a8] sm:$0xff]  ;;  %v2217_v11 = vor.u32 1.1754944e-38, %v2216_v35 }
 0x4b8   :  { %v2061_v46 = vsel %vm2060_vm2, %v3453_v6, %v2057_v23  ;;  %v8669_v23 = vld [vmem:[%s10105_s1 + $0x1b8] sm:$0xff]  ;;  %vm2215_vm13 = vcmp.eq.f32.partialorder %v2214_v52, 8.507059e+37 }
 0x4b9   :  { %v3461_v13 = vpop.eup %3460  ;;  %v2066_v39 = vsel %vm2063_vm3, %v2065_v33, %v2061_v46  ;;  %3464 = vpow2.f32 %v3273_v47  ;;  %v8685_v46 = vld [vmem:[%s10105_s1 + $0x198] sm:$0xff] }
 0x4ba   :  { %v8603_v1 = vpop.eup %3462  ;;  %v2088_v2 = vmul.f32 %v2066_v39, %v8290_v58  ;;  %v2074_v14 = vmul.f32 %v3461_v13, %v2072_v44  ;;  %vm2079_vm4 = vweird.f32 %v3461_v13  ;;  %v8632_v44 = vld [vmem:[%s10105_s1 + $0x1f8] sm:$0xff] }
 0x4bb   :  { %v2206_v50 = vmul.f32 %v8603_v1, %v8591_v45  ;;  %vm2080_vm6 = vmor %vm2078_vm5, %vm2079_vm4  ;;  %v2155_v12 = vpop.f32.mrf.mxu2  ;;  %vm2211_vm8 = vweird.f32 %v8603_v1  ;;  %v8795_v52 = vld [vmem:[%s10105_s1 + $0x98] sm:$0xff] }
 0x4bc   :  { %v8606_v22 = vadd.f32 %v2089_v61, %v2088_v2  ;;  %v2075_v5 = vsub.f32 1.0, %v2074_v14  ;;  %v2180_v55 = vadd.f32 %v3271_v30, %v2155_v12  ;;  %vm8655_vm10 = vmor %vm2210_vm9, %vm2211_vm8  ;;  %v8692_v2 = vld [vmem:[%s10105_s1 + $0x168] sm:$0xff]  ;;  %v8698_v61 = vld [vmem:[%s10105_s1 + $0x178] sm:$0xff] }
 0x4bd   :  { %v2207_v26 = vsub.f32 1.0, %v2206_v50  ;;  %v8750_v30 = vld [vmem:[%s10105_s1 + $0xe8] sm:$0xff]  ;;  %v8756_v12 = vld [vmem:[%s10105_s1 + $0xf8] sm:$0xff] }
 0x4be   :  { %3466 = vtanh.f32 %v8606_v22  ;;  %v2076_v40 = vmul.f32 %v3461_v13, %v2075_v5 }
 0x4bf   :  { %v3465_v21 = vpop.eup %3464  ;;  %3468 = vrcp.f32 %v8610_v15  ;;  %v2208_v25 = vmul.f32 %v8603_v1, %v2207_v26  ;;  %v8724_v26 = vld [vmem:[%s10105_s1 + $0x138] sm:$0xff] }
 0x4c0   :  { %v8613_v62 = vadd.f32 1.0, %v3465_v21  ;;  %v2077_v58 = vadd.f32 %v3461_v13, %v2076_v40  ;;  %v8711_v21 = vld [vmem:[%s10105_s1 + $0x158] sm:$0xff] }
 0x4c1   :  { %v2209_v60 = vadd.f32 %v8603_v1, %v2208_v25  ;;  %v2234_v25 = vand.u32 2147483647, %v8610_v15 }
 0x4c2   :  { %3470 = vrcp.f32 %v8613_v62  ;;  %v2081_v20 = vsel %vm2080_vm6, %v3461_v13, %v2077_v58  ;;  %v2197_v56 = vand.u32 2147483648, %v8613_v62  ;;  %v2195_v3 = vand.u32 2147483647, %v8613_v62  ;;  %v8718_v58 = vld [vmem:[%s10105_s1 + $0x128] sm:$0xff] }
 0x4c3   :  { %v2086_v28 = vsel %vm2083_vm7, %v2085_v18, %v2081_v20  ;;  %3472 = vtanh.f32 %v2180_v55  ;;  %v2213_v33 = vsel %vm8655_vm10, %v8603_v1, %v2209_v60  ;;  %vm2191_vm12 = vweird.f32 %v8613_v62 }
 0x4c4   :  { %v3467_v49 = vpop.eup %3466  ;;  %v2198_v39 = vor.u32 1.1754944e-38, %v2197_v56  ;;  %v2218_v1 = vsel %vm2215_vm13, %v2217_v11, %v2213_v33  ;;  %vm2196_vm15 = vcmp.eq.f32.partialorder %v2195_v3, 8.507059e+37  ;;  %vm2235_vm3 = vcmp.eq.f32.partialorder %v2234_v25, 8.507059e+37  ;;  %v8810_v56 = vld [vmem:[%s10105_s1 + $0x68] sm:$0xff]  ;;  %v8835_v33 = vld [vmem:[%s10105_s1 + $0x58] sm:$0xff] }
 0x4c5   :  { %v2092_v6 = vmul.f32 %v3467_v49, %v2086_v28  ;;  %v8621_v41 = vpop.eup %3468  ;;  %v2240_v37 = vmul.f32 %v2218_v1, %v8334_v29  ;;  %v8734_v29 = vld [vmem:[%s10105_s1 + $0x108] sm:$0xff]  ;;  %v8740_v49 = vld [vmem:[%s10105_s1 + $0x118] sm:$0xff]  ;;  %v2236_v28 = vand.u32 2147483648, %v8610_v15  ;;  %v8891_v1 = vld [vmem:[%s10106_s2 + $0x3e0] sm:$0xff] }
 0x4c6   :  { %v2226_v9 = vmul.f32 %v8621_v41, %v8610_v15  ;;  %vm2231_vm0 = vweird.f32 %v8621_v41  ;;  %v8763_v15 = vld [vmem:[%s10105_s1 + $0xc8] sm:$0xff]  ;;  %11475 = vst [vmem:[#allocation2_spill] sm:$0xff] %v8891_v1 }
 0x4c7   :  { %2281 = vmatmul.f32.vlgmr.msra.gmra.mxu1 %v2092_v6  ;;  %2321 = vmatmul.f32.vlgmr.msra.gmra.mxu3 %v2092_v6  ;;  %vm2232_vm2 = vmor %vm2230_vm1, %vm2231_vm0  ;;  %v2237_v55 = vor.u32 1.1754944e-38, %v2236_v28  ;;  %v8829_v3 = vld [vmem:[%s10105_s1 + $0x48] sm:$0xff]  ;;  %v8973_v28 = vld [vmem:[%s10105_s1 + $0xd0] sm:$0xff] }
 0x4c8   :  { %v3471_v42 = vpop.eup %3470  ;;  %2493 = vmatpush.msra.mxu1 %v8626_v34  ;;  %2533 = vmatpush.msra.mxu3 %v8632_v44  ;;  %v2227_v47 = vsub.f32 1.0, %v2226_v9  ;;  %v8848_v11 = vld [vmem:[%s10105_s1 + $0x28] sm:$0xff]  ;;  %11488 = vst [vmem:[#allocation54_spill] sm:$0xff] %v8973_v28 }
 0x4c9   :  { %v2187_v57 = vmul.f32 %v3471_v42, %v8613_v62  ;;  %vm2192_vm11 = vweird.f32 %v3471_v42  ;;  %v3473_v5 = vpop.eup %3472  ;;  %v8979_v25 = vld [vmem:[%s10106_s2 + $0x368] sm:$0xff] }
 0x4ca   :  { %2494 = vmatpush.msra.mxu1 %v8644_v4  ;;  %2534 = vmatpush.msra.mxu3 %v8650_v43  ;;  %vm2193_vm14 = vmor %vm2191_vm12, %vm2192_vm11  ;;  %v2228_v50 = vmul.f32 %v8621_v41, %v2227_v47  ;;  %v8854_v47 = vld [vmem:[%s10105_s1 + $0x38] sm:$0xff]  ;;  %11489 = vst [vmem:[#allocation55_spill] sm:$0xff] %v8979_v25 }
 0x4cb   :  { %v2188_v17 = vsub.f32 1.0, %v2187_v57  ;;  %v8781_v57 = vld [vmem:[%s10105_s1 + $0xb8] sm:$0xff] }
 0x4cc   :  { %2495 = vmatpush.msra.mxu1 %v8663_v38  ;;  %2535 = vmatpush.msra.mxu3 %v8669_v23  ;;  %v2229_v20 = vadd.f32 %v8621_v41, %v2228_v50  ;;  %v8922_v50 = vld [vmem:[%s10106_s2 + $0x3c8] sm:$0xff] }
 0x4cd   :  { %v2189_v45 = vmul.f32 %v3471_v42, %v2188_v17  ;;  %v8789_v17 = vld [vmem:[%s10105_s1 + $0x88] sm:$0xff]  ;;  %11480 = vst [vmem:[#allocation4_spill] sm:$0xff] %v8922_v50 }
 0x4ce   :  { %2496 = vmatpush.msra.mxu1 %v8679_v36  ;;  %2536 = vmatpush.msra.mxu3 %v8685_v46 }
 0x4cf   :  { %v2190_v13 = vadd.f32 %v3471_v42, %v2189_v45  ;;  %2361 = vmatmul.f32.vlgmr.msrb.gmra.mxu1 %v2092_v6  ;;  %2401 = vmatmul.f32.vlgmr.msrb.gmra.mxu3 %v2092_v6  ;;  %v2233_v6 = vsel %vm2232_vm2, %v8621_v41, %v2229_v20  ;;  %v8775_v41 = vld [vmem:[%s10105_s1 + $0xa8] sm:$0xff]  ;;  %v8816_v45 = vld [vmem:[%s10105_s1 + $0x78] sm:$0xff] }
 0x4d0   :  { %2497 = vmatpush.msra.mxu1 %v8692_v2  ;;  %2537 = vmatpush.msra.mxu3 %v8698_v61  ;;  %v2238_v35 = vsel %vm2235_vm3, %v2237_v55, %v2233_v6  ;;  %v8960_v20 = vld [vmem:[%s10106_s2 + $0x388] sm:$0xff]  ;;  %v8991_v6 = vld [vmem:[%s10106_s2 + $0x340] sm:$0xff]  ;;  %v8997_v55 = vld [vmem:[%s10105_s1 + $0xb0] sm:$0xff] }
 0x4d1   :  { %v2194_v14 = vsel %vm2193_vm14, %v3471_v42, %v2190_v13  ;;  %v8769_v42 = vld [vmem:[%s10105_s1 + $0xd8] sm:$0xff]  ;;  %v8867_v13 = vld [vmem:[%s10105_s1 + $0x8] sm:$0xff]  ;;  %11486 = vst [vmem:[#allocation53_spill] sm:$0xff] %v8960_v20 }
 0x4d2   :  { %v2199_v40 = vsel %vm2196_vm15, %v2198_v39, %v2194_v14  ;;  %2498 = vmatpush.msra.mxu1 %v8705_v59  ;;  %2538 = vmatpush.msra.mxu3 %v8711_v21  ;;  %v8873_v39 = vld [vmem:[%s10105_s1 + $0x18] sm:$0xff]  ;;  %v8903_v14 = vld [vmem:[%s10106_s2 + $0x3e8] sm:$0xff]  ;;  %11491 = vst [vmem:[#allocation56_spill] sm:$0xff] %v8991_v6 }
 0x4d3   :  { %v2241_v62 = vmul.f32 %v3473_v5, %v2199_v40  ;;  %11477 = vst [vmem:[#allocation3_spill] sm:$0xff] %v8903_v14  ;;  %v8916_v5 = vld [vmem:[%s10105_s1 + $0x130] sm:$0xff] }
 0x4d4   :  { %2499 = vmatpush.msra.mxu1 %v8718_v58  ;;  %2539 = vmatpush.msra.mxu3 %v8724_v26  ;;  %11479 = vst [vmem:[#allocation49_spill] sm:$0xff] %v8916_v5  ;;  %v8935_v40 = vld [vmem:[%s10105_s1 + $0x110] sm:$0xff] }
 0x4d5   :  { %v8727_v18 = vadd.f32 %v2241_v62, %v2240_v37  ;;  %11482 = vst [vmem:[#allocation51_spill] sm:$0xff] %v8935_v40  ;;  %v8941_v37 = vld [vmem:[%s10106_s2 + $0x3a8] sm:$0xff]  ;;  %v8954_v62 = vld [vmem:[%s10105_s1 + $0xf0] sm:$0xff] }
 0x4d6   :  { %2500 = vmatpush.msra.mxu1 %v8734_v29  ;;  %2540 = vmatpush.msra.mxu3 %v8740_v49  ;;  %11483 = vst [vmem:[#allocation5_spill] sm:$0xff] %v8941_v37 }
 0x4d7   :  { %3474 = vtanh.f32 %v8727_v18  ;;  %11485 = vst [vmem:[#allocation52_spill] sm:$0xff] %v8954_v62 }
 0x4d8   :  { %2501 = vmatpush.msra.mxu1 %v8750_v30  ;;  %2541 = vmatpush.msra.mxu3 %v8756_v12  ;;  %11492 = vst [vmem:[#allocation57_spill] sm:$0xff] %v8997_v55 }
 0x4da   :  { %2502 = vmatpush.msra.mxu1 %v8763_v15  ;;  %2542 = vmatpush.msra.mxu3 %v8769_v42 }
 0x4dc   :  { %2503 = vmatpush.msra.mxu1 %v8775_v41  ;;  %2543 = vmatpush.msra.mxu3 %v8781_v57 }
 0x4dd   :  { %v3475_v60 = vpop.eup %3474 }
 0x4de   :  { %v8784_v9 = vmul.f32 %v3475_v60, %v2238_v35  ;;  %2504 = vmatpush.msra.mxu1 %v8789_v17  ;;  %2544 = vmatpush.msra.mxu3 %v8795_v52  ;;  %v9003_v60 = vld [vmem:[%s10106_s2 + $0x348] sm:$0xff]  ;;  %v9009_v35 = vld [vmem:[%s10105_s1 + $0x80] sm:$0xff] }
 0x4df   :  { %11493 = vst [vmem:[#allocation11_spill] sm:$0xff] %v9003_v60 }
 0x4e0   :  { %2261 = vmatmul.f32.vlgmr.msra.gmra.mxu0 %v8784_v9  ;;  %2301 = vmatmul.f32.vlgmr.msra.gmra.mxu2 %v8784_v9  ;;  %11494 = vst [vmem:[#allocation58_spill] sm:$0xff] %v9009_v35 }
 0x4e1   :  { %2473 = vmatpush.msra.mxu0 %v8360_v27  ;;  %2513 = vmatpush.msra.mxu2 %v8804_v63  ;;  %v8823_v27 = vld [vmem:[%s10105_s1 + $0x1d0] sm:$0xff] }
 0x4e2   :  { %2505 = vmatpush.msra.mxu1 %v8810_v56  ;;  %2545 = vmatpush.msra.mxu3 %v8816_v45 }
 0x4e3   :  { %2474 = vmatpush.msra.mxu0 %v8369_v31  ;;  %2514 = vmatpush.msra.mxu2 %v8823_v27  ;;  %v8842_v31 = vld [vmem:[%s10105_s1 + $0x1b0] sm:$0xff] }
 0x4e4   :  { %2506 = vmatpush.msra.mxu1 %v8829_v3  ;;  %2546 = vmatpush.msra.mxu3 %v8835_v33 }
 0x4e5   :  { %2475 = vmatpush.msra.mxu0 %v8378_v48  ;;  %2515 = vmatpush.msra.mxu2 %v8842_v31  ;;  %v8861_v48 = vld [vmem:[%s10105_s1 + $0x190] sm:$0xff] }
 0x4e6   :  { %2507 = vmatpush.msra.mxu1 %v8848_v11  ;;  %2547 = vmatpush.msra.mxu3 %v8854_v47 }
 0x4e7   :  { %2476 = vmatpush.msra.mxu0 %v8387_v8  ;;  %2516 = vmatpush.msra.mxu2 %v8861_v48  ;;  %v8883_v8 = vld [vmem:[%s10105_s1 + $0x170] sm:$0xff] }
 0x4e8   :  { %2508 = vmatpush.msra.mxu1 %v8867_v13  ;;  %2548 = vmatpush.msra.mxu3 %v8873_v39  ;;  %11474 = vst [vmem:[#allocation46_spill] sm:$0xff] %v8883_v8 }
 0x4e9   :  { %2341 = vmatmul.f32.vlgmr.msrb.gmra.mxu0 %v8784_v9  ;;  %2381 = vmatmul.f32.vlgmr.msrb.gmra.mxu2 %v8784_v9 }
 0x4ea   :  { %2477 = vmatpush.msra.mxu0 %v8398_v7  ;;  %2509 = vmatmul.f32.vlgmr.msra.gmra.mxu1 %v8784_v9  ;;  %v8897_v7 = vld [vmem:[%s10105_s1 + $0x150] sm:$0xff] }
 0x4eb   :  { %2517 = vmatpush.msra.mxu2 %v8883_v8  ;;  %2549 = vmatmul.f32.vlgmr.msra.gmra.mxu3 %v8784_v9  ;;  %11476 = vst [vmem:[#allocation47_spill] sm:$0xff] %v8897_v7 }
 0x4ec   :  { %2478 = vmatpush.msra.mxu0 %v8407_v16  ;;  %2640 = vmatpush.msrb.mxu1 %v8891_v1  ;;  %v8910_v16 = vld [vmem:[%s10106_s2 + $0x3c0] sm:$0xff] }
 0x4ed   :  { %2518 = vmatpush.msra.mxu2 %v8897_v7  ;;  %2680 = vmatpush.msrb.mxu3 %v8903_v14  ;;  %11478 = vst [vmem:[#allocation48_spill] sm:$0xff] %v8910_v16 }
 0x4ee   :  { %2479 = vmatpush.msra.mxu0 %v8416_v32  ;;  %2641 = vmatpush.msrb.mxu1 %v8910_v16  ;;  %v8929_v32 = vld [vmem:[%s10106_s2 + $0x3a0] sm:$0xff] }
 0x4ef   :  { %2519 = vmatpush.msra.mxu2 %v8916_v5  ;;  %2681 = vmatpush.msrb.mxu3 %v8922_v50  ;;  %11481 = vst [vmem:[#allocation50_spill] sm:$0xff] %v8929_v32 }
 0x4f0   :  { %2480 = vmatpush.msra.mxu0 %v8425_v54  ;;  %2642 = vmatpush.msrb.mxu1 %v8929_v32  ;;  %v8948_v54 = vld [vmem:[%s10106_s2 + $0x380] sm:$0xff] }
 0x4f1   :  { %2520 = vmatpush.msra.mxu2 %v8935_v40  ;;  %2682 = vmatpush.msrb.mxu3 %v8941_v37  ;;  %11484 = vst [vmem:[#allocation6_spill] sm:$0xff] %v8948_v54 }
 0x4f2   :  { %2481 = vmatpush.msra.mxu0 %v8434_v10  ;;  %2643 = vmatpush.msrb.mxu1 %v8948_v54  ;;  %v8967_v10 = vld [vmem:[%s10106_s2 + $0x360] sm:$0xff]  ;;  %v3280_v54 = vld [vmem:[%s10107_s0 + $0xc8] sm:$0xff] }
 0x4f3   :  { %2521 = vmatpush.msra.mxu2 %v8954_v62  ;;  %2683 = vmatpush.msrb.mxu3 %v8960_v20  ;;  %11487 = vst [vmem:[#allocation7_spill] sm:$0xff] %v8967_v10 }
 0x4f4   :  { %2482 = vmatpush.msra.mxu0 %v8443_v0  ;;  %2644 = vmatpush.msrb.mxu1 %v8967_v10  ;;  %v8985_v0 = vld [vmem:[%s10105_s1 + $0xa0] sm:$0xff] }
 0x4f5   :  { %2522 = vmatpush.msra.mxu2 %v8973_v28  ;;  %2684 = vmatpush.msrb.mxu3 %v8979_v25  ;;  %11490 = vst [vmem:[#allocation9_spill] sm:$0xff] %v8985_v0 }
 0x4f6   :  { %2483 = vmatpush.msra.mxu0 %v8985_v0  ;;  %2645 = vmatpush.msrb.mxu1 %v8991_v6  ;;  %v9015_v6 = vld [vmem:[%s10106_s2 + $0x320] sm:$0xff] }
 0x4f7   :  { %2523 = vmatpush.msra.mxu2 %v8997_v55  ;;  %2685 = vmatpush.msrb.mxu3 %v9003_v60  ;;  %11495 = vst [vmem:[#allocation59_spill] sm:$0xff] %v9015_v6  ;;  %v9021_v55 = vld [vmem:[%s10105_s1 + $0x90] sm:$0xff]  ;;  %v9027_v60 = vld [vmem:[%s10106_s2 + $0x328] sm:$0xff] }
 0x4f8   :  { %2484 = vmatpush.msra.mxu0 %v9009_v35  ;;  %2646 = vmatpush.msrb.mxu1 %v9015_v6  ;;  %11496 = vst [vmem:[#allocation13_spill] sm:$0xff] %v9021_v55  ;;  %v9033_v35 = vld [vmem:[%s10105_s1 + $0x60] sm:$0xff] }
 0x4f9   :  { %2524 = vmatpush.msra.mxu2 %v9021_v55  ;;  %11497 = vst [vmem:[#allocation60_spill] sm:$0xff] %v9027_v60  ;;  %2686 = vmatpush.msrb.mxu3 %v9027_v60  ;;  %v9039_v6 = vld [vmem:[%s10106_s2 + $0x300] sm:$0xff]  ;;  %v9045_v55 = vld [vmem:[%s10105_s1 + $0x70] sm:$0xff]  ;;  %v9051_v60 = vld [vmem:[%s10106_s2 + $0x308] sm:$0xff] }
 0x4fa   :  { %11498 = vst [vmem:[#allocation61_spill] sm:$0xff] %v9033_v35  ;;  %2485 = vmatpush.msra.mxu0 %v9033_v35  ;;  %2647 = vmatpush.msrb.mxu1 %v9039_v6  ;;  %v9057_v35 = vld [vmem:[%s10105_s1 + $0x40] sm:$0xff] }
 0x4fb   :  { %11499 = vst [vmem:[#allocation15_spill] sm:$0xff] %v9039_v6  ;;  %2525 = vmatpush.msra.mxu2 %v9045_v55  ;;  %2687 = vmatpush.msrb.mxu3 %v9051_v60  ;;  %v9063_v6 = vld [vmem:[%s10106_s2 + $0x2e0] sm:$0xff] }
 0x4fc   :  { %11500 = vst [vmem:[#allocation62_spill] sm:$0xff] %v9045_v55  ;;  %2486 = vmatpush.msra.mxu0 %v9057_v35  ;;  %2648 = vmatpush.msrb.mxu1 %v9063_v6  ;;  %v9069_v55 = vld [vmem:[%s10105_s1 + $0x50] sm:$0xff] }
 0x4fd   :  { %11501 = vst [vmem:[#allocation8_spill] sm:$0xff] %v9051_v60  ;;  %2526 = vmatpush.msra.mxu2 %v9069_v55  ;;  %v9075_v60 = vld [vmem:[%s10106_s2 + $0x2e8] sm:$0xff] }
 0x4fe   :  { %11502 = vst [vmem:[#allocation63_spill] sm:$0xff] %v9057_v35  ;;  %2688 = vmatpush.msrb.mxu3 %v9075_v60  ;;  %v9081_v35 = vld [vmem:[%s10105_s1 + $0x20] sm:$0xff] }
 0x4ff   :  { %11503 = vst [vmem:[#allocation17_spill] sm:$0xff] %v9063_v6  ;;  %2487 = vmatpush.msra.mxu0 %v9081_v35  ;;  %v9087_v6 = vld [vmem:[%s10106_s2 + $0x2c0] sm:$0xff] }
 0x500   :  { %11504 = vst [vmem:[#allocation64_spill] sm:$0xff] %v9069_v55  ;;  %2649 = vmatpush.msrb.mxu1 %v9087_v6  ;;  %v9093_v55 = vld [vmem:[%s10105_s1 + $0x30] sm:$0xff] }
 0x501   :  { %11505 = vst [vmem:[#allocation10_spill] sm:$0xff] %v9075_v60  ;;  %2527 = vmatpush.msra.mxu2 %v9093_v55  ;;  %v9099_v60 = vld [vmem:[%s10106_s2 + $0x2c8] sm:$0xff] }
 0x502   :  { %11506 = vst [vmem:[#allocation65_spill] sm:$0xff] %v9081_v35  ;;  %2689 = vmatpush.msrb.mxu3 %v9099_v60  ;;  %v9105_v35 = vld [vmem:[%s10105_s1] sm:$0xff] }
 0x503   :  { %11507 = vst [vmem:[#allocation19_spill] sm:$0xff] %v9087_v6  ;;  %2488 = vmatpush.msra.mxu0 %v9105_v35  ;;  %v9111_v6 = vld [vmem:[%s10106_s2 + $0x2a0] sm:$0xff] }
 0x504   :  { %11508 = vst [vmem:[#allocation66_spill] sm:$0xff] %v9093_v55  ;;  %2650 = vmatpush.msrb.mxu1 %v9111_v6  ;;  %v9117_v55 = vld [vmem:[%s10105_s1 + $0x10] sm:$0xff]  ;;  %2489 = vmatmul.f32.vlgmr.msra.gmra.mxu0 %v8784_v9 }
 0x505   :  { %11509 = vst [vmem:[#allocation12_spill] sm:$0xff] %v9099_v60  ;;  %2528 = vmatpush.msra.mxu2 %v9117_v55 }
 0x506   :  { %11510 = vst [vmem:[#allocation69_spill] sm:$0xff] %v9105_v35  ;;  %2529 = vmatmul.f32.vlgmr.msra.gmra.mxu2 %v8784_v9  ;;  %v9125_v35 = vld [vmem:[%s10106_s2 + $0x2a8] sm:$0xff] }
 0x507   :  { %11511 = vst [vmem:[#allocation20_spill] sm:$0xff] %v9111_v6  ;;  %2690 = vmatpush.msrb.mxu3 %v9125_v35  ;;  %v9131_v6 = vld [vmem:[%s10106_s2 + $0x280] sm:$0xff]  ;;  %v9143_v9 = vld [vmem:[%s10106_s2 + $0x288] sm:$0xff] }
 0x508   :  { %11512 = vst [vmem:[#allocation70_spill] sm:$0xff] %v9117_v55  ;;  %2651 = vmatpush.msrb.mxu1 %v9131_v6  ;;  %v9137_v55 = vld [vmem:[%s10106_s2 + $0x1e0] sm:$0xff] }
 0x509   :  { %11513 = vst [vmem:[#allocation14_spill] sm:$0xff] %v9125_v35  ;;  %2620 = vmatpush.msrb.mxu0 %v9137_v55  ;;  %2691 = vmatpush.msrb.mxu3 %v9143_v9  ;;  %v9149_v35 = vld [vmem:[%s10106_s2 + $0x1e8] sm:$0xff] }
 0x50a   :  { %11514 = vst [vmem:[#allocation73_spill] sm:$0xff] %v9131_v6  ;;  %2660 = vmatpush.msrb.mxu2 %v9149_v35  ;;  %v9155_v6 = vld [vmem:[%s10106_s2 + $0x260] sm:$0xff] }
 0x50b   :  { %11515 = vst [vmem:[#allocation23_spill] sm:$0xff] %v9137_v55  ;;  %2652 = vmatpush.msrb.mxu1 %v9155_v6  ;;  %v9161_v55 = vld [vmem:[%s10106_s2 + $0x1c0] sm:$0xff] }
 0x50c   :  { %11516 = vst [vmem:[#allocation74_spill] sm:$0xff] %v9143_v9  ;;  %2621 = vmatpush.msrb.mxu0 %v9161_v55  ;;  %v9167_v9 = vld [vmem:[%s10106_s2 + $0x268] sm:$0xff] }
 0x50d   :  { %11517 = vst [vmem:[#allocation16_spill] sm:$0xff] %v9149_v35  ;;  %2692 = vmatpush.msrb.mxu3 %v9167_v9  ;;  %v9173_v35 = vld [vmem:[%s10106_s2 + $0x1c8] sm:$0xff] }
 0x50e   :  { %11518 = vst [vmem:[#allocation77_spill] sm:$0xff] %v9155_v6  ;;  %2661 = vmatpush.msrb.mxu2 %v9173_v35  ;;  %v9179_v6 = vld [vmem:[%s10106_s2 + $0x240] sm:$0xff] }
 0x50f   :  { %11519 = vst [vmem:[#allocation25_spill] sm:$0xff] %v9161_v55  ;;  %2653 = vmatpush.msrb.mxu1 %v9179_v6  ;;  %v9185_v55 = vld [vmem:[%s10106_s2 + $0x1a0] sm:$0xff] }
 0x510   :  { %11520 = vst [vmem:[#allocation78_spill] sm:$0xff] %v9167_v9  ;;  %2622 = vmatpush.msrb.mxu0 %v9185_v55  ;;  %v9191_v9 = vld [vmem:[%s10106_s2 + $0x248] sm:$0xff] }
 0x511   :  { %11521 = vst [vmem:[#allocation18_spill] sm:$0xff] %v9173_v35  ;;  %2693 = vmatpush.msrb.mxu3 %v9191_v9  ;;  %v9197_v35 = vld [vmem:[%s10106_s2 + $0x1a8] sm:$0xff] }
 0x512   :  { %11522 = vst [vmem:[#allocation81_spill] sm:$0xff] %v9179_v6  ;;  %2662 = vmatpush.msrb.mxu2 %v9197_v35  ;;  %v9203_v6 = vld [vmem:[%s10106_s2 + $0x220] sm:$0xff] }
 0x513   :  { %11523 = vst [vmem:[#allocation27_spill] sm:$0xff] %v9185_v55  ;;  %2654 = vmatpush.msrb.mxu1 %v9203_v6  ;;  %v9209_v55 = vld [vmem:[%s10106_s2 + $0x180] sm:$0xff] }
 0x514   :  { %11524 = vst [vmem:[#allocation21_spill] sm:$0xff] %v9191_v9  ;;  %2623 = vmatpush.msrb.mxu0 %v9209_v55  ;;  %v9215_v9 = vld [vmem:[%s10106_s2 + $0x228] sm:$0xff] }
 0x515   :  { %11525 = vst [vmem:[#allocation28_spill] sm:$0xff] %v9197_v35  ;;  %2694 = vmatpush.msrb.mxu3 %v9215_v9  ;;  %v9221_v35 = vld [vmem:[%s10106_s2 + $0x188] sm:$0xff] }
 0x516   :  { %11526 = vst [vmem:[#allocation82_spill] sm:$0xff] %v9203_v6  ;;  %2663 = vmatpush.msrb.mxu2 %v9221_v35  ;;  %v9227_v6 = vld [vmem:[%s10106_s2 + $0x200] sm:$0xff] }
 0x517   :  { %11527 = vst [vmem:[#allocation22_spill] sm:$0xff] %v9209_v55  ;;  %2655 = vmatpush.msrb.mxu1 %v9227_v6  ;;  %v9233_v55 = vld [vmem:[%s10106_s2 + $0x160] sm:$0xff] }
 0x518   :  { %11528 = vst [vmem:[#allocation85_spill] sm:$0xff] %v9215_v9  ;;  %2624 = vmatpush.msrb.mxu0 %v9233_v55  ;;  %v9239_v9 = vld [vmem:[%s10106_s2 + $0x208] sm:$0xff] }
 0x519   :  { %11529 = vst [vmem:[#allocation30_spill] sm:$0xff] %v9221_v35  ;;  %2695 = vmatpush.msrb.mxu3 %v9239_v9  ;;  %v9245_v35 = vld [vmem:[%s10106_s2 + $0x168] sm:$0xff] }
 0x51a   :  { %11530 = vst [vmem:[#allocation86_spill] sm:$0xff] %v9227_v6  ;;  %2664 = vmatpush.msrb.mxu2 %v9245_v35  ;;  %v9251_v6 = vld [vmem:[%s10106_s2 + $0x3f0] sm:$0xff] }
 0x51b   :  { %11531 = vst [vmem:[#allocation24_spill] sm:$0xff] %v9233_v55  ;;  %2720 = vmatpush.msra.mxu1 %v9251_v6  ;;  %v9257_v55 = vld [vmem:[%s10106_s2 + $0x3f8] sm:$0xff] }
 0x51c   :  { %11532 = vst [vmem:[#allocation89_spill] sm:$0xff] %v9239_v9  ;;  %2760 = vmatpush.msra.mxu3 %v9257_v55  ;;  %v9263_v9 = vld [vmem:[%s10106_s2 + $0x140] sm:$0xff] }
 0x51d   :  { %11533 = vst [vmem:[#allocation32_spill] sm:$0xff] %v9245_v35  ;;  %2625 = vmatpush.msrb.mxu0 %v9263_v9  ;;  %v9269_v35 = vld [vmem:[%s10106_s2 + $0x148] sm:$0xff] }
 0x51e   :  { %11534 = vst [vmem:[#allocation90_spill] sm:$0xff] %v9251_v6  ;;  %2665 = vmatpush.msrb.mxu2 %v9269_v35  ;;  %v9275_v6 = vld [vmem:[%s10106_s2 + $0x3d0] sm:$0xff] }
 0x51f   :  { %11535 = vst [vmem:[#allocation26_spill] sm:$0xff] %v9257_v55  ;;  %2721 = vmatpush.msra.mxu1 %v9275_v6  ;;  %v9281_v55 = vld [vmem:[%s10106_s2 + $0x3d8] sm:$0xff] }
 0x520   :  { %11536 = vst [vmem:[#allocation34_spill] sm:$0xff] %v9263_v9  ;;  %2761 = vmatpush.msra.mxu3 %v9281_v55  ;;  %v9287_v9 = vld [vmem:[%s10106_s2 + $0x120] sm:$0xff] }
 0x521   :  { %11537 = vst [vmem:[#allocation29_spill] sm:$0xff] %v9269_v35  ;;  %2626 = vmatpush.msrb.mxu0 %v9287_v9  ;;  %v9293_v35 = vld [vmem:[%s10106_s2 + $0x128] sm:$0xff] }
 0x522   :  { %11538 = vst [vmem:[#allocation36_spill] sm:$0xff] %v9275_v6  ;;  %2666 = vmatpush.msrb.mxu2 %v9293_v35  ;;  %v9299_v6 = vld [vmem:[%s10106_s2 + $0x3b0] sm:$0xff] }
 0x523   :  { %11539 = vst [vmem:[#allocation31_spill] sm:$0xff] %v9281_v55  ;;  %2722 = vmatpush.msra.mxu1 %v9299_v6  ;;  %v9305_v55 = vld [vmem:[%s10106_s2 + $0x3b8] sm:$0xff] }
 0x524   :  { %11540 = vst [vmem:[#allocation38_spill] sm:$0xff] %v9287_v9  ;;  %2762 = vmatpush.msra.mxu3 %v9305_v55  ;;  %v9311_v9 = vld [vmem:[%s10106_s2 + $0x100] sm:$0xff] }
 0x525   :  { %11541 = vst [vmem:[#allocation33_spill] sm:$0xff] %v9293_v35  ;;  %2627 = vmatpush.msrb.mxu0 %v9311_v9  ;;  %v9317_v35 = vld [vmem:[%s10106_s2 + $0x108] sm:$0xff] }
 0x526   :  { %11542 = vst [vmem:[#allocation39_spill] sm:$0xff] %v9299_v6  ;;  %2667 = vmatpush.msrb.mxu2 %v9317_v35  ;;  %v9323_v6 = vld [vmem:[%s10106_s2 + $0x390] sm:$0xff] }
 0x527   :  { %11543 = vst [vmem:[#allocation35_spill] sm:$0xff] %v9305_v55  ;;  %2723 = vmatpush.msra.mxu1 %v9323_v6  ;;  %v9329_v55 = vld [vmem:[%s10106_s2 + $0x398] sm:$0xff] }
 0x528   :  { %11544 = vst [vmem:[#allocation41_spill] sm:$0xff] %v9311_v9  ;;  %2763 = vmatpush.msra.mxu3 %v9329_v55  ;;  %v9335_v9 = vld [vmem:[%s10106_s2 + $0xe0] sm:$0xff] }
 0x529   :  { %11545 = vst [vmem:[#allocation37_spill] sm:$0xff] %v9317_v35  ;;  %2628 = vmatpush.msrb.mxu0 %v9335_v9  ;;  %v9341_v35 = vld [vmem:[%s10106_s2 + $0xe8] sm:$0xff] }
 0x52a   :  { %11546 = vst [vmem:[#allocation44_spill] sm:$0xff] %v9323_v6  ;;  %2668 = vmatpush.msrb.mxu2 %v9341_v35  ;;  %v9347_v6 = vld [vmem:[%s10106_s2 + $0x370] sm:$0xff] }
 0x52b   :  { %11547 = vst [vmem:[#allocation67_spill] sm:$0xff] %v9329_v55  ;;  %2724 = vmatpush.msra.mxu1 %v9347_v6  ;;  %v9353_v55 = vld [vmem:[%s10106_s2 + $0x378] sm:$0xff] }
 0x52c   :  { %11548 = vst [vmem:[#allocation68_spill] sm:$0xff] %v9335_v9  ;;  %2764 = vmatpush.msra.mxu3 %v9353_v55  ;;  %v9359_v9 = vld [vmem:[%s10106_s2 + $0xc0] sm:$0xff] }
 0x52d   :  { %11549 = vst [vmem:[#allocation71_spill] sm:$0xff] %v9341_v35  ;;  %2629 = vmatpush.msrb.mxu0 %v9359_v9  ;;  %v9365_v35 = vld [vmem:[%s10106_s2 + $0xc8] sm:$0xff] }
 0x52e   :  { %11550 = vst [vmem:[#allocation72_spill] sm:$0xff] %v9347_v6  ;;  %2669 = vmatpush.msrb.mxu2 %v9365_v35  ;;  %v9371_v6 = vld [vmem:[%s10106_s2 + $0x350] sm:$0xff] }
 0x52f   :  { %11551 = vst [vmem:[#allocation75_spill] sm:$0xff] %v9353_v55  ;;  %2725 = vmatpush.msra.mxu1 %v9371_v6  ;;  %v9377_v55 = vld [vmem:[%s10106_s2 + $0x358] sm:$0xff] }
 0x530   :  { %11552 = vst [vmem:[#allocation76_spill] sm:$0xff] %v9359_v9  ;;  %2765 = vmatpush.msra.mxu3 %v9377_v55  ;;  %v9383_v9 = vld [vmem:[%s10106_s2 + $0xa0] sm:$0xff] }
 0x531   :  { %11553 = vst [vmem:[#allocation79_spill] sm:$0xff] %v9365_v35  ;;  %2630 = vmatpush.msrb.mxu0 %v9383_v9  ;;  %v9389_v35 = vld [vmem:[%s10106_s2 + $0xa8] sm:$0xff] }
 0x532   :  { %11554 = vst [vmem:[#allocation80_spill] sm:$0xff] %v9371_v6  ;;  %2670 = vmatpush.msrb.mxu2 %v9389_v35  ;;  %v9395_v6 = vld [vmem:[%s10106_s2 + $0x330] sm:$0xff] }
 0x533   :  { %11555 = vst [vmem:[#allocation83_spill] sm:$0xff] %v9377_v55  ;;  %2726 = vmatpush.msra.mxu1 %v9395_v6  ;;  %v9401_v55 = vld [vmem:[%s10106_s2 + $0x338] sm:$0xff] }
 0x534   :  { %11556 = vst [vmem:[#allocation84_spill] sm:$0xff] %v9383_v9  ;;  %2766 = vmatpush.msra.mxu3 %v9401_v55  ;;  %v9407_v9 = vld [vmem:[%s10106_s2 + $0x80] sm:$0xff] }
 0x535   :  { %11557 = vst [vmem:[#allocation87_spill] sm:$0xff] %v9389_v35  ;;  %2631 = vmatpush.msrb.mxu0 %v9407_v9  ;;  %v9413_v35 = vld [vmem:[%s10106_s2 + $0x88] sm:$0xff] }
 0x536   :  { %11558 = vst [vmem:[#allocation88_spill] sm:$0xff] %v9395_v6  ;;  %2671 = vmatpush.msrb.mxu2 %v9413_v35  ;;  %v9419_v6 = vld [vmem:[%s10106_s2 + $0x310] sm:$0xff] }
 0x537   :  { %11559 = vst [vmem:[#allocation91_spill] sm:$0xff] %v9401_v55  ;;  %2727 = vmatpush.msra.mxu1 %v9419_v6  ;;  %v9425_v55 = vld [vmem:[%s10106_s2 + $0x318] sm:$0xff] }
 0x538   :  { %11560 = vst [vmem:[#allocation92_spill] sm:$0xff] %v9407_v9  ;;  %2767 = vmatpush.msra.mxu3 %v9425_v55  ;;  %v9431_v9 = vld [vmem:[%s10106_s2 + $0x60] sm:$0xff] }
 0x539   :  { %11561 = vst [vmem:[#allocation93_spill] sm:$0xff] %v9413_v35  ;;  %2632 = vmatpush.msrb.mxu0 %v9431_v9  ;;  %v9437_v35 = vld [vmem:[%s10106_s2 + $0x68] sm:$0xff] }
 0x53a   :  { %11562 = vst [vmem:[#allocation94_spill] sm:$0xff] %v9419_v6  ;;  %2672 = vmatpush.msrb.mxu2 %v9437_v35  ;;  %v9443_v6 = vld [vmem:[%s10106_s2 + $0x2f0] sm:$0xff] }
 0x53b   :  { %11563 = vst [vmem:[#allocation95_spill] sm:$0xff] %v9425_v55  ;;  %2728 = vmatpush.msra.mxu1 %v9443_v6  ;;  %v9449_v55 = vld [vmem:[%s10106_s2 + $0x2f8] sm:$0xff] }
 0x53c   :  { %11564 = vst [vmem:[#allocation96_spill] sm:$0xff] %v9431_v9  ;;  %2768 = vmatpush.msra.mxu3 %v9449_v55  ;;  %v9455_v9 = vld [vmem:[%s10106_s2 + $0x40] sm:$0xff] }
 0x53d   :  { %11565 = vst [vmem:[#allocation97_spill] sm:$0xff] %v9437_v35  ;;  %2633 = vmatpush.msrb.mxu0 %v9455_v9  ;;  %v9461_v35 = vld [vmem:[%s10106_s2 + $0x48] sm:$0xff] }
 0x53e   :  { %11566 = vst [vmem:[#allocation98_spill] sm:$0xff] %v9443_v6  ;;  %2673 = vmatpush.msrb.mxu2 %v9461_v35  ;;  %v9467_v6 = vld [vmem:[%s10106_s2 + $0x2d0] sm:$0xff] }
 0x53f   :  { %11567 = vst [vmem:[#allocation99_spill] sm:$0xff] %v9449_v55  ;;  %2729 = vmatpush.msra.mxu1 %v9467_v6  ;;  %v9473_v55 = vld [vmem:[%s10106_s2 + $0x2d8] sm:$0xff] }
 0x540   :  { %11568 = vst [vmem:[#allocation100_spill] sm:$0xff] %v9455_v9  ;;  %2769 = vmatpush.msra.mxu3 %v9473_v55  ;;  %v9479_v9 = vld [vmem:[%s10106_s2 + $0x20] sm:$0xff] }
 0x541   :  { %11569 = vst [vmem:[#allocation101_spill] sm:$0xff] %v9461_v35  ;;  %2634 = vmatpush.msrb.mxu0 %v9479_v9  ;;  %v9485_v35 = vld [vmem:[%s10106_s2 + $0x28] sm:$0xff] }
 0x542   :  { %11570 = vst [vmem:[#allocation102_spill] sm:$0xff] %v9467_v6  ;;  %2674 = vmatpush.msrb.mxu2 %v9485_v35  ;;  %v9491_v6 = vld [vmem:[%s10106_s2 + $0x2b0] sm:$0xff] }
 0x543   :  { %11571 = vst [vmem:[#allocation103_spill] sm:$0xff] %v9473_v55  ;;  %2730 = vmatpush.msra.mxu1 %v9491_v6  ;;  %v9497_v55 = vld [vmem:[%s10106_s2 + $0x2b8] sm:$0xff] }
 0x544   :  { %11572 = vst [vmem:[#allocation104_spill] sm:$0xff] %v9479_v9  ;;  %2770 = vmatpush.msra.mxu3 %v9497_v55  ;;  %v9503_v9 = vld [vmem:[%s10106_s2] sm:$0xff] }
 0x545   :  { %11573 = vst [vmem:[#allocation105_spill] sm:$0xff] %v9485_v35  ;;  %2635 = vmatpush.msrb.mxu0 %v9503_v9  ;;  %v9509_v35 = vld [vmem:[%s10106_s2 + $0x8] sm:$0xff] }
 0x546   :  { %11574 = vst [vmem:[#allocation106_spill] sm:$0xff] %v9491_v6  ;;  %2675 = vmatpush.msrb.mxu2 %v9509_v35  ;;  %v9515_v6 = vld [vmem:[%s10106_s2 + $0x290] sm:$0xff] }
 0x547   :  { %11575 = vst [vmem:[#allocation107_spill] sm:$0xff] %v9497_v55  ;;  %2731 = vmatpush.msra.mxu1 %v9515_v6  ;;  %v9521_v55 = vld [vmem:[%s10106_s2 + $0x298] sm:$0xff] }
 0x548   :  { %11576 = vst [vmem:[#allocation108_spill] sm:$0xff] %v9503_v9  ;;  %2771 = vmatpush.msra.mxu3 %v9521_v55  ;;  %v9527_v9 = vld [vmem:[%s10106_s2 + $0x1f0] sm:$0xff] }
 0x549   :  { %11577 = vst [vmem:[#allocation109_spill] sm:$0xff] %v9509_v35  ;;  %2700 = vmatpush.msra.mxu0 %v9527_v9  ;;  %v9533_v35 = vld [vmem:[%s10106_s2 + $0x1f8] sm:$0xff] }
 0x54a   :  { %11578 = vst [vmem:[#allocation110_spill] sm:$0xff] %v9515_v6  ;;  %2740 = vmatpush.msra.mxu2 %v9533_v35  ;;  %v9539_v6 = vld [vmem:[%s10106_s2 + $0x270] sm:$0xff]  ;;  %v2322_v25 = vpop.f32.mrf.mxu3 }
 0x54b   :  { %11579 = vst [vmem:[#allocation111_spill] sm:$0xff] %v9521_v55  ;;  %2732 = vmatpush.msra.mxu1 %v9539_v6  ;;  %v9545_v55 = vld [vmem:[%s10106_s2 + $0x278] sm:$0xff] }
 0x54c   :  { %11580 = vst [vmem:[#allocation112_spill] sm:$0xff] %v9527_v9  ;;  %2772 = vmatpush.msra.mxu3 %v9545_v55  ;;  %v9551_v9 = vld [vmem:[%s10106_s2 + $0x1d0] sm:$0xff] }
 0x54d   :  { %11581 = vst [vmem:[#allocation113_spill] sm:$0xff] %v9533_v35  ;;  %2701 = vmatpush.msra.mxu0 %v9551_v9  ;;  %v9557_v35 = vld [vmem:[%s10106_s2 + $0x1d8] sm:$0xff] }
 0x54e   :  { %11582 = vst [vmem:[#allocation114_spill] sm:$0xff] %v9539_v6  ;;  %2741 = vmatpush.msra.mxu2 %v9557_v35  ;;  %v9563_v6 = vld [vmem:[%s10106_s2 + $0x250] sm:$0xff] }
 0x54f   :  { %11583 = vst [vmem:[#allocation115_spill] sm:$0xff] %v9545_v55  ;;  %2733 = vmatpush.msra.mxu1 %v9563_v6  ;;  %v9569_v55 = vld [vmem:[%s10106_s2 + $0x258] sm:$0xff] }
 0x550   :  { %11584 = vst [vmem:[#allocation116_spill] sm:$0xff] %v9551_v9  ;;  %2773 = vmatpush.msra.mxu3 %v9569_v55  ;;  %v9575_v9 = vld [vmem:[%s10106_s2 + $0x1b0] sm:$0xff] }
 0x551   :  { %11585 = vst [vmem:[#allocation117_spill] sm:$0xff] %v9557_v35  ;;  %2702 = vmatpush.msra.mxu0 %v9575_v9  ;;  %v9581_v35 = vld [vmem:[%s10106_s2 + $0x1b8] sm:$0xff] }
 0x552   :  { %11586 = vst [vmem:[#allocation118_spill] sm:$0xff] %v9563_v6  ;;  %2742 = vmatpush.msra.mxu2 %v9581_v35  ;;  %v9587_v6 = vld [vmem:[%s10106_s2 + $0x230] sm:$0xff] }
 0x553   :  { %11587 = vst [vmem:[#allocation119_spill] sm:$0xff] %v9569_v55  ;;  %2734 = vmatpush.msra.mxu1 %v9587_v6  ;;  %v9593_v55 = vld [vmem:[%s10106_s2 + $0x238] sm:$0xff] }
 0x554   :  { %11588 = vst [vmem:[#allocation120_spill] sm:$0xff] %v9575_v9  ;;  %2774 = vmatpush.msra.mxu3 %v9593_v55  ;;  %v9599_v9 = vld [vmem:[%s10106_s2 + $0x190] sm:$0xff] }
 0x555   :  { %11589 = vst [vmem:[#allocation121_spill] sm:$0xff] %v9581_v35  ;;  %2703 = vmatpush.msra.mxu0 %v9599_v9  ;;  %v9605_v35 = vld [vmem:[%s10106_s2 + $0x198] sm:$0xff] }
 0x556   :  { %11590 = vst [vmem:[#allocation122_spill] sm:$0xff] %v9587_v6  ;;  %2743 = vmatpush.msra.mxu2 %v9605_v35  ;;  %v9611_v6 = vld [vmem:[%s10106_s2 + $0x210] sm:$0xff] }
 0x557   :  { %11591 = vst [vmem:[#allocation123_spill] sm:$0xff] %v9593_v55  ;;  %2735 = vmatpush.msra.mxu1 %v9611_v6  ;;  %v9617_v55 = vld [vmem:[%s10106_s2 + $0x218] sm:$0xff] }
 0x558   :  { %11592 = vst [vmem:[#allocation124_spill] sm:$0xff] %v9599_v9  ;;  %2775 = vmatpush.msra.mxu3 %v9617_v55  ;;  %v9623_v9 = vld [vmem:[%s10106_s2 + $0x170] sm:$0xff] }
 0x559   :  { %11593 = vst [vmem:[#allocation125_spill] sm:$0xff] %v9605_v35  ;;  %2704 = vmatpush.msra.mxu0 %v9623_v9  ;;  %v9629_v35 = vld [vmem:[%s10106_s2 + $0x178] sm:$0xff] }
 0x55a   :  { %11594 = vst [vmem:[#allocation126_spill] sm:$0xff] %v9611_v6  ;;  %2744 = vmatpush.msra.mxu2 %v9629_v35  ;;  %v9635_v6 = vld [vmem:[%s10106_s2 + $0x150] sm:$0xff] }
 0x55b   :  { %11595 = vst [vmem:[#allocation127_spill] sm:$0xff] %v9617_v55  ;;  %2705 = vmatpush.msra.mxu0 %v9635_v6  ;;  %v9641_v55 = vld [vmem:[%s10106_s2 + $0x158] sm:$0xff] }
 0x55c   :  { %11596 = vst [vmem:[#allocation128_spill] sm:$0xff] %v9623_v9  ;;  %2745 = vmatpush.msra.mxu2 %v9641_v55  ;;  %v9647_v9 = vld [vmem:[%s10106_s2 + $0x130] sm:$0xff] }
 0x55d   :  { %11597 = vst [vmem:[#allocation129_spill] sm:$0xff] %v9629_v35  ;;  %2706 = vmatpush.msra.mxu0 %v9647_v9  ;;  %v9653_v35 = vld [vmem:[%s10106_s2 + $0x138] sm:$0xff]  ;;  %v2262_v60 = vpop.f32.mrf.mxu0 }
 0x55e   :  { %11598 = vst [vmem:[#allocation130_spill] sm:$0xff] %v9635_v6  ;;  %2746 = vmatpush.msra.mxu2 %v9653_v35  ;;  %v9659_v6 = vld [vmem:[%s10106_s2 + $0x110] sm:$0xff]  ;;  %v2263_v0 = vadd.f32 %v2262_v60, %v11466_v53 }
 0x55f   :  { %11599 = vst [vmem:[#allocation131_spill] sm:$0xff] %v9641_v55  ;;  %2707 = vmatpush.msra.mxu0 %v9659_v6  ;;  %v9665_v55 = vld [vmem:[%s10106_s2 + $0x118] sm:$0xff] }
 0x560   :  { %11600 = vst [vmem:[#allocation132_spill] sm:$0xff] %v9647_v9  ;;  %2747 = vmatpush.msra.mxu2 %v9665_v55  ;;  %v9671_v9 = vld [vmem:[%s10106_s2 + $0xf0] sm:$0xff] }
 0x561   :  { %11601 = vst [vmem:[#allocation133_spill] sm:$0xff] %v9653_v35  ;;  %2708 = vmatpush.msra.mxu0 %v9671_v9  ;;  %v9677_v35 = vld [vmem:[%s10106_s2 + $0xf8] sm:$0xff] }
 0x562   :  { %11602 = vst [vmem:[#allocation134_spill] sm:$0xff] %v9659_v6  ;;  %2748 = vmatpush.msra.mxu2 %v9677_v35  ;;  %v9683_v6 = vld [vmem:[%s10106_s2 + $0xd0] sm:$0xff] }
 0x563   :  { %11603 = vst [vmem:[#allocation135_spill] sm:$0xff] %v9665_v55  ;;  %2709 = vmatpush.msra.mxu0 %v9683_v6  ;;  %v9689_v55 = vld [vmem:[%s10106_s2 + $0xd8] sm:$0xff]  ;;  %v2302_v20 = vpop.f32.mrf.mxu2 }
 0x564   :  { %11604 = vst [vmem:[#allocation136_spill] sm:$0xff] %v9671_v9  ;;  %2749 = vmatpush.msra.mxu2 %v9689_v55  ;;  %v9695_v9 = vld [vmem:[%s10106_s2 + $0xb0] sm:$0xff]  ;;  %v2303_v62 = vadd.f32 %v2302_v20, %v11467_v51 }
 0x565   :  { %11605 = vst [vmem:[#allocation137_spill] sm:$0xff] %v9677_v35  ;;  %2710 = vmatpush.msra.mxu0 %v9695_v9  ;;  %v9701_v35 = vld [vmem:[%s10106_s2 + $0xb8] sm:$0xff] }
 0x566   :  { %11606 = vst [vmem:[#allocation138_spill] sm:$0xff] %v9683_v6  ;;  %2750 = vmatpush.msra.mxu2 %v9701_v35  ;;  %v9707_v6 = vld [vmem:[%s10106_s2 + $0x90] sm:$0xff] }
 0x567   :  { %11607 = vst [vmem:[#allocation139_spill] sm:$0xff] %v9689_v55  ;;  %2711 = vmatpush.msra.mxu0 %v9707_v6  ;;  %v9713_v55 = vld [vmem:[%s10106_s2 + $0x98] sm:$0xff] }
 0x568   :  { %11608 = vst [vmem:[#allocation140_spill] sm:$0xff] %v9695_v9  ;;  %2751 = vmatpush.msra.mxu2 %v9713_v55  ;;  %v9719_v9 = vld [vmem:[%s10106_s2 + $0x70] sm:$0xff] }
 0x569   :  { %11609 = vst [vmem:[#allocation141_spill] sm:$0xff] %v9701_v35  ;;  %2712 = vmatpush.msra.mxu0 %v9719_v9  ;;  %v9725_v35 = vld [vmem:[%s10106_s2 + $0x78] sm:$0xff] }
 0x56a   :  { %11610 = vst [vmem:[#allocation142_spill] sm:$0xff] %v9707_v6  ;;  %2752 = vmatpush.msra.mxu2 %v9725_v35  ;;  %v9731_v6 = vld [vmem:[%s10106_s2 + $0x50] sm:$0xff] }
 0x56b   :  { %11611 = vst [vmem:[#allocation143_spill] sm:$0xff] %v9713_v55  ;;  %2713 = vmatpush.msra.mxu0 %v9731_v6  ;;  %v9737_v55 = vld [vmem:[%s10106_s2 + $0x58] sm:$0xff] }
 0x56c   :  { %11612 = vst [vmem:[#allocation144_spill] sm:$0xff] %v9719_v9  ;;  %2753 = vmatpush.msra.mxu2 %v9737_v55  ;;  %v9743_v9 = vld [vmem:[%s10106_s2 + $0x30] sm:$0xff]  ;;  %v2382_v53 = vpop.f32.mrf.mxu2 }
 0x56d   :  { %11613 = vst [vmem:[#allocation145_spill] sm:$0xff] %v9725_v35  ;;  %2714 = vmatpush.msra.mxu0 %v9743_v9  ;;  %v9749_v35 = vld [vmem:[%s10106_s2 + $0x38] sm:$0xff] }
 0x56e   :  { %11614 = vst [vmem:[#allocation146_spill] sm:$0xff] %v9731_v6  ;;  %2754 = vmatpush.msra.mxu2 %v9749_v35  ;;  %v9755_v6 = vld [vmem:[%s10106_s2 + $0x10] sm:$0xff] }
 0x56f   :  { %11615 = vst [vmem:[#allocation147_spill] sm:$0xff] %v9737_v55  ;;  %2715 = vmatpush.msra.mxu0 %v9755_v6  ;;  %v9761_v55 = vld [vmem:[%s10106_s2 + $0x18] sm:$0xff] }
 0x570   :  { %11616 = vst [vmem:[#allocation148_spill] sm:$0xff] %v9743_v9  ;;  %2755 = vmatpush.msra.mxu2 %v9761_v55  ;;  %v2282_v9 = vpop.f32.mrf.mxu1 }
 0x571   :  { %11617 = vst [vmem:[#allocation149_spill] sm:$0xff] %v9749_v35  ;;  %v2283_v28 = vadd.f32 %v2282_v9, %v2263_v0  ;;  %v2342_v9 = vpop.f32.mrf.mxu0 }
 0x572   :  { %11618 = vst [vmem:[#allocation150_spill] sm:$0xff] %v9755_v6  ;;  %v2323_v6 = vadd.f32 %v2322_v25, %v2303_v62  ;;  %v3282_v25 = vld [vmem:[%s10107_s0 + $0xd8] sm:$0xff] }
 0x573   :  { %11619 = vst [vmem:[#allocation151_spill] sm:$0xff] %v9761_v55  ;;  %v3276_v10 = vmul.f32 -1.442695, %v2283_v28  ;;  %v2402_v55 = vpop.f32.mrf.mxu3  ;;  %v2383_v28 = vadd.f32 %v2382_v53, %v11468_v19 }
 0x574   :  { %v3277_v40 = vmul.f32 -1.442695, %v2323_v6 }
 0x575   :  { %3476 = vpow2.f32 %v3276_v10  ;;  %v2403_v20 = vadd.f32 %v2402_v55, %v2383_v28 }
 0x576   :  { %3478 = vpow2.f32 %v3277_v40 }
 0x577   :  { %v3278_v51 = vmul.f32 -1.442695, %v2403_v20 }
 0x578   :  { %v2362_v35 = vpop.f32.mrf.mxu1 }
 0x57b   :  { %v3477_v50 = vpop.eup %3476  ;;  %v2550_v6 = vpop.f32.mrf.mxu3 }
 0x57c   :  { %v2408_v60 = vadd.f32 1.0, %v3477_v50  ;;  %v3479_v10 = vpop.eup %3478  ;;  %v2343_v50 = vadd.f32 %v2342_v9, %v11469_v24 }
 0x57d   :  { %v2427_v62 = vadd.f32 1.0, %v3479_v10 }
 0x57e   :  { %3480 = vrcp.f32 %v2408_v60  ;;  %v2363_v19 = vadd.f32 %v2362_v35, %v2343_v50  ;;  %v2420_v20 = vand.u32 2147483648, %v2408_v60  ;;  %vm2414_vm5 = vweird.f32 %v2408_v60 }
 0x57f   :  { %v2418_v9 = vand.u32 2147483647, %v2408_v60  ;;  %v2439_v35 = vand.u32 2147483648, %v2427_v62  ;;  %vm2433_vm8 = vweird.f32 %v2427_v62 }
 0x580   :  { %v2510_v37 = vpop.f32.mrf.mxu1  ;;  %v2421_v50 = vor.u32 1.1754944e-38, %v2420_v20 }
 0x581   :  { %v2554_v32 = vadd.f32 %v3280_v54, %v2510_v37  ;;  %vm2419_vm9 = vcmp.eq.f32.partialorder %v2418_v9, 8.507059e+37 }
 0x583   :  { %v3284_v0 = vmul.f32 -1.442695, %v2554_v32  ;;  %v2556_v32 = vadd.f32 %v3282_v25, %v2550_v6 }
 0x584   :  { %v3481_v37 = vpop.eup %3480 }
 0x585   :  { %3482 = vpow2.f32 %v3284_v0  ;;  %v2410_v40 = vmul.f32 %v3481_v37, %v2408_v60  ;;  %v3285_v55 = vmul.f32 -1.442695, %v2556_v32  ;;  %vm2415_vm4 = vweird.f32 %v3481_v37  ;;  %v2490_v60 = vpop.f32.mrf.mxu0 }
 0x586   :  { %3484 = vrcp.f32 %v2427_v62  ;;  %vm9779_vm6 = vmor %vm2414_vm5, %vm2415_vm4 }
 0x587   :  { %3486 = vpow2.f32 %v3278_v51  ;;  %v2411_v54 = vsub.f32 1.0, %v2410_v40  ;;  %v3279_v51 = vld [vmem:[%s10107_s0 + $0xc0] sm:$0xff] }
 0x588   :  { %3488 = vtanh.f32 %v2363_v19  ;;  %v2553_v40 = vadd.f32 %v3279_v51, %v2490_v60 }
 0x589   :  { %v2412_v5 = vmul.f32 %v3481_v37, %v2411_v54  ;;  %3490 = vpow2.f32 %v3285_v55 }
 0x58b   :  { %v3483_v53 = vpop.eup %3482  ;;  %v2413_v16 = vadd.f32 %v3481_v37, %v2412_v5  ;;  %v2437_v5 = vand.u32 2147483647, %v2427_v62 }
 0x58c   :  { %v3485_v28 = vpop.eup %3484  ;;  %v9774_v14 = vadd.f32 1.0, %v3483_v53  ;;  %v2440_v53 = vor.u32 1.1754944e-38, %v2439_v35 }
 0x58d   :  { %v3487_v0 = vpop.eup %3486  ;;  %v2429_v10 = vmul.f32 %v3485_v28, %v2427_v62  ;;  %vm2434_vm7 = vweird.f32 %v3485_v28  ;;  %v2417_v19 = vsel %vm9779_vm6, %v3481_v37, %v2413_v16  ;;  %vm2438_vm11 = vcmp.eq.f32.partialorder %v2437_v5, 8.507059e+37 }
 0x58e   :  { %v2447_v7 = vadd.f32 1.0, %v3487_v0  ;;  %v3489_v54 = vpop.eup %3488  ;;  %vm2435_vm10 = vmor %vm2433_vm8, %vm2434_vm7  ;;  %v2422_v55 = vsel %vm2419_vm9, %v2421_v50, %v2417_v19  ;;  %v3283_v0 = vmul.f32 -1.442695, %v2553_v40  ;;  %vm2585_vm1 = vweird.f32 %v9774_v14 }
 0x58f   :  { %v2430_v1 = vsub.f32 1.0, %v2429_v10  ;;  %v3491_v10 = vpop.eup %3490  ;;  %v2464_v20 = vmul.f32 %v3489_v54, %v2422_v55  ;;  %v2530_v55 = vpop.f32.mrf.mxu2 }
 0x590   :  { %3492 = vrcp.f32 %v2447_v7  ;;  %v9793_v25 = vadd.f32 1.0, %v3491_v10  ;;  %v2459_v5 = vand.u32 2147483648, %v2447_v7  ;;  %vm2453_vm13 = vweird.f32 %v2447_v7 }
 0x591   :  { %v2431_v6 = vmul.f32 %v3485_v28, %v2430_v1  ;;  %3494 = vrcp.f32 %v9774_v14 }
 0x592   :  { %3496 = vpow2.f32 %v3283_v0  ;;  %vm2605_vm9 = vweird.f32 %v9793_v25 }
 0x593   :  { %v2432_v32 = vadd.f32 %v3485_v28, %v2431_v6  ;;  %v2457_v6 = vand.u32 2147483647, %v2447_v7 }
 0x595   :  { %v2436_v24 = vsel %vm2435_vm10, %v3485_v28, %v2432_v32  ;;  %vm2458_vm15 = vcmp.eq.f32.partialorder %v2457_v6, 8.507059e+37 }
 0x596   :  { %v3493_v1 = vpop.eup %3492  ;;  %v2441_v8 = vsel %vm2438_vm11, %v2440_v53, %v2436_v24  ;;  %v3281_v53 = vld [vmem:[%s10107_s0 + $0xd0] sm:$0xff] }
 0x597   :  { %v9786_v16 = vpop.eup %3494  ;;  %v2463_v37 = vmul.f32 %v2441_v8, %v8606_v22  ;;  %v2449_v51 = vmul.f32 %v3493_v1, %v2447_v7  ;;  %vm2454_vm12 = vweird.f32 %v3493_v1  ;;  %v2460_v8 = vor.u32 1.1754944e-38, %v2459_v5 }
 0x598   :  { %v2581_v35 = vmul.f32 %v9786_v16, %v9774_v14  ;;  %v3497_v24 = vpop.eup %3496  ;;  %vm2455_vm14 = vmor %vm2453_vm13, %vm2454_vm12  ;;  %vm2586_vm0 = vweird.f32 %v9786_v16 }
 0x599   :  { %v9789_v62 = vadd.f32 %v2464_v20, %v2463_v37  ;;  %v2450_v9 = vsub.f32 1.0, %v2449_v51  ;;  %v2560_v19 = vadd.f32 1.0, %v3497_v24  ;;  %v2555_v37 = vadd.f32 %v3281_v53, %v2530_v55  ;;  %vm9814_vm2 = vmor %vm2585_vm1, %vm2586_vm0  ;;  %v11640_v53 = vld [vmem:[#allocation9_spill] sm:$0xff]  ;;  %v11641_v55 = vld [vmem:[#allocation56_spill] sm:$0xff] }
 0x59a   :  { %v2582_v22 = vsub.f32 1.0, %v2581_v35  ;;  %v2591_v51 = vand.u32 2147483648, %v9774_v14 }
 0x59b   :  { %3498 = vtanh.f32 %v9789_v62  ;;  %v2451_v28 = vmul.f32 %v3493_v1, %v2450_v9  ;;  %vm2566_vm4 = vweird.f32 %v2560_v19 }
 0x59c   :  { %3500 = vrcp.f32 %v9793_v25  ;;  %v2583_v54 = vmul.f32 %v9786_v16, %v2582_v22  ;;  %v2592_v24 = vor.u32 1.1754944e-38, %v2591_v51  ;;  %v11648_v51 = vld [vmem:[#allocation61_spill] sm:$0xff] }
 0x59d   :  { %v2452_v60 = vadd.f32 %v3493_v1, %v2451_v28  ;;  %3502 = vrcp.f32 %v2560_v19  ;;  %v2572_v28 = vand.u32 2147483648, %v2560_v19 }
 0x59e   :  { %v2584_v20 = vadd.f32 %v9786_v16, %v2583_v54  ;;  %3504 = vtanh.f32 %v2555_v37  ;;  %v11639_v54 = vld [vmem:[#allocation55_spill] sm:$0xff] }
 0x59f   :  { %v2456_v50 = vsel %vm2455_vm14, %v3493_v1, %v2452_v60  ;;  %v11645_v37 = vld [vmem:[#allocation59_spill] sm:$0xff] }
 0x5a0   :  { %v2461_v32 = vsel %vm2458_vm15, %v2460_v8, %v2456_v50  ;;  %v11636_v8 = vld [vmem:[#allocation53_spill] sm:$0xff]  ;;  %v4141_v50 = vld [vmem:[%s10105_s1 + $0xc0] sm:$0xff] }
 0x5a1   :  { %v3499_v40 = vpop.eup %3498 }
 0x5a2   :  { %v2467_v0 = vmul.f32 %v3499_v40, %v2461_v32  ;;  %v9801_v10 = vpop.eup %3500  ;;  %v11637_v40 = vld [vmem:[#allocation7_spill] sm:$0xff]  ;;  %v11638_v32 = vld [vmem:[#allocation54_spill] sm:$0xff] }
 0x5a3   :  { %v3503_v7 = vpop.eup %3502  ;;  %v2601_v9 = vmul.f32 %v9801_v10, %v9793_v25  ;;  %vm2606_vm8 = vweird.f32 %v9801_v10 }
 0x5a4   :  { %2656 = vmatmul.f32.vlgmr.msrb.gmra.mxu1 %v2467_v0  ;;  %2696 = vmatmul.f32.vlgmr.msrb.gmra.mxu3 %v2467_v0  ;;  %v2562_v1 = vmul.f32 %v3503_v7, %v2560_v19  ;;  %vm2567_vm3 = vweird.f32 %v3503_v7  ;;  %vm2607_vm10 = vmor %vm2605_vm9, %vm2606_vm8 }
 0x5a5   :  { %2868 = vmatpush.msrb.mxu1 %v8626_v34  ;;  %2908 = vmatpush.msrb.mxu3 %v8632_v44  ;;  %v2589_v34 = vand.u32 2147483647, %v9774_v14  ;;  %v2602_v6 = vsub.f32 1.0, %v2601_v9  ;;  %vm2568_vm6 = vmor %vm2566_vm4, %vm2567_vm3  ;;  %v11649_v9 = vld [vmem:[#allocation15_spill] sm:$0xff] }
 0x5a6   :  { %v2563_v35 = vsub.f32 1.0, %v2562_v1  ;;  %v11646_v1 = vld [vmem:[#allocation13_spill] sm:$0xff]  ;;  %v11652_v44 = vld [vmem:[#allocation63_spill] sm:$0xff] }
 0x5a7   :  { %2869 = vmatpush.msrb.mxu1 %v8644_v4  ;;  %2909 = vmatpush.msrb.mxu3 %v8650_v43  ;;  %v2570_v4 = vand.u32 2147483647, %v2560_v19  ;;  %v2588_v43 = vsel %vm9814_vm2, %v9786_v16, %v2584_v20  ;;  %vm2590_vm5 = vcmp.eq.f32.partialorder %v2589_v34, 8.507059e+37  ;;  %v3505_v16 = vpop.eup %3504  ;;  %v2603_v22 = vmul.f32 %v9801_v10, %v2602_v6  ;;  %v11647_v20 = vld [vmem:[#allocation60_spill] sm:$0xff]  ;;  %v11658_v6 = vld [vmem:[#allocation66_spill] sm:$0xff] }
 0x5a8   :  { %v2564_v5 = vmul.f32 %v3503_v7, %v2563_v35  ;;  %v11650_v35 = vld [vmem:[#allocation62_spill] sm:$0xff]  ;;  %v11651_v34 = vld [vmem:[#allocation8_spill] sm:$0xff] }
 0x5a9   :  { %2870 = vmatpush.msrb.mxu1 %v8663_v38  ;;  %2910 = vmatpush.msrb.mxu3 %v8669_v23  ;;  %v2573_v38 = vor.u32 1.1754944e-38, %v2572_v28  ;;  %v2593_v23 = vsel %vm2590_vm5, %v2592_v24, %v2588_v43  ;;  %vm2571_vm7 = vcmp.eq.f32.partialorder %v2570_v4, 8.507059e+37  ;;  %v11653_v28 = vld [vmem:[#allocation17_spill] sm:$0xff]  ;;  %v11655_v4 = vld [vmem:[#allocation10_spill] sm:$0xff]  ;;  %v11657_v24 = vld [vmem:[#allocation19_spill] sm:$0xff] }
 0x5aa   :  { %v2565_v14 = vadd.f32 %v3503_v7, %v2564_v5  ;;  %v11654_v5 = vld [vmem:[#allocation64_spill] sm:$0xff]  ;;  %v11656_v43 = vld [vmem:[#allocation65_spill] sm:$0xff] }
 0x5ab   :  { %2871 = vmatpush.msrb.mxu1 %v8679_v36  ;;  %2911 = vmatpush.msrb.mxu3 %v8685_v46  ;;  %v2615_v46 = vmul.f32 %v2593_v23, %v8727_v18  ;;  %v11661_v23 = vld [vmem:[#allocation20_spill] sm:$0xff] }
 0x5ac   :  { %2736 = vmatmul.f32.vlgmr.msra.gmra.mxu1 %v2467_v0  ;;  %2776 = vmatmul.f32.vlgmr.msra.gmra.mxu3 %v2467_v0  ;;  %v2569_v60 = vsel %vm2568_vm6, %v3503_v7, %v2565_v14  ;;  %v11642_v0 = vld [vmem:[#allocation57_spill] sm:$0xff]  ;;  %v11644_v7 = vld [vmem:[#allocation58_spill] sm:$0xff]  ;;  %v11659_v14 = vld [vmem:[#allocation12_spill] sm:$0xff] }
 0x5ad   :  { %2872 = vmatpush.msrb.mxu1 %v8692_v2  ;;  %2912 = vmatpush.msrb.mxu3 %v8698_v61  ;;  %v2574_v36 = vsel %vm2571_vm7, %v2573_v38, %v2569_v60  ;;  %v2604_v61 = vadd.f32 %v9801_v10, %v2603_v22  ;;  %v11660_v38 = vld [vmem:[#allocation69_spill] sm:$0xff]  ;;  %v11662_v60 = vld [vmem:[#allocation70_spill] sm:$0xff] }
 0x5ae   :  { %v2616_v19 = vmul.f32 %v3505_v16, %v2574_v36  ;;  %v11663_v16 = vld [vmem:[#allocation14_spill] sm:$0xff]  ;;  %v11664_v22 = vld [vmem:[#allocation73_spill] sm:$0xff]  ;;  %v11665_v36 = vld [vmem:[#allocation23_spill] sm:$0xff] }
 0x5af   :  { %2873 = vmatpush.msrb.mxu1 %v8705_v59  ;;  %2913 = vmatpush.msrb.mxu3 %v8711_v21  ;;  %v2611_v59 = vand.u32 2147483648, %v9793_v25  ;;  %v2609_v21 = vand.u32 2147483647, %v9793_v25  ;;  %v11635_v25 = vld [vmem:[#allocation52_spill] sm:$0xff] }
 0x5b0   :  { %v9833_v2 = vadd.f32 %v2616_v19, %v2615_v46  ;;  %v11666_v46 = vld [vmem:[#allocation74_spill] sm:$0xff]  ;;  %v11667_v19 = vld [vmem:[#allocation16_spill] sm:$0xff] }
 0x5b1   :  { %2874 = vmatpush.msrb.mxu1 %v8718_v58  ;;  %2914 = vmatpush.msrb.mxu3 %v8724_v26  ;;  %v2608_v58 = vsel %vm2607_vm10, %v9801_v10, %v2604_v61  ;;  %v2612_v26 = vor.u32 1.1754944e-38, %v2611_v59  ;;  %vm2610_vm11 = vcmp.eq.f32.partialorder %v2609_v21, 8.507059e+37  ;;  %v11643_v10 = vld [vmem:[#allocation11_spill] sm:$0xff]  ;;  %v11668_v61 = vld [vmem:[#allocation77_spill] sm:$0xff]  ;;  %v11670_v21 = vld [vmem:[#allocation78_spill] sm:$0xff] }
 0x5b2   :  { %3506 = vtanh.f32 %v9833_v2  ;;  %v11669_v59 = vld [vmem:[#allocation25_spill] sm:$0xff] }
 0x5b3   :  { %2875 = vmatpush.msrb.mxu1 %v8734_v29  ;;  %2915 = vmatpush.msrb.mxu3 %v8740_v49  ;;  %v2613_v29 = vsel %vm2610_vm11, %v2612_v26, %v2608_v58  ;;  %v11671_v58 = vld [vmem:[#allocation18_spill] sm:$0xff]  ;;  %v11672_v26 = vld [vmem:[#allocation81_spill] sm:$0xff] }
 0x5b5   :  { %2876 = vmatpush.msrb.mxu1 %v8750_v30  ;;  %2916 = vmatpush.msrb.mxu3 %v8756_v12  ;;  %v4132_v30 = vld [vmem:[%s10105_s1 + $0x1e0] sm:$0xff] }
 0x5b6   :  { %v4133_v12 = vld [vmem:[%s10105_s1 + $0x1c0] sm:$0xff] }
 0x5b7   :  { %2877 = vmatpush.msrb.mxu1 %v8763_v15  ;;  %2917 = vmatpush.msrb.mxu3 %v8769_v42  ;;  %v4134_v15 = vld [vmem:[%s10105_s1 + $0x1a0] sm:$0xff] }
 0x5b8   :  { %v3507_v18 = vpop.eup %3506  ;;  %v4135_v42 = vld [vmem:[%s10105_s1 + $0x180] sm:$0xff] }
 0x5b9   :  { %2878 = vmatpush.msrb.mxu1 %v8775_v41  ;;  %2918 = vmatpush.msrb.mxu3 %v8781_v57  ;;  %v9850_v49 = vmul.f32 %v3507_v18, %v2613_v29  ;;  %v4136_v41 = vld [vmem:[%s10105_s1 + $0x160] sm:$0xff]  ;;  %v11673_v18 = vld [vmem:[#allocation27_spill] sm:$0xff]  ;;  %v11674_v29 = vld [vmem:[#allocation21_spill] sm:$0xff] }
 0x5ba   :  { %v11624_v57 = vld [vmem:[#allocation46_spill] sm:$0xff] }
 0x5bb   :  { %2879 = vmatpush.msrb.mxu1 %v8789_v17  ;;  %2919 = vmatpush.msrb.mxu3 %v8795_v52  ;;  %v4137_v17 = vld [vmem:[%s10105_s1 + $0x140] sm:$0xff] }
 0x5bc   :  { %2636 = vmatmul.f32.vlgmr.msrb.gmra.mxu0 %v9850_v49  ;;  %2676 = vmatmul.f32.vlgmr.msrb.gmra.mxu2 %v9850_v49  ;;  %v11625_v52 = vld [vmem:[#allocation2_spill] sm:$0xff] }
 0x5bd   :  { %2848 = vmatpush.msrb.mxu0 %v4132_v30  ;;  %2888 = vmatpush.msrb.mxu2 %v8804_v63  ;;  %v11626_v63 = vld [vmem:[#allocation47_spill] sm:$0xff]  ;;  %v11676_v30 = vld [vmem:[#allocation82_spill] sm:$0xff] }
 0x5be   :  { %2880 = vmatpush.msrb.mxu1 %v8810_v56  ;;  %2920 = vmatpush.msrb.mxu3 %v8816_v45  ;;  %v11627_v56 = vld [vmem:[#allocation3_spill] sm:$0xff]  ;;  %v4138_v45 = vld [vmem:[%s10105_s1 + $0x120] sm:$0xff] }
 0x5bf   :  { %2849 = vmatpush.msrb.mxu0 %v4133_v12  ;;  %2889 = vmatpush.msrb.mxu2 %v8823_v27  ;;  %v11628_v27 = vld [vmem:[#allocation48_spill] sm:$0xff]  ;;  %v11677_v12 = vld [vmem:[#allocation22_spill] sm:$0xff] }
 0x5c0   :  { %2881 = vmatpush.msrb.mxu1 %v8829_v3  ;;  %2921 = vmatpush.msrb.mxu3 %v8835_v33  ;;  %v11629_v3 = vld [vmem:[#allocation49_spill] sm:$0xff]  ;;  %v11630_v33 = vld [vmem:[#allocation4_spill] sm:$0xff] }
 0x5c1   :  { %2850 = vmatpush.msrb.mxu0 %v4134_v15  ;;  %2890 = vmatpush.msrb.mxu2 %v8842_v31  ;;  %v4139_v31 = vld [vmem:[%s10105_s1 + $0x100] sm:$0xff]  ;;  %v11678_v15 = vld [vmem:[#allocation85_spill] sm:$0xff] }
 0x5c2   :  { %2882 = vmatpush.msrb.mxu1 %v8848_v11  ;;  %2922 = vmatpush.msrb.mxu3 %v8854_v47  ;;  %v11631_v11 = vld [vmem:[#allocation50_spill] sm:$0xff]  ;;  %v11632_v47 = vld [vmem:[#allocation51_spill] sm:$0xff] }
 0x5c3   :  { %2851 = vmatpush.msrb.mxu0 %v4135_v42  ;;  %2891 = vmatpush.msrb.mxu2 %v8861_v48  ;;  %v11633_v48 = vld [vmem:[#allocation5_spill] sm:$0xff]  ;;  %v11679_v42 = vld [vmem:[#allocation30_spill] sm:$0xff] }
 0x5c4   :  { %2883 = vmatpush.msrb.mxu1 %v8867_v13  ;;  %2923 = vmatpush.msrb.mxu3 %v8873_v39  ;;  %v4140_v13 = vld [vmem:[%s10105_s1 + $0xe0] sm:$0xff] }
 0x5c5   :  { %2716 = vmatmul.f32.vlgmr.msra.gmra.mxu0 %v9850_v49  ;;  %2756 = vmatmul.f32.vlgmr.msra.gmra.mxu2 %v9850_v49  ;;  %v11634_v39 = vld [vmem:[#allocation6_spill] sm:$0xff] }
 0x5c6   :  { %2852 = vmatpush.msrb.mxu0 %v4136_v41  ;;  %2884 = vmatmul.f32.vlgmr.msrb.gmra.mxu1 %v9850_v49  ;;  %v11680_v41 = vld [vmem:[#allocation86_spill] sm:$0xff] }
 0x5c7   :  { %2892 = vmatpush.msrb.mxu2 %v11624_v57  ;;  %2924 = vmatmul.f32.vlgmr.msrb.gmra.mxu3 %v9850_v49  ;;  %v11681_v57 = vld [vmem:[#allocation24_spill] sm:$0xff] }
 0x5c8   :  { %2853 = vmatpush.msrb.mxu0 %v4137_v17  ;;  %3015 = vmatpush.msra.mxu1 %v11625_v52  ;;  %v11682_v17 = vld [vmem:[#allocation89_spill] sm:$0xff]  ;;  %v11683_v52 = vld [vmem:[#allocation32_spill] sm:$0xff] }
 0x5c9   :  { %2893 = vmatpush.msrb.mxu2 %v11626_v63  ;;  %3055 = vmatpush.msra.mxu3 %v11627_v56  ;;  %v11684_v63 = vld [vmem:[#allocation90_spill] sm:$0xff] }
 0x5ca   :  { %2854 = vmatpush.msrb.mxu0 %v4138_v45  ;;  %3016 = vmatpush.msra.mxu1 %v11628_v27  ;;  %v11685_v56 = vld [vmem:[#allocation26_spill] sm:$0xff]  ;;  %v11687_v27 = vld [vmem:[#allocation29_spill] sm:$0xff] }
 0x5cb   :  { %2894 = vmatpush.msrb.mxu2 %v11629_v3  ;;  %3056 = vmatpush.msra.mxu3 %v11630_v33  ;;  %v11686_v45 = vld [vmem:[#allocation34_spill] sm:$0xff]  ;;  %v11688_v3 = vld [vmem:[#allocation36_spill] sm:$0xff]  ;;  %v11689_v33 = vld [vmem:[#allocation31_spill] sm:$0xff] }
 0x5cc   :  { %2855 = vmatpush.msrb.mxu0 %v4139_v31  ;;  %3017 = vmatpush.msra.mxu1 %v11631_v11  ;;  %v11690_v31 = vld [vmem:[#allocation38_spill] sm:$0xff]  ;;  %v11691_v11 = vld [vmem:[#allocation33_spill] sm:$0xff] }
 0x5cd   :  { %2895 = vmatpush.msrb.mxu2 %v11632_v47  ;;  %3057 = vmatpush.msra.mxu3 %v11633_v48  ;;  %v11692_v47 = vld [vmem:[#allocation39_spill] sm:$0xff] }
 0x5ce   :  { %2856 = vmatpush.msrb.mxu0 %v4140_v13  ;;  %3018 = vmatpush.msra.mxu1 %v11634_v39  ;;  %v11693_v48 = vld [vmem:[#allocation35_spill] sm:$0xff]  ;;  %v11694_v13 = vld [vmem:[#allocation41_spill] sm:$0xff] }
 0x5cf   :  { %2896 = vmatpush.msrb.mxu2 %v11635_v25  ;;  %3058 = vmatpush.msra.mxu3 %v11636_v8  ;;  %v11695_v39 = vld [vmem:[#allocation37_spill] sm:$0xff]  ;;  %v11696_v25 = vld [vmem:[#allocation44_spill] sm:$0xff]  ;;  %v11697_v8 = vld [vmem:[#allocation67_spill] sm:$0xff] }
 0x5d0   :  { %2857 = vmatpush.msrb.mxu0 %v4141_v50  ;;  %3019 = vmatpush.msra.mxu1 %v11637_v40  ;;  %v11698_v50 = vld [vmem:[#allocation68_spill] sm:$0xff]  ;;  %v11699_v40 = vld [vmem:[#allocation71_spill] sm:$0xff] }
 0x5d1   :  { %2897 = vmatpush.msrb.mxu2 %v11638_v32  ;;  %3059 = vmatpush.msra.mxu3 %v11639_v54  ;;  %v11700_v32 = vld [vmem:[#allocation72_spill] sm:$0xff]  ;;  %v11701_v54 = vld [vmem:[#allocation75_spill] sm:$0xff] }
 0x5d2   :  { %2858 = vmatpush.msrb.mxu0 %v11640_v53  ;;  %3020 = vmatpush.msra.mxu1 %v11641_v55  ;;  %v11702_v53 = vld [vmem:[#allocation76_spill] sm:$0xff]  ;;  %v11703_v55 = vld [vmem:[#allocation79_spill] sm:$0xff] }
 0x5d3   :  { %2898 = vmatpush.msrb.mxu2 %v11642_v0  ;;  %3060 = vmatpush.msra.mxu3 %v11643_v10  ;;  %v11704_v0 = vld [vmem:[#allocation80_spill] sm:$0xff]  ;;  %v11705_v10 = vld [vmem:[#allocation83_spill] sm:$0xff] }
 0x5d4   :  { %2859 = vmatpush.msrb.mxu0 %v11644_v7  ;;  %3021 = vmatpush.msra.mxu1 %v11645_v37  ;;  %v11706_v7 = vld [vmem:[#allocation84_spill] sm:$0xff]  ;;  %v11707_v37 = vld [vmem:[#allocation87_spill] sm:$0xff] }
 0x5d5   :  { %2899 = vmatpush.msrb.mxu2 %v11646_v1  ;;  %3061 = vmatpush.msra.mxu3 %v11647_v20  ;;  %v11708_v1 = vld [vmem:[#allocation88_spill] sm:$0xff]  ;;  %v11709_v20 = vld [vmem:[#allocation91_spill] sm:$0xff] }
 0x5d6   :  { %2860 = vmatpush.msrb.mxu0 %v11648_v51  ;;  %3022 = vmatpush.msra.mxu1 %v11649_v9  ;;  %v11710_v51 = vld [vmem:[#allocation92_spill] sm:$0xff]  ;;  %v11711_v9 = vld [vmem:[#allocation93_spill] sm:$0xff] }
 0x5d7   :  { %2900 = vmatpush.msrb.mxu2 %v11650_v35  ;;  %3062 = vmatpush.msra.mxu3 %v11651_v34  ;;  %v11712_v35 = vld [vmem:[#allocation94_spill] sm:$0xff]  ;;  %v11713_v34 = vld [vmem:[#allocation95_spill] sm:$0xff] }
 0x5d8   :  { %2861 = vmatpush.msrb.mxu0 %v11652_v44  ;;  %3023 = vmatpush.msra.mxu1 %v11653_v28  ;;  %v11714_v44 = vld [vmem:[#allocation96_spill] sm:$0xff]  ;;  %v11715_v28 = vld [vmem:[#allocation97_spill] sm:$0xff] }
 0x5d9   :  { %2901 = vmatpush.msrb.mxu2 %v11654_v5  ;;  %3063 = vmatpush.msra.mxu3 %v11655_v4  ;;  %v11716_v5 = vld [vmem:[#allocation98_spill] sm:$0xff]  ;;  %v11717_v4 = vld [vmem:[#allocation99_spill] sm:$0xff] }
 0x5da   :  { %2862 = vmatpush.msrb.mxu0 %v11656_v43  ;;  %3024 = vmatpush.msra.mxu1 %v11657_v24  ;;  %v11718_v43 = vld [vmem:[#allocation100_spill] sm:$0xff]  ;;  %v11719_v24 = vld [vmem:[#allocation101_spill] sm:$0xff] }
 0x5db   :  { %2902 = vmatpush.msrb.mxu2 %v11658_v6  ;;  %3064 = vmatpush.msra.mxu3 %v11659_v14  ;;  %v11720_v6 = vld [vmem:[#allocation102_spill] sm:$0xff]  ;;  %v11721_v14 = vld [vmem:[#allocation103_spill] sm:$0xff] }
 0x5dc   :  { %2863 = vmatpush.msrb.mxu0 %v11660_v38  ;;  %3025 = vmatpush.msra.mxu1 %v11661_v23  ;;  %v11722_v38 = vld [vmem:[#allocation104_spill] sm:$0xff]  ;;  %v11723_v23 = vld [vmem:[#allocation105_spill] sm:$0xff] }
 0x5dd   :  { %2903 = vmatpush.msrb.mxu2 %v11662_v60  ;;  %2864 = vmatmul.f32.vlgmr.msrb.gmra.mxu0 %v9850_v49  ;;  %v11724_v60 = vld [vmem:[#allocation106_spill] sm:$0xff] }
 0x5de   :  { %2904 = vmatmul.f32.vlgmr.msrb.gmra.mxu2 %v9850_v49  ;;  %3065 = vmatpush.msra.mxu3 %v11663_v16  ;;  %v11675_v49 = vld [vmem:[#allocation28_spill] sm:$0xff]  ;;  %v11725_v16 = vld [vmem:[#allocation107_spill] sm:$0xff] }
 0x5df   :  { %3026 = vmatpush.msra.mxu1 %v11664_v22  ;;  %2995 = vmatpush.msra.mxu0 %v11665_v36  ;;  %v11726_v22 = vld [vmem:[#allocation108_spill] sm:$0xff]  ;;  %v11727_v36 = vld [vmem:[#allocation109_spill] sm:$0xff] }
 0x5e0   :  { %3066 = vmatpush.msra.mxu3 %v11666_v46  ;;  %3035 = vmatpush.msra.mxu2 %v11667_v19  ;;  %v11728_v46 = vld [vmem:[#allocation110_spill] sm:$0xff]  ;;  %v11729_v19 = vld [vmem:[#allocation111_spill] sm:$0xff] }
 0x5e1   :  { %3027 = vmatpush.msra.mxu1 %v11668_v61  ;;  %2996 = vmatpush.msra.mxu0 %v11669_v59  ;;  %v11730_v61 = vld [vmem:[#allocation112_spill] sm:$0xff]  ;;  %v11731_v59 = vld [vmem:[#allocation113_spill] sm:$0xff] }
 0x5e2   :  { %3067 = vmatpush.msra.mxu3 %v11670_v21  ;;  %3036 = vmatpush.msra.mxu2 %v11671_v58  ;;  %v11732_v21 = vld [vmem:[#allocation114_spill] sm:$0xff]  ;;  %v11733_v58 = vld [vmem:[#allocation115_spill] sm:$0xff] }
 0x5e3   :  { %3028 = vmatpush.msra.mxu1 %v11672_v26  ;;  %2997 = vmatpush.msra.mxu0 %v11673_v18  ;;  %v11734_v26 = vld [vmem:[#allocation116_spill] sm:$0xff]  ;;  %v11735_v18 = vld [vmem:[#allocation117_spill] sm:$0xff] }
 0x5e4   :  { %3068 = vmatpush.msra.mxu3 %v11674_v29  ;;  %3037 = vmatpush.msra.mxu2 %v11675_v49  ;;  %v11736_v29 = vld [vmem:[#allocation118_spill] sm:$0xff]  ;;  %v11737_v49 = vld [vmem:[#allocation119_spill] sm:$0xff] }
 0x5e5   :  { %3029 = vmatpush.msra.mxu1 %v11676_v30  ;;  %2998 = vmatpush.msra.mxu0 %v11677_v12  ;;  %v11738_v30 = vld [vmem:[#allocation120_spill] sm:$0xff]  ;;  %v11739_v12 = vld [vmem:[#allocation121_spill] sm:$0xff] }
 0x5e6   :  { %3069 = vmatpush.msra.mxu3 %v11678_v15  ;;  %3038 = vmatpush.msra.mxu2 %v11679_v42  ;;  %v11740_v15 = vld [vmem:[#allocation122_spill] sm:$0xff]  ;;  %v11741_v42 = vld [vmem:[#allocation123_spill] sm:$0xff] }
 0x5e7   :  { %3030 = vmatpush.msra.mxu1 %v11680_v41  ;;  %2999 = vmatpush.msra.mxu0 %v11681_v57  ;;  %v11742_v41 = vld [vmem:[#allocation124_spill] sm:$0xff]  ;;  %v11743_v57 = vld [vmem:[#allocation125_spill] sm:$0xff] }
 0x5e8   :  { %3070 = vmatpush.msra.mxu3 %v11682_v17  ;;  %3039 = vmatpush.msra.mxu2 %v11683_v52  ;;  %v11744_v17 = vld [vmem:[#allocation126_spill] sm:$0xff]  ;;  %v11745_v52 = vld [vmem:[#allocation127_spill] sm:$0xff] }
 0x5e9   :  { %3095 = vmatpush.msrb.mxu1 %v11684_v63  ;;  %3000 = vmatpush.msra.mxu0 %v11686_v45  ;;  %v11746_v63 = vld [vmem:[#allocation128_spill] sm:$0xff]  ;;  %v11748_v45 = vld [vmem:[#allocation130_spill] sm:$0xff] }
 0x5ea   :  { %3135 = vmatpush.msrb.mxu3 %v11685_v56  ;;  %3040 = vmatpush.msra.mxu2 %v11687_v27  ;;  %v11747_v56 = vld [vmem:[#allocation129_spill] sm:$0xff]  ;;  %v11749_v27 = vld [vmem:[#allocation131_spill] sm:$0xff] }
 0x5eb   :  { %3096 = vmatpush.msrb.mxu1 %v11688_v3  ;;  %3001 = vmatpush.msra.mxu0 %v11690_v31  ;;  %v11750_v3 = vld [vmem:[#allocation132_spill] sm:$0xff]  ;;  %v11752_v31 = vld [vmem:[#allocation134_spill] sm:$0xff] }
 0x5ec   :  { %3136 = vmatpush.msrb.mxu3 %v11689_v33  ;;  %3041 = vmatpush.msra.mxu2 %v11691_v11  ;;  %v11751_v33 = vld [vmem:[#allocation133_spill] sm:$0xff]  ;;  %v11753_v11 = vld [vmem:[#allocation135_spill] sm:$0xff] }
 0x5ed   :  { %3097 = vmatpush.msrb.mxu1 %v11692_v47  ;;  %3002 = vmatpush.msra.mxu0 %v11694_v13  ;;  %v11754_v47 = vld [vmem:[#allocation136_spill] sm:$0xff]  ;;  %v11756_v13 = vld [vmem:[#allocation138_spill] sm:$0xff] }
 0x5ee   :  { %3137 = vmatpush.msrb.mxu3 %v11693_v48  ;;  %3042 = vmatpush.msra.mxu2 %v11695_v39  ;;  %v11755_v48 = vld [vmem:[#allocation137_spill] sm:$0xff]  ;;  %v11757_v39 = vld [vmem:[#allocation139_spill] sm:$0xff] }
 0x5ef   :  { %3098 = vmatpush.msrb.mxu1 %v11696_v25  ;;  %3003 = vmatpush.msra.mxu0 %v11698_v50  ;;  %v11758_v25 = vld [vmem:[#allocation140_spill] sm:$0xff]  ;;  %v11760_v50 = vld [vmem:[#allocation142_spill] sm:$0xff] }
 0x5f0   :  { %3138 = vmatpush.msrb.mxu3 %v11697_v8  ;;  %3043 = vmatpush.msra.mxu2 %v11699_v40  ;;  %v11759_v8 = vld [vmem:[#allocation141_spill] sm:$0xff]  ;;  %v11761_v40 = vld [vmem:[#allocation143_spill] sm:$0xff] }
 0x5f1   :  { %3099 = vmatpush.msrb.mxu1 %v11700_v32  ;;  %3004 = vmatpush.msra.mxu0 %v11702_v53  ;;  %v11762_v32 = vld [vmem:[#allocation144_spill] sm:$0xff]  ;;  %v11764_v53 = vld [vmem:[#allocation146_spill] sm:$0xff] }
 0x5f2   :  { %3139 = vmatpush.msrb.mxu3 %v11701_v54  ;;  %3044 = vmatpush.msra.mxu2 %v11703_v55  ;;  %v11763_v54 = vld [vmem:[#allocation145_spill] sm:$0xff]  ;;  %v11765_v55 = vld [vmem:[#allocation147_spill] sm:$0xff] }
 0x5f3   :  { %3100 = vmatpush.msrb.mxu1 %v11704_v0  ;;  %3005 = vmatpush.msra.mxu0 %v11706_v7  ;;  %v11766_v0 = vld [vmem:[#allocation148_spill] sm:$0xff]  ;;  %v11768_v7 = vld [vmem:[#allocation150_spill] sm:$0xff] }
 0x5f4   :  { %3140 = vmatpush.msrb.mxu3 %v11705_v10  ;;  %3045 = vmatpush.msra.mxu2 %v11707_v37  ;;  %v11767_v10 = vld [vmem:[#allocation149_spill] sm:$0xff]  ;;  %v11769_v37 = vld [vmem:[#allocation151_spill] sm:$0xff] }
 0x5f5   :  { %3101 = vmatpush.msrb.mxu1 %v11708_v1  ;;  %3006 = vmatpush.msra.mxu0 %v11710_v51  ;;  %v11770_v51 = vld [vmem:[#allocation40_spill] sm:$0xff] }
 0x5f6   :  { %3141 = vmatpush.msrb.mxu3 %v11709_v20  ;;  %3046 = vmatpush.msra.mxu2 %v11711_v9 }
 0x5f7   :  { %3102 = vmatpush.msrb.mxu1 %v11712_v35  ;;  %3007 = vmatpush.msra.mxu0 %v11714_v44 }
 0x5f8   :  { %3142 = vmatpush.msrb.mxu3 %v11713_v34  ;;  %3047 = vmatpush.msra.mxu2 %v11715_v28 }
 0x5f9   :  { %3103 = vmatpush.msrb.mxu1 %v11716_v5  ;;  %3008 = vmatpush.msra.mxu0 %v11718_v43 }
 0x5fa   :  { %3143 = vmatpush.msrb.mxu3 %v11717_v4  ;;  %3048 = vmatpush.msra.mxu2 %v11719_v24  ;;  %v11771_v4 = vld [vmem:[#allocation42_spill] sm:$0xff] }
 0x5fb   :  { %3104 = vmatpush.msrb.mxu1 %v11720_v6  ;;  %3009 = vmatpush.msra.mxu0 %v11722_v38  ;;  %v3290_v6 = vld [vmem:[%s10107_s0 + $0xe8] sm:$0xff] }
 0x5fc   :  { %3144 = vmatpush.msrb.mxu3 %v11721_v14  ;;  %3049 = vmatpush.msra.mxu2 %v11723_v23 }
 0x5fd   :  { %3105 = vmatpush.msrb.mxu1 %v11724_v60  ;;  %3010 = vmatpush.msra.mxu0 %v11726_v22 }
 0x5fe   :  { %3145 = vmatpush.msrb.mxu3 %v11725_v16  ;;  %3050 = vmatpush.msra.mxu2 %v11727_v36 }
 0x5ff   :  { %3106 = vmatpush.msrb.mxu1 %v11728_v46  ;;  %3075 = vmatpush.msrb.mxu0 %v11730_v61 }
 0x600   :  { %3146 = vmatpush.msrb.mxu3 %v11729_v19  ;;  %3115 = vmatpush.msrb.mxu2 %v11731_v59  ;;  %v11772_v19 = vld [vmem:[#allocation43_spill] sm:$0xff] }
 0x601   :  { %3107 = vmatpush.msrb.mxu1 %v11732_v21  ;;  %3076 = vmatpush.msrb.mxu0 %v11734_v26 }
 0x602   :  { %3147 = vmatpush.msrb.mxu3 %v11733_v58  ;;  %3116 = vmatpush.msrb.mxu2 %v11735_v18  ;;  %v3292_v18 = vld [vmem:[%s10107_s0 + $0xf8] sm:$0xff] }
 0x603   :  { %3108 = vmatpush.msrb.mxu1 %v11736_v29  ;;  %3077 = vmatpush.msrb.mxu0 %v11738_v30 }
 0x604   :  { %3148 = vmatpush.msrb.mxu3 %v11737_v49  ;;  %3117 = vmatpush.msrb.mxu2 %v11739_v12  ;;  %v11773_v12 = vld [vmem:[#allocation45_spill] sm:$0xff] }
 0x605   :  { %3109 = vmatpush.msrb.mxu1 %v11740_v15  ;;  %3078 = vmatpush.msrb.mxu0 %v11742_v41 }
 0x606   :  { %3149 = vmatpush.msrb.mxu3 %v11741_v42  ;;  %3118 = vmatpush.msrb.mxu2 %v11743_v57 }
 0x607   :  { %3110 = vmatpush.msrb.mxu1 %v11744_v17  ;;  %3079 = vmatpush.msrb.mxu0 %v11746_v63 }
 0x608   :  { %3150 = vmatpush.msrb.mxu3 %v11745_v52  ;;  %3119 = vmatpush.msrb.mxu2 %v11747_v56 }
 0x609   :  { %3080 = vmatpush.msrb.mxu0 %v11748_v45 }
 0x60a   :  { %3120 = vmatpush.msrb.mxu2 %v11749_v27 }
 0x60b   :  { %3081 = vmatpush.msrb.mxu0 %v11750_v3 }
 0x60c   :  { %3121 = vmatpush.msrb.mxu2 %v11751_v33 }
 0x60d   :  { %3082 = vmatpush.msrb.mxu0 %v11752_v31 }
 0x60e   :  { %3122 = vmatpush.msrb.mxu2 %v11753_v11 }
 0x60f   :  { %3083 = vmatpush.msrb.mxu0 %v11754_v47 }
 0x610   :  { %3123 = vmatpush.msrb.mxu2 %v11755_v48 }
 0x611   :  { %3084 = vmatpush.msrb.mxu0 %v11756_v13 }
 0x612   :  { %3124 = vmatpush.msrb.mxu2 %v11757_v39  ;;  %v3289_v39 = vld [vmem:[%s10107_s0 + $0xe0] sm:$0xff] }
 0x613   :  { %3085 = vmatpush.msrb.mxu0 %v11758_v25 }
 0x614   :  { %3125 = vmatpush.msrb.mxu2 %v11759_v8 }
 0x615   :  { %3086 = vmatpush.msrb.mxu0 %v11760_v50 }
 0x616   :  { %3126 = vmatpush.msrb.mxu2 %v11761_v40 }
 0x617   :  { %3087 = vmatpush.msrb.mxu0 %v11762_v32 }
 0x618   :  { %3127 = vmatpush.msrb.mxu2 %v11763_v54 }
 0x619   :  { %3088 = vmatpush.msrb.mxu0 %v11764_v53 }
 0x61a   :  { %3128 = vmatpush.msrb.mxu2 %v11765_v55 }
 0x61b   :  { %3089 = vmatpush.msrb.mxu0 %v11766_v0 }
 0x61c   :  { %3129 = vmatpush.msrb.mxu2 %v11767_v10 }
 0x61d   :  { %3090 = vmatpush.msrb.mxu0 %v11768_v7 }
 0x61e   :  { %3130 = vmatpush.msrb.mxu2 %v11769_v37 }
 0x621   :  { %v2657_v1 = vpop.f32.mrf.mxu1 }
 0x627   :  { %v2697_v35 = vpop.f32.mrf.mxu3 }
 0x629   :  { %v2737_v34 = vpop.f32.mrf.mxu1 }
 0x62f   :  { %v2777_v23 = vpop.f32.mrf.mxu3 }
 0x639   :  { %v2637_v20 = vpop.f32.mrf.mxu0 }
 0x63a   :  { %v2638_v9 = vadd.f32 %v2637_v20, %v11770_v51 }
 0x63c   :  { %v2658_v44 = vadd.f32 %v2657_v1, %v2638_v9 }
 0x63e   :  { %v3286_v28 = vmul.f32 -1.442695, %v2658_v44 }
 0x63f   :  { %v2677_v5 = vpop.f32.mrf.mxu2 }
 0x640   :  { %3508 = vpow2.f32 %v3286_v28  ;;  %v2678_v43 = vadd.f32 %v2677_v5, %v11771_v4 }
 0x642   :  { %v2698_v24 = vadd.f32 %v2697_v35, %v2678_v43  ;;  %v2717_v21 = vpop.f32.mrf.mxu0 }
 0x643   :  { %v2885_v14 = vpop.f32.mrf.mxu1  ;;  %v2718_v15 = vadd.f32 %v2717_v21, %v11773_v12 }
 0x644   :  { %v3287_v38 = vmul.f32 -1.442695, %v2698_v24  ;;  %v2929_v60 = vadd.f32 %v3290_v6, %v2885_v14 }
 0x645   :  { %v2738_v52 = vadd.f32 %v2737_v34, %v2718_v15 }
 0x646   :  { %v3509_v16 = vpop.eup %3508  ;;  %3510 = vpow2.f32 %v3287_v38  ;;  %v3294_v46 = vmul.f32 -1.442695, %v2929_v60 }
 0x647   :  { %v2783_v22 = vadd.f32 1.0, %v3509_v16 }
 0x648   :  { %v2757_v36 = vpop.f32.mrf.mxu2 }
 0x649   :  { %3512 = vrcp.f32 %v2783_v22  ;;  %v2758_v61 = vadd.f32 %v2757_v36, %v11772_v19  ;;  %v2795_v11 = vand.u32 2147483648, %v2783_v22  ;;  %vm2789_vm13 = vweird.f32 %v2783_v22 }
 0x64a   :  { %3514 = vpow2.f32 %v3294_v46  ;;  %v2925_v29 = vpop.f32.mrf.mxu3  ;;  %v2793_v13 = vand.u32 2147483647, %v2783_v22 }
 0x64b   :  { %v2778_v58 = vadd.f32 %v2777_v23, %v2758_v61  ;;  %v2931_v41 = vadd.f32 %v3292_v18, %v2925_v29  ;;  %v2796_v53 = vor.u32 1.1754944e-38, %v2795_v11  ;;  %v3291_v18 = vld [vmem:[%s10107_s0 + $0xf0] sm:$0xff] }
 0x64c   :  { %v3511_v59 = vpop.eup %3510  ;;  %vm2794_vm1 = vcmp.eq.f32.partialorder %v2793_v13, 8.507059e+37 }
 0x64d   :  { %v2802_v26 = vadd.f32 1.0, %v3511_v59  ;;  %v3288_v49 = vmul.f32 -1.442695, %v2778_v58  ;;  %v3295_v56 = vmul.f32 -1.442695, %v2931_v41 }
 0x64f   :  { %v3513_v30 = vpop.eup %3512  ;;  %3516 = vrcp.f32 %v2802_v26  ;;  %v2814_v25 = vand.u32 2147483648, %v2802_v26  ;;  %v2812_v50 = vand.u32 2147483647, %v2802_v26  ;;  %vm2808_vm0 = vweird.f32 %v2802_v26 }
 0x650   :  { %v2785_v42 = vmul.f32 %v3513_v30, %v2783_v22  ;;  %3518 = vpow2.f32 %v3288_v49  ;;  %v3515_v17 = vpop.eup %3514  ;;  %vm2790_vm12 = vweird.f32 %v3513_v30 }
 0x651   :  { %v10060_v31 = vadd.f32 1.0, %v3515_v17  ;;  %3520 = vtanh.f32 %v2738_v52  ;;  %vm10065_vm14 = vmor %vm2789_vm13, %vm2790_vm12  ;;  %v2815_v7 = vor.u32 1.1754944e-38, %v2814_v25  ;;  %vm2813_vm3 = vcmp.eq.f32.partialorder %v2812_v50, 8.507059e+37 }
 0x652   :  { %v2786_v57 = vsub.f32 1.0, %v2785_v42  ;;  %3522 = vpow2.f32 %v3295_v56 }
 0x653   :  { %v2966_v17 = vand.u32 2147483648, %v10060_v31  ;;  %vm2960_vm9 = vweird.f32 %v10060_v31  ;;  %v2964_v56 = vand.u32 2147483647, %v10060_v31 }
 0x654   :  { %v2787_v63 = vmul.f32 %v3513_v30, %v2786_v57 }
 0x655   :  { %v3517_v45 = vpop.eup %3516  ;;  %vm2965_vm13 = vcmp.eq.f32.partialorder %v2964_v56, 8.507059e+37 }
 0x656   :  { %v3519_v27 = vpop.eup %3518  ;;  %v2804_v3 = vmul.f32 %v3517_v45, %v2802_v26  ;;  %v2788_v33 = vadd.f32 %v3513_v30, %v2787_v63  ;;  %vm2809_vm15 = vweird.f32 %v3517_v45 }
 0x657   :  { %v2822_v47 = vadd.f32 1.0, %v3519_v27  ;;  %v3521_v10 = vpop.eup %3520  ;;  %vm2810_vm2 = vmor %vm2808_vm0, %vm2809_vm15 }
 0x658   :  { %v2805_v48 = vsub.f32 1.0, %v2804_v3  ;;  %v2792_v32 = vsel %vm10065_vm14, %v3513_v30, %v2788_v33  ;;  %v3523_v20 = vpop.eup %3522 }
 0x659   :  { %3524 = vrcp.f32 %v2822_v47  ;;  %v2797_v37 = vsel %vm2794_vm1, %v2796_v53, %v2792_v32  ;;  %v10076_v38 = vadd.f32 1.0, %v3523_v20  ;;  %v2834_v60 = vand.u32 2147483648, %v2822_v47 }
 0x65a   :  { %v2806_v40 = vmul.f32 %v3517_v45, %v2805_v48  ;;  %3526 = vrcp.f32 %v10060_v31  ;;  %v2865_v54 = vpop.f32.mrf.mxu0  ;;  %v2839_v5 = vmul.f32 %v3521_v10, %v2797_v37  ;;  %v2832_v22 = vand.u32 2147483647, %v2822_v47 }
 0x65b   :  { %v2928_v55 = vadd.f32 %v3289_v39, %v2865_v54  ;;  %vm2828_vm5 = vweird.f32 %v2822_v47  ;;  %vm2980_vm1 = vweird.f32 %v10076_v38  ;;  %v2984_v10 = vand.u32 2147483647, %v10076_v38 }
 0x65c   :  { %v2807_v0 = vadd.f32 %v3517_v45, %v2806_v40  ;;  %vm2833_vm7 = vcmp.eq.f32.partialorder %v2832_v22, 8.507059e+37 }
 0x65d   :  { %v3293_v1 = vmul.f32 -1.442695, %v2928_v55 }
 0x65e   :  { %v2811_v9 = vsel %vm2810_vm2, %v3517_v45, %v2807_v0  ;;  %v2986_v0 = vand.u32 2147483648, %v10076_v38 }
 0x65f   :  { %v3525_v35 = vpop.eup %3524  ;;  %v2816_v34 = vsel %vm2813_vm3, %v2815_v7, %v2811_v9  ;;  %3528 = vpow2.f32 %v3293_v1  ;;  %vm2985_vm3 = vcmp.eq.f32.partialorder %v2984_v10, 8.507059e+37 }
 0x660   :  { %v3527_v44 = vpop.eup %3526  ;;  %v2838_v28 = vmul.f32 %v2816_v34, %v9789_v62  ;;  %v2824_v43 = vmul.f32 %v3525_v35, %v2822_v47  ;;  %vm2829_vm4 = vweird.f32 %v3525_v35  ;;  %v2835_v62 = vor.u32 1.1754944e-38, %v2834_v60 }
 0x661   :  { %v2956_v14 = vmul.f32 %v3527_v44, %v10060_v31  ;;  %vm2830_vm6 = vmor %vm2828_vm5, %vm2829_vm4  ;;  %v2905_v29 = vpop.f32.mrf.mxu2  ;;  %vm2961_vm8 = vweird.f32 %v3527_v44  ;;  %v2967_v47 = vor.u32 1.1754944e-38, %v2966_v17  ;;  %v2987_v37 = vor.u32 1.1754944e-38, %v2986_v0 }
 0x662   :  { %v10073_v24 = vadd.f32 %v2839_v5, %v2838_v28  ;;  %v2825_v6 = vsub.f32 1.0, %v2824_v43  ;;  %v2930_v42 = vadd.f32 %v3291_v18, %v2905_v29  ;;  %vm10087_vm10 = vmor %vm2960_vm9, %vm2961_vm8 }
 0x663   :  { %v2957_v61 = vsub.f32 1.0, %v2956_v14 }
 0x664   :  { %3530 = vtanh.f32 %v10073_v24  ;;  %v2826_v23 = vmul.f32 %v3525_v35, %v2825_v6 }
 0x665   :  { %v3529_v16 = vpop.eup %3528  ;;  %3532 = vrcp.f32 %v10076_v38  ;;  %v2958_v26 = vmul.f32 %v3527_v44, %v2957_v61 }
 0x666   :  { %v2935_v36 = vadd.f32 1.0, %v3529_v16  ;;  %v2827_v46 = vadd.f32 %v3525_v35, %v2826_v23 }
 0x667   :  { %v2959_v57 = vadd.f32 %v3527_v44, %v2958_v26 }
 0x668   :  { %3534 = vrcp.f32 %v2935_v36  ;;  %v2831_v59 = vsel %vm2830_vm6, %v3525_v35, %v2827_v46  ;;  %v2947_v27 = vand.u32 2147483648, %v2935_v36  ;;  %v2945_v33 = vand.u32 2147483647, %v2935_v36 }
 0x669   :  { %v2836_v58 = vsel %vm2833_vm7, %v2835_v62, %v2831_v59  ;;  %3536 = vtanh.f32 %v2930_v42  ;;  %v2963_v11 = vsel %vm10087_vm10, %v3527_v44, %v2959_v57  ;;  %vm2941_vm12 = vweird.f32 %v2935_v36 }
 0x66a   :  { %v3531_v21 = vpop.eup %3530  ;;  %v2948_v31 = vor.u32 1.1754944e-38, %v2947_v27  ;;  %v2968_v39 = vsel %vm2965_vm13, %v2967_v47, %v2963_v11  ;;  %vm2946_vm15 = vcmp.eq.f32.partialorder %v2945_v33, 8.507059e+37 }
 0x66b   :  { %v2842_v49 = vmul.f32 %v3531_v21, %v2836_v58  ;;  %v3533_v30 = vpop.eup %3532  ;;  %v2990_v32 = vmul.f32 %v2968_v39, %v9833_v2 }
 0x66c   :  { %v2976_v52 = vmul.f32 %v3533_v30, %v10076_v38  ;;  %vm2981_vm0 = vweird.f32 %v3533_v30 }
 0x66d   :  { %3031 = vmatmul.f32.vlgmr.msra.gmra.mxu1 %v2842_v49  ;;  %3071 = vmatmul.f32.vlgmr.msra.gmra.mxu3 %v2842_v49  ;;  %vm2982_vm2 = vmor %vm2980_vm1, %vm2981_vm0 }
 0x66e   :  { %v3535_v15 = vpop.eup %3534  ;;  %v2977_v48 = vsub.f32 1.0, %v2976_v52 }
 0x66f   :  { %v2937_v41 = vmul.f32 %v3535_v15, %v2935_v36  ;;  %vm2942_vm11 = vweird.f32 %v3535_v15  ;;  %v3537_v8 = vpop.eup %3536 }
 0x670   :  { %vm2943_vm14 = vmor %vm2941_vm12, %vm2942_vm11  ;;  %v2978_v40 = vmul.f32 %v3533_v30, %v2977_v48 }
 0x671   :  { %v2938_v63 = vsub.f32 1.0, %v2937_v41 }
 0x672   :  { %v2979_v55 = vadd.f32 %v3533_v30, %v2978_v40 }
 0x673   :  { %v2939_v3 = vmul.f32 %v3535_v15, %v2938_v63 }
 0x674   :  { %v2983_v7 = vsel %vm2982_vm2, %v3533_v30, %v2979_v55 }
 0x675   :  { %v2940_v13 = vadd.f32 %v3535_v15, %v2939_v3  ;;  %3111 = vmatmul.f32.vlgmr.msrb.gmra.mxu1 %v2842_v49  ;;  %3151 = vmatmul.f32.vlgmr.msrb.gmra.mxu3 %v2842_v49  ;;  %v2988_v20 = vsel %vm2985_vm3, %v2987_v37, %v2983_v7 }
 0x677   :  { %v2944_v25 = vsel %vm2943_vm14, %v3535_v15, %v2940_v13 }
 0x678   :  { %v2949_v50 = vsel %vm2946_vm15, %v2948_v31, %v2944_v25 }
 0x679   :  { %v2991_v54 = vmul.f32 %v3537_v8, %v2949_v50 }
 0x67b   :  { %v2992_v53 = vadd.f32 %v2991_v54, %v2990_v32 }
 0x67d   :  { %3538 = vtanh.f32 %v2992_v53 }
 0x683   :  { %v3539_v1 = vpop.eup %3538 }
 0x684   :  { %v2994_v9 = vmul.f32 %v3539_v1, %v2988_v20 }
 0x686   :  { %3011 = vmatmul.f32.vlgmr.msra.gmra.mxu0 %v2994_v9  ;;  %3051 = vmatmul.f32.vlgmr.msra.gmra.mxu2 %v2994_v9 }
 0x68e   :  { %3091 = vmatmul.f32.vlgmr.msrb.gmra.mxu0 %v2994_v9  ;;  %3131 = vmatmul.f32.vlgmr.msrb.gmra.mxu2 %v2994_v9 }
 0x6ea   :  { %v3032_v34 = vpop.f32.mrf.mxu1 }
 0x6f0   :  { %v3072_v5 = vpop.f32.mrf.mxu3 }
 0x6f2   :  { %v3112_v29 = vpop.f32.mrf.mxu1 }
 0x6f8   :  { %v3152_v36 = vpop.f32.mrf.mxu3 }
 0x703   :  { %v3012_v2 = vpop.f32.mrf.mxu0 }
 0x704   :  { %v3013_v35 = vadd.f32 %v3012_v2, %v11770_v51 }
 0x706   :  { %v3033_v44 = vadd.f32 %v3032_v34, %v3013_v35 }
 0x708   :  { %v3296_v28 = vmul.f32 -1.442695, %v3033_v44 }
 0x709   :  { %v3052_v43 = vpop.f32.mrf.mxu2 }
 0x70a   :  { %3540 = vpow2.f32 %v3296_v28  ;;  %v3053_v6 = vadd.f32 %v3052_v43, %v11771_v4 }
 0x70b   :  { %v3092_v59 = vpop.f32.mrf.mxu0 }
 0x70c   :  { %v3073_v14 = vadd.f32 %v3072_v5, %v3053_v6  ;;  %v3093_v4 = vadd.f32 %v3092_v59, %v11773_v12 }
 0x70e   :  { %v3297_v38 = vmul.f32 -1.442695, %v3073_v14  ;;  %v3113_v15 = vadd.f32 %v3112_v29, %v3093_v4 }
 0x710   :  { %v3541_v23 = vpop.eup %3540  ;;  %3542 = vpow2.f32 %v3297_v38 }
 0x711   :  { %v3158_v60 = vadd.f32 1.0, %v3541_v23  ;;  %v3132_v16 = vpop.f32.mrf.mxu2 }
 0x712   :  { %v3133_v22 = vadd.f32 %v3132_v16, %v11772_v19 }
 0x713   :  { %3544 = vrcp.f32 %v3158_v60  ;;  %v3170_v57 = vand.u32 2147483648, %v3158_v60  ;;  %vm3164_vm5 = vweird.f32 %v3158_v60  ;;  %v3168_v52 = vand.u32 2147483647, %v3158_v60 }
 0x714   :  { %v3153_v46 = vadd.f32 %v3152_v36, %v3133_v22 }
 0x715   :  { %v3171_v27 = vor.u32 1.1754944e-38, %v3170_v57  ;;  %vm3169_vm9 = vcmp.eq.f32.partialorder %v3168_v52, 8.507059e+37 }
 0x716   :  { %v3543_v51 = vpop.eup %3542  ;;  %v3298_v61 = vmul.f32 -1.442695, %v3153_v46 }
 0x717   :  { %v3177_v62 = vadd.f32 1.0, %v3543_v51 }
 0x718   :  { %3546 = vpow2.f32 %v3298_v61 }
 0x719   :  { %v3545_v21 = vpop.eup %3544  ;;  %3548 = vrcp.f32 %v3177_v62  ;;  %v3189_v63 = vand.u32 2147483648, %v3177_v62  ;;  %v3187_v45 = vand.u32 2147483647, %v3177_v62  ;;  %vm3183_vm8 = vweird.f32 %v3177_v62 }
 0x71a   :  { %v3160_v58 = vmul.f32 %v3545_v21, %v3158_v60  ;;  %vm3165_vm4 = vweird.f32 %v3545_v21 }
 0x71b   :  { %vm3166_vm6 = vmor %vm3164_vm5, %vm3165_vm4  ;;  %v3190_v11 = vor.u32 1.1754944e-38, %v3189_v63  ;;  %vm3188_vm11 = vcmp.eq.f32.partialorder %v3187_v45, 8.507059e+37 }
 0x71c   :  { %v3161_v26 = vsub.f32 1.0, %v3160_v58 }
 0x71e   :  { %v3547_v18 = vpop.eup %3546  ;;  %v3162_v49 = vmul.f32 %v3545_v21, %v3161_v26 }
 0x71f   :  { %v3549_v30 = vpop.eup %3548  ;;  %v3197_v19 = vadd.f32 1.0, %v3547_v18 }
 0x720   :  { %v3179_v42 = vmul.f32 %v3549_v30, %v3177_v62  ;;  %v3163_v41 = vadd.f32 %v3545_v21, %v3162_v49  ;;  %vm3184_vm7 = vweird.f32 %v3549_v30 }
 0x721   :  { %3550 = vrcp.f32 %v3197_v19  ;;  %vm3185_vm10 = vmor %vm3183_vm8, %vm3184_vm7  ;;  %v3209_v53 = vand.u32 2147483648, %v3197_v19  ;;  %vm3203_vm13 = vweird.f32 %v3197_v19  ;;  %v3207_v55 = vand.u32 2147483647, %v3197_v19 }
 0x722   :  { %v3180_v17 = vsub.f32 1.0, %v3179_v42  ;;  %3552 = vtanh.f32 %v3113_v15  ;;  %v3167_v12 = vsel %vm3166_vm6, %v3545_v21, %v3163_v41 }
 0x723   :  { %v3172_v47 = vsel %vm3169_vm9, %v3171_v27, %v3167_v12  ;;  %v3210_v10 = vor.u32 1.1754944e-38, %v3209_v53  ;;  %vm3208_vm15 = vcmp.eq.f32.partialorder %v3207_v55, 8.507059e+37 }
 0x724   :  { %v3181_v56 = vmul.f32 %v3549_v30, %v3180_v17 }
 0x726   :  { %v3182_v3 = vadd.f32 %v3549_v30, %v3181_v56 }
 0x727   :  { %v3551_v33 = vpop.eup %3550 }
 0x728   :  { %v3186_v48 = vsel %vm3185_vm10, %v3549_v30, %v3182_v3  ;;  %v3199_v13 = vmul.f32 %v3551_v33, %v3197_v19  ;;  %v3553_v31 = vpop.eup %3552  ;;  %vm3204_vm12 = vweird.f32 %v3551_v33 }
 0x729   :  { %v3191_v39 = vsel %vm3188_vm11, %v3190_v11, %v3186_v48  ;;  %v3214_v8 = vmul.f32 %v3553_v31, %v3172_v47  ;;  %vm3205_vm14 = vmor %vm3203_vm13, %vm3204_vm12 }
 0x72a   :  { %v3213_v25 = vmul.f32 %v3191_v39, %v10073_v24  ;;  %v3200_v50 = vsub.f32 1.0, %v3199_v13 }
 0x72c   :  { %v3215_v40 = vadd.f32 %v3214_v8, %v3213_v25  ;;  %v3201_v32 = vmul.f32 %v3551_v33, %v3200_v50 }
 0x72e   :  { %3554 = vtanh.f32 %v3215_v40  ;;  %v3202_v54 = vadd.f32 %v3551_v33, %v3201_v32 }
 0x730   :  { %v3206_v0 = vsel %vm3205_vm14, %v3551_v33, %v3202_v54 }
 0x731   :  { %v3211_v37 = vsel %vm3208_vm15, %v3210_v10, %v3206_v0 }
 0x734   :  { %v3555_v7 = vpop.eup %3554 }
 0x735   :  { %v3217_v1 = vmul.f32 %v3555_v7, %v3211_v37 }
 0x737   :  { %3218 = vst [vmem:[%s10109_s4] sm:$0xff] %v3217_v1 }

</bundles_post_ra>
